<compile_context>
chip_gen: v5e
topology: v5e:2x2
jax: 0.10.0
libtpu: 0.0.40
codegen_flags: <defaults>
</compile_context>

<pallas_src>
import functools

import jax
import jax.numpy as jnp
from jax.experimental import pallas as pl
from jax.experimental.pallas import tpu as pltpu

EPS = 1e-5
NEG_SLOPE = 0.2
VMEM_LIMIT = 32 * 1024 * 1024

_CPARAMS = pltpu.CompilerParams(vmem_limit_bytes=VMEM_LIMIT)


# ----------------------------------------------------------------------------
# In-kernel helpers
# ----------------------------------------------------------------------------
def _valid_col_mask(rows, period, width, nblocks):
    """[rows, 1] bool mask: True where (row % period) < width.

    Built from a sublane iota plus static-constant compares / logical ops only
    (no vector integer div/mod), so it lowers on every TPU generation.
    `nblocks` = rows // period (static).
    """
    r = jax.lax.broadcasted_iota(jnp.int32, (rows, 1), 0)
    mask = None
    for b in range(nblocks):
        start = b * period
        blk = jnp.logical_and(r >= start, r < start + width)
        mask = blk if mask is None else jnp.logical_or(mask, blk)
    return mask


# ----------------------------------------------------------------------------
# Kernels (whole batch per invocation, no grid)
# ----------------------------------------------------------------------------
def _conv_bn_lrelu_kernel(planes_ref, w_ref, out_ref, *, N, M, P, Wo,
                          inv_count, eps, slope):
    """Conv2d(k=4,s=2,p=1) + BatchNorm2d(batch stats) + LeakyReLU(0.2).

    planes_ref : [N, S, 4*Cin]   bf16  parity-packed padded input planes
    w_ref      : [4, 4*Cin, Cout] bf16 per-shift (di,dj) folded weights
    out_ref    : [N, M, Cout]    bf16  normalized + activated output
                                       (pad columns included, dropped in glue)
    """
    # --- conv: 4 shift-dots with K = 4*Cin, accumulated in registers -------
    accs = []
    for n in range(N):
        acc = None
        for di in (0, 1):
            for dj in (0, 1):
                xs = planes_ref[n, pl.ds(di * P + dj, M), :]      # [M, 4Cin]
                d = jnp.dot(xs, w_ref[2 * di + dj],
                            preferred_element_type=jnp.float32)   # [M, Cout]
                acc = d if acc is None else acc + d
        accs.append(acc)

    # --- BatchNorm statistics over valid columns of the whole batch --------
    mask = _valid_col_mask(M, P, Wo, M // P)
    s1 = jnp.zeros_like(accs[0][0:1, :])
    s2 = jnp.zeros_like(s1)
    for acc in accs:
        av = jnp.where(mask, acc, 0.0)
        s1 = s1 + jnp.sum(av, axis=0, keepdims=True)
        s2 = s2 + jnp.sum(av * av, axis=0, keepdims=True)
    mean = s1 * inv_count
    inv = jax.lax.rsqrt(s2 * inv_count - mean * mean + eps)

    # --- normalize + LeakyReLU, then the only store of this layer ----------
    for n in range(N):
        y = (accs[n] - mean) * inv
        y = jnp.where(y >= 0.0, y, slope * y)
        out_ref[n, :, :] = y.astype(out_ref.dtype)


def _convT_bn_relu_kernel(xpk_ref, w_ref, out_ref, *, N, M, P, W,
                          inv_count, eps):
    """ConvTranspose2d(k=4,s=2,p=1) + BatchNorm2d + ReLU via the sub-pixel
    decomposition: 4 independent 2x2 convs, one K = 4*Cin dot each.

    xpk_ref : [N, Spk, 4*Cin]    bf16  2x2-neighborhood-packed padded input
    w_ref   : [4, 4*Cin, Cout]   bf16  per-subpixel folded weights
    out_ref : [N, 4, M, Cout]    bf16  per-subpixel output planes
    """
    accs = []                                   # accs[u][n] : [M, Cout] f32
    for r in (0, 1):
        for s in (0, 1):
            base = r * P + s
            per_n = []
            for n in range(N):
                xs = xpk_ref[n, pl.ds(base, M), :]                # [M, 4Cin]
                per_n.append(jnp.dot(xs, w_ref[2 * r + s],
                                     preferred_element_type=jnp.float32))
            accs.append(per_n)

    mask = _valid_col_mask(M, P, W, M // P)
    s1 = jnp.zeros_like(accs[0][0][0:1, :])
    s2 = jnp.zeros_like(s1)
    for per_n in accs:
        for acc in per_n:
            av = jnp.where(mask, acc, 0.0)
            s1 = s1 + jnp.sum(av, axis=0, keepdims=True)
            s2 = s2 + jnp.sum(av * av, axis=0, keepdims=True)
    mean = s1 * inv_count
    inv = jax.lax.rsqrt(s2 * inv_count - mean * mean + eps)

    for u in range(4):
        for n in range(N):
            y = jnp.maximum((accs[u][n] - mean) * inv, 0.0)
            out_ref[n, u, :, :] = y.astype(out_ref.dtype)


def _convT_tanh_kernel(xpk_ref, w_ref, b_ref, out_ref, *, N, M, P):
    """Final ConvTranspose2d(k=4,s=2,p=1) + bias + tanh (no BN)."""
    bias = b_ref[...]                                             # [1, Cout]
    for r in (0, 1):
        for s in (0, 1):
            base = r * P + s
            for n in range(N):
                xs = xpk_ref[n, pl.ds(base, M), :]
                acc = jnp.dot(xs, w_ref[2 * r + s],
                              preferred_element_type=jnp.float32)
                y = jnp.tanh(acc + bias)
                out_ref[n, 2 * r + s, :, :] = y.astype(out_ref.dtype)


# ----------------------------------------------------------------------------
# Layer wrappers (glue is cheap XLA: pad / strided-slice / reshape only)
# ----------------------------------------------------------------------------
def conv_down_bn_lrelu(x, w):
    """Conv2d(k=4,s=2,p=1) + BN + LeakyReLU(0.2).  x: [N,H,W,Cin] bf16."""
    N, H, W, Cin = x.shape
    Cout = w.shape[0]
    Ho, Wo = H // 2, W // 2
    P = Wo + 2                  # flattened-row pitch (2 pad columns per row)
    M = Ho * P                  # flattened output rows per batch element
    S = M + P + 2               # parity-plane flat length (covers max shift)

    xp = jnp.pad(x, ((0, 0), (1, 1), (1, 1), (0, 0)))             # [N,H+2,W+2,Cin]
    planes = []
    for p in range(2):
        for q in range(2):
            pp = xp[:, p::2, q::2, :]                             # [N,Ho+1,Wo+1,Cin]
            pp = jnp.pad(pp, ((0, 0), (0, 0), (0, 1), (0, 0)))    # width -> P
            planes.append(pp.reshape(N, (Ho + 1) * P, Cin))
    # Pack the 4 parity planes along lanes: lane index = (2p+q)*Cin + c.
    planes = jnp.stack(planes, axis=2).reshape(N, (Ho + 1) * P, 4 * Cin)
    planes = jnp.pad(planes, ((0, 0), (0, S - (Ho + 1) * P), (0, 0)))
    planes = planes.astype(jnp.bfloat16)

    # Per-shift (di,dj) weights, rows ordered (2p+q)*Cin + c to match planes.
    wt = jnp.transpose(w, (2, 3, 1, 0))                           # [kh,kw,Cin,Cout]
    wk = jnp.stack(
        [jnp.concatenate([wt[2 * di + p, 2 * dj + q]
                          for p in (0, 1) for q in (0, 1)], axis=0)
         for di in (0, 1) for dj in (0, 1)],
        axis=0).astype(jnp.bfloat16)                              # [4,4Cin,Cout]

    kern = functools.partial(_conv_bn_lrelu_kernel, N=N, M=M, P=P, Wo=Wo,
                             inv_count=1.0 / float(N * Ho * Wo),
                             eps=EPS, slope=NEG_SLOPE)
    out = pl.pallas_call(
        kern,
        out_shape=jax.ShapeDtypeStruct((N, M, Cout), jnp.bfloat16),
        compiler_params=_CPARAMS,
    )(planes, wk)
    return out.reshape(N, Ho, P, Cout)[:, :, :Wo, :]              # drop pad cols


def _convT_prep(x, w):
    """Common prep for ConvTranspose2d(k=4,s=2,p=1) sub-pixel lowering."""
    N, H, W, Cin = x.shape
    Cout = w.shape[1]
    P = W + 2
    M = H * P
    Spk = M + P + 2                 # packed rows: max subpixel base P+1, len M

    xp = jnp.pad(x, ((0, 0), (1, 1), (1, 1), (0, 0)))             # [N,H+2,P,Cin]
    xf = xp.reshape(N, (H + 2) * P, Cin)
    need = Spk + P + 1              # max row read while packing, +1
    xf = jnp.pad(xf, ((0, 0), (0, need - (H + 2) * P), (0, 0)))
    # Pack the 2x2 tap neighborhood along lanes: lane index = (2a+b)*Cin + c.
    xpk = jnp.concatenate([xf[:, a * P + b: a * P + b + Spk, :]
                           for a in (0, 1) for b in (0, 1)],
                          axis=-1).astype(jnp.bfloat16)           # [N,Spk,4Cin]

    # Sub-pixel (r,s), tap (a,b) -> ConvT weight tap (kh,kw) = (3-r-2a, 3-s-2b)
    wk = jnp.stack(
        [jnp.concatenate([w[:, :, 3 - r - 2 * a, 3 - s - 2 * b]
                          for a in (0, 1) for b in (0, 1)], axis=0)
         for r in (0, 1) for s in (0, 1)],
        axis=0).astype(jnp.bfloat16)                              # [4,4Cin,Cout]
    return xpk, wk, (N, H, W, Cin, Cout, P, M, Spk)


def _pixel_shuffle(y, W):
    """[N, r, s, H, P(=W+2), C] sub-pixel planes -> interleaved [N, 2H, 2W, C]."""
    N, _, _, H, _, C = y.shape
    y = y[:, :, :, :, :W, :]
    y = jnp.transpose(y, (0, 3, 1, 4, 2, 5))                      # [N,H,r,W,s,C]
    return y.reshape(N, 2 * H, 2 * W, C)


def convT_up_bn_relu(x, w):
    """ConvTranspose2d(k=4,s=2,p=1) + BN + ReLU.  x: [N,H,W,Cin] bf16."""
    xpk, wk, (N, H, W, Cin, Cout, P, M, Spk) = _convT_prep(x, w)
    kern = functools.partial(_convT_bn_relu_kernel, N=N, M=M, P=P, W=W,
                             inv_count=1.0 / float(N * 4 * H * W), eps=EPS)
    out = pl.pallas_call(
        kern,
        out_shape=jax.ShapeDtypeStruct((N, 4, M, Cout), jnp.bfloat16),
        compiler_params=_CPARAMS,
    )(xpk, wk)
    return _pixel_shuffle(out.reshape(N, 2, 2, H, P, Cout), W)


def convT_up_tanh(x, w, b):
    """Final ConvTranspose2d(k=4,s=2,p=1) + bias + Tanh (no BN)."""
    xpk, wk, (N, H, W, Cin, Cout, P, M, Spk) = _convT_prep(x, w)
    kern = functools.partial(_convT_tanh_kernel, N=N, M=M, P=P)
    out = pl.pallas_call(
        kern,
        out_shape=jax.ShapeDtypeStruct((N, 4, M, Cout), jnp.bfloat16),
        compiler_params=_CPARAMS,
    )(xpk, wk, b.reshape(1, Cout).astype(jnp.float32))
    return _pixel_shuffle(out.reshape(N, 2, 2, H, P, Cout), W)


# ----------------------------------------------------------------------------
# Generator: parameters + forward
# ----------------------------------------------------------------------------
def init_generator_params(key, nc, ngf):
    ks = jax.random.split(key, 12)
    s = 0.05
    p = {}
    # Encoder convs: weight (Cout, Cin, 4, 4)
    p["w1"] = s * jax.random.normal(ks[0], (ngf, nc, 4, 4), jnp.float32)
    p["b1"] = s * jax.random.normal(ks[1], (ngf,), jnp.float32)
    p["w2"] = s * jax.random.normal(ks[2], (ngf * 2, ngf, 4, 4), jnp.float32)
    p["b2"] = s * jax.random.normal(ks[3], (ngf * 2,), jnp.float32)
    p["w3"] = s * jax.random.normal(ks[4], (ngf * 4, ngf * 2, 4, 4), jnp.float32)
    p["b3"] = s * jax.random.normal(ks[5], (ngf * 4,), jnp.float32)
    # Decoder transposed convs: weight (Cin, Cout, 4, 4)
    p["w4"] = s * jax.random.normal(ks[6], (ngf * 4, ngf * 2, 4, 4), jnp.float32)
    p["b4"] = s * jax.random.normal(ks[7], (ngf * 2,), jnp.float32)
    p["w5"] = s * jax.random.normal(ks[8], (ngf * 2, ngf, 4, 4), jnp.float32)
    p["b5"] = s * jax.random.normal(ks[9], (ngf,), jnp.float32)
    p["w6"] = s * jax.random.normal(ks[10], (ngf, nc, 4, 4), jnp.float32)
    p["b6"] = s * jax.random.normal(ks[11], (nc,), jnp.float32)
    # Note: b1..b5 are kept for module parity but are provably no-ops: each is
    # followed by BatchNorm2d (gamma=1, beta=0, batch stats), whose mean
    # subtraction cancels the bias exactly, so they are not fed to the kernels.
    return p


def generator_forward(params, x_nchw):
    # NCHW f32 (PyTorch convention) -> NHWC bf16 once at the boundary.
    x = jnp.transpose(x_nchw, (0, 2, 3, 1)).astype(jnp.bfloat16)
    # layer1..3: Conv2d + BN + LeakyReLU(0.2)   (biases cancelled by BN)
    out = conv_down_bn_lrelu(x, params["w1"])
    out = conv_down_bn_lrelu(out, params["w2"])
    out = conv_down_bn_lrelu(out, params["w3"])
    # layer4..5: ConvTranspose2d + BN + ReLU    (biases cancelled by BN)
    out = convT_up_bn_relu(out, params["w4"])
    out = convT_up_bn_relu(out, params["w5"])
    # layer6: ConvTranspose2d + bias + Tanh
    out = convT_up_tanh(out, params["w6"], params["b6"])
    # NHWC -> NCHW f32 at the boundary.
    return jnp.transpose(out, (0, 3, 1, 2)).astype(jnp.float32)


if __name__ == "__main__":
    nc = 1
    ngf = 8
    N, H, W = 2, 16, 16

    key = jax.random.PRNGKey(0)
    k_in, k_par = jax.random.split(key)
    x = jax.random.normal(k_in, (N, nc, H, W), jnp.float32)   # NCHW, like PyTorch
    params = init_generator_params(k_par, nc, ngf)

    fwd = jax.jit(generator_forward)
    y = fwd(params, x)
    jax.block_until_ready(y)

    assert y.shape == (N, nc, H, W), y.shape
    assert y.dtype == jnp.float32
    assert bool(jnp.all(jnp.isfinite(y)))
    print("KERNEL_OK")
</pallas_src>

<mosaic_0001>
module attributes {stable_mosaic.version = 11 : i64} {
  func.func @_conv_bn_lrelu_kernel(%arg0: memref<2x92x4xbf16, #tpu.memory_space<vmem>>, %arg1: memref<4x4x8xbf16, #tpu.memory_space<vmem>>, %arg2: memref<2x80x8xbf16, #tpu.memory_space<vmem>>) attributes {dimension_semantics = [], scalar_prefetch = 0 : i64, scratch_operands = 0 : i64, tpu.core_type = #tpu.core_type<tc>} {
    %c0 = arith.constant 0 : index
    %c0_0 = arith.constant 0 : index
    %c0_1 = arith.constant 0 : index
    %0 = vector.load %arg0[%c0, %c0_0, %c0_1] : memref<2x92x4xbf16, #tpu.memory_space<vmem>>, vector<1x80x4xbf16>
    %1 = vector.shape_cast %0 : vector<1x80x4xbf16> to vector<80x4xbf16>
    %c0_2 = arith.constant 0 : index
    %c0_3 = arith.constant 0 : index
    %c0_4 = arith.constant 0 : index
    %2 = vector.load %arg1[%c0_2, %c0_3, %c0_4] : memref<4x4x8xbf16, #tpu.memory_space<vmem>>, vector<1x4x8xbf16>
    %3 = vector.shape_cast %2 : vector<1x4x8xbf16> to vector<4x8xbf16>
    %cst = arith.constant dense<0.000000e+00> : vector<80x8xf32>
    %4 = tpu.matmul %1, %3, %cst {dimension_numbers = #tpu.dot_dimension_numbers<[1], [0], [0], [1], [0, 0, 1, 1], [], []>} : vector<80x4xbf16>, vector<4x8xbf16>, vector<80x8xf32> -> vector<80x8xf32>
    %c0_5 = arith.constant 0 : index
    %c1 = arith.constant 1 : index
    %c0_6 = arith.constant 0 : index
    %5 = vector.load %arg0[%c0_5, %c1, %c0_6] : memref<2x92x4xbf16, #tpu.memory_space<vmem>>, vector<1x80x4xbf16>
    %6 = vector.shape_cast %5 : vector<1x80x4xbf16> to vector<80x4xbf16>
    %c1_7 = arith.constant 1 : index
    %c0_8 = arith.constant 0 : index
    %c0_9 = arith.constant 0 : index
    %7 = vector.load %arg1[%c1_7, %c0_8, %c0_9] : memref<4x4x8xbf16, #tpu.memory_space<vmem>>, vector<1x4x8xbf16>
    %8 = vector.shape_cast %7 : vector<1x4x8xbf16> to vector<4x8xbf16>
    %cst_10 = arith.constant dense<0.000000e+00> : vector<80x8xf32>
    %9 = tpu.matmul %6, %8, %cst_10 {dimension_numbers = #tpu.dot_dimension_numbers<[1], [0], [0], [1], [0, 0, 1, 1], [], []>} : vector<80x4xbf16>, vector<4x8xbf16>, vector<80x8xf32> -> vector<80x8xf32>
    %10 = arith.addf %4, %9 : vector<80x8xf32>
    %c0_11 = arith.constant 0 : index
    %c10 = arith.constant 10 : index
    %c0_12 = arith.constant 0 : index
    %11 = vector.load %arg0[%c0_11, %c10, %c0_12] : memref<2x92x4xbf16, #tpu.memory_space<vmem>>, vector<1x80x4xbf16>
    %12 = vector.shape_cast %11 : vector<1x80x4xbf16> to vector<80x4xbf16>
    %c2 = arith.constant 2 : index
    %c0_13 = arith.constant 0 : index
    %c0_14 = arith.constant 0 : index
    %13 = vector.load %arg1[%c2, %c0_13, %c0_14] : memref<4x4x8xbf16, #tpu.memory_space<vmem>>, vector<1x4x8xbf16>
    %14 = vector.shape_cast %13 : vector<1x4x8xbf16> to vector<4x8xbf16>
    %cst_15 = arith.constant dense<0.000000e+00> : vector<80x8xf32>
    %15 = tpu.matmul %12, %14, %cst_15 {dimension_numbers = #tpu.dot_dimension_numbers<[1], [0], [0], [1], [0, 0, 1, 1], [], []>} : vector<80x4xbf16>, vector<4x8xbf16>, vector<80x8xf32> -> vector<80x8xf32>
    %16 = arith.addf %10, %15 : vector<80x8xf32>
    %c0_16 = arith.constant 0 : index
    %c11 = arith.constant 11 : index
    %c0_17 = arith.constant 0 : index
    %17 = vector.load %arg0[%c0_16, %c11, %c0_17] : memref<2x92x4xbf16, #tpu.memory_space<vmem>>, vector<1x80x4xbf16>
    %18 = vector.shape_cast %17 : vector<1x80x4xbf16> to vector<80x4xbf16>
    %c3 = arith.constant 3 : index
    %c0_18 = arith.constant 0 : index
    %c0_19 = arith.constant 0 : index
    %19 = vector.load %arg1[%c3, %c0_18, %c0_19] : memref<4x4x8xbf16, #tpu.memory_space<vmem>>, vector<1x4x8xbf16>
    %20 = vector.shape_cast %19 : vector<1x4x8xbf16> to vector<4x8xbf16>
    %cst_20 = arith.constant dense<0.000000e+00> : vector<80x8xf32>
    %21 = tpu.matmul %18, %20, %cst_20 {dimension_numbers = #tpu.dot_dimension_numbers<[1], [0], [0], [1], [0, 0, 1, 1], [], []>} : vector<80x4xbf16>, vector<4x8xbf16>, vector<80x8xf32> -> vector<80x8xf32>
    %22 = arith.addf %16, %21 : vector<80x8xf32>
    %c1_21 = arith.constant 1 : index
    %c0_22 = arith.constant 0 : index
    %c0_23 = arith.constant 0 : index
    %23 = vector.load %arg0[%c1_21, %c0_22, %c0_23] : memref<2x92x4xbf16, #tpu.memory_space<vmem>>, vector<1x80x4xbf16>
    %24 = vector.shape_cast %23 : vector<1x80x4xbf16> to vector<80x4xbf16>
    %c0_24 = arith.constant 0 : index
    %c0_25 = arith.constant 0 : index
    %c0_26 = arith.constant 0 : index
    %25 = vector.load %arg1[%c0_24, %c0_25, %c0_26] : memref<4x4x8xbf16, #tpu.memory_space<vmem>>, vector<1x4x8xbf16>
    %26 = vector.shape_cast %25 : vector<1x4x8xbf16> to vector<4x8xbf16>
    %cst_27 = arith.constant dense<0.000000e+00> : vector<80x8xf32>
    %27 = tpu.matmul %24, %26, %cst_27 {dimension_numbers = #tpu.dot_dimension_numbers<[1], [0], [0], [1], [0, 0, 1, 1], [], []>} : vector<80x4xbf16>, vector<4x8xbf16>, vector<80x8xf32> -> vector<80x8xf32>
    %c1_28 = arith.constant 1 : index
    %c1_29 = arith.constant 1 : index
    %c0_30 = arith.constant 0 : index
    %28 = vector.load %arg0[%c1_28, %c1_29, %c0_30] : memref<2x92x4xbf16, #tpu.memory_space<vmem>>, vector<1x80x4xbf16>
    %29 = vector.shape_cast %28 : vector<1x80x4xbf16> to vector<80x4xbf16>
    %c1_31 = arith.constant 1 : index
    %c0_32 = arith.constant 0 : index
    %c0_33 = arith.constant 0 : index
    %30 = vector.load %arg1[%c1_31, %c0_32, %c0_33] : memref<4x4x8xbf16, #tpu.memory_space<vmem>>, vector<1x4x8xbf16>
    %31 = vector.shape_cast %30 : vector<1x4x8xbf16> to vector<4x8xbf16>
    %cst_34 = arith.constant dense<0.000000e+00> : vector<80x8xf32>
    %32 = tpu.matmul %29, %31, %cst_34 {dimension_numbers = #tpu.dot_dimension_numbers<[1], [0], [0], [1], [0, 0, 1, 1], [], []>} : vector<80x4xbf16>, vector<4x8xbf16>, vector<80x8xf32> -> vector<80x8xf32>
    %33 = arith.addf %27, %32 : vector<80x8xf32>
    %c1_35 = arith.constant 1 : index
    %c10_36 = arith.constant 10 : index
    %c0_37 = arith.constant 0 : index
    %34 = vector.load %arg0[%c1_35, %c10_36, %c0_37] : memref<2x92x4xbf16, #tpu.memory_space<vmem>>, vector<1x80x4xbf16>
    %35 = vector.shape_cast %34 : vector<1x80x4xbf16> to vector<80x4xbf16>
    %c2_38 = arith.constant 2 : index
    %c0_39 = arith.constant 0 : index
    %c0_40 = arith.constant 0 : index
    %36 = vector.load %arg1[%c2_38, %c0_39, %c0_40] : memref<4x4x8xbf16, #tpu.memory_space<vmem>>, vector<1x4x8xbf16>
    %37 = vector.shape_cast %36 : vector<1x4x8xbf16> to vector<4x8xbf16>
    %cst_41 = arith.constant dense<0.000000e+00> : vector<80x8xf32>
    %38 = tpu.matmul %35, %37, %cst_41 {dimension_numbers = #tpu.dot_dimension_numbers<[1], [0], [0], [1], [0, 0, 1, 1], [], []>} : vector<80x4xbf16>, vector<4x8xbf16>, vector<80x8xf32> -> vector<80x8xf32>
    %39 = arith.addf %33, %38 : vector<80x8xf32>
    %c1_42 = arith.constant 1 : index
    %c11_43 = arith.constant 11 : index
    %c0_44 = arith.constant 0 : index
    %40 = vector.load %arg0[%c1_42, %c11_43, %c0_44] : memref<2x92x4xbf16, #tpu.memory_space<vmem>>, vector<1x80x4xbf16>
    %41 = vector.shape_cast %40 : vector<1x80x4xbf16> to vector<80x4xbf16>
    %c3_45 = arith.constant 3 : index
    %c0_46 = arith.constant 0 : index
    %c0_47 = arith.constant 0 : index
    %42 = vector.load %arg1[%c3_45, %c0_46, %c0_47] : memref<4x4x8xbf16, #tpu.memory_space<vmem>>, vector<1x4x8xbf16>
    %43 = vector.shape_cast %42 : vector<1x4x8xbf16> to vector<4x8xbf16>
    %cst_48 = arith.constant dense<0.000000e+00> : vector<80x8xf32>
    %44 = tpu.matmul %41, %43, %cst_48 {dimension_numbers = #tpu.dot_dimension_numbers<[1], [0], [0], [1], [0, 0, 1, 1], [], []>} : vector<80x4xbf16>, vector<4x8xbf16>, vector<80x8xf32> -> vector<80x8xf32>
    %45 = arith.addf %39, %44 : vector<80x8xf32>
    %46 = tpu.iota {dimensions = array<i32: 0>} : vector<80x1xi32>
    %c0_i32 = arith.constant 0 : i32
    %47 = vector.broadcast %c0_i32 : i32 to vector<80x1xi32>
    %48 = arith.cmpi sge, %46, %47 : vector<80x1xi32>
    %c8_i32 = arith.constant 8 : i32
    %49 = vector.broadcast %c8_i32 : i32 to vector<80x1xi32>
    %50 = arith.cmpi slt, %46, %49 : vector<80x1xi32>
    %51 = arith.andi %48, %50 : vector<80x1xi1>
    %c10_i32 = arith.constant 10 : i32
    %52 = vector.broadcast %c10_i32 : i32 to vector<80x1xi32>
    %53 = arith.cmpi sge, %46, %52 : vector<80x1xi32>
    %c18_i32 = arith.constant 18 : i32
    %54 = vector.broadcast %c18_i32 : i32 to vector<80x1xi32>
    %55 = arith.cmpi slt, %46, %54 : vector<80x1xi32>
    %56 = arith.andi %53, %55 : vector<80x1xi1>
    %57 = arith.ori %51, %56 : vector<80x1xi1>
    %c20_i32 = arith.constant 20 : i32
    %58 = vector.broadcast %c20_i32 : i32 to vector<80x1xi32>
    %59 = arith.cmpi sge, %46, %58 : vector<80x1xi32>
    %c28_i32 = arith.constant 28 : i32
    %60 = vector.broadcast %c28_i32 : i32 to vector<80x1xi32>
    %61 = arith.cmpi slt, %46, %60 : vector<80x1xi32>
    %62 = arith.andi %59, %61 : vector<80x1xi1>
    %63 = arith.ori %57, %62 : vector<80x1xi1>
    %c30_i32 = arith.constant 30 : i32
    %64 = vector.broadcast %c30_i32 : i32 to vector<80x1xi32>
    %65 = arith.cmpi sge, %46, %64 : vector<80x1xi32>
    %c38_i32 = arith.constant 38 : i32
    %66 = vector.broadcast %c38_i32 : i32 to vector<80x1xi32>
    %67 = arith.cmpi slt, %46, %66 : vector<80x1xi32>
    %68 = arith.andi %65, %67 : vector<80x1xi1>
    %69 = arith.ori %63, %68 : vector<80x1xi1>
    %c40_i32 = arith.constant 40 : i32
    %70 = vector.broadcast %c40_i32 : i32 to vector<80x1xi32>
    %71 = arith.cmpi sge, %46, %70 : vector<80x1xi32>
    %c48_i32 = arith.constant 48 : i32
    %72 = vector.broadcast %c48_i32 : i32 to vector<80x1xi32>
    %73 = arith.cmpi slt, %46, %72 : vector<80x1xi32>
    %74 = arith.andi %71, %73 : vector<80x1xi1>
    %75 = arith.ori %69, %74 : vector<80x1xi1>
    %c50_i32 = arith.constant 50 : i32
    %76 = vector.broadcast %c50_i32 : i32 to vector<80x1xi32>
    %77 = arith.cmpi sge, %46, %76 : vector<80x1xi32>
    %c58_i32 = arith.constant 58 : i32
    %78 = vector.broadcast %c58_i32 : i32 to vector<80x1xi32>
    %79 = arith.cmpi slt, %46, %78 : vector<80x1xi32>
    %80 = arith.andi %77, %79 : vector<80x1xi1>
    %81 = arith.ori %75, %80 : vector<80x1xi1>
    %c60_i32 = arith.constant 60 : i32
    %82 = vector.broadcast %c60_i32 : i32 to vector<80x1xi32>
    %83 = arith.cmpi sge, %46, %82 : vector<80x1xi32>
    %c68_i32 = arith.constant 68 : i32
    %84 = vector.broadcast %c68_i32 : i32 to vector<80x1xi32>
    %85 = arith.cmpi slt, %46, %84 : vector<80x1xi32>
    %86 = arith.andi %83, %85 : vector<80x1xi1>
    %87 = arith.ori %81, %86 : vector<80x1xi1>
    %c70_i32 = arith.constant 70 : i32
    %88 = vector.broadcast %c70_i32 : i32 to vector<80x1xi32>
    %89 = arith.cmpi sge, %46, %88 : vector<80x1xi32>
    %c78_i32 = arith.constant 78 : i32
    %90 = vector.broadcast %c78_i32 : i32 to vector<80x1xi32>
    %91 = arith.cmpi slt, %46, %90 : vector<80x1xi32>
    %92 = arith.andi %89, %91 : vector<80x1xi1>
    %93 = arith.ori %87, %92 : vector<80x1xi1>
    %cst_49 = arith.constant 0.000000e+00 : f32
    %94 = vector.broadcast %cst_49 : f32 to vector<1x8xf32>
    %cst_50 = arith.constant 0.000000e+00 : f32
    %95 = vector.broadcast %cst_50 : f32 to vector<1x8xf32>
    %cst_51 = arith.constant 0.000000e+00 : f32
    %96 = vector.shape_cast %93 : vector<80x1xi1> to vector<80x1xi1>
    %97 = vector.broadcast %96 : vector<80x1xi1> to vector<80x8xi1>
    %98 = vector.broadcast %cst_51 : f32 to vector<80x8xf32>
    %99 = arith.select %97, %22, %98 : vector<80x8xi1>, vector<80x8xf32>
    %cst_52 = arith.constant dense<0.000000e+00> : vector<8xf32>
    %100 = vector.multi_reduction <add>, %99, %cst_52 [0] : vector<80x8xf32> to vector<8xf32>
    %101 = vector.shape_cast %100 : vector<8xf32> to vector<1x8xf32>
    %102 = arith.addf %94, %101 : vector<1x8xf32>
    %103 = arith.mulf %99, %99 : vector<80x8xf32>
    %cst_53 = arith.constant dense<0.000000e+00> : vector<8xf32>
    %104 = vector.multi_reduction <add>, %103, %cst_53 [0] : vector<80x8xf32> to vector<8xf32>
    %105 = vector.shape_cast %104 : vector<8xf32> to vector<1x8xf32>
    %106 = arith.addf %95, %105 : vector<1x8xf32>
    %cst_54 = arith.constant 0.000000e+00 : f32
    %107 = vector.shape_cast %93 : vector<80x1xi1> to vector<80x1xi1>
    %108 = vector.broadcast %107 : vector<80x1xi1> to vector<80x8xi1>
    %109 = vector.broadcast %cst_54 : f32 to vector<80x8xf32>
    %110 = arith.select %108, %45, %109 : vector<80x8xi1>, vector<80x8xf32>
    %cst_55 = arith.constant dense<0.000000e+00> : vector<8xf32>
    %111 = vector.multi_reduction <add>, %110, %cst_55 [0] : vector<80x8xf32> to vector<8xf32>
    %112 = vector.shape_cast %111 : vector<8xf32> to vector<1x8xf32>
    %113 = arith.addf %102, %112 : vector<1x8xf32>
    %114 = arith.mulf %110, %110 : vector<80x8xf32>
    %cst_56 = arith.constant dense<0.000000e+00> : vector<8xf32>
    %115 = vector.multi_reduction <add>, %114, %cst_56 [0] : vector<80x8xf32> to vector<8xf32>
    %116 = vector.shape_cast %115 : vector<8xf32> to vector<1x8xf32>
    %117 = arith.addf %106, %116 : vector<1x8xf32>
    %cst_57 = arith.constant 7.812500e-03 : f32
    %118 = vector.broadcast %cst_57 : f32 to vector<1x8xf32>
    %119 = arith.mulf %113, %118 : vector<1x8xf32>
    %cst_58 = arith.constant 7.812500e-03 : f32
    %120 = vector.broadcast %cst_58 : f32 to vector<1x8xf32>
    %121 = arith.mulf %117, %120 : vector<1x8xf32>
    %122 = arith.mulf %119, %119 : vector<1x8xf32>
    %123 = arith.subf %121, %122 : vector<1x8xf32>
    %cst_59 = arith.constant 9.99999974E-6 : f32
    %124 = vector.broadcast %cst_59 : f32 to vector<1x8xf32>
    %125 = arith.addf %123, %124 : vector<1x8xf32>
    %126 = math.rsqrt %125 : vector<1x8xf32>
    %127 = vector.broadcast %119 : vector<1x8xf32> to vector<80x8xf32>
    %128 = arith.subf %22, %127 : vector<80x8xf32>
    %129 = vector.broadcast %126 : vector<1x8xf32> to vector<80x8xf32>
    %130 = arith.mulf %128, %129 : vector<80x8xf32>
    %cst_60 = arith.constant 0.000000e+00 : f32
    %131 = vector.broadcast %cst_60 : f32 to vector<80x8xf32>
    %132 = arith.cmpf oge, %130, %131 : vector<80x8xf32>
    %cst_61 = arith.constant 2.000000e-01 : f32
    %133 = vector.broadcast %cst_61 : f32 to vector<80x8xf32>
    %134 = arith.mulf %133, %130 : vector<80x8xf32>
    %135 = arith.select %132, %130, %134 : vector<80x8xi1>, vector<80x8xf32>
    %136 = arith.truncf %135 : vector<80x8xf32> to vector<80x8xbf16>
    %c0_62 = arith.constant 0 : index
    %c0_63 = arith.constant 0 : index
    %c0_64 = arith.constant 0 : index
    %137 = vector.load %arg2[%c0_62, %c0_63, %c0_64] : memref<2x80x8xbf16, #tpu.memory_space<vmem>>, vector<1x80x8xbf16>
    %138 = vector.shape_cast %137 : vector<1x80x8xbf16> to vector<80x8xbf16>
    %139 = vector.shape_cast %136 : vector<80x8xbf16> to vector<1x80x8xbf16>
    tpu.vector_store %arg2[%c0_62, %c0_63, %c0_64], %139 {strides = array<i32>} : memref<2x80x8xbf16, #tpu.memory_space<vmem>>, vector<1x80x8xbf16>,
    %140 = vector.broadcast %119 : vector<1x8xf32> to vector<80x8xf32>
    %141 = arith.subf %45, %140 : vector<80x8xf32>
    %142 = vector.broadcast %126 : vector<1x8xf32> to vector<80x8xf32>
    %143 = arith.mulf %141, %142 : vector<80x8xf32>
    %cst_65 = arith.constant 0.000000e+00 : f32
    %144 = vector.broadcast %cst_65 : f32 to vector<80x8xf32>
    %145 = arith.cmpf oge, %143, %144 : vector<80x8xf32>
    %cst_66 = arith.constant 2.000000e-01 : f32
    %146 = vector.broadcast %cst_66 : f32 to vector<80x8xf32>
    %147 = arith.mulf %146, %143 : vector<80x8xf32>
    %148 = arith.select %145, %143, %147 : vector<80x8xi1>, vector<80x8xf32>
    %149 = arith.truncf %148 : vector<80x8xf32> to vector<80x8xbf16>
    %c1_67 = arith.constant 1 : index
    %c0_68 = arith.constant 0 : index
    %c0_69 = arith.constant 0 : index
    %150 = vector.load %arg2[%c1_67, %c0_68, %c0_69] : memref<2x80x8xbf16, #tpu.memory_space<vmem>>, vector<1x80x8xbf16>
    %151 = vector.shape_cast %150 : vector<1x80x8xbf16> to vector<80x8xbf16>
    %152 = vector.shape_cast %149 : vector<80x8xbf16> to vector<1x80x8xbf16>
    tpu.vector_store %arg2[%c1_67, %c0_68, %c0_69], %152 {strides = array<i32>} : memref<2x80x8xbf16, #tpu.memory_space<vmem>>, vector<1x80x8xbf16>,
    return
  }
}

module attributes {stable_mosaic.version = 11 : i64} {
  func.func @_conv_bn_lrelu_kernel(%arg0: memref<2x32x32xbf16, #tpu.memory_space<vmem>>, %arg1: memref<4x32x16xbf16, #tpu.memory_space<vmem>>, %arg2: memref<2x24x16xbf16, #tpu.memory_space<vmem>>) attributes {dimension_semantics = [], scalar_prefetch = 0 : i64, scratch_operands = 0 : i64, tpu.core_type = #tpu.core_type<tc>} {
    %c0 = arith.constant 0 : index
    %c0_0 = arith.constant 0 : index
    %c0_1 = arith.constant 0 : index
    %0 = vector.load %arg0[%c0, %c0_0, %c0_1] : memref<2x32x32xbf16, #tpu.memory_space<vmem>>, vector<1x24x32xbf16>
    %1 = vector.shape_cast %0 : vector<1x24x32xbf16> to vector<24x32xbf16>
    %c0_2 = arith.constant 0 : index
    %c0_3 = arith.constant 0 : index
    %c0_4 = arith.constant 0 : index
    %2 = vector.load %arg1[%c0_2, %c0_3, %c0_4] : memref<4x32x16xbf16, #tpu.memory_space<vmem>>, vector<1x32x16xbf16>
    %3 = vector.shape_cast %2 : vector<1x32x16xbf16> to vector<32x16xbf16>
    %cst = arith.constant dense<0.000000e+00> : vector<24x16xf32>
    %4 = tpu.matmul %1, %3, %cst {dimension_numbers = #tpu.dot_dimension_numbers<[1], [0], [0], [1], [0, 0, 1, 1], [], []>} : vector<24x32xbf16>, vector<32x16xbf16>, vector<24x16xf32> -> vector<24x16xf32>
    %c0_5 = arith.constant 0 : index
    %c1 = arith.constant 1 : index
    %c0_6 = arith.constant 0 : index
    %5 = vector.load %arg0[%c0_5, %c1, %c0_6] : memref<2x32x32xbf16, #tpu.memory_space<vmem>>, vector<1x24x32xbf16>
    %6 = vector.shape_cast %5 : vector<1x24x32xbf16> to vector<24x32xbf16>
    %c1_7 = arith.constant 1 : index
    %c0_8 = arith.constant 0 : index
    %c0_9 = arith.constant 0 : index
    %7 = vector.load %arg1[%c1_7, %c0_8, %c0_9] : memref<4x32x16xbf16, #tpu.memory_space<vmem>>, vector<1x32x16xbf16>
    %8 = vector.shape_cast %7 : vector<1x32x16xbf16> to vector<32x16xbf16>
    %cst_10 = arith.constant dense<0.000000e+00> : vector<24x16xf32>
    %9 = tpu.matmul %6, %8, %cst_10 {dimension_numbers = #tpu.dot_dimension_numbers<[1], [0], [0], [1], [0, 0, 1, 1], [], []>} : vector<24x32xbf16>, vector<32x16xbf16>, vector<24x16xf32> -> vector<24x16xf32>
    %10 = arith.addf %4, %9 : vector<24x16xf32>
    %c0_11 = arith.constant 0 : index
    %c6 = arith.constant 6 : index
    %c0_12 = arith.constant 0 : index
    %11 = vector.load %arg0[%c0_11, %c6, %c0_12] : memref<2x32x32xbf16, #tpu.memory_space<vmem>>, vector<1x24x32xbf16>
    %12 = vector.shape_cast %11 : vector<1x24x32xbf16> to vector<24x32xbf16>
    %c2 = arith.constant 2 : index
    %c0_13 = arith.constant 0 : index
    %c0_14 = arith.constant 0 : index
    %13 = vector.load %arg1[%c2, %c0_13, %c0_14] : memref<4x32x16xbf16, #tpu.memory_space<vmem>>, vector<1x32x16xbf16>
    %14 = vector.shape_cast %13 : vector<1x32x16xbf16> to vector<32x16xbf16>
    %cst_15 = arith.constant dense<0.000000e+00> : vector<24x16xf32>
    %15 = tpu.matmul %12, %14, %cst_15 {dimension_numbers = #tpu.dot_dimension_numbers<[1], [0], [0], [1], [0, 0, 1, 1], [], []>} : vector<24x32xbf16>, vector<32x16xbf16>, vector<24x16xf32> -> vector<24x16xf32>
    %16 = arith.addf %10, %15 : vector<24x16xf32>
    %c0_16 = arith.constant 0 : index
    %c7 = arith.constant 7 : index
    %c0_17 = arith.constant 0 : index
    %17 = vector.load %arg0[%c0_16, %c7, %c0_17] : memref<2x32x32xbf16, #tpu.memory_space<vmem>>, vector<1x24x32xbf16>
    %18 = vector.shape_cast %17 : vector<1x24x32xbf16> to vector<24x32xbf16>
    %c3 = arith.constant 3 : index
    %c0_18 = arith.constant 0 : index
    %c0_19 = arith.constant 0 : index
    %19 = vector.load %arg1[%c3, %c0_18, %c0_19] : memref<4x32x16xbf16, #tpu.memory_space<vmem>>, vector<1x32x16xbf16>
    %20 = vector.shape_cast %19 : vector<1x32x16xbf16> to vector<32x16xbf16>
    %cst_20 = arith.constant dense<0.000000e+00> : vector<24x16xf32>
    %21 = tpu.matmul %18, %20, %cst_20 {dimension_numbers = #tpu.dot_dimension_numbers<[1], [0], [0], [1], [0, 0, 1, 1], [], []>} : vector<24x32xbf16>, vector<32x16xbf16>, vector<24x16xf32> -> vector<24x16xf32>
    %22 = arith.addf %16, %21 : vector<24x16xf32>
    %c1_21 = arith.constant 1 : index
    %c0_22 = arith.constant 0 : index
    %c0_23 = arith.constant 0 : index
    %23 = vector.load %arg0[%c1_21, %c0_22, %c0_23] : memref<2x32x32xbf16, #tpu.memory_space<vmem>>, vector<1x24x32xbf16>
    %24 = vector.shape_cast %23 : vector<1x24x32xbf16> to vector<24x32xbf16>
    %c0_24 = arith.constant 0 : index
    %c0_25 = arith.constant 0 : index
    %c0_26 = arith.constant 0 : index
    %25 = vector.load %arg1[%c0_24, %c0_25, %c0_26] : memref<4x32x16xbf16, #tpu.memory_space<vmem>>, vector<1x32x16xbf16>
    %26 = vector.shape_cast %25 : vector<1x32x16xbf16> to vector<32x16xbf16>
    %cst_27 = arith.constant dense<0.000000e+00> : vector<24x16xf32>
    %27 = tpu.matmul %24, %26, %cst_27 {dimension_numbers = #tpu.dot_dimension_numbers<[1], [0], [0], [1], [0, 0, 1, 1], [], []>} : vector<24x32xbf16>, vector<32x16xbf16>, vector<24x16xf32> -> vector<24x16xf32>
    %c1_28 = arith.constant 1 : index
    %c1_29 = arith.constant 1 : index
    %c0_30 = arith.constant 0 : index
    %28 = vector.load %arg0[%c1_28, %c1_29, %c0_30] : memref<2x32x32xbf16, #tpu.memory_space<vmem>>, vector<1x24x32xbf16>
    %29 = vector.shape_cast %28 : vector<1x24x32xbf16> to vector<24x32xbf16>
    %c1_31 = arith.constant 1 : index
    %c0_32 = arith.constant 0 : index
    %c0_33 = arith.constant 0 : index
    %30 = vector.load %arg1[%c1_31, %c0_32, %c0_33] : memref<4x32x16xbf16, #tpu.memory_space<vmem>>, vector<1x32x16xbf16>
    %31 = vector.shape_cast %30 : vector<1x32x16xbf16> to vector<32x16xbf16>
    %cst_34 = arith.constant dense<0.000000e+00> : vector<24x16xf32>
    %32 = tpu.matmul %29, %31, %cst_34 {dimension_numbers = #tpu.dot_dimension_numbers<[1], [0], [0], [1], [0, 0, 1, 1], [], []>} : vector<24x32xbf16>, vector<32x16xbf16>, vector<24x16xf32> -> vector<24x16xf32>
    %33 = arith.addf %27, %32 : vector<24x16xf32>
    %c1_35 = arith.constant 1 : index
    %c6_36 = arith.constant 6 : index
    %c0_37 = arith.constant 0 : index
    %34 = vector.load %arg0[%c1_35, %c6_36, %c0_37] : memref<2x32x32xbf16, #tpu.memory_space<vmem>>, vector<1x24x32xbf16>
    %35 = vector.shape_cast %34 : vector<1x24x32xbf16> to vector<24x32xbf16>
    %c2_38 = arith.constant 2 : index
    %c0_39 = arith.constant 0 : index
    %c0_40 = arith.constant 0 : index
    %36 = vector.load %arg1[%c2_38, %c0_39, %c0_40] : memref<4x32x16xbf16, #tpu.memory_space<vmem>>, vector<1x32x16xbf16>
    %37 = vector.shape_cast %36 : vector<1x32x16xbf16> to vector<32x16xbf16>
    %cst_41 = arith.constant dense<0.000000e+00> : vector<24x16xf32>
    %38 = tpu.matmul %35, %37, %cst_41 {dimension_numbers = #tpu.dot_dimension_numbers<[1], [0], [0], [1], [0, 0, 1, 1], [], []>} : vector<24x32xbf16>, vector<32x16xbf16>, vector<24x16xf32> -> vector<24x16xf32>
    %39 = arith.addf %33, %38 : vector<24x16xf32>
    %c1_42 = arith.constant 1 : index
    %c7_43 = arith.constant 7 : index
    %c0_44 = arith.constant 0 : index
    %40 = vector.load %arg0[%c1_42, %c7_43, %c0_44] : memref<2x32x32xbf16, #tpu.memory_space<vmem>>, vector<1x24x32xbf16>
    %41 = vector.shape_cast %40 : vector<1x24x32xbf16> to vector<24x32xbf16>
    %c3_45 = arith.constant 3 : index
    %c0_46 = arith.constant 0 : index
    %c0_47 = arith.constant 0 : index
    %42 = vector.load %arg1[%c3_45, %c0_46, %c0_47] : memref<4x32x16xbf16, #tpu.memory_space<vmem>>, vector<1x32x16xbf16>
    %43 = vector.shape_cast %42 : vector<1x32x16xbf16> to vector<32x16xbf16>
    %cst_48 = arith.constant dense<0.000000e+00> : vector<24x16xf32>
    %44 = tpu.matmul %41, %43, %cst_48 {dimension_numbers = #tpu.dot_dimension_numbers<[1], [0], [0], [1], [0, 0, 1, 1], [], []>} : vector<24x32xbf16>, vector<32x16xbf16>, vector<24x16xf32> -> vector<24x16xf32>
    %45 = arith.addf %39, %44 : vector<24x16xf32>
    %46 = tpu.iota {dimensions = array<i32: 0>} : vector<24x1xi32>
    %c0_i32 = arith.constant 0 : i32
    %47 = vector.broadcast %c0_i32 : i32 to vector<24x1xi32>
    %48 = arith.cmpi sge, %46, %47 : vector<24x1xi32>
    %c4_i32 = arith.constant 4 : i32
    %49 = vector.broadcast %c4_i32 : i32 to vector<24x1xi32>
    %50 = arith.cmpi slt, %46, %49 : vector<24x1xi32>
    %51 = arith.andi %48, %50 : vector<24x1xi1>
    %c6_i32 = arith.constant 6 : i32
    %52 = vector.broadcast %c6_i32 : i32 to vector<24x1xi32>
    %53 = arith.cmpi sge, %46, %52 : vector<24x1xi32>
    %c10_i32 = arith.constant 10 : i32
    %54 = vector.broadcast %c10_i32 : i32 to vector<24x1xi32>
    %55 = arith.cmpi slt, %46, %54 : vector<24x1xi32>
    %56 = arith.andi %53, %55 : vector<24x1xi1>
    %57 = arith.ori %51, %56 : vector<24x1xi1>
    %c12_i32 = arith.constant 12 : i32
    %58 = vector.broadcast %c12_i32 : i32 to vector<24x1xi32>
    %59 = arith.cmpi sge, %46, %58 : vector<24x1xi32>
    %c16_i32 = arith.constant 16 : i32
    %60 = vector.broadcast %c16_i32 : i32 to vector<24x1xi32>
    %61 = arith.cmpi slt, %46, %60 : vector<24x1xi32>
    %62 = arith.andi %59, %61 : vector<24x1xi1>
    %63 = arith.ori %57, %62 : vector<24x1xi1>
    %c18_i32 = arith.constant 18 : i32
    %64 = vector.broadcast %c18_i32 : i32 to vector<24x1xi32>
    %65 = arith.cmpi sge, %46, %64 : vector<24x1xi32>
    %c22_i32 = arith.constant 22 : i32
    %66 = vector.broadcast %c22_i32 : i32 to vector<24x1xi32>
    %67 = arith.cmpi slt, %46, %66 : vector<24x1xi32>
    %68 = arith.andi %65, %67 : vector<24x1xi1>
    %69 = arith.ori %63, %68 : vector<24x1xi1>
    %cst_49 = arith.constant 0.000000e+00 : f32
    %70 = vector.broadcast %cst_49 : f32 to vector<1x16xf32>
    %cst_50 = arith.constant 0.000000e+00 : f32
    %71 = vector.broadcast %cst_50 : f32 to vector<1x16xf32>
    %cst_51 = arith.constant 0.000000e+00 : f32
    %72 = vector.shape_cast %69 : vector<24x1xi1> to vector<24x1xi1>
    %73 = vector.broadcast %72 : vector<24x1xi1> to vector<24x16xi1>
    %74 = vector.broadcast %cst_51 : f32 to vector<24x16xf32>
    %75 = arith.select %73, %22, %74 : vector<24x16xi1>, vector<24x16xf32>
    %cst_52 = arith.constant dense<0.000000e+00> : vector<16xf32>
    %76 = vector.multi_reduction <add>, %75, %cst_52 [0] : vector<24x16xf32> to vector<16xf32>
    %77 = vector.shape_cast %76 : vector<16xf32> to vector<1x16xf32>
    %78 = arith.addf %70, %77 : vector<1x16xf32>
    %79 = arith.mulf %75, %75 : vector<24x16xf32>
    %cst_53 = arith.constant dense<0.000000e+00> : vector<16xf32>
    %80 = vector.multi_reduction <add>, %79, %cst_53 [0] : vector<24x16xf32> to vector<16xf32>
    %81 = vector.shape_cast %80 : vector<16xf32> to vector<1x16xf32>
    %82 = arith.addf %71, %81 : vector<1x16xf32>
    %cst_54 = arith.constant 0.000000e+00 : f32
    %83 = vector.shape_cast %69 : vector<24x1xi1> to vector<24x1xi1>
    %84 = vector.broadcast %83 : vector<24x1xi1> to vector<24x16xi1>
    %85 = vector.broadcast %cst_54 : f32 to vector<24x16xf32>
    %86 = arith.select %84, %45, %85 : vector<24x16xi1>, vector<24x16xf32>
    %cst_55 = arith.constant dense<0.000000e+00> : vector<16xf32>
    %87 = vector.multi_reduction <add>, %86, %cst_55 [0] : vector<24x16xf32> to vector<16xf32>
    %88 = vector.shape_cast %87 : vector<16xf32> to vector<1x16xf32>
    %89 = arith.addf %78, %88 : vector<1x16xf32>
    %90 = arith.mulf %86, %86 : vector<24x16xf32>
    %cst_56 = arith.constant dense<0.000000e+00> : vector<16xf32>
    %91 = vector.multi_reduction <add>, %90, %cst_56 [0] : vector<24x16xf32> to vector<16xf32>
    %92 = vector.shape_cast %91 : vector<16xf32> to vector<1x16xf32>
    %93 = arith.addf %82, %92 : vector<1x16xf32>
    %cst_57 = arith.constant 3.125000e-02 : f32
    %94 = vector.broadcast %cst_57 : f32 to vector<1x16xf32>
    %95 = arith.mulf %89, %94 : vector<1x16xf32>
    %cst_58 = arith.constant 3.125000e-02 : f32
    %96 = vector.broadcast %cst_58 : f32 to vector<1x16xf32>
    %97 = arith.mulf %93, %96 : vector<1x16xf32>
    %98 = arith.mulf %95, %95 : vector<1x16xf32>
    %99 = arith.subf %97, %98 : vector<1x16xf32>
    %cst_59 = arith.constant 9.99999974E-6 : f32
    %100 = vector.broadcast %cst_59 : f32 to vector<1x16xf32>
    %101 = arith.addf %99, %100 : vector<1x16xf32>
    %102 = math.rsqrt %101 : vector<1x16xf32>
    %103 = vector.broadcast %95 : vector<1x16xf32> to vector<24x16xf32>
    %104 = arith.subf %22, %103 : vector<24x16xf32>
    %105 = vector.broadcast %102 : vector<1x16xf32> to vector<24x16xf32>
    %106 = arith.mulf %104, %105 : vector<24x16xf32>
    %cst_60 = arith.constant 0.000000e+00 : f32
    %107 = vector.broadcast %cst_60 : f32 to vector<24x16xf32>
    %108 = arith.cmpf oge, %106, %107 : vector<24x16xf32>
    %cst_61 = arith.constant 2.000000e-01 : f32
    %109 = vector.broadcast %cst_61 : f32 to vector<24x16xf32>
    %110 = arith.mulf %109, %106 : vector<24x16xf32>
    %111 = arith.select %108, %106, %110 : vector<24x16xi1>, vector<24x16xf32>
    %112 = arith.truncf %111 : vector<24x16xf32> to vector<24x16xbf16>
    %c0_62 = arith.constant 0 : index
    %c0_63 = arith.constant 0 : index
    %c0_64 = arith.constant 0 : index
    %113 = vector.load %arg2[%c0_62, %c0_63, %c0_64] : memref<2x24x16xbf16, #tpu.memory_space<vmem>>, vector<1x24x16xbf16>
    %114 = vector.shape_cast %113 : vector<1x24x16xbf16> to vector<24x16xbf16>
    %115 = vector.shape_cast %112 : vector<24x16xbf16> to vector<1x24x16xbf16>
    tpu.vector_store %arg2[%c0_62, %c0_63, %c0_64], %115 {strides = array<i32>} : memref<2x24x16xbf16, #tpu.memory_space<vmem>>, vector<1x24x16xbf16>,
    %116 = vector.broadcast %95 : vector<1x16xf32> to vector<24x16xf32>
    %117 = arith.subf %45, %116 : vector<24x16xf32>
    %118 = vector.broadcast %102 : vector<1x16xf32> to vector<24x16xf32>
    %119 = arith.mulf %117, %118 : vector<24x16xf32>
    %cst_65 = arith.constant 0.000000e+00 : f32
    %120 = vector.broadcast %cst_65 : f32 to vector<24x16xf32>
    %121 = arith.cmpf oge, %119, %120 : vector<24x16xf32>
    %cst_66 = arith.constant 2.000000e-01 : f32
    %122 = vector.broadcast %cst_66 : f32 to vector<24x16xf32>
    %123 = arith.mulf %122, %119 : vector<24x16xf32>
    %124 = arith.select %121, %119, %123 : vector<24x16xi1>, vector<24x16xf32>
    %125 = arith.truncf %124 : vector<24x16xf32> to vector<24x16xbf16>
    %c1_67 = arith.constant 1 : index
    %c0_68 = arith.constant 0 : index
    %c0_69 = arith.constant 0 : index
    %126 = vector.load %arg2[%c1_67, %c0_68, %c0_69] : memref<2x24x16xbf16, #tpu.memory_space<vmem>>, vector<1x24x16xbf16>
    %127 = vector.shape_cast %126 : vector<1x24x16xbf16> to vector<24x16xbf16>
    %128 = vector.shape_cast %125 : vector<24x16xbf16> to vector<1x24x16xbf16>
    tpu.vector_store %arg2[%c1_67, %c0_68, %c0_69], %128 {strides = array<i32>} : memref<2x24x16xbf16, #tpu.memory_space<vmem>>, vector<1x24x16xbf16>,
    return
  }
}

module attributes {stable_mosaic.version = 11 : i64} {
  func.func @_conv_bn_lrelu_kernel(%arg0: memref<2x14x64xbf16, #tpu.memory_space<vmem>>, %arg1: memref<4x64x32xbf16, #tpu.memory_space<vmem>>, %arg2: memref<2x8x32xbf16, #tpu.memory_space<vmem>>) attributes {dimension_semantics = [], scalar_prefetch = 0 : i64, scratch_operands = 0 : i64, tpu.core_type = #tpu.core_type<tc>} {
    %c0 = arith.constant 0 : index
    %c0_0 = arith.constant 0 : index
    %c0_1 = arith.constant 0 : index
    %0 = vector.load %arg0[%c0, %c0_0, %c0_1] : memref<2x14x64xbf16, #tpu.memory_space<vmem>>, vector<1x8x64xbf16>
    %1 = vector.shape_cast %0 : vector<1x8x64xbf16> to vector<8x64xbf16>
    %c0_2 = arith.constant 0 : index
    %c0_3 = arith.constant 0 : index
    %c0_4 = arith.constant 0 : index
    %2 = vector.load %arg1[%c0_2, %c0_3, %c0_4] : memref<4x64x32xbf16, #tpu.memory_space<vmem>>, vector<1x64x32xbf16>
    %3 = vector.shape_cast %2 : vector<1x64x32xbf16> to vector<64x32xbf16>
    %cst = arith.constant dense<0.000000e+00> : vector<8x32xf32>
    %4 = tpu.matmul %1, %3, %cst {dimension_numbers = #tpu.dot_dimension_numbers<[1], [0], [0], [1], [0, 0, 1, 1], [], []>} : vector<8x64xbf16>, vector<64x32xbf16>, vector<8x32xf32> -> vector<8x32xf32>
    %c0_5 = arith.constant 0 : index
    %c1 = arith.constant 1 : index
    %c0_6 = arith.constant 0 : index
    %5 = vector.load %arg0[%c0_5, %c1, %c0_6] : memref<2x14x64xbf16, #tpu.memory_space<vmem>>, vector<1x8x64xbf16>
    %6 = vector.shape_cast %5 : vector<1x8x64xbf16> to vector<8x64xbf16>
    %c1_7 = arith.constant 1 : index
    %c0_8 = arith.constant 0 : index
    %c0_9 = arith.constant 0 : index
    %7 = vector.load %arg1[%c1_7, %c0_8, %c0_9] : memref<4x64x32xbf16, #tpu.memory_space<vmem>>, vector<1x64x32xbf16>
    %8 = vector.shape_cast %7 : vector<1x64x32xbf16> to vector<64x32xbf16>
    %cst_10 = arith.constant dense<0.000000e+00> : vector<8x32xf32>
    %9 = tpu.matmul %6, %8, %cst_10 {dimension_numbers = #tpu.dot_dimension_numbers<[1], [0], [0], [1], [0, 0, 1, 1], [], []>} : vector<8x64xbf16>, vector<64x32xbf16>, vector<8x32xf32> -> vector<8x32xf32>
    %10 = arith.addf %4, %9 : vector<8x32xf32>
    %c0_11 = arith.constant 0 : index
    %c4 = arith.constant 4 : index
    %c0_12 = arith.constant 0 : index
    %11 = vector.load %arg0[%c0_11, %c4, %c0_12] : memref<2x14x64xbf16, #tpu.memory_space<vmem>>, vector<1x8x64xbf16>
    %12 = vector.shape_cast %11 : vector<1x8x64xbf16> to vector<8x64xbf16>
    %c2 = arith.constant 2 : index
    %c0_13 = arith.constant 0 : index
    %c0_14 = arith.constant 0 : index
    %13 = vector.load %arg1[%c2, %c0_13, %c0_14] : memref<4x64x32xbf16, #tpu.memory_space<vmem>>, vector<1x64x32xbf16>
    %14 = vector.shape_cast %13 : vector<1x64x32xbf16> to vector<64x32xbf16>
    %cst_15 = arith.constant dense<0.000000e+00> : vector<8x32xf32>
    %15 = tpu.matmul %12, %14, %cst_15 {dimension_numbers = #tpu.dot_dimension_numbers<[1], [0], [0], [1], [0, 0, 1, 1], [], []>} : vector<8x64xbf16>, vector<64x32xbf16>, vector<8x32xf32> -> vector<8x32xf32>
    %16 = arith.addf %10, %15 : vector<8x32xf32>
    %c0_16 = arith.constant 0 : index
    %c5 = arith.constant 5 : index
    %c0_17 = arith.constant 0 : index
    %17 = vector.load %arg0[%c0_16, %c5, %c0_17] : memref<2x14x64xbf16, #tpu.memory_space<vmem>>, vector<1x8x64xbf16>
    %18 = vector.shape_cast %17 : vector<1x8x64xbf16> to vector<8x64xbf16>
    %c3 = arith.constant 3 : index
    %c0_18 = arith.constant 0 : index
    %c0_19 = arith.constant 0 : index
    %19 = vector.load %arg1[%c3, %c0_18, %c0_19] : memref<4x64x32xbf16, #tpu.memory_space<vmem>>, vector<1x64x32xbf16>
    %20 = vector.shape_cast %19 : vector<1x64x32xbf16> to vector<64x32xbf16>
    %cst_20 = arith.constant dense<0.000000e+00> : vector<8x32xf32>
    %21 = tpu.matmul %18, %20, %cst_20 {dimension_numbers = #tpu.dot_dimension_numbers<[1], [0], [0], [1], [0, 0, 1, 1], [], []>} : vector<8x64xbf16>, vector<64x32xbf16>, vector<8x32xf32> -> vector<8x32xf32>
    %22 = arith.addf %16, %21 : vector<8x32xf32>
    %c1_21 = arith.constant 1 : index
    %c0_22 = arith.constant 0 : index
    %c0_23 = arith.constant 0 : index
    %23 = vector.load %arg0[%c1_21, %c0_22, %c0_23] : memref<2x14x64xbf16, #tpu.memory_space<vmem>>, vector<1x8x64xbf16>
    %24 = vector.shape_cast %23 : vector<1x8x64xbf16> to vector<8x64xbf16>
    %c0_24 = arith.constant 0 : index
    %c0_25 = arith.constant 0 : index
    %c0_26 = arith.constant 0 : index
    %25 = vector.load %arg1[%c0_24, %c0_25, %c0_26] : memref<4x64x32xbf16, #tpu.memory_space<vmem>>, vector<1x64x32xbf16>
    %26 = vector.shape_cast %25 : vector<1x64x32xbf16> to vector<64x32xbf16>
    %cst_27 = arith.constant dense<0.000000e+00> : vector<8x32xf32>
    %27 = tpu.matmul %24, %26, %cst_27 {dimension_numbers = #tpu.dot_dimension_numbers<[1], [0], [0], [1], [0, 0, 1, 1], [], []>} : vector<8x64xbf16>, vector<64x32xbf16>, vector<8x32xf32> -> vector<8x32xf32>
    %c1_28 = arith.constant 1 : index
    %c1_29 = arith.constant 1 : index
    %c0_30 = arith.constant 0 : index
    %28 = vector.load %arg0[%c1_28, %c1_29, %c0_30] : memref<2x14x64xbf16, #tpu.memory_space<vmem>>, vector<1x8x64xbf16>
    %29 = vector.shape_cast %28 : vector<1x8x64xbf16> to vector<8x64xbf16>
    %c1_31 = arith.constant 1 : index
    %c0_32 = arith.constant 0 : index
    %c0_33 = arith.constant 0 : index
    %30 = vector.load %arg1[%c1_31, %c0_32, %c0_33] : memref<4x64x32xbf16, #tpu.memory_space<vmem>>, vector<1x64x32xbf16>
    %31 = vector.shape_cast %30 : vector<1x64x32xbf16> to vector<64x32xbf16>
    %cst_34 = arith.constant dense<0.000000e+00> : vector<8x32xf32>
    %32 = tpu.matmul %29, %31, %cst_34 {dimension_numbers = #tpu.dot_dimension_numbers<[1], [0], [0], [1], [0, 0, 1, 1], [], []>} : vector<8x64xbf16>, vector<64x32xbf16>, vector<8x32xf32> -> vector<8x32xf32>
    %33 = arith.addf %27, %32 : vector<8x32xf32>
    %c1_35 = arith.constant 1 : index
    %c4_36 = arith.constant 4 : index
    %c0_37 = arith.constant 0 : index
    %34 = vector.load %arg0[%c1_35, %c4_36, %c0_37] : memref<2x14x64xbf16, #tpu.memory_space<vmem>>, vector<1x8x64xbf16>
    %35 = vector.shape_cast %34 : vector<1x8x64xbf16> to vector<8x64xbf16>
    %c2_38 = arith.constant 2 : index
    %c0_39 = arith.constant 0 : index
    %c0_40 = arith.constant 0 : index
    %36 = vector.load %arg1[%c2_38, %c0_39, %c0_40] : memref<4x64x32xbf16, #tpu.memory_space<vmem>>, vector<1x64x32xbf16>
    %37 = vector.shape_cast %36 : vector<1x64x32xbf16> to vector<64x32xbf16>
    %cst_41 = arith.constant dense<0.000000e+00> : vector<8x32xf32>
    %38 = tpu.matmul %35, %37, %cst_41 {dimension_numbers = #tpu.dot_dimension_numbers<[1], [0], [0], [1], [0, 0, 1, 1], [], []>} : vector<8x64xbf16>, vector<64x32xbf16>, vector<8x32xf32> -> vector<8x32xf32>
    %39 = arith.addf %33, %38 : vector<8x32xf32>
    %c1_42 = arith.constant 1 : index
    %c5_43 = arith.constant 5 : index
    %c0_44 = arith.constant 0 : index
    %40 = vector.load %arg0[%c1_42, %c5_43, %c0_44] : memref<2x14x64xbf16, #tpu.memory_space<vmem>>, vector<1x8x64xbf16>
    %41 = vector.shape_cast %40 : vector<1x8x64xbf16> to vector<8x64xbf16>
    %c3_45 = arith.constant 3 : index
    %c0_46 = arith.constant 0 : index
    %c0_47 = arith.constant 0 : index
    %42 = vector.load %arg1[%c3_45, %c0_46, %c0_47] : memref<4x64x32xbf16, #tpu.memory_space<vmem>>, vector<1x64x32xbf16>
    %43 = vector.shape_cast %42 : vector<1x64x32xbf16> to vector<64x32xbf16>
    %cst_48 = arith.constant dense<0.000000e+00> : vector<8x32xf32>
    %44 = tpu.matmul %41, %43, %cst_48 {dimension_numbers = #tpu.dot_dimension_numbers<[1], [0], [0], [1], [0, 0, 1, 1], [], []>} : vector<8x64xbf16>, vector<64x32xbf16>, vector<8x32xf32> -> vector<8x32xf32>
    %45 = arith.addf %39, %44 : vector<8x32xf32>
    %46 = tpu.iota {dimensions = array<i32: 0>} : vector<8x1xi32>
    %c0_i32 = arith.constant 0 : i32
    %47 = vector.broadcast %c0_i32 : i32 to vector<8x1xi32>
    %48 = arith.cmpi sge, %46, %47 : vector<8x1xi32>
    %c2_i32 = arith.constant 2 : i32
    %49 = vector.broadcast %c2_i32 : i32 to vector<8x1xi32>
    %50 = arith.cmpi slt, %46, %49 : vector<8x1xi32>
    %51 = arith.andi %48, %50 : vector<8x1xi1>
    %c4_i32 = arith.constant 4 : i32
    %52 = vector.broadcast %c4_i32 : i32 to vector<8x1xi32>
    %53 = arith.cmpi sge, %46, %52 : vector<8x1xi32>
    %c6_i32 = arith.constant 6 : i32
    %54 = vector.broadcast %c6_i32 : i32 to vector<8x1xi32>
    %55 = arith.cmpi slt, %46, %54 : vector<8x1xi32>
    %56 = arith.andi %53, %55 : vector<8x1xi1>
    %57 = arith.ori %51, %56 : vector<8x1xi1>
    %cst_49 = arith.constant 0.000000e+00 : f32
    %58 = vector.broadcast %cst_49 : f32 to vector<1x32xf32>
    %cst_50 = arith.constant 0.000000e+00 : f32
    %59 = vector.broadcast %cst_50 : f32 to vector<1x32xf32>
    %cst_51 = arith.constant 0.000000e+00 : f32
    %60 = vector.shape_cast %57 : vector<8x1xi1> to vector<8x1xi1>
    %61 = vector.broadcast %60 : vector<8x1xi1> to vector<8x32xi1>
    %62 = vector.broadcast %cst_51 : f32 to vector<8x32xf32>
    %63 = arith.select %61, %22, %62 : vector<8x32xi1>, vector<8x32xf32>
    %cst_52 = arith.constant dense<0.000000e+00> : vector<32xf32>
    %64 = vector.multi_reduction <add>, %63, %cst_52 [0] : vector<8x32xf32> to vector<32xf32>
    %65 = vector.shape_cast %64 : vector<32xf32> to vector<1x32xf32>
    %66 = arith.addf %58, %65 : vector<1x32xf32>
    %67 = arith.mulf %63, %63 : vector<8x32xf32>
    %cst_53 = arith.constant dense<0.000000e+00> : vector<32xf32>
    %68 = vector.multi_reduction <add>, %67, %cst_53 [0] : vector<8x32xf32> to vector<32xf32>
    %69 = vector.shape_cast %68 : vector<32xf32> to vector<1x32xf32>
    %70 = arith.addf %59, %69 : vector<1x32xf32>
    %cst_54 = arith.constant 0.000000e+00 : f32
    %71 = vector.shape_cast %57 : vector<8x1xi1> to vector<8x1xi1>
    %72 = vector.broadcast %71 : vector<8x1xi1> to vector<8x32xi1>
    %73 = vector.broadcast %cst_54 : f32 to vector<8x32xf32>
    %74 = arith.select %72, %45, %73 : vector<8x32xi1>, vector<8x32xf32>
    %cst_55 = arith.constant dense<0.000000e+00> : vector<32xf32>
    %75 = vector.multi_reduction <add>, %74, %cst_55 [0] : vector<8x32xf32> to vector<32xf32>
    %76 = vector.shape_cast %75 : vector<32xf32> to vector<1x32xf32>
    %77 = arith.addf %66, %76 : vector<1x32xf32>
    %78 = arith.mulf %74, %74 : vector<8x32xf32>
    %cst_56 = arith.constant dense<0.000000e+00> : vector<32xf32>
    %79 = vector.multi_reduction <add>, %78, %cst_56 [0] : vector<8x32xf32> to vector<32xf32>
    %80 = vector.shape_cast %79 : vector<32xf32> to vector<1x32xf32>
    %81 = arith.addf %70, %80 : vector<1x32xf32>
    %cst_57 = arith.constant 1.250000e-01 : f32
    %82 = vector.broadcast %cst_57 : f32 to vector<1x32xf32>
    %83 = arith.mulf %77, %82 : vector<1x32xf32>
    %cst_58 = arith.constant 1.250000e-01 : f32
    %84 = vector.broadcast %cst_58 : f32 to vector<1x32xf32>
    %85 = arith.mulf %81, %84 : vector<1x32xf32>
    %86 = arith.mulf %83, %83 : vector<1x32xf32>
    %87 = arith.subf %85, %86 : vector<1x32xf32>
    %cst_59 = arith.constant 9.99999974E-6 : f32
    %88 = vector.broadcast %cst_59 : f32 to vector<1x32xf32>
    %89 = arith.addf %87, %88 : vector<1x32xf32>
    %90 = math.rsqrt %89 : vector<1x32xf32>
    %91 = vector.broadcast %83 : vector<1x32xf32> to vector<8x32xf32>
    %92 = arith.subf %22, %91 : vector<8x32xf32>
    %93 = vector.broadcast %90 : vector<1x32xf32> to vector<8x32xf32>
    %94 = arith.mulf %92, %93 : vector<8x32xf32>
    %cst_60 = arith.constant 0.000000e+00 : f32
    %95 = vector.broadcast %cst_60 : f32 to vector<8x32xf32>
    %96 = arith.cmpf oge, %94, %95 : vector<8x32xf32>
    %cst_61 = arith.constant 2.000000e-01 : f32
    %97 = vector.broadcast %cst_61 : f32 to vector<8x32xf32>
    %98 = arith.mulf %97, %94 : vector<8x32xf32>
    %99 = arith.select %96, %94, %98 : vector<8x32xi1>, vector<8x32xf32>
    %100 = arith.truncf %99 : vector<8x32xf32> to vector<8x32xbf16>
    %c0_62 = arith.constant 0 : index
    %c0_63 = arith.constant 0 : index
    %c0_64 = arith.constant 0 : index
    %101 = vector.load %arg2[%c0_62, %c0_63, %c0_64] : memref<2x8x32xbf16, #tpu.memory_space<vmem>>, vector<1x8x32xbf16>
    %102 = vector.shape_cast %101 : vector<1x8x32xbf16> to vector<8x32xbf16>
    %103 = vector.shape_cast %100 : vector<8x32xbf16> to vector<1x8x32xbf16>
    tpu.vector_store %arg2[%c0_62, %c0_63, %c0_64], %103 {strides = array<i32>} : memref<2x8x32xbf16, #tpu.memory_space<vmem>>, vector<1x8x32xbf16>,
    %104 = vector.broadcast %83 : vector<1x32xf32> to vector<8x32xf32>
    %105 = arith.subf %45, %104 : vector<8x32xf32>
    %106 = vector.broadcast %90 : vector<1x32xf32> to vector<8x32xf32>
    %107 = arith.mulf %105, %106 : vector<8x32xf32>
    %cst_65 = arith.constant 0.000000e+00 : f32
    %108 = vector.broadcast %cst_65 : f32 to vector<8x32xf32>
    %109 = arith.cmpf oge, %107, %108 : vector<8x32xf32>
    %cst_66 = arith.constant 2.000000e-01 : f32
    %110 = vector.broadcast %cst_66 : f32 to vector<8x32xf32>
    %111 = arith.mulf %110, %107 : vector<8x32xf32>
    %112 = arith.select %109, %107, %111 : vector<8x32xi1>, vector<8x32xf32>
    %113 = arith.truncf %112 : vector<8x32xf32> to vector<8x32xbf16>
    %c1_67 = arith.constant 1 : index
    %c0_68 = arith.constant 0 : index
    %c0_69 = arith.constant 0 : index
    %114 = vector.load %arg2[%c1_67, %c0_68, %c0_69] : memref<2x8x32xbf16, #tpu.memory_space<vmem>>, vector<1x8x32xbf16>
    %115 = vector.shape_cast %114 : vector<1x8x32xbf16> to vector<8x32xbf16>
    %116 = vector.shape_cast %113 : vector<8x32xbf16> to vector<1x8x32xbf16>
    tpu.vector_store %arg2[%c1_67, %c0_68, %c0_69], %116 {strides = array<i32>} : memref<2x8x32xbf16, #tpu.memory_space<vmem>>, vector<1x8x32xbf16>,
    return
  }
}

module attributes {stable_mosaic.version = 11 : i64} {
  func.func @_convT_bn_relu_kernel(%arg0: memref<2x14x128xbf16, #tpu.memory_space<vmem>>, %arg1: memref<4x128x16xbf16, #tpu.memory_space<vmem>>, %arg2: memref<2x4x8x16xbf16, #tpu.memory_space<vmem>>) attributes {dimension_semantics = [], scalar_prefetch = 0 : i64, scratch_operands = 0 : i64, tpu.core_type = #tpu.core_type<tc>} {
    %c0 = arith.constant 0 : index
    %c0_0 = arith.constant 0 : index
    %c0_1 = arith.constant 0 : index
    %0 = vector.load %arg0[%c0, %c0_0, %c0_1] : memref<2x14x128xbf16, #tpu.memory_space<vmem>>, vector<1x8x128xbf16>
    %1 = vector.shape_cast %0 : vector<1x8x128xbf16> to vector<8x128xbf16>
    %c0_2 = arith.constant 0 : index
    %c0_3 = arith.constant 0 : index
    %c0_4 = arith.constant 0 : index
    %2 = vector.load %arg1[%c0_2, %c0_3, %c0_4] : memref<4x128x16xbf16, #tpu.memory_space<vmem>>, vector<1x128x16xbf16>
    %3 = vector.shape_cast %2 : vector<1x128x16xbf16> to vector<128x16xbf16>
    %cst = arith.constant dense<0.000000e+00> : vector<8x16xf32>
    %4 = tpu.matmul %1, %3, %cst {dimension_numbers = #tpu.dot_dimension_numbers<[1], [0], [0], [1], [0, 0, 1, 1], [], []>} : vector<8x128xbf16>, vector<128x16xbf16>, vector<8x16xf32> -> vector<8x16xf32>
    %c1 = arith.constant 1 : index
    %c0_5 = arith.constant 0 : index
    %c0_6 = arith.constant 0 : index
    %5 = vector.load %arg0[%c1, %c0_5, %c0_6] : memref<2x14x128xbf16, #tpu.memory_space<vmem>>, vector<1x8x128xbf16>
    %6 = vector.shape_cast %5 : vector<1x8x128xbf16> to vector<8x128xbf16>
    %c0_7 = arith.constant 0 : index
    %c0_8 = arith.constant 0 : index
    %c0_9 = arith.constant 0 : index
    %7 = vector.load %arg1[%c0_7, %c0_8, %c0_9] : memref<4x128x16xbf16, #tpu.memory_space<vmem>>, vector<1x128x16xbf16>
    %8 = vector.shape_cast %7 : vector<1x128x16xbf16> to vector<128x16xbf16>
    %cst_10 = arith.constant dense<0.000000e+00> : vector<8x16xf32>
    %9 = tpu.matmul %6, %8, %cst_10 {dimension_numbers = #tpu.dot_dimension_numbers<[1], [0], [0], [1], [0, 0, 1, 1], [], []>} : vector<8x128xbf16>, vector<128x16xbf16>, vector<8x16xf32> -> vector<8x16xf32>
    %c0_11 = arith.constant 0 : index
    %c1_12 = arith.constant 1 : index
    %c0_13 = arith.constant 0 : index
    %10 = vector.load %arg0[%c0_11, %c1_12, %c0_13] : memref<2x14x128xbf16, #tpu.memory_space<vmem>>, vector<1x8x128xbf16>
    %11 = vector.shape_cast %10 : vector<1x8x128xbf16> to vector<8x128xbf16>
    %c1_14 = arith.constant 1 : index
    %c0_15 = arith.constant 0 : index
    %c0_16 = arith.constant 0 : index
    %12 = vector.load %arg1[%c1_14, %c0_15, %c0_16] : memref<4x128x16xbf16, #tpu.memory_space<vmem>>, vector<1x128x16xbf16>
    %13 = vector.shape_cast %12 : vector<1x128x16xbf16> to vector<128x16xbf16>
    %cst_17 = arith.constant dense<0.000000e+00> : vector<8x16xf32>
    %14 = tpu.matmul %11, %13, %cst_17 {dimension_numbers = #tpu.dot_dimension_numbers<[1], [0], [0], [1], [0, 0, 1, 1], [], []>} : vector<8x128xbf16>, vector<128x16xbf16>, vector<8x16xf32> -> vector<8x16xf32>
    %c1_18 = arith.constant 1 : index
    %c1_19 = arith.constant 1 : index
    %c0_20 = arith.constant 0 : index
    %15 = vector.load %arg0[%c1_18, %c1_19, %c0_20] : memref<2x14x128xbf16, #tpu.memory_space<vmem>>, vector<1x8x128xbf16>
    %16 = vector.shape_cast %15 : vector<1x8x128xbf16> to vector<8x128xbf16>
    %c1_21 = arith.constant 1 : index
    %c0_22 = arith.constant 0 : index
    %c0_23 = arith.constant 0 : index
    %17 = vector.load %arg1[%c1_21, %c0_22, %c0_23] : memref<4x128x16xbf16, #tpu.memory_space<vmem>>, vector<1x128x16xbf16>
    %18 = vector.shape_cast %17 : vector<1x128x16xbf16> to vector<128x16xbf16>
    %cst_24 = arith.constant dense<0.000000e+00> : vector<8x16xf32>
    %19 = tpu.matmul %16, %18, %cst_24 {dimension_numbers = #tpu.dot_dimension_numbers<[1], [0], [0], [1], [0, 0, 1, 1], [], []>} : vector<8x128xbf16>, vector<128x16xbf16>, vector<8x16xf32> -> vector<8x16xf32>
    %c0_25 = arith.constant 0 : index
    %c4 = arith.constant 4 : index
    %c0_26 = arith.constant 0 : index
    %20 = vector.load %arg0[%c0_25, %c4, %c0_26] : memref<2x14x128xbf16, #tpu.memory_space<vmem>>, vector<1x8x128xbf16>
    %21 = vector.shape_cast %20 : vector<1x8x128xbf16> to vector<8x128xbf16>
    %c2 = arith.constant 2 : index
    %c0_27 = arith.constant 0 : index
    %c0_28 = arith.constant 0 : index
    %22 = vector.load %arg1[%c2, %c0_27, %c0_28] : memref<4x128x16xbf16, #tpu.memory_space<vmem>>, vector<1x128x16xbf16>
    %23 = vector.shape_cast %22 : vector<1x128x16xbf16> to vector<128x16xbf16>
    %cst_29 = arith.constant dense<0.000000e+00> : vector<8x16xf32>
    %24 = tpu.matmul %21, %23, %cst_29 {dimension_numbers = #tpu.dot_dimension_numbers<[1], [0], [0], [1], [0, 0, 1, 1], [], []>} : vector<8x128xbf16>, vector<128x16xbf16>, vector<8x16xf32> -> vector<8x16xf32>
    %c1_30 = arith.constant 1 : index
    %c4_31 = arith.constant 4 : index
    %c0_32 = arith.constant 0 : index
    %25 = vector.load %arg0[%c1_30, %c4_31, %c0_32] : memref<2x14x128xbf16, #tpu.memory_space<vmem>>, vector<1x8x128xbf16>
    %26 = vector.shape_cast %25 : vector<1x8x128xbf16> to vector<8x128xbf16>
    %c2_33 = arith.constant 2 : index
    %c0_34 = arith.constant 0 : index
    %c0_35 = arith.constant 0 : index
    %27 = vector.load %arg1[%c2_33, %c0_34, %c0_35] : memref<4x128x16xbf16, #tpu.memory_space<vmem>>, vector<1x128x16xbf16>
    %28 = vector.shape_cast %27 : vector<1x128x16xbf16> to vector<128x16xbf16>
    %cst_36 = arith.constant dense<0.000000e+00> : vector<8x16xf32>
    %29 = tpu.matmul %26, %28, %cst_36 {dimension_numbers = #tpu.dot_dimension_numbers<[1], [0], [0], [1], [0, 0, 1, 1], [], []>} : vector<8x128xbf16>, vector<128x16xbf16>, vector<8x16xf32> -> vector<8x16xf32>
    %c0_37 = arith.constant 0 : index
    %c5 = arith.constant 5 : index
    %c0_38 = arith.constant 0 : index
    %30 = vector.load %arg0[%c0_37, %c5, %c0_38] : memref<2x14x128xbf16, #tpu.memory_space<vmem>>, vector<1x8x128xbf16>
    %31 = vector.shape_cast %30 : vector<1x8x128xbf16> to vector<8x128xbf16>
    %c3 = arith.constant 3 : index
    %c0_39 = arith.constant 0 : index
    %c0_40 = arith.constant 0 : index
    %32 = vector.load %arg1[%c3, %c0_39, %c0_40] : memref<4x128x16xbf16, #tpu.memory_space<vmem>>, vector<1x128x16xbf16>
    %33 = vector.shape_cast %32 : vector<1x128x16xbf16> to vector<128x16xbf16>
    %cst_41 = arith.constant dense<0.000000e+00> : vector<8x16xf32>
    %34 = tpu.matmul %31, %33, %cst_41 {dimension_numbers = #tpu.dot_dimension_numbers<[1], [0], [0], [1], [0, 0, 1, 1], [], []>} : vector<8x128xbf16>, vector<128x16xbf16>, vector<8x16xf32> -> vector<8x16xf32>
    %c1_42 = arith.constant 1 : index
    %c5_43 = arith.constant 5 : index
    %c0_44 = arith.constant 0 : index
    %35 = vector.load %arg0[%c1_42, %c5_43, %c0_44] : memref<2x14x128xbf16, #tpu.memory_space<vmem>>, vector<1x8x128xbf16>
    %36 = vector.shape_cast %35 : vector<1x8x128xbf16> to vector<8x128xbf16>
    %c3_45 = arith.constant 3 : index
    %c0_46 = arith.constant 0 : index
    %c0_47 = arith.constant 0 : index
    %37 = vector.load %arg1[%c3_45, %c0_46, %c0_47] : memref<4x128x16xbf16, #tpu.memory_space<vmem>>, vector<1x128x16xbf16>
    %38 = vector.shape_cast %37 : vector<1x128x16xbf16> to vector<128x16xbf16>
    %cst_48 = arith.constant dense<0.000000e+00> : vector<8x16xf32>
    %39 = tpu.matmul %36, %38, %cst_48 {dimension_numbers = #tpu.dot_dimension_numbers<[1], [0], [0], [1], [0, 0, 1, 1], [], []>} : vector<8x128xbf16>, vector<128x16xbf16>, vector<8x16xf32> -> vector<8x16xf32>
    %40 = tpu.iota {dimensions = array<i32: 0>} : vector<8x1xi32>
    %c0_i32 = arith.constant 0 : i32
    %41 = vector.broadcast %c0_i32 : i32 to vector<8x1xi32>
    %42 = arith.cmpi sge, %40, %41 : vector<8x1xi32>
    %c2_i32 = arith.constant 2 : i32
    %43 = vector.broadcast %c2_i32 : i32 to vector<8x1xi32>
    %44 = arith.cmpi slt, %40, %43 : vector<8x1xi32>
    %45 = arith.andi %42, %44 : vector<8x1xi1>
    %c4_i32 = arith.constant 4 : i32
    %46 = vector.broadcast %c4_i32 : i32 to vector<8x1xi32>
    %47 = arith.cmpi sge, %40, %46 : vector<8x1xi32>
    %c6_i32 = arith.constant 6 : i32
    %48 = vector.broadcast %c6_i32 : i32 to vector<8x1xi32>
    %49 = arith.cmpi slt, %40, %48 : vector<8x1xi32>
    %50 = arith.andi %47, %49 : vector<8x1xi1>
    %51 = arith.ori %45, %50 : vector<8x1xi1>
    %cst_49 = arith.constant 0.000000e+00 : f32
    %52 = vector.broadcast %cst_49 : f32 to vector<1x16xf32>
    %cst_50 = arith.constant 0.000000e+00 : f32
    %53 = vector.broadcast %cst_50 : f32 to vector<1x16xf32>
    %cst_51 = arith.constant 0.000000e+00 : f32
    %54 = vector.shape_cast %51 : vector<8x1xi1> to vector<8x1xi1>
    %55 = vector.broadcast %54 : vector<8x1xi1> to vector<8x16xi1>
    %56 = vector.broadcast %cst_51 : f32 to vector<8x16xf32>
    %57 = arith.select %55, %4, %56 : vector<8x16xi1>, vector<8x16xf32>
    %cst_52 = arith.constant dense<0.000000e+00> : vector<16xf32>
    %58 = vector.multi_reduction <add>, %57, %cst_52 [0] : vector<8x16xf32> to vector<16xf32>
    %59 = vector.shape_cast %58 : vector<16xf32> to vector<1x16xf32>
    %60 = arith.addf %52, %59 : vector<1x16xf32>
    %61 = arith.mulf %57, %57 : vector<8x16xf32>
    %cst_53 = arith.constant dense<0.000000e+00> : vector<16xf32>
    %62 = vector.multi_reduction <add>, %61, %cst_53 [0] : vector<8x16xf32> to vector<16xf32>
    %63 = vector.shape_cast %62 : vector<16xf32> to vector<1x16xf32>
    %64 = arith.addf %53, %63 : vector<1x16xf32>
    %cst_54 = arith.constant 0.000000e+00 : f32
    %65 = vector.shape_cast %51 : vector<8x1xi1> to vector<8x1xi1>
    %66 = vector.broadcast %65 : vector<8x1xi1> to vector<8x16xi1>
    %67 = vector.broadcast %cst_54 : f32 to vector<8x16xf32>
    %68 = arith.select %66, %9, %67 : vector<8x16xi1>, vector<8x16xf32>
    %cst_55 = arith.constant dense<0.000000e+00> : vector<16xf32>
    %69 = vector.multi_reduction <add>, %68, %cst_55 [0] : vector<8x16xf32> to vector<16xf32>
    %70 = vector.shape_cast %69 : vector<16xf32> to vector<1x16xf32>
    %71 = arith.addf %60, %70 : vector<1x16xf32>
    %72 = arith.mulf %68, %68 : vector<8x16xf32>
    %cst_56 = arith.constant dense<0.000000e+00> : vector<16xf32>
    %73 = vector.multi_reduction <add>, %72, %cst_56 [0] : vector<8x16xf32> to vector<16xf32>
    %74 = vector.shape_cast %73 : vector<16xf32> to vector<1x16xf32>
    %75 = arith.addf %64, %74 : vector<1x16xf32>
    %cst_57 = arith.constant 0.000000e+00 : f32
    %76 = vector.shape_cast %51 : vector<8x1xi1> to vector<8x1xi1>
    %77 = vector.broadcast %76 : vector<8x1xi1> to vector<8x16xi1>
    %78 = vector.broadcast %cst_57 : f32 to vector<8x16xf32>
    %79 = arith.select %77, %14, %78 : vector<8x16xi1>, vector<8x16xf32>
    %cst_58 = arith.constant dense<0.000000e+00> : vector<16xf32>
    %80 = vector.multi_reduction <add>, %79, %cst_58 [0] : vector<8x16xf32> to vector<16xf32>
    %81 = vector.shape_cast %80 : vector<16xf32> to vector<1x16xf32>
    %82 = arith.addf %71, %81 : vector<1x16xf32>
    %83 = arith.mulf %79, %79 : vector<8x16xf32>
    %cst_59 = arith.constant dense<0.000000e+00> : vector<16xf32>
    %84 = vector.multi_reduction <add>, %83, %cst_59 [0] : vector<8x16xf32> to vector<16xf32>
    %85 = vector.shape_cast %84 : vector<16xf32> to vector<1x16xf32>
    %86 = arith.addf %75, %85 : vector<1x16xf32>
    %cst_60 = arith.constant 0.000000e+00 : f32
    %87 = vector.shape_cast %51 : vector<8x1xi1> to vector<8x1xi1>
    %88 = vector.broadcast %87 : vector<8x1xi1> to vector<8x16xi1>
    %89 = vector.broadcast %cst_60 : f32 to vector<8x16xf32>
    %90 = arith.select %88, %19, %89 : vector<8x16xi1>, vector<8x16xf32>
    %cst_61 = arith.constant dense<0.000000e+00> : vector<16xf32>
    %91 = vector.multi_reduction <add>, %90, %cst_61 [0] : vector<8x16xf32> to vector<16xf32>
    %92 = vector.shape_cast %91 : vector<16xf32> to vector<1x16xf32>
    %93 = arith.addf %82, %92 : vector<1x16xf32>
    %94 = arith.mulf %90, %90 : vector<8x16xf32>
    %cst_62 = arith.constant dense<0.000000e+00> : vector<16xf32>
    %95 = vector.multi_reduction <add>, %94, %cst_62 [0] : vector<8x16xf32> to vector<16xf32>
    %96 = vector.shape_cast %95 : vector<16xf32> to vector<1x16xf32>
    %97 = arith.addf %86, %96 : vector<1x16xf32>
    %cst_63 = arith.constant 0.000000e+00 : f32
    %98 = vector.shape_cast %51 : vector<8x1xi1> to vector<8x1xi1>
    %99 = vector.broadcast %98 : vector<8x1xi1> to vector<8x16xi1>
    %100 = vector.broadcast %cst_63 : f32 to vector<8x16xf32>
    %101 = arith.select %99, %24, %100 : vector<8x16xi1>, vector<8x16xf32>
    %cst_64 = arith.constant dense<0.000000e+00> : vector<16xf32>
    %102 = vector.multi_reduction <add>, %101, %cst_64 [0] : vector<8x16xf32> to vector<16xf32>
    %103 = vector.shape_cast %102 : vector<16xf32> to vector<1x16xf32>
    %104 = arith.addf %93, %103 : vector<1x16xf32>
    %105 = arith.mulf %101, %101 : vector<8x16xf32>
    %cst_65 = arith.constant dense<0.000000e+00> : vector<16xf32>
    %106 = vector.multi_reduction <add>, %105, %cst_65 [0] : vector<8x16xf32> to vector<16xf32>
    %107 = vector.shape_cast %106 : vector<16xf32> to vector<1x16xf32>
    %108 = arith.addf %97, %107 : vector<1x16xf32>
    %cst_66 = arith.constant 0.000000e+00 : f32
    %109 = vector.shape_cast %51 : vector<8x1xi1> to vector<8x1xi1>
    %110 = vector.broadcast %109 : vector<8x1xi1> to vector<8x16xi1>
    %111 = vector.broadcast %cst_66 : f32 to vector<8x16xf32>
    %112 = arith.select %110, %29, %111 : vector<8x16xi1>, vector<8x16xf32>
    %cst_67 = arith.constant dense<0.000000e+00> : vector<16xf32>
    %113 = vector.multi_reduction <add>, %112, %cst_67 [0] : vector<8x16xf32> to vector<16xf32>
    %114 = vector.shape_cast %113 : vector<16xf32> to vector<1x16xf32>
    %115 = arith.addf %104, %114 : vector<1x16xf32>
    %116 = arith.mulf %112, %112 : vector<8x16xf32>
    %cst_68 = arith.constant dense<0.000000e+00> : vector<16xf32>
    %117 = vector.multi_reduction <add>, %116, %cst_68 [0] : vector<8x16xf32> to vector<16xf32>
    %118 = vector.shape_cast %117 : vector<16xf32> to vector<1x16xf32>
    %119 = arith.addf %108, %118 : vector<1x16xf32>
    %cst_69 = arith.constant 0.000000e+00 : f32
    %120 = vector.shape_cast %51 : vector<8x1xi1> to vector<8x1xi1>
    %121 = vector.broadcast %120 : vector<8x1xi1> to vector<8x16xi1>
    %122 = vector.broadcast %cst_69 : f32 to vector<8x16xf32>
    %123 = arith.select %121, %34, %122 : vector<8x16xi1>, vector<8x16xf32>
    %cst_70 = arith.constant dense<0.000000e+00> : vector<16xf32>
    %124 = vector.multi_reduction <add>, %123, %cst_70 [0] : vector<8x16xf32> to vector<16xf32>
    %125 = vector.shape_cast %124 : vector<16xf32> to vector<1x16xf32>
    %126 = arith.addf %115, %125 : vector<1x16xf32>
    %127 = arith.mulf %123, %123 : vector<8x16xf32>
    %cst_71 = arith.constant dense<0.000000e+00> : vector<16xf32>
    %128 = vector.multi_reduction <add>, %127, %cst_71 [0] : vector<8x16xf32> to vector<16xf32>
    %129 = vector.shape_cast %128 : vector<16xf32> to vector<1x16xf32>
    %130 = arith.addf %119, %129 : vector<1x16xf32>
    %cst_72 = arith.constant 0.000000e+00 : f32
    %131 = vector.shape_cast %51 : vector<8x1xi1> to vector<8x1xi1>
    %132 = vector.broadcast %131 : vector<8x1xi1> to vector<8x16xi1>
    %133 = vector.broadcast %cst_72 : f32 to vector<8x16xf32>
    %134 = arith.select %132, %39, %133 : vector<8x16xi1>, vector<8x16xf32>
    %cst_73 = arith.constant dense<0.000000e+00> : vector<16xf32>
    %135 = vector.multi_reduction <add>, %134, %cst_73 [0] : vector<8x16xf32> to vector<16xf32>
    %136 = vector.shape_cast %135 : vector<16xf32> to vector<1x16xf32>
    %137 = arith.addf %126, %136 : vector<1x16xf32>
    %138 = arith.mulf %134, %134 : vector<8x16xf32>
    %cst_74 = arith.constant dense<0.000000e+00> : vector<16xf32>
    %139 = vector.multi_reduction <add>, %138, %cst_74 [0] : vector<8x16xf32> to vector<16xf32>
    %140 = vector.shape_cast %139 : vector<16xf32> to vector<1x16xf32>
    %141 = arith.addf %130, %140 : vector<1x16xf32>
    %cst_75 = arith.constant 3.125000e-02 : f32
    %142 = vector.broadcast %cst_75 : f32 to vector<1x16xf32>
    %143 = arith.mulf %137, %142 : vector<1x16xf32>
    %cst_76 = arith.constant 3.125000e-02 : f32
    %144 = vector.broadcast %cst_76 : f32 to vector<1x16xf32>
    %145 = arith.mulf %141, %144 : vector<1x16xf32>
    %146 = arith.mulf %143, %143 : vector<1x16xf32>
    %147 = arith.subf %145, %146 : vector<1x16xf32>
    %cst_77 = arith.constant 9.99999974E-6 : f32
    %148 = vector.broadcast %cst_77 : f32 to vector<1x16xf32>
    %149 = arith.addf %147, %148 : vector<1x16xf32>
    %150 = math.rsqrt %149 : vector<1x16xf32>
    %151 = vector.broadcast %143 : vector<1x16xf32> to vector<8x16xf32>
    %152 = arith.subf %4, %151 : vector<8x16xf32>
    %153 = vector.broadcast %150 : vector<1x16xf32> to vector<8x16xf32>
    %154 = arith.mulf %152, %153 : vector<8x16xf32>
    %cst_78 = arith.constant 0.000000e+00 : f32
    %155 = vector.broadcast %cst_78 : f32 to vector<8x16xf32>
    %156 = arith.maximumf %154, %155 : vector<8x16xf32>
    %157 = arith.truncf %156 : vector<8x16xf32> to vector<8x16xbf16>
    %c0_79 = arith.constant 0 : index
    %c0_80 = arith.constant 0 : index
    %c0_81 = arith.constant 0 : index
    %c0_82 = arith.constant 0 : index
    %158 = vector.load %arg2[%c0_79, %c0_80, %c0_81, %c0_82] : memref<2x4x8x16xbf16, #tpu.memory_space<vmem>>, vector<1x1x8x16xbf16>
    %159 = vector.shape_cast %158 : vector<1x1x8x16xbf16> to vector<8x16xbf16>
    %160 = vector.shape_cast %157 : vector<8x16xbf16> to vector<1x1x8x16xbf16>
    tpu.vector_store %arg2[%c0_79, %c0_80, %c0_81, %c0_82], %160 {strides = array<i32>} : memref<2x4x8x16xbf16, #tpu.memory_space<vmem>>, vector<1x1x8x16xbf16>,
    %161 = vector.broadcast %143 : vector<1x16xf32> to vector<8x16xf32>
    %162 = arith.subf %9, %161 : vector<8x16xf32>
    %163 = vector.broadcast %150 : vector<1x16xf32> to vector<8x16xf32>
    %164 = arith.mulf %162, %163 : vector<8x16xf32>
    %cst_83 = arith.constant 0.000000e+00 : f32
    %165 = vector.broadcast %cst_83 : f32 to vector<8x16xf32>
    %166 = arith.maximumf %164, %165 : vector<8x16xf32>
    %167 = arith.truncf %166 : vector<8x16xf32> to vector<8x16xbf16>
    %c1_84 = arith.constant 1 : index
    %c0_85 = arith.constant 0 : index
    %c0_86 = arith.constant 0 : index
    %c0_87 = arith.constant 0 : index
    %168 = vector.load %arg2[%c1_84, %c0_85, %c0_86, %c0_87] : memref<2x4x8x16xbf16, #tpu.memory_space<vmem>>, vector<1x1x8x16xbf16>
    %169 = vector.shape_cast %168 : vector<1x1x8x16xbf16> to vector<8x16xbf16>
    %170 = vector.shape_cast %167 : vector<8x16xbf16> to vector<1x1x8x16xbf16>
    tpu.vector_store %arg2[%c1_84, %c0_85, %c0_86, %c0_87], %170 {strides = array<i32>} : memref<2x4x8x16xbf16, #tpu.memory_space<vmem>>, vector<1x1x8x16xbf16>,
    %171 = vector.broadcast %143 : vector<1x16xf32> to vector<8x16xf32>
    %172 = arith.subf %14, %171 : vector<8x16xf32>
    %173 = vector.broadcast %150 : vector<1x16xf32> to vector<8x16xf32>
    %174 = arith.mulf %172, %173 : vector<8x16xf32>
    %cst_88 = arith.constant 0.000000e+00 : f32
    %175 = vector.broadcast %cst_88 : f32 to vector<8x16xf32>
    %176 = arith.maximumf %174, %175 : vector<8x16xf32>
    %177 = arith.truncf %176 : vector<8x16xf32> to vector<8x16xbf16>
    %c0_89 = arith.constant 0 : index
    %c1_90 = arith.constant 1 : index
    %c0_91 = arith.constant 0 : index
    %c0_92 = arith.constant 0 : index
    %178 = vector.load %arg2[%c0_89, %c1_90, %c0_91, %c0_92] : memref<2x4x8x16xbf16, #tpu.memory_space<vmem>>, vector<1x1x8x16xbf16>
    %179 = vector.shape_cast %178 : vector<1x1x8x16xbf16> to vector<8x16xbf16>
    %180 = vector.shape_cast %177 : vector<8x16xbf16> to vector<1x1x8x16xbf16>
    tpu.vector_store %arg2[%c0_89, %c1_90, %c0_91, %c0_92], %180 {strides = array<i32>} : memref<2x4x8x16xbf16, #tpu.memory_space<vmem>>, vector<1x1x8x16xbf16>,
    %181 = vector.broadcast %143 : vector<1x16xf32> to vector<8x16xf32>
    %182 = arith.subf %19, %181 : vector<8x16xf32>
    %183 = vector.broadcast %150 : vector<1x16xf32> to vector<8x16xf32>
    %184 = arith.mulf %182, %183 : vector<8x16xf32>
    %cst_93 = arith.constant 0.000000e+00 : f32
    %185 = vector.broadcast %cst_93 : f32 to vector<8x16xf32>
    %186 = arith.maximumf %184, %185 : vector<8x16xf32>
    %187 = arith.truncf %186 : vector<8x16xf32> to vector<8x16xbf16>
    %c1_94 = arith.constant 1 : index
    %c1_95 = arith.constant 1 : index
    %c0_96 = arith.constant 0 : index
    %c0_97 = arith.constant 0 : index
    %188 = vector.load %arg2[%c1_94, %c1_95, %c0_96, %c0_97] : memref<2x4x8x16xbf16, #tpu.memory_space<vmem>>, vector<1x1x8x16xbf16>
    %189 = vector.shape_cast %188 : vector<1x1x8x16xbf16> to vector<8x16xbf16>
    %190 = vector.shape_cast %187 : vector<8x16xbf16> to vector<1x1x8x16xbf16>
    tpu.vector_store %arg2[%c1_94, %c1_95, %c0_96, %c0_97], %190 {strides = array<i32>} : memref<2x4x8x16xbf16, #tpu.memory_space<vmem>>, vector<1x1x8x16xbf16>,
    %191 = vector.broadcast %143 : vector<1x16xf32> to vector<8x16xf32>
    %192 = arith.subf %24, %191 : vector<8x16xf32>
    %193 = vector.broadcast %150 : vector<1x16xf32> to vector<8x16xf32>
    %194 = arith.mulf %192, %193 : vector<8x16xf32>
    %cst_98 = arith.constant 0.000000e+00 : f32
    %195 = vector.broadcast %cst_98 : f32 to vector<8x16xf32>
    %196 = arith.maximumf %194, %195 : vector<8x16xf32>
    %197 = arith.truncf %196 : vector<8x16xf32> to vector<8x16xbf16>
    %c0_99 = arith.constant 0 : index
    %c2_100 = arith.constant 2 : index
    %c0_101 = arith.constant 0 : index
    %c0_102 = arith.constant 0 : index
    %198 = vector.load %arg2[%c0_99, %c2_100, %c0_101, %c0_102] : memref<2x4x8x16xbf16, #tpu.memory_space<vmem>>, vector<1x1x8x16xbf16>
    %199 = vector.shape_cast %198 : vector<1x1x8x16xbf16> to vector<8x16xbf16>
    %200 = vector.shape_cast %197 : vector<8x16xbf16> to vector<1x1x8x16xbf16>
    tpu.vector_store %arg2[%c0_99, %c2_100, %c0_101, %c0_102], %200 {strides = array<i32>} : memref<2x4x8x16xbf16, #tpu.memory_space<vmem>>, vector<1x1x8x16xbf16>,
    %201 = vector.broadcast %143 : vector<1x16xf32> to vector<8x16xf32>
    %202 = arith.subf %29, %201 : vector<8x16xf32>
    %203 = vector.broadcast %150 : vector<1x16xf32> to vector<8x16xf32>
    %204 = arith.mulf %202, %203 : vector<8x16xf32>
    %cst_103 = arith.constant 0.000000e+00 : f32
    %205 = vector.broadcast %cst_103 : f32 to vector<8x16xf32>
    %206 = arith.maximumf %204, %205 : vector<8x16xf32>
    %207 = arith.truncf %206 : vector<8x16xf32> to vector<8x16xbf16>
    %c1_104 = arith.constant 1 : index
    %c2_105 = arith.constant 2 : index
    %c0_106 = arith.constant 0 : index
    %c0_107 = arith.constant 0 : index
    %208 = vector.load %arg2[%c1_104, %c2_105, %c0_106, %c0_107] : memref<2x4x8x16xbf16, #tpu.memory_space<vmem>>, vector<1x1x8x16xbf16>
    %209 = vector.shape_cast %208 : vector<1x1x8x16xbf16> to vector<8x16xbf16>
    %210 = vector.shape_cast %207 : vector<8x16xbf16> to vector<1x1x8x16xbf16>
    tpu.vector_store %arg2[%c1_104, %c2_105, %c0_106, %c0_107], %210 {strides = array<i32>} : memref<2x4x8x16xbf16, #tpu.memory_space<vmem>>, vector<1x1x8x16xbf16>,
    %211 = vector.broadcast %143 : vector<1x16xf32> to vector<8x16xf32>
    %212 = arith.subf %34, %211 : vector<8x16xf32>
    %213 = vector.broadcast %150 : vector<1x16xf32> to vector<8x16xf32>
    %214 = arith.mulf %212, %213 : vector<8x16xf32>
    %cst_108 = arith.constant 0.000000e+00 : f32
    %215 = vector.broadcast %cst_108 : f32 to vector<8x16xf32>
    %216 = arith.maximumf %214, %215 : vector<8x16xf32>
    %217 = arith.truncf %216 : vector<8x16xf32> to vector<8x16xbf16>
    %c0_109 = arith.constant 0 : index
    %c3_110 = arith.constant 3 : index
    %c0_111 = arith.constant 0 : index
    %c0_112 = arith.constant 0 : index
    %218 = vector.load %arg2[%c0_109, %c3_110, %c0_111, %c0_112] : memref<2x4x8x16xbf16, #tpu.memory_space<vmem>>, vector<1x1x8x16xbf16>
    %219 = vector.shape_cast %218 : vector<1x1x8x16xbf16> to vector<8x16xbf16>
    %220 = vector.shape_cast %217 : vector<8x16xbf16> to vector<1x1x8x16xbf16>
    tpu.vector_store %arg2[%c0_109, %c3_110, %c0_111, %c0_112], %220 {strides = array<i32>} : memref<2x4x8x16xbf16, #tpu.memory_space<vmem>>, vector<1x1x8x16xbf16>,
    %221 = vector.broadcast %143 : vector<1x16xf32> to vector<8x16xf32>
    %222 = arith.subf %39, %221 : vector<8x16xf32>
    %223 = vector.broadcast %150 : vector<1x16xf32> to vector<8x16xf32>
    %224 = arith.mulf %222, %223 : vector<8x16xf32>
    %cst_113 = arith.constant 0.000000e+00 : f32
    %225 = vector.broadcast %cst_113 : f32 to vector<8x16xf32>
    %226 = arith.maximumf %224, %225 : vector<8x16xf32>
    %227 = arith.truncf %226 : vector<8x16xf32> to vector<8x16xbf16>
    %c1_114 = arith.constant 1 : index
    %c3_115 = arith.constant 3 : index
    %c0_116 = arith.constant 0 : index
    %c0_117 = arith.constant 0 : index
    %228 = vector.load %arg2[%c1_114, %c3_115, %c0_116, %c0_117] : memref<2x4x8x16xbf16, #tpu.memory_space<vmem>>, vector<1x1x8x16xbf16>
    %229 = vector.shape_cast %228 : vector<1x1x8x16xbf16> to vector<8x16xbf16>
    %230 = vector.shape_cast %227 : vector<8x16xbf16> to vector<1x1x8x16xbf16>
    tpu.vector_store %arg2[%c1_114, %c3_115, %c0_116, %c0_117], %230 {strides = array<i32>} : memref<2x4x8x16xbf16, #tpu.memory_space<vmem>>, vector<1x1x8x16xbf16>,
    return
  }
}

module attributes {stable_mosaic.version = 11 : i64} {
  func.func @_convT_bn_relu_kernel(%arg0: memref<2x32x64xbf16, #tpu.memory_space<vmem>>, %arg1: memref<4x64x8xbf16, #tpu.memory_space<vmem>>, %arg2: memref<2x4x24x8xbf16, #tpu.memory_space<vmem>>) attributes {dimension_semantics = [], scalar_prefetch = 0 : i64, scratch_operands = 0 : i64, tpu.core_type = #tpu.core_type<tc>} {
    %c0 = arith.constant 0 : index
    %c0_0 = arith.constant 0 : index
    %c0_1 = arith.constant 0 : index
    %0 = vector.load %arg0[%c0, %c0_0, %c0_1] : memref<2x32x64xbf16, #tpu.memory_space<vmem>>, vector<1x24x64xbf16>
    %1 = vector.shape_cast %0 : vector<1x24x64xbf16> to vector<24x64xbf16>
    %c0_2 = arith.constant 0 : index
    %c0_3 = arith.constant 0 : index
    %c0_4 = arith.constant 0 : index
    %2 = vector.load %arg1[%c0_2, %c0_3, %c0_4] : memref<4x64x8xbf16, #tpu.memory_space<vmem>>, vector<1x64x8xbf16>
    %3 = vector.shape_cast %2 : vector<1x64x8xbf16> to vector<64x8xbf16>
    %cst = arith.constant dense<0.000000e+00> : vector<24x8xf32>
    %4 = tpu.matmul %1, %3, %cst {dimension_numbers = #tpu.dot_dimension_numbers<[1], [0], [0], [1], [0, 0, 1, 1], [], []>} : vector<24x64xbf16>, vector<64x8xbf16>, vector<24x8xf32> -> vector<24x8xf32>
    %c1 = arith.constant 1 : index
    %c0_5 = arith.constant 0 : index
    %c0_6 = arith.constant 0 : index
    %5 = vector.load %arg0[%c1, %c0_5, %c0_6] : memref<2x32x64xbf16, #tpu.memory_space<vmem>>, vector<1x24x64xbf16>
    %6 = vector.shape_cast %5 : vector<1x24x64xbf16> to vector<24x64xbf16>
    %c0_7 = arith.constant 0 : index
    %c0_8 = arith.constant 0 : index
    %c0_9 = arith.constant 0 : index
    %7 = vector.load %arg1[%c0_7, %c0_8, %c0_9] : memref<4x64x8xbf16, #tpu.memory_space<vmem>>, vector<1x64x8xbf16>
    %8 = vector.shape_cast %7 : vector<1x64x8xbf16> to vector<64x8xbf16>
    %cst_10 = arith.constant dense<0.000000e+00> : vector<24x8xf32>
    %9 = tpu.matmul %6, %8, %cst_10 {dimension_numbers = #tpu.dot_dimension_numbers<[1], [0], [0], [1], [0, 0, 1, 1], [], []>} : vector<24x64xbf16>, vector<64x8xbf16>, vector<24x8xf32> -> vector<24x8xf32>
    %c0_11 = arith.constant 0 : index
    %c1_12 = arith.constant 1 : index
    %c0_13 = arith.constant 0 : index
    %10 = vector.load %arg0[%c0_11, %c1_12, %c0_13] : memref<2x32x64xbf16, #tpu.memory_space<vmem>>, vector<1x24x64xbf16>
    %11 = vector.shape_cast %10 : vector<1x24x64xbf16> to vector<24x64xbf16>
    %c1_14 = arith.constant 1 : index
    %c0_15 = arith.constant 0 : index
    %c0_16 = arith.constant 0 : index
    %12 = vector.load %arg1[%c1_14, %c0_15, %c0_16] : memref<4x64x8xbf16, #tpu.memory_space<vmem>>, vector<1x64x8xbf16>
    %13 = vector.shape_cast %12 : vector<1x64x8xbf16> to vector<64x8xbf16>
    %cst_17 = arith.constant dense<0.000000e+00> : vector<24x8xf32>
    %14 = tpu.matmul %11, %13, %cst_17 {dimension_numbers = #tpu.dot_dimension_numbers<[1], [0], [0], [1], [0, 0, 1, 1], [], []>} : vector<24x64xbf16>, vector<64x8xbf16>, vector<24x8xf32> -> vector<24x8xf32>
    %c1_18 = arith.constant 1 : index
    %c1_19 = arith.constant 1 : index
    %c0_20 = arith.constant 0 : index
    %15 = vector.load %arg0[%c1_18, %c1_19, %c0_20] : memref<2x32x64xbf16, #tpu.memory_space<vmem>>, vector<1x24x64xbf16>
    %16 = vector.shape_cast %15 : vector<1x24x64xbf16> to vector<24x64xbf16>
    %c1_21 = arith.constant 1 : index
    %c0_22 = arith.constant 0 : index
    %c0_23 = arith.constant 0 : index
    %17 = vector.load %arg1[%c1_21, %c0_22, %c0_23] : memref<4x64x8xbf16, #tpu.memory_space<vmem>>, vector<1x64x8xbf16>
    %18 = vector.shape_cast %17 : vector<1x64x8xbf16> to vector<64x8xbf16>
    %cst_24 = arith.constant dense<0.000000e+00> : vector<24x8xf32>
    %19 = tpu.matmul %16, %18, %cst_24 {dimension_numbers = #tpu.dot_dimension_numbers<[1], [0], [0], [1], [0, 0, 1, 1], [], []>} : vector<24x64xbf16>, vector<64x8xbf16>, vector<24x8xf32> -> vector<24x8xf32>
    %c0_25 = arith.constant 0 : index
    %c6 = arith.constant 6 : index
    %c0_26 = arith.constant 0 : index
    %20 = vector.load %arg0[%c0_25, %c6, %c0_26] : memref<2x32x64xbf16, #tpu.memory_space<vmem>>, vector<1x24x64xbf16>
    %21 = vector.shape_cast %20 : vector<1x24x64xbf16> to vector<24x64xbf16>
    %c2 = arith.constant 2 : index
    %c0_27 = arith.constant 0 : index
    %c0_28 = arith.constant 0 : index
    %22 = vector.load %arg1[%c2, %c0_27, %c0_28] : memref<4x64x8xbf16, #tpu.memory_space<vmem>>, vector<1x64x8xbf16>
    %23 = vector.shape_cast %22 : vector<1x64x8xbf16> to vector<64x8xbf16>
    %cst_29 = arith.constant dense<0.000000e+00> : vector<24x8xf32>
    %24 = tpu.matmul %21, %23, %cst_29 {dimension_numbers = #tpu.dot_dimension_numbers<[1], [0], [0], [1], [0, 0, 1, 1], [], []>} : vector<24x64xbf16>, vector<64x8xbf16>, vector<24x8xf32> -> vector<24x8xf32>
    %c1_30 = arith.constant 1 : index
    %c6_31 = arith.constant 6 : index
    %c0_32 = arith.constant 0 : index
    %25 = vector.load %arg0[%c1_30, %c6_31, %c0_32] : memref<2x32x64xbf16, #tpu.memory_space<vmem>>, vector<1x24x64xbf16>
    %26 = vector.shape_cast %25 : vector<1x24x64xbf16> to vector<24x64xbf16>
    %c2_33 = arith.constant 2 : index
    %c0_34 = arith.constant 0 : index
    %c0_35 = arith.constant 0 : index
    %27 = vector.load %arg1[%c2_33, %c0_34, %c0_35] : memref<4x64x8xbf16, #tpu.memory_space<vmem>>, vector<1x64x8xbf16>
    %28 = vector.shape_cast %27 : vector<1x64x8xbf16> to vector<64x8xbf16>
    %cst_36 = arith.constant dense<0.000000e+00> : vector<24x8xf32>
    %29 = tpu.matmul %26, %28, %cst_36 {dimension_numbers = #tpu.dot_dimension_numbers<[1], [0], [0], [1], [0, 0, 1, 1], [], []>} : vector<24x64xbf16>, vector<64x8xbf16>, vector<24x8xf32> -> vector<24x8xf32>
    %c0_37 = arith.constant 0 : index
    %c7 = arith.constant 7 : index
    %c0_38 = arith.constant 0 : index
    %30 = vector.load %arg0[%c0_37, %c7, %c0_38] : memref<2x32x64xbf16, #tpu.memory_space<vmem>>, vector<1x24x64xbf16>
    %31 = vector.shape_cast %30 : vector<1x24x64xbf16> to vector<24x64xbf16>
    %c3 = arith.constant 3 : index
    %c0_39 = arith.constant 0 : index
    %c0_40 = arith.constant 0 : index
    %32 = vector.load %arg1[%c3, %c0_39, %c0_40] : memref<4x64x8xbf16, #tpu.memory_space<vmem>>, vector<1x64x8xbf16>
    %33 = vector.shape_cast %32 : vector<1x64x8xbf16> to vector<64x8xbf16>
    %cst_41 = arith.constant dense<0.000000e+00> : vector<24x8xf32>
    %34 = tpu.matmul %31, %33, %cst_41 {dimension_numbers = #tpu.dot_dimension_numbers<[1], [0], [0], [1], [0, 0, 1, 1], [], []>} : vector<24x64xbf16>, vector<64x8xbf16>, vector<24x8xf32> -> vector<24x8xf32>
    %c1_42 = arith.constant 1 : index
    %c7_43 = arith.constant 7 : index
    %c0_44 = arith.constant 0 : index
    %35 = vector.load %arg0[%c1_42, %c7_43, %c0_44] : memref<2x32x64xbf16, #tpu.memory_space<vmem>>, vector<1x24x64xbf16>
    %36 = vector.shape_cast %35 : vector<1x24x64xbf16> to vector<24x64xbf16>
    %c3_45 = arith.constant 3 : index
    %c0_46 = arith.constant 0 : index
    %c0_47 = arith.constant 0 : index
    %37 = vector.load %arg1[%c3_45, %c0_46, %c0_47] : memref<4x64x8xbf16, #tpu.memory_space<vmem>>, vector<1x64x8xbf16>
    %38 = vector.shape_cast %37 : vector<1x64x8xbf16> to vector<64x8xbf16>
    %cst_48 = arith.constant dense<0.000000e+00> : vector<24x8xf32>
    %39 = tpu.matmul %36, %38, %cst_48 {dimension_numbers = #tpu.dot_dimension_numbers<[1], [0], [0], [1], [0, 0, 1, 1], [], []>} : vector<24x64xbf16>, vector<64x8xbf16>, vector<24x8xf32> -> vector<24x8xf32>
    %40 = tpu.iota {dimensions = array<i32: 0>} : vector<24x1xi32>
    %c0_i32 = arith.constant 0 : i32
    %41 = vector.broadcast %c0_i32 : i32 to vector<24x1xi32>
    %42 = arith.cmpi sge, %40, %41 : vector<24x1xi32>
    %c4_i32 = arith.constant 4 : i32
    %43 = vector.broadcast %c4_i32 : i32 to vector<24x1xi32>
    %44 = arith.cmpi slt, %40, %43 : vector<24x1xi32>
    %45 = arith.andi %42, %44 : vector<24x1xi1>
    %c6_i32 = arith.constant 6 : i32
    %46 = vector.broadcast %c6_i32 : i32 to vector<24x1xi32>
    %47 = arith.cmpi sge, %40, %46 : vector<24x1xi32>
    %c10_i32 = arith.constant 10 : i32
    %48 = vector.broadcast %c10_i32 : i32 to vector<24x1xi32>
    %49 = arith.cmpi slt, %40, %48 : vector<24x1xi32>
    %50 = arith.andi %47, %49 : vector<24x1xi1>
    %51 = arith.ori %45, %50 : vector<24x1xi1>
    %c12_i32 = arith.constant 12 : i32
    %52 = vector.broadcast %c12_i32 : i32 to vector<24x1xi32>
    %53 = arith.cmpi sge, %40, %52 : vector<24x1xi32>
    %c16_i32 = arith.constant 16 : i32
    %54 = vector.broadcast %c16_i32 : i32 to vector<24x1xi32>
    %55 = arith.cmpi slt, %40, %54 : vector<24x1xi32>
    %56 = arith.andi %53, %55 : vector<24x1xi1>
    %57 = arith.ori %51, %56 : vector<24x1xi1>
    %c18_i32 = arith.constant 18 : i32
    %58 = vector.broadcast %c18_i32 : i32 to vector<24x1xi32>
    %59 = arith.cmpi sge, %40, %58 : vector<24x1xi32>
    %c22_i32 = arith.constant 22 : i32
    %60 = vector.broadcast %c22_i32 : i32 to vector<24x1xi32>
    %61 = arith.cmpi slt, %40, %60 : vector<24x1xi32>
    %62 = arith.andi %59, %61 : vector<24x1xi1>
    %63 = arith.ori %57, %62 : vector<24x1xi1>
    %cst_49 = arith.constant 0.000000e+00 : f32
    %64 = vector.broadcast %cst_49 : f32 to vector<1x8xf32>
    %cst_50 = arith.constant 0.000000e+00 : f32
    %65 = vector.broadcast %cst_50 : f32 to vector<1x8xf32>
    %cst_51 = arith.constant 0.000000e+00 : f32
    %66 = vector.shape_cast %63 : vector<24x1xi1> to vector<24x1xi1>
    %67 = vector.broadcast %66 : vector<24x1xi1> to vector<24x8xi1>
    %68 = vector.broadcast %cst_51 : f32 to vector<24x8xf32>
    %69 = arith.select %67, %4, %68 : vector<24x8xi1>, vector<24x8xf32>
    %cst_52 = arith.constant dense<0.000000e+00> : vector<8xf32>
    %70 = vector.multi_reduction <add>, %69, %cst_52 [0] : vector<24x8xf32> to vector<8xf32>
    %71 = vector.shape_cast %70 : vector<8xf32> to vector<1x8xf32>
    %72 = arith.addf %64, %71 : vector<1x8xf32>
    %73 = arith.mulf %69, %69 : vector<24x8xf32>
    %cst_53 = arith.constant dense<0.000000e+00> : vector<8xf32>
    %74 = vector.multi_reduction <add>, %73, %cst_53 [0] : vector<24x8xf32> to vector<8xf32>
    %75 = vector.shape_cast %74 : vector<8xf32> to vector<1x8xf32>
    %76 = arith.addf %65, %75 : vector<1x8xf32>
    %cst_54 = arith.constant 0.000000e+00 : f32
    %77 = vector.shape_cast %63 : vector<24x1xi1> to vector<24x1xi1>
    %78 = vector.broadcast %77 : vector<24x1xi1> to vector<24x8xi1>
    %79 = vector.broadcast %cst_54 : f32 to vector<24x8xf32>
    %80 = arith.select %78, %9, %79 : vector<24x8xi1>, vector<24x8xf32>
    %cst_55 = arith.constant dense<0.000000e+00> : vector<8xf32>
    %81 = vector.multi_reduction <add>, %80, %cst_55 [0] : vector<24x8xf32> to vector<8xf32>
    %82 = vector.shape_cast %81 : vector<8xf32> to vector<1x8xf32>
    %83 = arith.addf %72, %82 : vector<1x8xf32>
    %84 = arith.mulf %80, %80 : vector<24x8xf32>
    %cst_56 = arith.constant dense<0.000000e+00> : vector<8xf32>
    %85 = vector.multi_reduction <add>, %84, %cst_56 [0] : vector<24x8xf32> to vector<8xf32>
    %86 = vector.shape_cast %85 : vector<8xf32> to vector<1x8xf32>
    %87 = arith.addf %76, %86 : vector<1x8xf32>
    %cst_57 = arith.constant 0.000000e+00 : f32
    %88 = vector.shape_cast %63 : vector<24x1xi1> to vector<24x1xi1>
    %89 = vector.broadcast %88 : vector<24x1xi1> to vector<24x8xi1>
    %90 = vector.broadcast %cst_57 : f32 to vector<24x8xf32>
    %91 = arith.select %89, %14, %90 : vector<24x8xi1>, vector<24x8xf32>
    %cst_58 = arith.constant dense<0.000000e+00> : vector<8xf32>
    %92 = vector.multi_reduction <add>, %91, %cst_58 [0] : vector<24x8xf32> to vector<8xf32>
    %93 = vector.shape_cast %92 : vector<8xf32> to vector<1x8xf32>
    %94 = arith.addf %83, %93 : vector<1x8xf32>
    %95 = arith.mulf %91, %91 : vector<24x8xf32>
    %cst_59 = arith.constant dense<0.000000e+00> : vector<8xf32>
    %96 = vector.multi_reduction <add>, %95, %cst_59 [0] : vector<24x8xf32> to vector<8xf32>
    %97 = vector.shape_cast %96 : vector<8xf32> to vector<1x8xf32>
    %98 = arith.addf %87, %97 : vector<1x8xf32>
    %cst_60 = arith.constant 0.000000e+00 : f32
    %99 = vector.shape_cast %63 : vector<24x1xi1> to vector<24x1xi1>
    %100 = vector.broadcast %99 : vector<24x1xi1> to vector<24x8xi1>
    %101 = vector.broadcast %cst_60 : f32 to vector<24x8xf32>
    %102 = arith.select %100, %19, %101 : vector<24x8xi1>, vector<24x8xf32>
    %cst_61 = arith.constant dense<0.000000e+00> : vector<8xf32>
    %103 = vector.multi_reduction <add>, %102, %cst_61 [0] : vector<24x8xf32> to vector<8xf32>
    %104 = vector.shape_cast %103 : vector<8xf32> to vector<1x8xf32>
    %105 = arith.addf %94, %104 : vector<1x8xf32>
    %106 = arith.mulf %102, %102 : vector<24x8xf32>
    %cst_62 = arith.constant dense<0.000000e+00> : vector<8xf32>
    %107 = vector.multi_reduction <add>, %106, %cst_62 [0] : vector<24x8xf32> to vector<8xf32>
    %108 = vector.shape_cast %107 : vector<8xf32> to vector<1x8xf32>
    %109 = arith.addf %98, %108 : vector<1x8xf32>
    %cst_63 = arith.constant 0.000000e+00 : f32
    %110 = vector.shape_cast %63 : vector<24x1xi1> to vector<24x1xi1>
    %111 = vector.broadcast %110 : vector<24x1xi1> to vector<24x8xi1>
    %112 = vector.broadcast %cst_63 : f32 to vector<24x8xf32>
    %113 = arith.select %111, %24, %112 : vector<24x8xi1>, vector<24x8xf32>
    %cst_64 = arith.constant dense<0.000000e+00> : vector<8xf32>
    %114 = vector.multi_reduction <add>, %113, %cst_64 [0] : vector<24x8xf32> to vector<8xf32>
    %115 = vector.shape_cast %114 : vector<8xf32> to vector<1x8xf32>
    %116 = arith.addf %105, %115 : vector<1x8xf32>
    %117 = arith.mulf %113, %113 : vector<24x8xf32>
    %cst_65 = arith.constant dense<0.000000e+00> : vector<8xf32>
    %118 = vector.multi_reduction <add>, %117, %cst_65 [0] : vector<24x8xf32> to vector<8xf32>
    %119 = vector.shape_cast %118 : vector<8xf32> to vector<1x8xf32>
    %120 = arith.addf %109, %119 : vector<1x8xf32>
    %cst_66 = arith.constant 0.000000e+00 : f32
    %121 = vector.shape_cast %63 : vector<24x1xi1> to vector<24x1xi1>
    %122 = vector.broadcast %121 : vector<24x1xi1> to vector<24x8xi1>
    %123 = vector.broadcast %cst_66 : f32 to vector<24x8xf32>
    %124 = arith.select %122, %29, %123 : vector<24x8xi1>, vector<24x8xf32>
    %cst_67 = arith.constant dense<0.000000e+00> : vector<8xf32>
    %125 = vector.multi_reduction <add>, %124, %cst_67 [0] : vector<24x8xf32> to vector<8xf32>
    %126 = vector.shape_cast %125 : vector<8xf32> to vector<1x8xf32>
    %127 = arith.addf %116, %126 : vector<1x8xf32>
    %128 = arith.mulf %124, %124 : vector<24x8xf32>
    %cst_68 = arith.constant dense<0.000000e+00> : vector<8xf32>
    %129 = vector.multi_reduction <add>, %128, %cst_68 [0] : vector<24x8xf32> to vector<8xf32>
    %130 = vector.shape_cast %129 : vector<8xf32> to vector<1x8xf32>
    %131 = arith.addf %120, %130 : vector<1x8xf32>
    %cst_69 = arith.constant 0.000000e+00 : f32
    %132 = vector.shape_cast %63 : vector<24x1xi1> to vector<24x1xi1>
    %133 = vector.broadcast %132 : vector<24x1xi1> to vector<24x8xi1>
    %134 = vector.broadcast %cst_69 : f32 to vector<24x8xf32>
    %135 = arith.select %133, %34, %134 : vector<24x8xi1>, vector<24x8xf32>
    %cst_70 = arith.constant dense<0.000000e+00> : vector<8xf32>
    %136 = vector.multi_reduction <add>, %135, %cst_70 [0] : vector<24x8xf32> to vector<8xf32>
    %137 = vector.shape_cast %136 : vector<8xf32> to vector<1x8xf32>
    %138 = arith.addf %127, %137 : vector<1x8xf32>
    %139 = arith.mulf %135, %135 : vector<24x8xf32>
    %cst_71 = arith.constant dense<0.000000e+00> : vector<8xf32>
    %140 = vector.multi_reduction <add>, %139, %cst_71 [0] : vector<24x8xf32> to vector<8xf32>
    %141 = vector.shape_cast %140 : vector<8xf32> to vector<1x8xf32>
    %142 = arith.addf %131, %141 : vector<1x8xf32>
    %cst_72 = arith.constant 0.000000e+00 : f32
    %143 = vector.shape_cast %63 : vector<24x1xi1> to vector<24x1xi1>
    %144 = vector.broadcast %143 : vector<24x1xi1> to vector<24x8xi1>
    %145 = vector.broadcast %cst_72 : f32 to vector<24x8xf32>
    %146 = arith.select %144, %39, %145 : vector<24x8xi1>, vector<24x8xf32>
    %cst_73 = arith.constant dense<0.000000e+00> : vector<8xf32>
    %147 = vector.multi_reduction <add>, %146, %cst_73 [0] : vector<24x8xf32> to vector<8xf32>
    %148 = vector.shape_cast %147 : vector<8xf32> to vector<1x8xf32>
    %149 = arith.addf %138, %148 : vector<1x8xf32>
    %150 = arith.mulf %146, %146 : vector<24x8xf32>
    %cst_74 = arith.constant dense<0.000000e+00> : vector<8xf32>
    %151 = vector.multi_reduction <add>, %150, %cst_74 [0] : vector<24x8xf32> to vector<8xf32>
    %152 = vector.shape_cast %151 : vector<8xf32> to vector<1x8xf32>
    %153 = arith.addf %142, %152 : vector<1x8xf32>
    %cst_75 = arith.constant 7.812500e-03 : f32
    %154 = vector.broadcast %cst_75 : f32 to vector<1x8xf32>
    %155 = arith.mulf %149, %154 : vector<1x8xf32>
    %cst_76 = arith.constant 7.812500e-03 : f32
    %156 = vector.broadcast %cst_76 : f32 to vector<1x8xf32>
    %157 = arith.mulf %153, %156 : vector<1x8xf32>
    %158 = arith.mulf %155, %155 : vector<1x8xf32>
    %159 = arith.subf %157, %158 : vector<1x8xf32>
    %cst_77 = arith.constant 9.99999974E-6 : f32
    %160 = vector.broadcast %cst_77 : f32 to vector<1x8xf32>
    %161 = arith.addf %159, %160 : vector<1x8xf32>
    %162 = math.rsqrt %161 : vector<1x8xf32>
    %163 = vector.broadcast %155 : vector<1x8xf32> to vector<24x8xf32>
    %164 = arith.subf %4, %163 : vector<24x8xf32>
    %165 = vector.broadcast %162 : vector<1x8xf32> to vector<24x8xf32>
    %166 = arith.mulf %164, %165 : vector<24x8xf32>
    %cst_78 = arith.constant 0.000000e+00 : f32
    %167 = vector.broadcast %cst_78 : f32 to vector<24x8xf32>
    %168 = arith.maximumf %166, %167 : vector<24x8xf32>
    %169 = arith.truncf %168 : vector<24x8xf32> to vector<24x8xbf16>
    %c0_79 = arith.constant 0 : index
    %c0_80 = arith.constant 0 : index
    %c0_81 = arith.constant 0 : index
    %c0_82 = arith.constant 0 : index
    %170 = vector.load %arg2[%c0_79, %c0_80, %c0_81, %c0_82] : memref<2x4x24x8xbf16, #tpu.memory_space<vmem>>, vector<1x1x24x8xbf16>
    %171 = vector.shape_cast %170 : vector<1x1x24x8xbf16> to vector<24x8xbf16>
    %172 = vector.shape_cast %169 : vector<24x8xbf16> to vector<1x1x24x8xbf16>
    tpu.vector_store %arg2[%c0_79, %c0_80, %c0_81, %c0_82], %172 {strides = array<i32>} : memref<2x4x24x8xbf16, #tpu.memory_space<vmem>>, vector<1x1x24x8xbf16>,
    %173 = vector.broadcast %155 : vector<1x8xf32> to vector<24x8xf32>
    %174 = arith.subf %9, %173 : vector<24x8xf32>
    %175 = vector.broadcast %162 : vector<1x8xf32> to vector<24x8xf32>
    %176 = arith.mulf %174, %175 : vector<24x8xf32>
    %cst_83 = arith.constant 0.000000e+00 : f32
    %177 = vector.broadcast %cst_83 : f32 to vector<24x8xf32>
    %178 = arith.maximumf %176, %177 : vector<24x8xf32>
    %179 = arith.truncf %178 : vector<24x8xf32> to vector<24x8xbf16>
    %c1_84 = arith.constant 1 : index
    %c0_85 = arith.constant 0 : index
    %c0_86 = arith.constant 0 : index
    %c0_87 = arith.constant 0 : index
    %180 = vector.load %arg2[%c1_84, %c0_85, %c0_86, %c0_87] : memref<2x4x24x8xbf16, #tpu.memory_space<vmem>>, vector<1x1x24x8xbf16>
    %181 = vector.shape_cast %180 : vector<1x1x24x8xbf16> to vector<24x8xbf16>
    %182 = vector.shape_cast %179 : vector<24x8xbf16> to vector<1x1x24x8xbf16>
    tpu.vector_store %arg2[%c1_84, %c0_85, %c0_86, %c0_87], %182 {strides = array<i32>} : memref<2x4x24x8xbf16, #tpu.memory_space<vmem>>, vector<1x1x24x8xbf16>,
    %183 = vector.broadcast %155 : vector<1x8xf32> to vector<24x8xf32>
    %184 = arith.subf %14, %183 : vector<24x8xf32>
    %185 = vector.broadcast %162 : vector<1x8xf32> to vector<24x8xf32>
    %186 = arith.mulf %184, %185 : vector<24x8xf32>
    %cst_88 = arith.constant 0.000000e+00 : f32
    %187 = vector.broadcast %cst_88 : f32 to vector<24x8xf32>
    %188 = arith.maximumf %186, %187 : vector<24x8xf32>
    %189 = arith.truncf %188 : vector<24x8xf32> to vector<24x8xbf16>
    %c0_89 = arith.constant 0 : index
    %c1_90 = arith.constant 1 : index
    %c0_91 = arith.constant 0 : index
    %c0_92 = arith.constant 0 : index
    %190 = vector.load %arg2[%c0_89, %c1_90, %c0_91, %c0_92] : memref<2x4x24x8xbf16, #tpu.memory_space<vmem>>, vector<1x1x24x8xbf16>
    %191 = vector.shape_cast %190 : vector<1x1x24x8xbf16> to vector<24x8xbf16>
    %192 = vector.shape_cast %189 : vector<24x8xbf16> to vector<1x1x24x8xbf16>
    tpu.vector_store %arg2[%c0_89, %c1_90, %c0_91, %c0_92], %192 {strides = array<i32>} : memref<2x4x24x8xbf16, #tpu.memory_space<vmem>>, vector<1x1x24x8xbf16>,
    %193 = vector.broadcast %155 : vector<1x8xf32> to vector<24x8xf32>
    %194 = arith.subf %19, %193 : vector<24x8xf32>
    %195 = vector.broadcast %162 : vector<1x8xf32> to vector<24x8xf32>
    %196 = arith.mulf %194, %195 : vector<24x8xf32>
    %cst_93 = arith.constant 0.000000e+00 : f32
    %197 = vector.broadcast %cst_93 : f32 to vector<24x8xf32>
    %198 = arith.maximumf %196, %197 : vector<24x8xf32>
    %199 = arith.truncf %198 : vector<24x8xf32> to vector<24x8xbf16>
    %c1_94 = arith.constant 1 : index
    %c1_95 = arith.constant 1 : index
    %c0_96 = arith.constant 0 : index
    %c0_97 = arith.constant 0 : index
    %200 = vector.load %arg2[%c1_94, %c1_95, %c0_96, %c0_97] : memref<2x4x24x8xbf16, #tpu.memory_space<vmem>>, vector<1x1x24x8xbf16>
    %201 = vector.shape_cast %200 : vector<1x1x24x8xbf16> to vector<24x8xbf16>
    %202 = vector.shape_cast %199 : vector<24x8xbf16> to vector<1x1x24x8xbf16>
    tpu.vector_store %arg2[%c1_94, %c1_95, %c0_96, %c0_97], %202 {strides = array<i32>} : memref<2x4x24x8xbf16, #tpu.memory_space<vmem>>, vector<1x1x24x8xbf16>,
    %203 = vector.broadcast %155 : vector<1x8xf32> to vector<24x8xf32>
    %204 = arith.subf %24, %203 : vector<24x8xf32>
    %205 = vector.broadcast %162 : vector<1x8xf32> to vector<24x8xf32>
    %206 = arith.mulf %204, %205 : vector<24x8xf32>
    %cst_98 = arith.constant 0.000000e+00 : f32
    %207 = vector.broadcast %cst_98 : f32 to vector<24x8xf32>
    %208 = arith.maximumf %206, %207 : vector<24x8xf32>
    %209 = arith.truncf %208 : vector<24x8xf32> to vector<24x8xbf16>
    %c0_99 = arith.constant 0 : index
    %c2_100 = arith.constant 2 : index
    %c0_101 = arith.constant 0 : index
    %c0_102 = arith.constant 0 : index
    %210 = vector.load %arg2[%c0_99, %c2_100, %c0_101, %c0_102] : memref<2x4x24x8xbf16, #tpu.memory_space<vmem>>, vector<1x1x24x8xbf16>
    %211 = vector.shape_cast %210 : vector<1x1x24x8xbf16> to vector<24x8xbf16>
    %212 = vector.shape_cast %209 : vector<24x8xbf16> to vector<1x1x24x8xbf16>
    tpu.vector_store %arg2[%c0_99, %c2_100, %c0_101, %c0_102], %212 {strides = array<i32>} : memref<2x4x24x8xbf16, #tpu.memory_space<vmem>>, vector<1x1x24x8xbf16>,
    %213 = vector.broadcast %155 : vector<1x8xf32> to vector<24x8xf32>
    %214 = arith.subf %29, %213 : vector<24x8xf32>
    %215 = vector.broadcast %162 : vector<1x8xf32> to vector<24x8xf32>
    %216 = arith.mulf %214, %215 : vector<24x8xf32>
    %cst_103 = arith.constant 0.000000e+00 : f32
    %217 = vector.broadcast %cst_103 : f32 to vector<24x8xf32>
    %218 = arith.maximumf %216, %217 : vector<24x8xf32>
    %219 = arith.truncf %218 : vector<24x8xf32> to vector<24x8xbf16>
    %c1_104 = arith.constant 1 : index
    %c2_105 = arith.constant 2 : index
    %c0_106 = arith.constant 0 : index
    %c0_107 = arith.constant 0 : index
    %220 = vector.load %arg2[%c1_104, %c2_105, %c0_106, %c0_107] : memref<2x4x24x8xbf16, #tpu.memory_space<vmem>>, vector<1x1x24x8xbf16>
    %221 = vector.shape_cast %220 : vector<1x1x24x8xbf16> to vector<24x8xbf16>
    %222 = vector.shape_cast %219 : vector<24x8xbf16> to vector<1x1x24x8xbf16>
    tpu.vector_store %arg2[%c1_104, %c2_105, %c0_106, %c0_107], %222 {strides = array<i32>} : memref<2x4x24x8xbf16, #tpu.memory_space<vmem>>, vector<1x1x24x8xbf16>,
    %223 = vector.broadcast %155 : vector<1x8xf32> to vector<24x8xf32>
    %224 = arith.subf %34, %223 : vector<24x8xf32>
    %225 = vector.broadcast %162 : vector<1x8xf32> to vector<24x8xf32>
    %226 = arith.mulf %224, %225 : vector<24x8xf32>
    %cst_108 = arith.constant 0.000000e+00 : f32
    %227 = vector.broadcast %cst_108 : f32 to vector<24x8xf32>
    %228 = arith.maximumf %226, %227 : vector<24x8xf32>
    %229 = arith.truncf %228 : vector<24x8xf32> to vector<24x8xbf16>
    %c0_109 = arith.constant 0 : index
    %c3_110 = arith.constant 3 : index
    %c0_111 = arith.constant 0 : index
    %c0_112 = arith.constant 0 : index
    %230 = vector.load %arg2[%c0_109, %c3_110, %c0_111, %c0_112] : memref<2x4x24x8xbf16, #tpu.memory_space<vmem>>, vector<1x1x24x8xbf16>
    %231 = vector.shape_cast %230 : vector<1x1x24x8xbf16> to vector<24x8xbf16>
    %232 = vector.shape_cast %229 : vector<24x8xbf16> to vector<1x1x24x8xbf16>
    tpu.vector_store %arg2[%c0_109, %c3_110, %c0_111, %c0_112], %232 {strides = array<i32>} : memref<2x4x24x8xbf16, #tpu.memory_space<vmem>>, vector<1x1x24x8xbf16>,
    %233 = vector.broadcast %155 : vector<1x8xf32> to vector<24x8xf32>
    %234 = arith.subf %39, %233 : vector<24x8xf32>
    %235 = vector.broadcast %162 : vector<1x8xf32> to vector<24x8xf32>
    %236 = arith.mulf %234, %235 : vector<24x8xf32>
    %cst_113 = arith.constant 0.000000e+00 : f32
    %237 = vector.broadcast %cst_113 : f32 to vector<24x8xf32>
    %238 = arith.maximumf %236, %237 : vector<24x8xf32>
    %239 = arith.truncf %238 : vector<24x8xf32> to vector<24x8xbf16>
    %c1_114 = arith.constant 1 : index
    %c3_115 = arith.constant 3 : index
    %c0_116 = arith.constant 0 : index
    %c0_117 = arith.constant 0 : index
    %240 = vector.load %arg2[%c1_114, %c3_115, %c0_116, %c0_117] : memref<2x4x24x8xbf16, #tpu.memory_space<vmem>>, vector<1x1x24x8xbf16>
    %241 = vector.shape_cast %240 : vector<1x1x24x8xbf16> to vector<24x8xbf16>
    %242 = vector.shape_cast %239 : vector<24x8xbf16> to vector<1x1x24x8xbf16>
    tpu.vector_store %arg2[%c1_114, %c3_115, %c0_116, %c0_117], %242 {strides = array<i32>} : memref<2x4x24x8xbf16, #tpu.memory_space<vmem>>, vector<1x1x24x8xbf16>,
    return
  }
}

module attributes {stable_mosaic.version = 11 : i64} {
  func.func @_convT_tanh_kernel(%arg0: memref<2x92x32xbf16, #tpu.memory_space<vmem>>, %arg1: memref<4x32x1xbf16, #tpu.memory_space<vmem>>, %arg2: memref<1x1xf32, #tpu.memory_space<vmem>>, %arg3: memref<2x4x80x1xbf16, #tpu.memory_space<vmem>>) attributes {dimension_semantics = [], scalar_prefetch = 0 : i64, scratch_operands = 0 : i64, tpu.core_type = #tpu.core_type<tc>} {
    %c0 = arith.constant 0 : index
    %c0_0 = arith.constant 0 : index
    %0 = vector.load %arg2[%c0, %c0_0] : memref<1x1xf32, #tpu.memory_space<vmem>>, vector<1x1xf32>
    %c0_1 = arith.constant 0 : index
    %c0_2 = arith.constant 0 : index
    %c0_3 = arith.constant 0 : index
    %1 = vector.load %arg0[%c0_1, %c0_2, %c0_3] : memref<2x92x32xbf16, #tpu.memory_space<vmem>>, vector<1x80x32xbf16>
    %2 = vector.shape_cast %1 : vector<1x80x32xbf16> to vector<80x32xbf16>
    %c0_4 = arith.constant 0 : index
    %c0_5 = arith.constant 0 : index
    %c0_6 = arith.constant 0 : index
    %3 = vector.load %arg1[%c0_4, %c0_5, %c0_6] : memref<4x32x1xbf16, #tpu.memory_space<vmem>>, vector<1x32x1xbf16>
    %4 = vector.shape_cast %3 : vector<1x32x1xbf16> to vector<32x1xbf16>
    %cst = arith.constant dense<0.000000e+00> : vector<80x1xf32>
    %5 = tpu.matmul %2, %4, %cst {dimension_numbers = #tpu.dot_dimension_numbers<[1], [0], [0], [1], [0, 0, 1, 1], [], []>} : vector<80x32xbf16>, vector<32x1xbf16>, vector<80x1xf32> -> vector<80x1xf32>
    %6 = vector.broadcast %0 : vector<1x1xf32> to vector<80x1xf32>
    %7 = arith.addf %5, %6 : vector<80x1xf32>
    %8 = math.tanh %7 : vector<80x1xf32>
    %9 = arith.truncf %8 : vector<80x1xf32> to vector<80x1xbf16>
    %c0_7 = arith.constant 0 : index
    %c0_8 = arith.constant 0 : index
    %c0_9 = arith.constant 0 : index
    %c0_10 = arith.constant 0 : index
    %10 = vector.load %arg3[%c0_7, %c0_8, %c0_9, %c0_10] : memref<2x4x80x1xbf16, #tpu.memory_space<vmem>>, vector<1x1x80x1xbf16>
    %11 = vector.shape_cast %10 : vector<1x1x80x1xbf16> to vector<80x1xbf16>
    %12 = vector.shape_cast %9 : vector<80x1xbf16> to vector<1x1x80x1xbf16>
    tpu.vector_store %arg3[%c0_7, %c0_8, %c0_9, %c0_10], %12 {strides = array<i32>} : memref<2x4x80x1xbf16, #tpu.memory_space<vmem>>, vector<1x1x80x1xbf16>,
    %c1 = arith.constant 1 : index
    %c0_11 = arith.constant 0 : index
    %c0_12 = arith.constant 0 : index
    %13 = vector.load %arg0[%c1, %c0_11, %c0_12] : memref<2x92x32xbf16, #tpu.memory_space<vmem>>, vector<1x80x32xbf16>
    %14 = vector.shape_cast %13 : vector<1x80x32xbf16> to vector<80x32xbf16>
    %c0_13 = arith.constant 0 : index
    %c0_14 = arith.constant 0 : index
    %c0_15 = arith.constant 0 : index
    %15 = vector.load %arg1[%c0_13, %c0_14, %c0_15] : memref<4x32x1xbf16, #tpu.memory_space<vmem>>, vector<1x32x1xbf16>
    %16 = vector.shape_cast %15 : vector<1x32x1xbf16> to vector<32x1xbf16>
    %cst_16 = arith.constant dense<0.000000e+00> : vector<80x1xf32>
    %17 = tpu.matmul %14, %16, %cst_16 {dimension_numbers = #tpu.dot_dimension_numbers<[1], [0], [0], [1], [0, 0, 1, 1], [], []>} : vector<80x32xbf16>, vector<32x1xbf16>, vector<80x1xf32> -> vector<80x1xf32>
    %18 = vector.broadcast %0 : vector<1x1xf32> to vector<80x1xf32>
    %19 = arith.addf %17, %18 : vector<80x1xf32>
    %20 = math.tanh %19 : vector<80x1xf32>
    %21 = arith.truncf %20 : vector<80x1xf32> to vector<80x1xbf16>
    %c1_17 = arith.constant 1 : index
    %c0_18 = arith.constant 0 : index
    %c0_19 = arith.constant 0 : index
    %c0_20 = arith.constant 0 : index
    %22 = vector.load %arg3[%c1_17, %c0_18, %c0_19, %c0_20] : memref<2x4x80x1xbf16, #tpu.memory_space<vmem>>, vector<1x1x80x1xbf16>
    %23 = vector.shape_cast %22 : vector<1x1x80x1xbf16> to vector<80x1xbf16>
    %24 = vector.shape_cast %21 : vector<80x1xbf16> to vector<1x1x80x1xbf16>
    tpu.vector_store %arg3[%c1_17, %c0_18, %c0_19, %c0_20], %24 {strides = array<i32>} : memref<2x4x80x1xbf16, #tpu.memory_space<vmem>>, vector<1x1x80x1xbf16>,
    %c0_21 = arith.constant 0 : index
    %c1_22 = arith.constant 1 : index
    %c0_23 = arith.constant 0 : index
    %25 = vector.load %arg0[%c0_21, %c1_22, %c0_23] : memref<2x92x32xbf16, #tpu.memory_space<vmem>>, vector<1x80x32xbf16>
    %26 = vector.shape_cast %25 : vector<1x80x32xbf16> to vector<80x32xbf16>
    %c1_24 = arith.constant 1 : index
    %c0_25 = arith.constant 0 : index
    %c0_26 = arith.constant 0 : index
    %27 = vector.load %arg1[%c1_24, %c0_25, %c0_26] : memref<4x32x1xbf16, #tpu.memory_space<vmem>>, vector<1x32x1xbf16>
    %28 = vector.shape_cast %27 : vector<1x32x1xbf16> to vector<32x1xbf16>
    %cst_27 = arith.constant dense<0.000000e+00> : vector<80x1xf32>
    %29 = tpu.matmul %26, %28, %cst_27 {dimension_numbers = #tpu.dot_dimension_numbers<[1], [0], [0], [1], [0, 0, 1, 1], [], []>} : vector<80x32xbf16>, vector<32x1xbf16>, vector<80x1xf32> -> vector<80x1xf32>
    %30 = vector.broadcast %0 : vector<1x1xf32> to vector<80x1xf32>
    %31 = arith.addf %29, %30 : vector<80x1xf32>
    %32 = math.tanh %31 : vector<80x1xf32>
    %33 = arith.truncf %32 : vector<80x1xf32> to vector<80x1xbf16>
    %c0_28 = arith.constant 0 : index
    %c1_29 = arith.constant 1 : index
    %c0_30 = arith.constant 0 : index
    %c0_31 = arith.constant 0 : index
    %34 = vector.load %arg3[%c0_28, %c1_29, %c0_30, %c0_31] : memref<2x4x80x1xbf16, #tpu.memory_space<vmem>>, vector<1x1x80x1xbf16>
    %35 = vector.shape_cast %34 : vector<1x1x80x1xbf16> to vector<80x1xbf16>
    %36 = vector.shape_cast %33 : vector<80x1xbf16> to vector<1x1x80x1xbf16>
    tpu.vector_store %arg3[%c0_28, %c1_29, %c0_30, %c0_31], %36 {strides = array<i32>} : memref<2x4x80x1xbf16, #tpu.memory_space<vmem>>, vector<1x1x80x1xbf16>,
    %c1_32 = arith.constant 1 : index
    %c1_33 = arith.constant 1 : index
    %c0_34 = arith.constant 0 : index
    %37 = vector.load %arg0[%c1_32, %c1_33, %c0_34] : memref<2x92x32xbf16, #tpu.memory_space<vmem>>, vector<1x80x32xbf16>
    %38 = vector.shape_cast %37 : vector<1x80x32xbf16> to vector<80x32xbf16>
    %c1_35 = arith.constant 1 : index
    %c0_36 = arith.constant 0 : index
    %c0_37 = arith.constant 0 : index
    %39 = vector.load %arg1[%c1_35, %c0_36, %c0_37] : memref<4x32x1xbf16, #tpu.memory_space<vmem>>, vector<1x32x1xbf16>
    %40 = vector.shape_cast %39 : vector<1x32x1xbf16> to vector<32x1xbf16>
    %cst_38 = arith.constant dense<0.000000e+00> : vector<80x1xf32>
    %41 = tpu.matmul %38, %40, %cst_38 {dimension_numbers = #tpu.dot_dimension_numbers<[1], [0], [0], [1], [0, 0, 1, 1], [], []>} : vector<80x32xbf16>, vector<32x1xbf16>, vector<80x1xf32> -> vector<80x1xf32>
    %42 = vector.broadcast %0 : vector<1x1xf32> to vector<80x1xf32>
    %43 = arith.addf %41, %42 : vector<80x1xf32>
    %44 = math.tanh %43 : vector<80x1xf32>
    %45 = arith.truncf %44 : vector<80x1xf32> to vector<80x1xbf16>
    %c1_39 = arith.constant 1 : index
    %c1_40 = arith.constant 1 : index
    %c0_41 = arith.constant 0 : index
    %c0_42 = arith.constant 0 : index
    %46 = vector.load %arg3[%c1_39, %c1_40, %c0_41, %c0_42] : memref<2x4x80x1xbf16, #tpu.memory_space<vmem>>, vector<1x1x80x1xbf16>
    %47 = vector.shape_cast %46 : vector<1x1x80x1xbf16> to vector<80x1xbf16>
    %48 = vector.shape_cast %45 : vector<80x1xbf16> to vector<1x1x80x1xbf16>
    tpu.vector_store %arg3[%c1_39, %c1_40, %c0_41, %c0_42], %48 {strides = array<i32>} : memref<2x4x80x1xbf16, #tpu.memory_space<vmem>>, vector<1x1x80x1xbf16>,
    %c0_43 = arith.constant 0 : index
    %c10 = arith.constant 10 : index
    %c0_44 = arith.constant 0 : index
    %49 = vector.load %arg0[%c0_43, %c10, %c0_44] : memref<2x92x32xbf16, #tpu.memory_space<vmem>>, vector<1x80x32xbf16>
    %50 = vector.shape_cast %49 : vector<1x80x32xbf16> to vector<80x32xbf16>
    %c2 = arith.constant 2 : index
    %c0_45 = arith.constant 0 : index
    %c0_46 = arith.constant 0 : index
    %51 = vector.load %arg1[%c2, %c0_45, %c0_46] : memref<4x32x1xbf16, #tpu.memory_space<vmem>>, vector<1x32x1xbf16>
    %52 = vector.shape_cast %51 : vector<1x32x1xbf16> to vector<32x1xbf16>
    %cst_47 = arith.constant dense<0.000000e+00> : vector<80x1xf32>
    %53 = tpu.matmul %50, %52, %cst_47 {dimension_numbers = #tpu.dot_dimension_numbers<[1], [0], [0], [1], [0, 0, 1, 1], [], []>} : vector<80x32xbf16>, vector<32x1xbf16>, vector<80x1xf32> -> vector<80x1xf32>
    %54 = vector.broadcast %0 : vector<1x1xf32> to vector<80x1xf32>
    %55 = arith.addf %53, %54 : vector<80x1xf32>
    %56 = math.tanh %55 : vector<80x1xf32>
    %57 = arith.truncf %56 : vector<80x1xf32> to vector<80x1xbf16>
    %c0_48 = arith.constant 0 : index
    %c2_49 = arith.constant 2 : index
    %c0_50 = arith.constant 0 : index
    %c0_51 = arith.constant 0 : index
    %58 = vector.load %arg3[%c0_48, %c2_49, %c0_50, %c0_51] : memref<2x4x80x1xbf16, #tpu.memory_space<vmem>>, vector<1x1x80x1xbf16>
    %59 = vector.shape_cast %58 : vector<1x1x80x1xbf16> to vector<80x1xbf16>
    %60 = vector.shape_cast %57 : vector<80x1xbf16> to vector<1x1x80x1xbf16>
    tpu.vector_store %arg3[%c0_48, %c2_49, %c0_50, %c0_51], %60 {strides = array<i32>} : memref<2x4x80x1xbf16, #tpu.memory_space<vmem>>, vector<1x1x80x1xbf16>,
    %c1_52 = arith.constant 1 : index
    %c10_53 = arith.constant 10 : index
    %c0_54 = arith.constant 0 : index
    %61 = vector.load %arg0[%c1_52, %c10_53, %c0_54] : memref<2x92x32xbf16, #tpu.memory_space<vmem>>, vector<1x80x32xbf16>
    %62 = vector.shape_cast %61 : vector<1x80x32xbf16> to vector<80x32xbf16>
    %c2_55 = arith.constant 2 : index
    %c0_56 = arith.constant 0 : index
    %c0_57 = arith.constant 0 : index
    %63 = vector.load %arg1[%c2_55, %c0_56, %c0_57] : memref<4x32x1xbf16, #tpu.memory_space<vmem>>, vector<1x32x1xbf16>
    %64 = vector.shape_cast %63 : vector<1x32x1xbf16> to vector<32x1xbf16>
    %cst_58 = arith.constant dense<0.000000e+00> : vector<80x1xf32>
    %65 = tpu.matmul %62, %64, %cst_58 {dimension_numbers = #tpu.dot_dimension_numbers<[1], [0], [0], [1], [0, 0, 1, 1], [], []>} : vector<80x32xbf16>, vector<32x1xbf16>, vector<80x1xf32> -> vector<80x1xf32>
    %66 = vector.broadcast %0 : vector<1x1xf32> to vector<80x1xf32>
    %67 = arith.addf %65, %66 : vector<80x1xf32>
    %68 = math.tanh %67 : vector<80x1xf32>
    %69 = arith.truncf %68 : vector<80x1xf32> to vector<80x1xbf16>
    %c1_59 = arith.constant 1 : index
    %c2_60 = arith.constant 2 : index
    %c0_61 = arith.constant 0 : index
    %c0_62 = arith.constant 0 : index
    %70 = vector.load %arg3[%c1_59, %c2_60, %c0_61, %c0_62] : memref<2x4x80x1xbf16, #tpu.memory_space<vmem>>, vector<1x1x80x1xbf16>
    %71 = vector.shape_cast %70 : vector<1x1x80x1xbf16> to vector<80x1xbf16>
    %72 = vector.shape_cast %69 : vector<80x1xbf16> to vector<1x1x80x1xbf16>
    tpu.vector_store %arg3[%c1_59, %c2_60, %c0_61, %c0_62], %72 {strides = array<i32>} : memref<2x4x80x1xbf16, #tpu.memory_space<vmem>>, vector<1x1x80x1xbf16>,
    %c0_63 = arith.constant 0 : index
    %c11 = arith.constant 11 : index
    %c0_64 = arith.constant 0 : index
    %73 = vector.load %arg0[%c0_63, %c11, %c0_64] : memref<2x92x32xbf16, #tpu.memory_space<vmem>>, vector<1x80x32xbf16>
    %74 = vector.shape_cast %73 : vector<1x80x32xbf16> to vector<80x32xbf16>
    %c3 = arith.constant 3 : index
    %c0_65 = arith.constant 0 : index
    %c0_66 = arith.constant 0 : index
    %75 = vector.load %arg1[%c3, %c0_65, %c0_66] : memref<4x32x1xbf16, #tpu.memory_space<vmem>>, vector<1x32x1xbf16>
    %76 = vector.shape_cast %75 : vector<1x32x1xbf16> to vector<32x1xbf16>
    %cst_67 = arith.constant dense<0.000000e+00> : vector<80x1xf32>
    %77 = tpu.matmul %74, %76, %cst_67 {dimension_numbers = #tpu.dot_dimension_numbers<[1], [0], [0], [1], [0, 0, 1, 1], [], []>} : vector<80x32xbf16>, vector<32x1xbf16>, vector<80x1xf32> -> vector<80x1xf32>
    %78 = vector.broadcast %0 : vector<1x1xf32> to vector<80x1xf32>
    %79 = arith.addf %77, %78 : vector<80x1xf32>
    %80 = math.tanh %79 : vector<80x1xf32>
    %81 = arith.truncf %80 : vector<80x1xf32> to vector<80x1xbf16>
    %c0_68 = arith.constant 0 : index
    %c3_69 = arith.constant 3 : index
    %c0_70 = arith.constant 0 : index
    %c0_71 = arith.constant 0 : index
    %82 = vector.load %arg3[%c0_68, %c3_69, %c0_70, %c0_71] : memref<2x4x80x1xbf16, #tpu.memory_space<vmem>>, vector<1x1x80x1xbf16>
    %83 = vector.shape_cast %82 : vector<1x1x80x1xbf16> to vector<80x1xbf16>
    %84 = vector.shape_cast %81 : vector<80x1xbf16> to vector<1x1x80x1xbf16>
    tpu.vector_store %arg3[%c0_68, %c3_69, %c0_70, %c0_71], %84 {strides = array<i32>} : memref<2x4x80x1xbf16, #tpu.memory_space<vmem>>, vector<1x1x80x1xbf16>,
    %c1_72 = arith.constant 1 : index
    %c11_73 = arith.constant 11 : index
    %c0_74 = arith.constant 0 : index
    %85 = vector.load %arg0[%c1_72, %c11_73, %c0_74] : memref<2x92x32xbf16, #tpu.memory_space<vmem>>, vector<1x80x32xbf16>
    %86 = vector.shape_cast %85 : vector<1x80x32xbf16> to vector<80x32xbf16>
    %c3_75 = arith.constant 3 : index
    %c0_76 = arith.constant 0 : index
    %c0_77 = arith.constant 0 : index
    %87 = vector.load %arg1[%c3_75, %c0_76, %c0_77] : memref<4x32x1xbf16, #tpu.memory_space<vmem>>, vector<1x32x1xbf16>
    %88 = vector.shape_cast %87 : vector<1x32x1xbf16> to vector<32x1xbf16>
    %cst_78 = arith.constant dense<0.000000e+00> : vector<80x1xf32>
    %89 = tpu.matmul %86, %88, %cst_78 {dimension_numbers = #tpu.dot_dimension_numbers<[1], [0], [0], [1], [0, 0, 1, 1], [], []>} : vector<80x32xbf16>, vector<32x1xbf16>, vector<80x1xf32> -> vector<80x1xf32>
    %90 = vector.broadcast %0 : vector<1x1xf32> to vector<80x1xf32>
    %91 = arith.addf %89, %90 : vector<80x1xf32>
    %92 = math.tanh %91 : vector<80x1xf32>
    %93 = arith.truncf %92 : vector<80x1xf32> to vector<80x1xbf16>
    %c1_79 = arith.constant 1 : index
    %c3_80 = arith.constant 3 : index
    %c0_81 = arith.constant 0 : index
    %c0_82 = arith.constant 0 : index
    %94 = vector.load %arg3[%c1_79, %c3_80, %c0_81, %c0_82] : memref<2x4x80x1xbf16, #tpu.memory_space<vmem>>, vector<1x1x80x1xbf16>
    %95 = vector.shape_cast %94 : vector<1x1x80x1xbf16> to vector<80x1xbf16>
    %96 = vector.shape_cast %93 : vector<80x1xbf16> to vector<1x1x80x1xbf16>
    tpu.vector_store %arg3[%c1_79, %c3_80, %c0_81, %c0_82], %96 {strides = array<i32>} : memref<2x4x80x1xbf16, #tpu.memory_space<vmem>>, vector<1x1x80x1xbf16>,
    return
  }
}

</mosaic_0001>

<bundles_post_ra>
// kernel: generator_forward.7
= control target key start
LH: loop header
LB: loop body
LE: loop exit
PB: predicated region body
PF: predicated region fallthrough
CT: control target
= control target key end

     0   :  { %vm63_vm0 = vcmask 261120   ;;  %vm137_vm1 = vcmask 1044480   ;;  %vm35_vm2 = vsmask.f32 7424  ;;  %vm189_vm3 = vsmask.f32 4352  ;;  %s865_s1 = inlined_call_operand.vmem [shape: bf16[4,32,16], index: 1, kind: input, shape index: {}]   ;;  %s866_s0 = inlined_call_operand.vmem [shape: bf16[2,32,32], index: 0, kind: input, shape index: {}]   ;;  %s867_s2 = inlined_call_operand.vmem [shape: bf16[2,24,16], index: 2, kind: output, shape index: {}]  }
   0x1   :  { %v662_v0 = vld [vmem:[%s865_s1 + $0x18] sm:$0xff]  ;;  %v660_v1 = vld [vmem:[%s865_s1 + $0x8] sm:$0xff]  ;;  %v661_v4 = vld [vmem:[%s865_s1 + $0x10] sm:$0xff]  ;;  %vm468_vm13 = vcmask 130048  }
   0x2   :  { %v664_v2 = vld [vmem:[%s865_s1 + $0x28] sm:$0xff]  ;;  %v666_v3 = vld [vmem:[%s865_s1 + $0x38] sm:$0xff]  ;;  %76 = vmatpush.bf16.msra.mxu0 %v662_v0  ;;  %112 = vmatpush.bf16.msra.mxu1 %v660_v1  ;;  %v659_v5 = vld [vmem:[%s865_s1] sm:$0xff] }
   0x3   :  { %v663_v6 = vld [vmem:[%s865_s1 + $0x20] sm:$0xff]  ;;  %165 = vmatpush.bf16.msra.mxu2 %v664_v2  ;;  %231 = vmatpush.bf16.msra.mxu3 %v666_v3  ;;  %v665_v8 = vld [vmem:[%s865_s1 + $0x30] sm:$0xff]  ;;  %v14_v9 = vld [vmem:[%s866_s0 + $0x8] sm:$0xff]  }
   0x4   :  { %v668_v7 = vld [vmem:[%s866_s0] sm:$0xff]   ;;  %v19_v10 = vld [vmem:[%s866_s0 + $0xc] sm:$0x1]  ;;  %v31_v13 = vunpack.c.l.b16 %v14_v9  ;;  %v199_v28 = vshrl.u32 %v14_v9, 16  ;;  %v202_v29 = vshll.u32 %v14_v9, 16  ;;  %v643_v43 = vld [vmem:[%s866_s0 + $0x18] sm:$0xff]  }
   0x5   :  { %v37_v11 = vshrl.u32 %v668_v7, 16  ;;  %v39_v12 = vshll.u32 %v668_v7, 16  ;;  %v32_v14 = vunpack.c.l.b16 %v19_v10  ;;  %v675_v15 = vld [vmem:[%s866_s0] sm:$0xf0]  ;;  %v676_v16 = vld [vmem:[%s866_s0] sm:$0x8]  ;;  %v257_v45 = vunpack.c.l.b16 %v643_v43 }
   0x6   :  { %v125_v17 = vld [vmem:[%s866_s0 + $0xc] sm:$0x7]  ;;  %v677_v20 = vor.u32 %v676_v16, %v675_v15  ;;  %77 = vmatpush.bf16.msra.mxu0 %v661_v4  ;;  %113 = vmatpush.bf16.msra.mxu1 %v659_v5  ;;  %v201_v34 = vrot.slane %v199_v28, 3  ;;  %v204_v35 = vrot.slane %v202_v29, 4  ;;  %v88_v42 = vpack.c.b16 %v31_v13, %v31_v13  ;;  %v644_v44 = vld [vmem:[%s866_s0 + $0x1c] sm:$0x1] }
   0x7   :  { %v41_v18 = vrot.slane %v39_v12, 1  ;;  %v134_v19 = vunpack.c.l.b16 %v125_v17  ;;  %v34_v21 = vpack.c.b16 %v32_v14, %v31_v13  ;;  %166 = vmatpush.bf16.msra.mxu2 %v663_v6  ;;  %232 = vmatpush.bf16.msra.mxu3 %v665_v8  ;;  %v679_v47 = vld [vmem:[%s866_s0 + $0x10] sm:$0xf0]  ;;  %v680_v48 = vld [vmem:[%s866_s0 + $0x10] sm:$0x8]  ;;  %v258_v49 = vunpack.c.l.b16 %v644_v44 }
   0x8   :  { %v138_v24 = vrot.slane %v677_v20, 3  ;;  %v191_v25 = vshrl.u32 %v677_v20, 16  ;;  %v194_v27 = vshll.u32 %v677_v20, 16  ;;  %v205_v39 = vor.u32 %v204_v35, %v201_v34  ;;  %v650_v50 = vld [vmem:[%s866_s0 + $0x1c] sm:$0x7]  ;;  %v678_v51 = vld [vmem:[%s866_s0 + $0x10] sm:$0xff]  }
   0x9   :  { %v42_v22 = vor.u32 %v41_v18, %v37_v11  ;;  %v136_v23 = vpack.c.b16 %v134_v19, %v31_v13  ;;  %v44_v26 = vshll.u32 %v34_v21, 16  ;;  %611 = vmatmul.msk.bf16.vlgmr.msra.gmra.mxu1 %vm63_vm0, %v668_v7  ;;  %v48_v41 = vshrl.u32 %v34_v21, 16 }
   0xa   :  { %v193_v31 = vrot.slane %v191_v25, 3  ;;  %288 = vmatpush.bf16.msrb.mxu0 %v662_v0  ;;  %v196_v33 = vrot.slane %v194_v27, 4  ;;  %312 = vmatpush.bf16.msrb.mxu1 %v660_v1  ;;  %v681_v52 = vor.u32 %v680_v48, %v679_v47  ;;  %v329_v53 = vunpack.c.l.b16 %v650_v50 }
   0xb   :  { %347 = vmatpush.bf16.msrb.mxu2 %v664_v2  ;;  %395 = vmatpush.bf16.msrb.mxu3 %v666_v3  ;;  %v139_v30 = vrot.slane %v136_v23, 3  ;;  %v46_v32 = vrot.slane %v44_v26, 1  ;;  %v260_v54 = vpack.c.b16 %v258_v49, %v257_v45  ;;  %v264_v55 = vshll.u32 %v678_v51, 16 }
   0xc   :  { %v197_v38 = vor.u32 %v196_v33, %v193_v31  ;;  %v367_v56 = vshrl.u32 %v681_v52, 16  ;;  %v370_v57 = vshll.u32 %v681_v52, 16  ;;  %v375_v58 = vshrl.u32 %v643_v43, 16 }
   0xd   :  { %v140_v36 = vsel %vm137_vm1, %v138_v24, %v139_v30  ;;  %v47_v37 = vsel %vm35_vm2, %v42_v22, %v46_v32  ;;  %v50_v46 = vor.u32 %v48_v41, %v46_v32  ;;  %v378_v59 = vshll.u32 %v643_v43, 16 }
   0xe   :  { %625 = vmatmul.msk.bf16.vlgmr.msra.gmra.mxu2 %vm63_vm0, %v140_v36  ;;  %601 = vmatmul.msk.bf16.vlgmr.msra.gmra.mxu0 %vm63_vm0, %v47_v37  ;;  %v206_v40 = vsel %vm189_vm3, %v197_v38, %v205_v39  ;;  %v331_v60 = vpack.c.b16 %v329_v53, %v257_v45  ;;  %v262_v61 = vshrl.u32 %v678_v51, 16  ;;  %v266_v62 = vrot.slane %v264_v55, 1 }
   0xf   :  { %348 = vmatpush.bf16.msrb.mxu2 %v663_v6  ;;  %396 = vmatpush.bf16.msrb.mxu3 %v665_v8  ;;  %v269_v63 = vshll.u32 %v260_v54, 16  ;;  %v369_v0 = vrot.slane %v367_v56, 3  ;;  %v372_v1 = vrot.slane %v370_v57, 4  ;;  %v377_v2 = vrot.slane %v375_v58, 3 }
  0x10   :  { %289 = vmatpush.bf16.msrb.mxu0 %v661_v4  ;;  %639 = vmatmul.msk.bf16.vlgmr.msra.gmra.mxu3 %vm63_vm0, %v206_v40  ;;  %v380_v3 = vrot.slane %v378_v59, 4  ;;  %v332_v4 = vrot.slane %v681_v52, 3  ;;  %v267_v6 = vor.u32 %v266_v62, %v262_v61  ;;  %v273_v13 = vshrl.u32 %v260_v54, 16 }
  0x11   :  { %313 = vmatpush.bf16.msrb.mxu1 %v659_v5  ;;  %v333_v5 = vrot.slane %v331_v60, 3  ;;  %v271_v7 = vrot.slane %v269_v63, 1  ;;  %v373_v8 = vor.u32 %v372_v1, %v369_v0  ;;  %v300_v14 = vpack.c.b16 %v257_v45, %v257_v45 }
  0x12   :  { %v381_v9 = vor.u32 %v380_v3, %v377_v2  ;;  %v410_v28 = vlaneseq }
  0x13   :  { %v334_v10 = vsel %vm137_vm1, %v332_v4, %v333_v5  ;;  %v272_v11 = vsel %vm35_vm2, %v267_v6, %v271_v7  ;;  %v275_v15 = vor.u32 %v273_v13, %v271_v7  ;;  %vm559_vm1 = vcmask 125952  }
  0x14   :  { %v382_v12 = vsel %vm189_vm3, %v373_v8, %v381_v9  ;;  %v411_v31 = vshrl.u32 %v410_v28, 7 }
  0x16   :  { %v412_v36 = vadd.s32 8, %v411_v31  ;;  %vm417_vm6 = vcmp.lt.s32.totalorder %v411_v31, 4  ;;  %vm423_vm7 = vcmp.ge.s32.totalorder %v411_v31, 6 }
  0x17   :  { %vm789_vm11 = vmor %vm417_vm6, %vm423_vm7 }
  0x18   :  { %vm427_vm4 = vcmp.lt.s32.totalorder %v412_v36, 10  ;;  %vm436_vm5 = vcmp.ge.s32.totalorder %v412_v36, 12 }
  0x19   :  { %612 = vmatmul.msk.bf16.gmra.mxu1 %vm63_vm0, %v88_v42  ;;  %vm783_vm10 = vmor %vm427_vm4, %vm436_vm5 }
  0x1e   :  { %626 = vmatmul.msk.bf16.gmra.mxu2 %vm63_vm0, %v139_v30  ;;  %602 = vmatmul.msk.bf16.gmra.mxu0 %vm63_vm0, %v50_v46 }
  0x20   :  { %640 = vmatmul.msk.bf16.gmra.mxu3 %vm63_vm0, %v205_v39  ;;  %v413_v39 = vadd.s32 16, %v411_v31 }
  0x22   :  { %vm449_vm8 = vcmp.ge.s32.totalorder %v413_v39, 18  ;;  %vm452_vm9 = vcmp.lt.s32.totalorder %v413_v39, 22 }
  0x23   :  { %vm795_vm12 = vmand %vm449_vm8, %vm452_vm9 }
  0x29   :  { %647 = vmatmul.msk.bf16.vlgmr.msrb.gmra.mxu1 %vm63_vm0, %v678_v51 }
  0x2e   :  { %651 = vmatmul.msk.bf16.vlgmr.msrb.gmra.mxu2 %vm63_vm0, %v334_v10  ;;  %645 = vmatmul.msk.bf16.vlgmr.msrb.gmra.mxu0 %vm63_vm0, %v272_v11 }
  0x30   :  { %654 = vmatmul.msk.bf16.vlgmr.msrb.gmra.mxu3 %vm63_vm0, %v382_v12 }
  0x39   :  { %648 = vmatmul.msk.bf16.gmra.mxu1 %vm63_vm0, %v300_v14 }
  0x3e   :  { %652 = vmatmul.msk.bf16.gmra.mxu2 %vm63_vm0, %v333_v5  ;;  %646 = vmatmul.msk.bf16.gmra.mxu0 %vm63_vm0, %v275_v15 }
  0x40   :  { %655 = vmatmul.msk.bf16.gmra.mxu3 %vm63_vm0, %v381_v9 }
  0x86   :  { %v115_v16 = vpop.f32.mrf.mxu1 }
  0x8b   :  { %v79_v17 = vpop.f32.mrf.mxu0 }
  0x8c   :  { %v116_v33 = vadd.f32 %v115_v16, %v79_v17 }
  0x8e   :  { %v117_v18 = vpop.f32.mrf.mxu1 }
  0x91   :  { %v168_v19 = vpop.f32.mrf.mxu2 }
  0x92   :  { %v177_v42 = vadd.f32 %v168_v19, %v116_v33 }
  0x93   :  { %v81_v20 = vpop.f32.mrf.mxu0  ;;  %v234_v21 = vpop.f32.mrf.mxu3 }
  0x94   :  { %v118_v34 = vadd.f32 %v117_v18, %v81_v20  ;;  %v787_v47 = vadd.f32 %v234_v21, %v177_v42 }
  0x96   :  { %v120_v22 = vpop.f32.mrf.mxu1  ;;  %v465_v55 = vsel %vm789_vm11, %v787_v47, 0.0 }
  0x97   :  { %v481_v59 = vmul.f32 %v465_v55, %v465_v55  ;;  %v469_v2 = vsel %vm468_vm13, %v465_v55, 0.0 }
  0x99   :  { %v170_v23 = vpop.f32.mrf.mxu2  ;;  %v484_v7 = vsel %vm468_vm13, %v481_v59, 0.0 }
  0x9a   :  { %v178_v38 = vadd.f32 %v170_v23, %v118_v34 }
  0x9b   :  { %v84_v24 = vpop.f32.mrf.mxu0  ;;  %v236_v25 = vpop.f32.mrf.mxu3 }
  0x9c   :  { %v121_v35 = vadd.f32 %v120_v22, %v84_v24  ;;  %v781_v44 = vadd.f32 %v236_v25, %v178_v38 }
  0x9e   :  { %v122_v26 = vpop.f32.mrf.mxu1  ;;  %v466_v52 = vsel %vm783_vm10, %v781_v44, 0.0 }
  0x9f   :  { %v482_v58 = vmul.f32 %v466_v52, %v466_v52  ;;  %v470_v60 = vsel %vm468_vm13, %v466_v52, 0.0 }
  0xa0   :  { %v471_v6 = vadd.f32 %v470_v60, %v469_v2 }
  0xa1   :  { %v173_v27 = vpop.f32.mrf.mxu2  ;;  %v485_v3 = vsel %vm468_vm13, %v482_v58, 0.0 }
  0xa2   :  { %v179_v43 = vadd.f32 %v173_v27, %v121_v35  ;;  %v486_v11 = vadd.f32 %v485_v3, %v484_v7 }
  0xa3   :  { %v86_v29 = vpop.f32.mrf.mxu0  ;;  %v239_v30 = vpop.f32.mrf.mxu3 }
  0xa4   :  { %v793_v49 = vadd.f32 %v239_v30, %v179_v43 }
  0xa6   :  { %v315_v32 = vpop.f32.mrf.mxu1  ;;  %v467_v56 = vsel %vm795_vm12, %v793_v49, 0.0 }
  0xa7   :  { %v483_v61 = vmul.f32 %v467_v56, %v467_v56  ;;  %v472_v4 = vsel %vm468_vm13, %v467_v56, 0.0 }
  0xa8   :  { %v473_v12 = vadd.f32 %v472_v4, %v471_v6 }
  0xa9   :  { %v175_v37 = vpop.f32.mrf.mxu2  ;;  %v487_v8 = vsel %vm468_vm13, %v483_v61, 0.0 }
  0xaa   :  { %v488_v16 = vadd.f32 %v487_v8, %v486_v11  ;;  %v474_v19 = vrot.slane %v473_v12, 4 }
  0xab   :  { %v241_v40 = vpop.f32.mrf.mxu3  ;;  %v291_v41 = vpop.f32.mrf.mxu0 }
  0xac   :  { %v316_v57 = vadd.f32 %v315_v32, %v291_v41  ;;  %v489_v24 = vrot.slane %v488_v16, 4  ;;  %v475_v29 = vadd.f32 %v474_v19, %v473_v12 }
  0xae   :  { %v317_v46 = vpop.f32.mrf.mxu1  ;;  %v490_v33 = vadd.f32 %v489_v24, %v488_v16  ;;  %v476_v39 = vrot.slane %v475_v29, 2 }
  0xb0   :  { %v491_v45 = vrot.slane %v490_v33, 2  ;;  %v477_v52 = vadd.f32 %v476_v39, %v475_v29 }
  0xb1   :  { %v350_v50 = vpop.f32.mrf.mxu2 }
  0xb2   :  { %v359_v0 = vadd.f32 %v350_v50, %v316_v57  ;;  %v492_v51 = vadd.f32 %v491_v45, %v490_v33  ;;  %v478_v57 = vrot.slane %v477_v52, 1 }
  0xb3   :  { %v293_v53 = vpop.f32.mrf.mxu0  ;;  %v398_v54 = vpop.f32.mrf.mxu3 }
  0xb4   :  { %v318_v62 = vadd.f32 %v317_v46, %v293_v53  ;;  %v814_v13 = vadd.f32 %v398_v54, %v359_v0  ;;  %v493_v60 = vrot.slane %v492_v51, 1 }
  0xb6   :  { %v320_v63 = vpop.f32.mrf.mxu1  ;;  %v496_v20 = vsel %vm789_vm11, %v814_v13, 0.0  ;;  %v494_v2 = vadd.f32 %v493_v60, %v492_v51 }
  0xb7   :  { %v511_v25 = vmul.f32 %v496_v20, %v496_v20  ;;  %v499_v31 = vsel %vm468_vm13, %v496_v20, 0.0 }
  0xb9   :  { %v352_v1 = vpop.f32.mrf.mxu2  ;;  %v514_v36 = vsel %vm468_vm13, %v511_v25, 0.0 }
  0xba   :  { %v360_v5 = vadd.f32 %v352_v1, %v318_v62 }
  0xbb   :  { %v296_v9 = vpop.f32.mrf.mxu0  ;;  %v400_v10 = vpop.f32.mrf.mxu3 }
  0xbc   :  { %v816_v14 = vadd.f32 %v400_v10, %v360_v5  ;;  %v321_v15 = vadd.f32 %v320_v63, %v296_v9  ;;  %v479_v63 = vadd.f32 %v478_v57, %v477_v52 }
  0xbe   :  { %v497_v17 = vsel %vm783_vm10, %v816_v14, 0.0  ;;  %v322_v18 = vpop.f32.mrf.mxu1 }
  0xbf   :  { %v512_v22 = vmul.f32 %v497_v17, %v497_v17  ;;  %v500_v26 = vsel %vm468_vm13, %v497_v17, 0.0 }
  0xc0   :  { %v501_v34 = vadd.f32 %v500_v26, %v499_v31 }
  0xc1   :  { %v355_v21 = vpop.f32.mrf.mxu2  ;;  %v515_v32 = vsel %vm468_vm13, %v512_v22, 0.0 }
  0xc2   :  { %v361_v23 = vadd.f32 %v355_v21, %v321_v15  ;;  %v516_v40 = vadd.f32 %v515_v32, %v514_v36 }
  0xc3   :  { %v298_v27 = vpop.f32.mrf.mxu0  ;;  %v403_v28 = vpop.f32.mrf.mxu3 }
  0xc4   :  { %v825_v30 = vadd.f32 %v403_v28, %v361_v23 }
  0xc6   :  { %v498_v35 = vsel %vm795_vm12, %v825_v30, 0.0 }
  0xc7   :  { %v502_v37 = vsel %vm468_vm13, %v498_v35, 0.0  ;;  %v513_v38 = vmul.f32 %v498_v35, %v498_v35 }
  0xc8   :  { %v503_v41 = vadd.f32 %v502_v37, %v501_v34 }
  0xc9   :  { %v357_v42 = vpop.f32.mrf.mxu2  ;;  %v517_v43 = vsel %vm468_vm13, %v513_v38, 0.0 }
  0xca   :  { %v504_v46 = vrot.slane %v503_v41, 4  ;;  %v518_v48 = vadd.f32 %v517_v43, %v516_v40 }
  0xcb   :  { %v405_v50 = vpop.f32.mrf.mxu3 }
  0xcc   :  { %v505_v53 = vadd.f32 %v504_v46, %v503_v41  ;;  %v519_v54 = vrot.slane %v518_v48, 4 }
  0xce   :  { %v506_v55 = vrot.slane %v505_v53, 2  ;;  %v520_v56 = vadd.f32 %v519_v54, %v518_v48 }
  0xd0   :  { %v507_v58 = vadd.f32 %v506_v55, %v505_v53  ;;  %v521_v59 = vrot.slane %v520_v56, 2 }
  0xd2   :  { %v508_v61 = vrot.slane %v507_v58, 1  ;;  %v522_v62 = vadd.f32 %v521_v59, %v520_v56 }
  0xd4   :  { %v509_v0 = vadd.f32 %v508_v61, %v507_v58  ;;  %v523_v1 = vrot.slane %v522_v62, 1 }
  0xd6   :  { %v510_v3 = vadd.f32 %v509_v0, %v479_v63  ;;  %v524_v4 = vadd.f32 %v523_v1, %v522_v62 }
  0xd8   :  { %v525_v5 = vadd.f32 %v524_v4, %v494_v2  ;;  %v526_v6 = vmul.f32 0.03125, %v510_v3 }
  0xda   :  { %v527_v7 = vmul.f32 0.03125, %v525_v5  ;;  %v528_v8 = vmul.f32 %v526_v6, %v526_v6  ;;  %v541_v19 = vsub.f32 %v787_v47, %v526_v6  ;;  %v542_v20 = vsub.f32 %v781_v44, %v526_v6 }
  0xdb   :  { %v543_v21 = vsub.f32 %v793_v49, %v526_v6  ;;  %v563_v22 = vsub.f32 %v814_v13, %v526_v6  ;;  %v564_v24 = vsub.f32 %v816_v14, %v526_v6  ;;  %v565_v25 = vsub.f32 %v825_v30, %v526_v6 }
  0xdc   :  { %v529_v9 = vsub.f32 %v527_v7, %v528_v8 }
  0xde   :  { %v530_v10 = vadd.f32 1e-05, %v529_v9 }
  0xe0   :  { %682 = vrsqrt.f32 %v530_v10  ;;  %vm537_vm15 = vweird.f32 %v530_v10 }
  0xe6   :  { %v683_v11 = vpop.eup %682 }
  0xe7   :  { %v532_v12 = vmul.f32 %v683_v11, %v530_v10  ;;  %vm538_vm14 = vweird.f32 %v683_v11 }
  0xe8   :  { %vm539_vm0 = vmor %vm537_vm15, %vm538_vm14 }
  0xe9   :  { %v533_v15 = vmul.f32 %v683_v11, %v532_v12 }
  0xeb   :  { %v534_v16 = vmul.f32 0.5, %v533_v15 }
  0xed   :  { %v535_v17 = vsub.f32 1.5, %v534_v16 }
  0xef   :  { %v536_v18 = vmul.f32 %v683_v11, %v535_v17 }
  0xf1   :  { %v540_v23 = vsel %vm539_vm0, %v683_v11, %v536_v18 }
  0xf2   :  { %v544_v26 = vmul.f32 %v541_v19, %v540_v23  ;;  %v545_v27 = vmul.f32 %v542_v20, %v540_v23  ;;  %v546_v28 = vmul.f32 %v543_v21, %v540_v23  ;;  %v566_v29 = vmul.f32 %v563_v22, %v540_v23 }
  0xf3   :  { %v567_v31 = vmul.f32 %v564_v24, %v540_v23  ;;  %v568_v32 = vmul.f32 %v565_v25, %v540_v23 }
  0xf4   :  { %vm547_vm2 = vcmp.ge.f32.partialorder %v544_v26, 0.0  ;;  %vm548_vm3 = vcmp.ge.f32.partialorder %v545_v27, 0.0  ;;  %vm549_vm4 = vcmp.ge.f32.partialorder %v546_v28, 0.0  ;;  %v550_v44 = vmul.f32 0.2, %v544_v26 }
  0xf5   :  { %v551_v47 = vmul.f32 0.2, %v545_v27  ;;  %v552_v49 = vmul.f32 0.2, %v546_v28  ;;  %vm569_vm5 = vcmp.ge.f32.partialorder %v566_v29, 0.0  ;;  %vm570_vm6 = vcmp.ge.f32.partialorder %v567_v31, 0.0 }
  0xf6   :  { %v553_v13 = vsel %vm547_vm2, %v544_v26, %v550_v44  ;;  %vm571_vm7 = vcmp.ge.f32.partialorder %v568_v32, 0.0  ;;  %v572_v14 = vmul.f32 0.2, %v566_v29  ;;  %v573_v33 = vmul.f32 0.2, %v567_v31 }
  0xf7   :  { %v554_v30 = vsel %vm548_vm3, %v545_v27, %v551_v47  ;;  %v555_v34 = vsel %vm549_vm4, %v546_v28, %v552_v49  ;;  %v556_v35 = vpack.c.bf16 %v553_v13, %v553_v13  ;;  %v574_v36 = vmul.f32 0.2, %v568_v32 }
  0xf8   :  { %v557_v37 = vpack.c.bf16 %v554_v30, %v554_v30  ;;  %v558_v38 = vpack.c.bf16 %v555_v34, %v555_v34  ;;  %v575_v39 = vsel %vm569_vm5, %v566_v29, %v572_v14  ;;  %v576_v40 = vsel %vm570_vm6, %v567_v31, %v573_v33 }
  0xf9   :  { %560 = vst.msk [vmem:[%s867_s2] sm:$0xf] %vm559_vm1, %v556_v35  ;;  %v577_v41 = vsel %vm571_vm7, %v568_v32, %v574_v36  ;;  %v578_v42 = vpack.c.bf16 %v575_v39, %v575_v39  ;;  %v579_v43 = vpack.c.bf16 %v576_v40, %v576_v40 }
  0xfa   :  { %561 = vst.msk [vmem:[%s867_s2 + $0x4] sm:$0xf] %vm559_vm1, %v557_v37  ;;  %v580_v45 = vpack.c.bf16 %v577_v41, %v577_v41 }
  0xfb   :  { %562 = vst.msk [vmem:[%s867_s2 + $0x8] sm:$0xf] %vm559_vm1, %v558_v38 }
  0xfc   :  { %656 = vst.msk [vmem:[%s867_s2 + $0xc] sm:$0xf] %vm559_vm1, %v578_v42 }
  0xfd   :  { %657 = vst.msk [vmem:[%s867_s2 + $0x10] sm:$0xf] %vm559_vm1, %v579_v43 }
  0xfe   :  { %658 = vst.msk [vmem:[%s867_s2 + $0x14] sm:$0xf] %vm559_vm1, %v580_v45 }

// kernel: generator_forward.8
= control target key start
LH: loop header
LB: loop body
LE: loop exit
PB: predicated region body
PF: predicated region fallthrough
CT: control target
= control target key end

     0   :  { %vm67_vm0 = vcmask 523264   ;;  %v345_v60 = vlaneseq  ;;  %vm357_vm6 = vcmask 261120   ;;  %vm414_vm12 = vcmask 257024   ;;  %s719_s1 = inlined_call_operand.vmem [shape: bf16[4,64,32], index: 1, kind: input, shape index: {}]   ;;  %s720_s0 = inlined_call_operand.vmem [shape: bf16[2,14,64], index: 0, kind: input, shape index: {}]   ;;  %s721_s2 = inlined_call_operand.vmem [shape: bf16[2,8,32], index: 2, kind: output, shape index: {}]  }
   0x1   :  { %v546_v0 = vld [vmem:[%s719_s1 + $0x38] sm:$0xff]  ;;  %v593_v4 = vld [vmem:[%s719_s1 + $0x30] sm:$0xff]  ;;  %v614_v8 = vld [vmem:[%s719_s1 + $0x28] sm:$0xff] }
   0x2   :  { %v579_v1 = vld [vmem:[%s719_s1 + $0x18] sm:$0xff]  ;;  %75 = vmatpush.bf16.msra.mxu0 %v546_v0  ;;  %v598_v5 = vld [vmem:[%s719_s1 + $0x10] sm:$0xff]  ;;  %v438_v9 = vld [vmem:[%s720_s0] sm:$0xf]  ;;  %v346_v61 = vshrl.u32 %v345_v60, 7 }
   0x3   :  { %v550_v2 = vld [vmem:[%s719_s1 + $0x58] sm:$0xff]  ;;  %115 = vmatpush.bf16.msra.mxu1 %v579_v1  ;;  %v604_v6 = vld [vmem:[%s719_s1 + $0x50] sm:$0xff]  ;;  %v542_v10 = vld [vmem:[%s720_s0] sm:$0x10] }
   0x4   :  { %v587_v3 = vld [vmem:[%s719_s1 + $0x78] sm:$0xff]  ;;  %172 = vmatpush.bf16.msra.mxu2 %v550_v2  ;;  %v609_v7 = vld [vmem:[%s719_s1 + $0x70] sm:$0xff]  ;;  %v627_v11 = vld [vmem:[%s719_s1 + $0x8] sm:$0xff]  ;;  %v439_v12 = vor.u32 %v542_v10, %v438_v9  ;;  %vm350_vm1 = vcmp.ge.s32.totalorder %v346_v61, 4  ;;  %vm351_vm2 = vcmp.lt.s32.totalorder %v346_v61, 6  ;;  %vm348_vm3 = vcmp.lt.s32.totalorder %v346_v61, 2 }
   0x5   :  { %234 = vmatpush.bf16.msra.mxu3 %v587_v3  ;;  %v124_v13 = vld [vmem:[%s720_s0] sm:$0xc]  ;;  %v125_v14 = vld [vmem:[%s720_s0 + $0x4] sm:$0x3]  ;;  %v548_v15 = vld [vmem:[%s719_s1 + $0x48] sm:$0xff] }
   0x6   :  { %76 = vmatpush.bf16.msra.mxu0 %v593_v4  ;;  %v552_v16 = vld [vmem:[%s719_s1 + $0x68] sm:$0xff]  ;;  %v137_v17 = vunpack.c.l.b16 %v124_v13  ;;  %v138_v18 = vunpack.c.l.b16 %v125_v14  ;;  %v182_v19 = vld [vmem:[%s720_s0 + $0x4] sm:$0x7]  ;;  %v39_v20 = vshll.u32 %v439_v12, 16  ;;  %v37_v22 = vshrl.u32 %v439_v12, 16  ;;  %vm352_vm4 = vmand %vm350_vm1, %vm351_vm2 }
   0x7   :  { %116 = vmatpush.bf16.msra.mxu1 %v598_v5  ;;  %v193_v21 = vunpack.c.l.b16 %v182_v19  ;;  %v543_v23 = vld [vmem:[%s719_s1 + $0x20] sm:$0xff]  ;;  %v532_v32 = vld [vmem:[%s720_s0 + $0x8] sm:$0xc]  ;;  %v535_v33 = vld [vmem:[%s720_s0 + $0xc] sm:$0x7] }
   0x8   :  { %173 = vmatpush.bf16.msra.mxu2 %v604_v6  ;;  %v538_v24 = vld [vmem:[%s719_s1] sm:$0xff]  ;;  %v41_v25 = vrot.slane %v39_v20, 1  ;;  %v139_v26 = vpack.c.b16 %v138_v18, %v137_v17  ;;  %v528_v36 = vld [vmem:[%s720_s0 + $0x8] sm:$0xf]  ;;  %v555_v40 = vld [vmem:[%s720_s0 + $0x8] sm:$0x10]  ;;  %v295_v41 = vunpack.c.l.b16 %v532_v32  ;;  %v318_v42 = vunpack.c.l.b16 %v535_v33 }
   0x9   :  { %235 = vmatpush.bf16.msra.mxu3 %v609_v7  ;;  %v194_v27 = vpack.c.b16 %v193_v21, %v137_v17  ;;  %v547_v28 = vld [vmem:[%s719_s1 + $0x40] sm:$0xff]  ;;  %v529_v44 = vor.u32 %v555_v40, %v528_v36  ;;  %v533_v45 = vld [vmem:[%s720_s0 + $0xc] sm:$0x3]  ;;  %v524_v58 = vld [vmem:[%s720_s0 + $0x8] sm:$0xf] }
   0xa   :  { %77 = vmatpush.bf16.msra.mxu0 %v614_v8  ;;  %v551_v29 = vld [vmem:[%s719_s1 + $0x60] sm:$0xff]  ;;  %v42_v34 = vor.u32 %v41_v25, %v37_v22  ;;  %v140_v37 = vrot.slane %v139_v26, 2  ;;  %v319_v46 = vpack.c.b16 %v318_v42, %v295_v41  ;;  %v296_v48 = vunpack.c.l.b16 %v533_v45  ;;  %vm697_vm5 = vmor %vm348_vm3, %vm352_vm4 }
   0xb   :  { %117 = vmatpush.bf16.msra.mxu1 %v627_v11  ;;  %v196_v30 = vshrl.u32 %v194_v27, 16  ;;  %v199_v31 = vshll.u32 %v194_v27, 16  ;;  %v12_v35 = vld [vmem:[%s720_s0] sm:$0xf]  ;;  %v255_v47 = vshll.u32 %v529_v44, 16  ;;  %v253_v51 = vshrl.u32 %v529_v44, 16 }
   0xc   :  { %174 = vmatpush.bf16.msra.mxu2 %v548_v15  ;;  %v321_v49 = vshrl.u32 %v319_v46, 16  ;;  %v324_v50 = vshll.u32 %v319_v46, 16  ;;  %v297_v53 = vpack.c.b16 %v296_v48, %v295_v41 }
   0xd   :  { %236 = vmatpush.bf16.msra.mxu3 %v552_v16  ;;  %v198_v38 = vrot.slane %v196_v30, 2  ;;  %v201_v39 = vrot.slane %v199_v31, 3  ;;  %v257_v52 = vrot.slane %v255_v47, 1 }
   0xe   :  { %78 = vmatpush.bf16.msra.mxu0 %v543_v23  ;;  %v323_v54 = vrot.slane %v321_v49, 2  ;;  %v326_v55 = vrot.slane %v324_v50, 3  ;;  %v298_v57 = vrot.slane %v297_v53, 2 }
   0xf   :  { %118 = vmatpush.bf16.msra.mxu1 %v538_v24  ;;  %v202_v43 = vor.u32 %v201_v39, %v198_v38  ;;  %v258_v56 = vor.u32 %v257_v52, %v253_v51 }
  0x10   :  { %175 = vmatpush.bf16.msra.mxu2 %v547_v28  ;;  %v327_v59 = vor.u32 %v326_v55, %v323_v54 }
  0x11   :  { %237 = vmatpush.bf16.msra.mxu3 %v551_v29  ;;  %456 = vmatmul.msk.bf16.vlgmr.msra.gmra.mxu0 %vm67_vm0, %v42_v34 }
  0x12   :  { %266 = vmatpush.bf16.msrb.mxu0 %v546_v0  ;;  %473 = vmatmul.msk.bf16.vlgmr.msra.gmra.mxu1 %vm67_vm0, %v12_v35 }
  0x13   :  { %498 = vmatmul.msk.bf16.vlgmr.msra.gmra.mxu2 %vm67_vm0, %v140_v37  ;;  %282 = vmatpush.bf16.msrb.mxu1 %v579_v1 }
  0x14   :  { %306 = vmatpush.bf16.msrb.mxu2 %v550_v2  ;;  %523 = vmatmul.msk.bf16.vlgmr.msra.gmra.mxu3 %vm67_vm0, %v202_v43 }
  0x15   :  { %335 = vmatpush.bf16.msrb.mxu3 %v587_v3 }
  0x16   :  { %267 = vmatpush.bf16.msrb.mxu0 %v593_v4 }
  0x17   :  { %283 = vmatpush.bf16.msrb.mxu1 %v598_v5 }
  0x18   :  { %307 = vmatpush.bf16.msrb.mxu2 %v604_v6 }
  0x19   :  { %336 = vmatpush.bf16.msrb.mxu3 %v609_v7 }
  0x1a   :  { %268 = vmatpush.bf16.msrb.mxu0 %v614_v8 }
  0x1b   :  { %284 = vmatpush.bf16.msrb.mxu1 %v627_v11 }
  0x1c   :  { %308 = vmatpush.bf16.msrb.mxu2 %v548_v15 }
  0x1d   :  { %337 = vmatpush.bf16.msrb.mxu3 %v552_v16 }
  0x1e   :  { %269 = vmatpush.bf16.msrb.mxu0 %v543_v23 }
  0x1f   :  { %285 = vmatpush.bf16.msrb.mxu1 %v538_v24 }
  0x20   :  { %309 = vmatpush.bf16.msrb.mxu2 %v547_v28 }
  0x21   :  { %338 = vmatpush.bf16.msrb.mxu3 %v551_v29  ;;  %530 = vmatmul.msk.bf16.vlgmr.msrb.gmra.mxu0 %vm67_vm0, %v258_v56 }
  0x22   :  { %531 = vmatmul.msk.bf16.vlgmr.msrb.gmra.mxu1 %vm67_vm0, %v524_v58 }
  0x23   :  { %534 = vmatmul.msk.bf16.vlgmr.msrb.gmra.mxu2 %vm67_vm0, %v298_v57 }
  0x24   :  { %536 = vmatmul.msk.bf16.vlgmr.msrb.gmra.mxu3 %vm67_vm0, %v327_v59 }
  0x8e   :  { %v80_v62 = vpop.f32.mrf.mxu0 }
  0x8f   :  { %v120_v63 = vpop.f32.mrf.mxu1 }
  0x90   :  { %v121_v0 = vadd.f32 %v120_v63, %v80_v62 }
  0x96   :  { %v177_v1 = vpop.f32.mrf.mxu2  ;;  %v82_v4 = vpop.f32.mrf.mxu0 }
  0x97   :  { %v239_v2 = vpop.f32.mrf.mxu3  ;;  %v181_v3 = vadd.f32 %v177_v1, %v121_v0  ;;  %v122_v5 = vpop.f32.mrf.mxu1 }
  0x99   :  { %v701_v7 = vadd.f32 %v239_v2, %v181_v3 }
  0x9b   :  { %v356_v8 = vsel %vm697_vm5, %v701_v7, 0.0 }
  0x9c   :  { %v366_v9 = vmul.f32 %v356_v8, %v356_v8  ;;  %v358_v13 = vsel %vm357_vm6, %v356_v8, 0.0 }
  0x9d   :  { %v359_v16 = vrot.slane %v358_v13, 4 }
  0x9e   :  { %v179_v10 = vpop.f32.mrf.mxu2  ;;  %v271_v12 = vpop.f32.mrf.mxu0  ;;  %v367_v15 = vsel %vm357_vm6, %v366_v9, 0.0 }
  0x9f   :  { %v241_v11 = vpop.f32.mrf.mxu3  ;;  %v287_v14 = vpop.f32.mrf.mxu1  ;;  %v368_v18 = vrot.slane %v367_v15, 4  ;;  %v360_v20 = vadd.f32 %v359_v16, %v358_v13 }
  0xa0   :  { %v288_v17 = vadd.f32 %v287_v14, %v271_v12 }
  0xa1   :  { %v369_v25 = vadd.f32 %v368_v18, %v367_v15  ;;  %v361_v27 = vrot.slane %v360_v20, 2 }
  0xa3   :  { %v370_v31 = vrot.slane %v369_v25, 2  ;;  %v362_v35 = vadd.f32 %v361_v27, %v360_v20 }
  0xa5   :  { %v371_v39 = vadd.f32 %v370_v31, %v369_v25  ;;  %v363_v42 = vrot.slane %v362_v35, 1 }
  0xa6   :  { %v311_v19 = vpop.f32.mrf.mxu2  ;;  %v273_v23 = vpop.f32.mrf.mxu0 }
  0xa7   :  { %v315_v21 = vadd.f32 %v311_v19, %v288_v17  ;;  %v340_v22 = vpop.f32.mrf.mxu3  ;;  %v289_v24 = vpop.f32.mrf.mxu1  ;;  %v372_v45 = vrot.slane %v371_v39, 1  ;;  %v364_v48 = vadd.f32 %v363_v42, %v362_v35 }
  0xa9   :  { %v344_v26 = vadd.f32 %v340_v22, %v315_v21  ;;  %v373_v51 = vadd.f32 %v372_v45, %v371_v39 }
  0xab   :  { %v375_v28 = vsel %vm697_vm5, %v344_v26, 0.0 }
  0xac   :  { %v376_v29 = vsel %vm357_vm6, %v375_v28, 0.0  ;;  %v384_v30 = vmul.f32 %v375_v28, %v375_v28 }
  0xad   :  { %v377_v32 = vrot.slane %v376_v29, 4 }
  0xae   :  { %v385_v33 = vsel %vm357_vm6, %v384_v30, 0.0  ;;  %v313_v34 = vpop.f32.mrf.mxu2 }
  0xaf   :  { %v378_v36 = vadd.f32 %v377_v32, %v376_v29  ;;  %v386_v37 = vrot.slane %v385_v33, 4  ;;  %v342_v38 = vpop.f32.mrf.mxu3 }
  0xb1   :  { %v379_v40 = vrot.slane %v378_v36, 2  ;;  %v387_v41 = vadd.f32 %v386_v37, %v385_v33 }
  0xb3   :  { %v380_v43 = vadd.f32 %v379_v40, %v378_v36  ;;  %v388_v44 = vrot.slane %v387_v41, 2 }
  0xb5   :  { %v381_v46 = vrot.slane %v380_v43, 1  ;;  %v389_v47 = vadd.f32 %v388_v44, %v387_v41 }
  0xb7   :  { %v382_v49 = vadd.f32 %v381_v46, %v380_v43  ;;  %v390_v50 = vrot.slane %v389_v47, 1 }
  0xb9   :  { %v383_v52 = vadd.f32 %v382_v49, %v364_v48  ;;  %v391_v53 = vadd.f32 %v390_v50, %v389_v47 }
  0xbb   :  { %v392_v54 = vadd.f32 %v391_v53, %v373_v51  ;;  %v393_v55 = vmul.f32 0.125, %v383_v52 }
  0xbd   :  { %v394_v56 = vmul.f32 0.125, %v392_v54  ;;  %v395_v57 = vmul.f32 %v393_v55, %v393_v55  ;;  %v408_v2 = vsub.f32 %v701_v7, %v393_v55  ;;  %v416_v3 = vsub.f32 %v344_v26, %v393_v55 }
  0xbf   :  { %v396_v58 = vsub.f32 %v394_v56, %v395_v57 }
  0xc1   :  { %v397_v59 = vadd.f32 1e-05, %v396_v58 }
  0xc3   :  { %556 = vrsqrt.f32 %v397_v59  ;;  %vm404_vm8 = vweird.f32 %v397_v59 }
  0xc9   :  { %v557_v60 = vpop.eup %556 }
  0xca   :  { %v399_v61 = vmul.f32 %v557_v60, %v397_v59  ;;  %vm405_vm7 = vweird.f32 %v557_v60 }
  0xcb   :  { %vm406_vm9 = vmor %vm404_vm8, %vm405_vm7 }
  0xcc   :  { %v400_v62 = vmul.f32 %v557_v60, %v399_v61 }
  0xce   :  { %v401_v63 = vmul.f32 0.5, %v400_v62 }
  0xd0   :  { %v402_v0 = vsub.f32 1.5, %v401_v63 }
  0xd2   :  { %v403_v1 = vmul.f32 %v557_v60, %v402_v0 }
  0xd4   :  { %v407_v4 = vsel %vm406_vm9, %v557_v60, %v403_v1 }
  0xd5   :  { %v409_v5 = vmul.f32 %v408_v2, %v407_v4  ;;  %v417_v6 = vmul.f32 %v416_v3, %v407_v4 }
  0xd7   :  { %vm410_vm10 = vcmp.ge.f32.partialorder %v409_v5, 0.0  ;;  %v411_v8 = vmul.f32 0.2, %v409_v5  ;;  %vm418_vm11 = vcmp.ge.f32.partialorder %v417_v6, 0.0  ;;  %v419_v9 = vmul.f32 0.2, %v417_v6 }
  0xd9   :  { %v412_v10 = vsel %vm410_vm10, %v409_v5, %v411_v8  ;;  %v420_v11 = vsel %vm418_vm11, %v417_v6, %v419_v9 }
  0xda   :  { %v413_v12 = vpack.c.bf16 %v412_v10, %v412_v10  ;;  %v421_v13 = vpack.c.bf16 %v420_v11, %v420_v11 }
  0xdc   :  { %415 = vst.msk [vmem:[%s721_s2] sm:$0xf] %vm414_vm12, %v413_v12 }
  0xdd   :  { %537 = vst.msk [vmem:[%s721_s2 + $0x4] sm:$0xf] %vm414_vm12, %v421_v13 }

// kernel: generator_forward.6
= control target key start
LH: loop header
LB: loop body
LE: loop exit
PB: predicated region body
PF: predicated region fallthrough
CT: control target
= control target key end

     0   :  { %vm115_vm0 = vcmask 1041408   ;;  %vm99_vm1 = vcmask 31744   ;;  %vm241_vm2 = vcmask 1046528   ;;  %vm54_vm3 = vsmask.f32 7424  ;;  %s2228_s1 = inlined_call_operand.vmem [shape: bf16[4,4,8], index: 1, kind: input, shape index: {}]   ;;  %s2229_s0 = inlined_call_operand.vmem [shape: bf16[2,92,4], index: 0, kind: input, shape index: {}]   ;;  %s2230_s2 = inlined_call_operand.vmem [shape: bf16[2,80,8], index: 2, kind: output, shape index: {}]  }
   0x1   :  { %v22_v0 = vld [vmem:[%s2228_s1] sm:$0x3]  ;;  %v1517_v1 = vld [vmem:[%s2228_s1 + $0x4] sm:$0x3]  ;;  %v1647_v6 = vld [vmem:[%s2229_s0 + $0x4] sm:$0xf0] }
   0x2   :  { %v1642_v2 = vld [vmem:[%s2229_s0] sm:$0xff]  ;;  %v164_v3 = vsel %vm115_vm0, %v22_v0, 0  ;;  %v269_v4 = vsel %vm115_vm0, %v1517_v1, 0  ;;  %v1648_v8 = vld [vmem:[%s2229_s0 + $0xc] sm:$0xff]  ;;  %vm321_vm4 = vsmask.f32 6400 }
   0x3   :  { %v1520_v5 = vld [vmem:[%s2229_s0 + $0x4] sm:$0xe]  ;;  %173 = vmatpush.bf16.msra.mxu1 %v164_v3  ;;  %278 = vmatpush.bf16.msra.mxu2 %v269_v4  ;;  %v58_v7 = vshll.u32 %v1642_v2, 16  ;;  %v1486_v10 = vld [vmem:[%s2228_s1 + $0x2] sm:$0x3]  ;;  %v1643_v14 = vld [vmem:[%s2229_s0 + $0x8] sm:$0xff] }
   0x4   :  { %v1521_v9 = vor.u32 %v1647_v6, %v1520_v5  ;;  %v1543_v11 = vld [vmem:[%s2228_s1 + $0x6] sm:$0x3]  ;;  %v117_v12 = vsel %vm115_vm0, %v1486_v10, 0  ;;  %v56_v15 = vshrl.u32 %v1642_v2, 16  ;;  %v243_v17 = vrot.slane %v1648_v8, 1  ;;  %v1649_v34 = vld [vmem:[%s2229_s0 + $0x14] sm:$0xff] }
   0x5   :  { %v391_v13 = vsel %vm115_vm0, %v1543_v11, 0  ;;  %126 = vmatpush.bf16.msra.mxu0 %v117_v12  ;;  %v60_v18 = vrot.slane %v58_v7, 1  ;;  %v63_v20 = vshll.u32 %v1643_v14, 16  ;;  %v331_v22 = vshrl.u32 %v1648_v8, 16  ;;  %v1644_v36 = vld [vmem:[%s2229_s0 + $0x10] sm:$0xff]  ;;  %v1650_v50 = vld [vmem:[%s2229_s0 + $0x1c] sm:$0xff] }
   0x6   :  { %v242_v16 = vrot.slane %v1521_v9, 1  ;;  %400 = vmatpush.bf16.msra.mxu3 %v391_v13  ;;  %v323_v19 = vshrl.u32 %v1521_v9, 16  ;;  %1512 = vmatmul.msk.bf16.vlgmr.msra.gmra.mxu1 %vm99_vm1, %v1642_v2  ;;  %v326_v21 = vshll.u32 %v1521_v9, 16  ;;  %v334_v23 = vshll.u32 %v1648_v8, 16  ;;  %v1645_v51 = vld [vmem:[%s2229_s0 + $0x18] sm:$0xff]  ;;  %v1651_v1 = vld [vmem:[%s2229_s0 + $0x24] sm:$0xff] }
   0x7   :  { %686 = vmatpush.bf16.msrb.mxu2 %v269_v4  ;;  %587 = vmatpush.bf16.msrb.mxu1 %v164_v3  ;;  %v61_v25 = vor.u32 %v60_v18, %v56_v15  ;;  %v65_v27 = vrot.slane %v63_v20, 1  ;;  %v333_v29 = vrot.slane %v331_v22, 1  ;;  %v340_v37 = vshrl.u32 %v1649_v34, 16  ;;  %v1646_v2 = vld [vmem:[%s2229_s0 + $0x20] sm:$0xff]  ;;  %v315_v10 = vld [vmem:[%s2229_s0 + $0x2c] sm:$0x3] }
   0x8   :  { %v244_v24 = vsel %vm241_vm2, %v242_v16, %v243_v17  ;;  %v325_v26 = vrot.slane %v323_v19, 1  ;;  %v328_v28 = vrot.slane %v326_v21, 2  ;;  %v336_v30 = vrot.slane %v334_v23, 2  ;;  %v210_v16 = vld [vmem:[%s2229_s0 + $0x2c] sm:$0x1] }
   0x9   :  { %543 = vmatpush.bf16.msrb.mxu0 %v117_v12  ;;  %1538 = vmatmul.msk.bf16.vlgmr.msra.gmra.mxu2 %vm99_vm1, %v244_v24  ;;  %v66_v31 = vsel %vm54_vm3, %v61_v25, %v65_v27  ;;  %v343_v38 = vshll.u32 %v1649_v34, 16  ;;  %v67_v39 = vshrl.u32 %v1643_v14, 16  ;;  %v71_v40 = vshll.u32 %v1644_v36, 16 }
   0xa   :  { %802 = vmatpush.bf16.msrb.mxu3 %v391_v13  ;;  %v329_v32 = vor.u32 %v328_v28, %v325_v26  ;;  %v337_v33 = vor.u32 %v336_v30, %v333_v29  ;;  %1507 = vmatmul.msk.bf16.vlgmr.msra.gmra.mxu0 %vm99_vm1, %v66_v31  ;;  %v245_v41 = vrot.slane %v1649_v34, 1  ;;  %v342_v42 = vrot.slane %v340_v37, 1  ;;  %v1657_v37 = vld [vmem:[%s2229_s0 + $0x34] sm:$0xf0] }
   0xb   :  { %v345_v43 = vrot.slane %v343_v38, 2  ;;  %v69_v44 = vor.u32 %v67_v39, %v65_v27  ;;  %v73_v45 = vrot.slane %v71_v40, 1  ;;  %v349_v52 = vshrl.u32 %v1650_v50, 16  ;;  %v1652_v39 = vld [vmem:[%s2229_s0 + $0x30] sm:$0xff] }
   0xc   :  { %v338_v35 = vsel %vm321_vm4, %v329_v32, %v337_v33  ;;  %v246_v46 = vsel %vm241_vm2, %v243_v17, %v245_v41  ;;  %v352_v53 = vshll.u32 %v1650_v50, 16  ;;  %v75_v54 = vshrl.u32 %v1644_v36, 16 }
   0xd   :  { %1544 = vmatmul.msk.bf16.vlgmr.msra.gmra.mxu3 %vm99_vm1, %v338_v35  ;;  %v346_v47 = vor.u32 %v345_v43, %v342_v42  ;;  %v74_v48 = vsel %vm54_vm3, %v69_v44, %v73_v45  ;;  %v79_v55 = vshll.u32 %v1645_v51, 16  ;;  %v247_v56 = vrot.slane %v1650_v50, 1  ;;  %v1653_v43 = vld [vmem:[%s2229_s0 + $0x38] sm:$0xff] }
   0xe   :  { %v351_v57 = vrot.slane %v349_v52, 1  ;;  %v354_v58 = vrot.slane %v352_v53, 2  ;;  %v77_v59 = vor.u32 %v75_v54, %v73_v45  ;;  %v358_v3 = vshrl.u32 %v1651_v1, 16 }
   0xf   :  { %v347_v49 = vsel %vm321_vm4, %v337_v33, %v346_v47  ;;  %v81_v60 = vrot.slane %v79_v55, 1  ;;  %v248_v61 = vsel %vm241_vm2, %v245_v41, %v247_v56  ;;  %v361_v4 = vshll.u32 %v1651_v1, 16  ;;  %v1658_v41 = vld [vmem:[%s2229_s0 + $0x3c] sm:$0xff] }
  0x10   :  { %v355_v62 = vor.u32 %v354_v58, %v351_v57  ;;  %v83_v5 = vshrl.u32 %v1645_v51, 16  ;;  %v87_v6 = vshll.u32 %v1646_v2, 16  ;;  %v249_v7 = vrot.slane %v1651_v1, 1  ;;  %v1659_v1 = vld [vmem:[%s2229_s0 + $0x44] sm:$0xff] }
  0x11   :  { %v82_v63 = vsel %vm54_vm3, %v77_v59, %v81_v60  ;;  %v360_v8 = vrot.slane %v358_v3, 1  ;;  %v363_v9 = vrot.slane %v361_v4, 2  ;;  %v319_v17 = vunpack.c.l.b16 %v315_v10 }
  0x12   :  { %v356_v0 = vsel %vm321_vm4, %v346_v47, %v355_v62  ;;  %v85_v11 = vor.u32 %v83_v5, %v81_v60  ;;  %v89_v12 = vrot.slane %v87_v6, 1  ;;  %v250_v13 = vsel %vm241_vm2, %v247_v56, %v249_v7 }
  0x13   :  { %v364_v15 = vor.u32 %v363_v9, %v360_v8  ;;  %v234_v20 = vunpack.c.l.b16 %v210_v16  ;;  %v320_v22 = vpack.c.b16 %v319_v17, %v319_v17  ;;  %v91_v27 = vshrl.u32 %v1646_v2, 16  ;;  %v1660_v16 = vld [vmem:[%s2229_s0 + $0x4c] sm:$0xff] }
  0x14   :  { %v90_v18 = vsel %vm54_vm3, %v85_v11, %v89_v12  ;;  %v480_v44 = vshll.u32 %v1652_v39, 16  ;;  %v736_v47 = vshrl.u32 %v1658_v41, 16  ;;  %v654_v53 = vrot.slane %v1658_v41, 1  ;;  %v1655_v17 = vld [vmem:[%s2229_s0 + $0x48] sm:$0xff] }
  0x15   :  { %v365_v21 = vsel %vm321_vm4, %v355_v62, %v364_v15  ;;  %v240_v24 = vpack.c.b16 %v234_v20, %v234_v20  ;;  %v367_v25 = vshrl.u32 %v320_v22, 16  ;;  %v370_v26 = vshll.u32 %v320_v22, 16 }
  0x16   :  { %1513 = vmatmul.msk.bf16.gmra.mxu1 %vm99_vm1, %v1643_v14  ;;  %v23_v14 = vld [vmem:[%s2229_s0 + $0x28] sm:$0x1]  ;;  %v93_v32 = vor.u32 %v91_v27, %v89_v12  ;;  %v482_v50 = vrot.slane %v480_v44, 1  ;;  %v738_v56 = vrot.slane %v736_v47, 1  ;;  %v745_v3 = vshrl.u32 %v1659_v1, 16 }
  0x17   :  { %v47_v19 = vunpack.c.l.b16 %v23_v14  ;;  %v251_v29 = vrot.slane %v240_v24, 1  ;;  %v369_v30 = vrot.slane %v367_v25, 1  ;;  %v372_v31 = vrot.slane %v370_v26, 2  ;;  %v1600_v47 = vld [vmem:[%s2229_s0 + $0x5c] sm:$0x1] }
  0x18   :  { %v748_v4 = vshll.u32 %v1659_v1, 16  ;;  %v489_v5 = vshrl.u32 %v1653_v43, 16  ;;  %v747_v8 = vrot.slane %v745_v3, 1  ;;  %v658_v22 = vrot.slane %v1660_v16, 1 }
  0x19   :  { %1539 = vmatmul.msk.bf16.gmra.mxu2 %vm99_vm1, %v246_v46  ;;  %v53_v23 = vpack.c.b16 %v47_v19, %v47_v19  ;;  %v252_v34 = vsel %vm241_vm2, %v249_v7, %v251_v29  ;;  %v373_v35 = vor.u32 %v372_v31, %v369_v30  ;;  %v656_v7 = vrot.slane %v1659_v1, 1  ;;  %v1661_v31 = vld [vmem:[%s2229_s0 + $0x54] sm:$0xff] }
  0x1a   :  { %1508 = vmatmul.msk.bf16.gmra.mxu0 %vm99_vm1, %v74_v48  ;;  %v739_v48 = vshll.u32 %v1658_v41, 16  ;;  %v750_v9 = vrot.slane %v748_v4, 2  ;;  %v757_v19 = vshll.u32 %v1660_v16, 16  ;;  %v1626_v41 = vld [vmem:[%s2229_s0 + $0x5c] sm:$0x3]  ;;  %vm1190_vm6 = vcmask 64512  }
  0x1b   :  { %v95_v28 = vshll.u32 %v53_v23, 16  ;;  %v374_v40 = vsel %vm321_vm4, %v364_v15, %v373_v35  ;;  %v657_v12 = vsel %vm241_vm2, %v654_v53, %v656_v7  ;;  %v659_v27 = vsel %vm241_vm2, %v656_v7, %v658_v22 }
  0x1c   :  { %v741_v57 = vrot.slane %v739_v48, 2  ;;  %v759_v24 = vrot.slane %v757_v19, 2  ;;  %v505_v35 = vshrl.u32 %v1655_v17, 16  ;;  %v725_v48 = vunpack.c.l.b16 %v1626_v41 }
  0x1d   :  { %1545 = vmatmul.msk.bf16.gmra.mxu3 %vm99_vm1, %v347_v49  ;;  %v97_v33 = vrot.slane %v95_v28, 1  ;;  %v478_v49 = vshrl.u32 %v1652_v39, 16 }
  0x1e   :  { %v742_v62 = vor.u32 %v741_v57, %v738_v56 }
  0x1f   :  { %v98_v38 = vsel %vm54_vm3, %v93_v32, %v97_v33  ;;  %v483_v58 = vor.u32 %v482_v50, %v478_v49  ;;  %v1656_v32 = vld [vmem:[%s2229_s0 + $0x50] sm:$0xff]  ;;  %v763_v33 = vshrl.u32 %v1661_v31, 16 }
  0x20   :  { %v513_v3 = vshrl.u32 %v1656_v32, 16 }
  0x26   :  { %1514 = vmatmul.msk.bf16.gmra.mxu1 %vm99_vm1, %v1644_v36  ;;  %v1603_v36 = vld [vmem:[%s2229_s0 + $0x34] sm:$0xe] }
  0x27   :  { %v1604_v42 = vor.u32 %v1657_v37, %v1603_v36  ;;  %v509_v36 = vshll.u32 %v1656_v32, 16  ;;  %v660_v37 = vrot.slane %v1661_v31, 1 }
  0x29   :  { %1540 = vmatmul.msk.bf16.gmra.mxu2 %vm99_vm1, %v248_v61  ;;  %v728_v45 = vshrl.u32 %v1604_v42, 16  ;;  %v731_v46 = vshll.u32 %v1604_v42, 16  ;;  %v653_v52 = vrot.slane %v1604_v42, 1  ;;  %v661_v44 = vsel %vm241_vm2, %v658_v22, %v660_v37 }
  0x2a   :  { %1509 = vmatmul.msk.bf16.gmra.mxu0 %vm99_vm1, %v82_v63 }
  0x2b   :  { %v730_v54 = vrot.slane %v728_v45, 1  ;;  %v733_v55 = vrot.slane %v731_v46, 2  ;;  %v655_v60 = vsel %vm241_vm2, %v653_v52, %v654_v53  ;;  %v1559_v45 = vld [vmem:[%s2229_s0 + $0x58] sm:$0x1]  ;;  %v646_v53 = vunpack.c.l.b16 %v1600_v47 }
  0x2d   :  { %1546 = vmatmul.msk.bf16.gmra.mxu3 %vm99_vm1, %v356_v0  ;;  %v734_v61 = vor.u32 %v733_v55, %v730_v54  ;;  %v726_v55 = vpack.c.b16 %v725_v48, %v725_v48 }
  0x2f   :  { %v743_v0 = vsel %vm321_vm4, %v734_v61, %v742_v62  ;;  %v652_v61 = vpack.c.b16 %v646_v53, %v646_v53 }
  0x31   :  { %v662_v7 = vrot.slane %v652_v61, 1 }
  0x36   :  { %1515 = vmatmul.msk.bf16.gmra.mxu1 %vm99_vm1, %v1645_v51  ;;  %v485_v51 = vshll.u32 %v1653_v43, 16 }
  0x38   :  { %v487_v59 = vrot.slane %v485_v51, 1  ;;  %v470_v51 = vunpack.c.l.b16 %v1559_v45 }
  0x39   :  { %1541 = vmatmul.msk.bf16.gmra.mxu2 %vm99_vm1, %v250_v13  ;;  %v751_v13 = vor.u32 %v750_v9, %v747_v8 }
  0x3a   :  { %1510 = vmatmul.msk.bf16.gmra.mxu0 %vm99_vm1, %v90_v18  ;;  %v488_v63 = vsel %vm54_vm3, %v483_v58, %v487_v59  ;;  %v491_v10 = vor.u32 %v489_v5, %v487_v59  ;;  %v754_v18 = vshrl.u32 %v1660_v16, 16  ;;  %v839_v59 = vlaneseq }
  0x3b   :  { %v752_v15 = vsel %vm321_vm4, %v742_v62, %v751_v13  ;;  %v772_v62 = vshrl.u32 %v726_v55, 16  ;;  %v663_v16 = vsel %vm241_vm2, %v660_v37, %v662_v7 }
  0x3c   :  { %v756_v23 = vrot.slane %v754_v18, 1 }
  0x3d   :  { %1547 = vmatmul.msk.bf16.gmra.mxu3 %vm99_vm1, %v365_v21  ;;  %v501_v21 = vshll.u32 %v1655_v17, 16  ;;  %v774_v8 = vrot.slane %v772_v62, 1 }
  0x3e   :  { %v760_v28 = vor.u32 %v759_v24, %v756_v23 }
  0x3f   :  { %v503_v26 = vrot.slane %v501_v21, 1 }
  0x40   :  { %v761_v30 = vsel %vm321_vm4, %v751_v13, %v760_v28 }
  0x41   :  { %v507_v42 = vor.u32 %v505_v35, %v503_v26 }
  0x46   :  { %1516 = vmatmul.msk.bf16.gmra.mxu1 %vm99_vm1, %v1646_v2  ;;  %v1654_v2 = vld [vmem:[%s2229_s0 + $0x40] sm:$0xff] }
  0x47   :  { %v493_v6 = vshll.u32 %v1654_v2, 16  ;;  %v497_v20 = vshrl.u32 %v1654_v2, 16 }
  0x49   :  { %1542 = vmatmul.msk.bf16.gmra.mxu2 %vm99_vm1, %v252_v34  ;;  %v495_v11 = vrot.slane %v493_v6, 1  ;;  %v766_v34 = vshll.u32 %v1661_v31, 16 }
  0x4a   :  { %1511 = vmatmul.msk.bf16.gmra.mxu0 %vm99_vm1, %v98_v38  ;;  %v765_v38 = vrot.slane %v763_v33, 1 }
  0x4b   :  { %v496_v14 = vsel %vm54_vm3, %v491_v10, %v495_v11  ;;  %v499_v25 = vor.u32 %v497_v20, %v495_v11 }
  0x4d   :  { %1548 = vmatmul.msk.bf16.gmra.mxu3 %vm99_vm1, %v374_v40  ;;  %v504_v29 = vsel %vm54_vm3, %v499_v25, %v503_v26 }
  0x56   :  { %1585 = vmatmul.msk.bf16.vlgmr.msrb.gmra.mxu1 %vm99_vm1, %v1652_v39  ;;  %v768_v39 = vrot.slane %v766_v34, 2 }
  0x58   :  { %v769_v46 = vor.u32 %v768_v39, %v765_v38 }
  0x59   :  { %1621 = vmatmul.msk.bf16.vlgmr.msrb.gmra.mxu2 %vm99_vm1, %v655_v60  ;;  %v476_v60 = vpack.c.b16 %v470_v51, %v470_v51 }
  0x5a   :  { %1580 = vmatmul.msk.bf16.vlgmr.msrb.gmra.mxu0 %vm99_vm1, %v488_v63  ;;  %v770_v54 = vsel %vm321_vm4, %v760_v28, %v769_v46  ;;  %v775_v63 = vshll.u32 %v726_v55, 16 }
  0x5b   :  { %v517_v4 = vshll.u32 %v476_v60, 16 }
  0x5c   :  { %v777_v9 = vrot.slane %v775_v63, 2 }
  0x5d   :  { %1627 = vmatmul.msk.bf16.vlgmr.msrb.gmra.mxu3 %vm99_vm1, %v743_v0 }
  0x66   :  { %1586 = vmatmul.msk.bf16.gmra.mxu1 %vm99_vm1, %v1653_v43  ;;  %v511_v43 = vrot.slane %v509_v36, 1 }
  0x68   :  { %v512_v50 = vsel %vm54_vm3, %v507_v42, %v511_v43 }
  0x69   :  { %1622 = vmatmul.msk.bf16.gmra.mxu2 %vm99_vm1, %v657_v12 }
  0x6a   :  { %1581 = vmatmul.msk.bf16.gmra.mxu0 %vm99_vm1, %v496_v14  ;;  %v515_v14 = vor.u32 %v513_v3, %v511_v43 }
  0x6d   :  { %1628 = vmatmul.msk.bf16.gmra.mxu3 %vm99_vm1, %v752_v15  ;;  %v519_v15 = vrot.slane %v517_v4, 1 }
  0x6f   :  { %v520_v20 = vsel %vm54_vm3, %v515_v14, %v519_v15 }
  0x76   :  { %1587 = vmatmul.msk.bf16.gmra.mxu1 %vm99_vm1, %v1654_v2  ;;  %v1842_v2 = vshrl.u32 %v839_v59, 7 }
  0x78   :  { %v1847_v13 = vadd.s32 8, %v1842_v2  ;;  %v842_v23 = vadd.s32 16, %v1842_v2  ;;  %v843_v42 = vadd.s32 24, %v1842_v2  ;;  %v1893_v63 = vadd.s32 32, %v1842_v2 }
  0x79   :  { %1623 = vmatmul.msk.bf16.gmra.mxu2 %vm99_vm1, %v659_v27 }
  0x7a   :  { %1582 = vmatmul.msk.bf16.gmra.mxu0 %vm99_vm1, %v504_v29  ;;  %vm881_vm5 = vcmp.ge.s32.totalorder %v1847_v13, 10  ;;  %vm892_vm7 = vcmp.lt.s32.totalorder %v842_v23, 18  ;;  %vm922_vm8 = vcmp.ge.s32.totalorder %v842_v23, 20  ;;  %vm933_vm10 = vcmp.lt.s32.totalorder %v843_v42, 28 }
  0x7b   :  { %vm1870_vm9 = vmor %vm892_vm7, %vm922_vm8  ;;  %vm963_vm11 = vcmp.ge.s32.totalorder %v843_v42, 30  ;;  %vm974_vm13 = vcmp.lt.s32.totalorder %v1893_v63, 38 }
  0x7c   :  { %vm1882_vm12 = vmor %vm933_vm10, %vm963_vm11  ;;  %vm1400_vm10 = vcmask 60416  }
  0x7d   :  { %1629 = vmatmul.msk.bf16.gmra.mxu3 %vm99_vm1, %v761_v30 }
  0x83   :  { %v175_v40 = vpop.f32.mrf.mxu1 }
  0x86   :  { %1588 = vmatmul.msk.bf16.gmra.mxu1 %vm99_vm1, %v1655_v17  ;;  %v778_v17 = vor.u32 %v777_v9, %v774_v8 }
  0x87   :  { %v128_v49 = vpop.f32.mrf.mxu0 }
  0x88   :  { %v176_v52 = vadd.f32 %v175_v40, %v128_v49  ;;  %v779_v25 = vsel %vm321_vm4, %v769_v46, %v778_v17 }
  0x89   :  { %1624 = vmatmul.msk.bf16.gmra.mxu2 %vm99_vm1, %v661_v44 }
  0x8a   :  { %1583 = vmatmul.msk.bf16.gmra.mxu0 %vm99_vm1, %v512_v50 }
  0x8b   :  { %v177_v57 = vpop.f32.mrf.mxu1 }
  0x8c   :  { %v280_v56 = vpop.f32.mrf.mxu2 }
  0x8d   :  { %v305_v58 = vadd.f32 %v280_v56, %v176_v52  ;;  %1630 = vmatmul.msk.bf16.gmra.mxu3 %vm99_vm1, %v770_v54 }
  0x8f   :  { %v130_v1 = vpop.f32.mrf.mxu0 }
  0x90   :  { %v402_v0 = vpop.f32.mrf.mxu3  ;;  %v178_v6 = vadd.f32 %v177_v57, %v130_v1 }
  0x91   :  { %v1844_v5 = vadd.f32 %v402_v0, %v305_v58 }
  0x93   :  { %v180_v11 = vpop.f32.mrf.mxu1  ;;  %v1217_v24 = vmul.f32 %v1844_v5, %v1844_v5  ;;  %v1191_v29 = vsel %vm1190_vm6, %v1844_v5, 0.0 }
  0x94   :  { %v282_v10 = vpop.f32.mrf.mxu2 }
  0x95   :  { %v306_v12 = vadd.f32 %v282_v10, %v178_v6  ;;  %v1227_v34 = vsel %vm1190_vm6, %v1217_v24, 0.0 }
  0x96   :  { %1589 = vmatmul.msk.bf16.gmra.mxu1 %vm99_vm1, %v1656_v32 }
  0x97   :  { %v133_v19 = vpop.f32.mrf.mxu0 }
  0x98   :  { %v404_v18 = vpop.f32.mrf.mxu3  ;;  %v181_v22 = vadd.f32 %v180_v11, %v133_v19 }
  0x99   :  { %1625 = vmatmul.msk.bf16.gmra.mxu2 %vm99_vm1, %v663_v16  ;;  %v1854_v21 = vadd.f32 %v404_v18, %v306_v12 }
  0x9a   :  { %1584 = vmatmul.msk.bf16.gmra.mxu0 %vm99_vm1, %v520_v20 }
  0x9b   :  { %v1181_v26 = vsel %vm881_vm5, %v1854_v21, 0.0  ;;  %v182_v28 = vpop.f32.mrf.mxu1 }
  0x9c   :  { %v285_v27 = vpop.f32.mrf.mxu2  ;;  %v1192_v30 = vsel %vm1190_vm6, %v1181_v26, 0.0  ;;  %v1218_v31 = vmul.f32 %v1181_v26, %v1181_v26 }
  0x9d   :  { %v307_v32 = vadd.f32 %v285_v27, %v181_v22  ;;  %v1193_v33 = vadd.f32 %v1192_v30, %v1191_v29  ;;  %1631 = vmatmul.msk.bf16.gmra.mxu3 %vm99_vm1, %v779_v25  ;;  %v1911_v30 = vadd.s32 48, %v1842_v2 }
  0x9e   :  { %v1228_v35 = vsel %vm1190_vm6, %v1218_v31, 0.0 }
  0x9f   :  { %v1229_v36 = vadd.f32 %v1228_v35, %v1227_v34  ;;  %v135_v39 = vpop.f32.mrf.mxu0  ;;  %vm1046_vm14 = vcmp.ge.s32.totalorder %v1911_v30, 50 }
  0xa0   :  { %v407_v37 = vpop.f32.mrf.mxu3  ;;  %v183_v41 = vadd.f32 %v182_v28, %v135_v39 }
  0xa1   :  { %v1874_v40 = vadd.f32 %v407_v37, %v307_v32  ;;  %v847_v37 = vadd.s32 56, %v1842_v2 }
  0xa3   :  { %v1182_v43 = vsel %vm1870_vm9, %v1874_v40, 0.0  ;;  %v185_v45 = vpop.f32.mrf.mxu1  ;;  %vm1057_vm15 = vcmp.lt.s32.totalorder %v847_v37, 58  ;;  %vm1087_vm0 = vcmp.ge.s32.totalorder %v847_v37, 60 }
  0xa4   :  { %v287_v44 = vpop.f32.mrf.mxu2  ;;  %v1194_v46 = vsel %vm1190_vm6, %v1182_v43, 0.0  ;;  %v1219_v47 = vmul.f32 %v1182_v43, %v1182_v43  ;;  %vm1923_vm1 = vmor %vm1057_vm15, %vm1087_vm0 }
  0xa5   :  { %v308_v48 = vadd.f32 %v287_v44, %v183_v41  ;;  %v1195_v49 = vadd.f32 %v1194_v46, %v1193_v33 }
  0xa6   :  { %v1230_v50 = vsel %vm1190_vm6, %v1219_v47, 0.0 }
  0xa7   :  { %v1231_v51 = vadd.f32 %v1230_v50, %v1229_v36  ;;  %v138_v54 = vpop.f32.mrf.mxu0 }
  0xa8   :  { %v409_v52 = vpop.f32.mrf.mxu3  ;;  %v186_v56 = vadd.f32 %v185_v45, %v138_v54 }
  0xa9   :  { %v1886_v55 = vadd.f32 %v409_v52, %v308_v48 }
  0xab   :  { %v1183_v57 = vsel %vm1882_vm12, %v1886_v55, 0.0  ;;  %v187_v59 = vpop.f32.mrf.mxu1 }
  0xac   :  { %v290_v58 = vpop.f32.mrf.mxu2  ;;  %v1196_v60 = vsel %vm1190_vm6, %v1183_v57, 0.0  ;;  %v1220_v61 = vmul.f32 %v1183_v57, %v1183_v57 }
  0xad   :  { %v309_v62 = vadd.f32 %v290_v58, %v186_v56  ;;  %v1197_v0 = vadd.f32 %v1196_v60, %v1195_v49  ;;  %v848_v56 = vadd.s32 64, %v1842_v2 }
  0xae   :  { %v1232_v1 = vsel %vm1190_vm6, %v1220_v61, 0.0 }
  0xaf   :  { %v1233_v3 = vadd.f32 %v1232_v1, %v1231_v51  ;;  %v140_v6 = vpop.f32.mrf.mxu0  ;;  %vm1098_vm2 = vcmp.lt.s32.totalorder %v848_v56, 68  ;;  %vm1128_vm3 = vcmp.ge.s32.totalorder %v848_v56, 70 }
  0xb0   :  { %v412_v4 = vpop.f32.mrf.mxu3  ;;  %v188_v8 = vadd.f32 %v187_v59, %v140_v6  ;;  %vm1935_vm4 = vmor %vm1098_vm2, %vm1128_vm3 }
  0xb1   :  { %v1897_v7 = vadd.f32 %v412_v4, %v309_v62 }
  0xb3   :  { %v1184_v9 = vsel %vm974_vm13, %v1897_v7, 0.0  ;;  %v190_v11 = vpop.f32.mrf.mxu1 }
  0xb4   :  { %v292_v10 = vpop.f32.mrf.mxu2  ;;  %v1198_v12 = vsel %vm1190_vm6, %v1184_v9, 0.0  ;;  %v1221_v14 = vmul.f32 %v1184_v9, %v1184_v9 }
  0xb5   :  { %v310_v15 = vadd.f32 %v292_v10, %v188_v8  ;;  %v1199_v16 = vadd.f32 %v1198_v12, %v1197_v0 }
  0xb6   :  { %v1234_v17 = vsel %vm1190_vm6, %v1221_v14, 0.0 }
  0xb7   :  { %v1235_v18 = vadd.f32 %v1234_v17, %v1233_v3  ;;  %v143_v20 = vpop.f32.mrf.mxu0 }
  0xb8   :  { %v414_v19 = vpop.f32.mrf.mxu3  ;;  %v191_v23 = vadd.f32 %v190_v11, %v143_v20 }
  0xb9   :  { %v1904_v22 = vadd.f32 %v414_v19, %v310_v15 }
  0xbb   :  { %v1200_v24 = vsel %vm1190_vm6, %v1904_v22, 0.0  ;;  %v1222_v25 = vmul.f32 %v1904_v22, %v1904_v22  ;;  %v192_v27 = vpop.f32.mrf.mxu1 }
  0xbc   :  { %v295_v26 = vpop.f32.mrf.mxu2  ;;  %v1201_v28 = vadd.f32 %v1200_v24, %v1199_v16 }
  0xbd   :  { %v311_v29 = vadd.f32 %v295_v26, %v191_v23  ;;  %v1236_v31 = vsel %vm1190_vm6, %v1222_v25, 0.0 }
  0xbe   :  { %v1237_v32 = vadd.f32 %v1236_v31, %v1235_v18  ;;  %v1946_v18 = vadd.s32 72, %v1842_v2 }
  0xbf   :  { %v145_v34 = vpop.f32.mrf.mxu0 }
  0xc0   :  { %v417_v33 = vpop.f32.mrf.mxu3  ;;  %v193_v36 = vadd.f32 %v192_v27, %v145_v34  ;;  %vm1139_vm7 = vcmp.lt.s32.totalorder %v1946_v18, 78 }
  0xc1   :  { %v1915_v35 = vadd.f32 %v417_v33, %v311_v29 }
  0xc3   :  { %v1186_v39 = vsel %vm1046_vm14, %v1915_v35, 0.0  ;;  %v195_v42 = vpop.f32.mrf.mxu1 }
  0xc4   :  { %v297_v41 = vpop.f32.mrf.mxu2  ;;  %v1202_v43 = vsel %vm1190_vm6, %v1186_v39, 0.0  ;;  %v1223_v44 = vmul.f32 %v1186_v39, %v1186_v39 }
  0xc5   :  { %v312_v45 = vadd.f32 %v297_v41, %v193_v36  ;;  %v1203_v46 = vadd.f32 %v1202_v43, %v1201_v28 }
  0xc6   :  { %v1238_v47 = vsel %vm1190_vm6, %v1223_v44, 0.0 }
  0xc7   :  { %v1239_v48 = vadd.f32 %v1238_v47, %v1237_v32  ;;  %v148_v51 = vpop.f32.mrf.mxu0 }
  0xc8   :  { %v419_v49 = vpop.f32.mrf.mxu3  ;;  %v196_v54 = vadd.f32 %v195_v42, %v148_v51 }
  0xc9   :  { %v1927_v52 = vadd.f32 %v419_v49, %v312_v45 }
  0xcb   :  { %v1187_v57 = vsel %vm1923_vm1, %v1927_v52, 0.0  ;;  %v197_v59 = vpop.f32.mrf.mxu1 }
  0xcc   :  { %v300_v58 = vpop.f32.mrf.mxu2  ;;  %v1204_v60 = vsel %vm1190_vm6, %v1187_v57, 0.0  ;;  %v1224_v61 = vmul.f32 %v1187_v57, %v1187_v57 }
  0xcd   :  { %v313_v62 = vadd.f32 %v300_v58, %v196_v54  ;;  %v1205_v0 = vadd.f32 %v1204_v60, %v1203_v46 }
  0xce   :  { %v1240_v1 = vsel %vm1190_vm6, %v1224_v61, 0.0 }
  0xcf   :  { %v1241_v3 = vadd.f32 %v1240_v1, %v1239_v48  ;;  %v150_v8 = vpop.f32.mrf.mxu0 }
  0xd0   :  { %v422_v4 = vpop.f32.mrf.mxu3  ;;  %v198_v10 = vadd.f32 %v197_v59, %v150_v8 }
  0xd1   :  { %v1939_v9 = vadd.f32 %v422_v4, %v313_v62 }
  0xd3   :  { %v1188_v11 = vsel %vm1935_vm4, %v1939_v9, 0.0  ;;  %v589_v14 = vpop.f32.mrf.mxu1 }
  0xd4   :  { %v302_v12 = vpop.f32.mrf.mxu2  ;;  %v1206_v15 = vsel %vm1190_vm6, %v1188_v11, 0.0  ;;  %v1225_v16 = vmul.f32 %v1188_v11, %v1188_v11 }
  0xd5   :  { %v314_v17 = vadd.f32 %v302_v12, %v198_v10  ;;  %v1207_v19 = vadd.f32 %v1206_v15, %v1205_v0 }
  0xd6   :  { %v1242_v20 = vsel %vm1190_vm6, %v1225_v16, 0.0 }
  0xd7   :  { %v1243_v23 = vadd.f32 %v1242_v20, %v1241_v3  ;;  %v545_v25 = vpop.f32.mrf.mxu0 }
  0xd8   :  { %v424_v24 = vpop.f32.mrf.mxu3  ;;  %v590_v10 = vadd.f32 %v589_v14, %v545_v25 }
  0xd9   :  { %v1950_v26 = vadd.f32 %v424_v24, %v314_v17 }
  0xdb   :  { %v1189_v27 = vsel %vm1139_vm7, %v1950_v26, 0.0  ;;  %v591_v29 = vpop.f32.mrf.mxu1 }
  0xdc   :  { %v688_v28 = vpop.f32.mrf.mxu2  ;;  %v1208_v31 = vsel %vm1190_vm6, %v1189_v27, 0.0  ;;  %v1226_v2 = vmul.f32 %v1189_v27, %v1189_v27 }
  0xdd   :  { %v1956_v32 = vadd.f32 %v1208_v31, %v1207_v19 }
  0xde   :  { %v1244_v33 = vsel %vm1190_vm6, %v1226_v2, 0.0 }
  0xdf   :  { %v1959_v34 = vadd.f32 %v1244_v33, %v1243_v23  ;;  %v547_v37 = vpop.f32.mrf.mxu0  ;;  %v713_v23 = vadd.f32 %v688_v28, %v590_v10 }
  0xe0   :  { %v804_v36 = vpop.f32.mrf.mxu3  ;;  %v592_v1 = vadd.f32 %v591_v29, %v547_v37 }
  0xe1   :  { %v1970_v25 = vadd.f32 %v804_v36, %v713_v23 }
  0xe3   :  { %v594_v41 = vpop.f32.mrf.mxu1  ;;  %v1289_v36 = vmul.f32 %v1970_v25, %v1970_v25 }
  0xe4   :  { %v690_v39 = vpop.f32.mrf.mxu2 }
  0xe5   :  { %v714_v11 = vadd.f32 %v690_v39, %v592_v1 }
  0xe7   :  { %v550_v43 = vpop.f32.mrf.mxu0 }
  0xe8   :  { %v806_v42 = vpop.f32.mrf.mxu3  ;;  %v595_v3 = vadd.f32 %v594_v41, %v550_v43 }
  0xe9   :  { %v1961_v20 = vadd.f32 %v806_v42, %v714_v11 }
  0xeb   :  { %v596_v45 = vpop.f32.mrf.mxu1  ;;  %v1254_v29 = vsel %vm881_vm5, %v1961_v20, 0.0 }
  0xec   :  { %v693_v44 = vpop.f32.mrf.mxu2 }
  0xed   :  { %v715_v12 = vadd.f32 %v693_v44, %v595_v3  ;;  %v1290_v44 = vmul.f32 %v1254_v29, %v1254_v29 }
  0xef   :  { %v552_v47 = vpop.f32.mrf.mxu0 }
  0xf0   :  { %v809_v46 = vpop.f32.mrf.mxu3  ;;  %v597_v15 = vadd.f32 %v596_v45, %v552_v47 }
  0xf1   :  { %v1963_v24 = vadd.f32 %v809_v46, %v715_v12 }
  0xf3   :  { %v599_v49 = vpop.f32.mrf.mxu1  ;;  %v1255_v39 = vsel %vm1870_vm9, %v1963_v24, 0.0 }
  0xf4   :  { %v695_v48 = vpop.f32.mrf.mxu2  ;;  %v1291_v38 = vmul.f32 %v1255_v39, %v1255_v39 }
  0xf5   :  { %v716_v27 = vadd.f32 %v695_v48, %v597_v15  ;;  %v1264_v48 = vsel %vm1190_vm6, %v1254_v29, 0.0 }
  0xf6   :  { %v1302_v63 = vsel %vm1190_vm6, %v1291_v38, 0.0 }
  0xf7   :  { %v555_v54 = vpop.f32.mrf.mxu0 }
  0xf8   :  { %v811_v51 = vpop.f32.mrf.mxu3  ;;  %v600_v16 = vadd.f32 %v599_v49, %v555_v54 }
  0xf9   :  { %v1968_v14 = vadd.f32 %v811_v51, %v716_v27  ;;  %v1263_v51 = vsel %vm1190_vm6, %v1970_v25, 0.0 }
  0xfa   :  { %v1265_v1 = vadd.f32 %v1264_v48, %v1263_v51 }
  0xfb   :  { %v601_v57 = vpop.f32.mrf.mxu1  ;;  %v1256_v13 = vsel %vm1882_vm12, %v1968_v14, 0.0 }
  0xfc   :  { %v698_v56 = vpop.f32.mrf.mxu2 }
  0xfd   :  { %v717_v31 = vadd.f32 %v698_v56, %v600_v16 }
  0xff   :  { %v557_v59 = vpop.f32.mrf.mxu0 }
 0x100   :  { %v814_v58 = vpop.f32.mrf.mxu3  ;;  %v602_v37 = vadd.f32 %v601_v57, %v557_v59  ;;  %v1266_v59 = vsel %vm1190_vm6, %v1255_v39, 0.0 }
 0x101   :  { %v1975_v28 = vadd.f32 %v814_v58, %v717_v31  ;;  %v1300_v58 = vsel %vm1190_vm6, %v1290_v44, 0.0  ;;  %v1267_v12 = vadd.f32 %v1266_v59, %v1265_v1 }
 0x103   :  { %v604_v61 = vpop.f32.mrf.mxu1  ;;  %v1257_v54 = vsel %vm974_vm13, %v1975_v28, 0.0 }
 0x104   :  { %v700_v60 = vpop.f32.mrf.mxu2  ;;  %v1293_v10 = vmul.f32 %v1257_v54, %v1257_v54  ;;  %v1270_v16 = vsel %vm1190_vm6, %v1257_v54, 0.0  ;;  %v1246_v54 = vrot.slane %v1959_v34, 4 }
 0x105   :  { %v718_v49 = vadd.f32 %v700_v60, %v602_v37 }
 0x106   :  { %v1306_v30 = vsel %vm1190_vm6, %v1293_v10, 0.0  ;;  %v1247_v10 = vadd.f32 %v1246_v54, %v1959_v34 }
 0x107   :  { %v560_v0 = vpop.f32.mrf.mxu0 }
 0x108   :  { %v816_v62 = vpop.f32.mrf.mxu3  ;;  %v605_v2 = vadd.f32 %v604_v61, %v560_v0  ;;  %v1292_v61 = vmul.f32 %v1256_v13, %v1256_v13 }
 0x109   :  { %v1992_v0 = vadd.f32 %v816_v62, %v718_v49 }
 0x10a   :  { %v1304_v62 = vsel %vm1190_vm6, %v1292_v61, 0.0 }
 0x10b   :  { %v606_v8 = vpop.f32.mrf.mxu1  ;;  %v1272_v29 = vsel %vm1190_vm6, %v1992_v0, 0.0 }
 0x10c   :  { %v703_v4 = vpop.f32.mrf.mxu2 }
 0x10d   :  { %v719_v41 = vadd.f32 %v703_v4, %v605_v2  ;;  %v1299_v4 = vsel %vm1190_vm6, %v1289_v36, 0.0 }
 0x10e   :  { %v1301_v11 = vadd.f32 %v1300_v58, %v1299_v4 }
 0x10f   :  { %v562_v19 = vpop.f32.mrf.mxu0 }
 0x110   :  { %v819_v17 = vpop.f32.mrf.mxu3  ;;  %v607_v42 = vadd.f32 %v606_v8, %v562_v19  ;;  %v1268_v8 = vsel %vm1190_vm6, %v1256_v13, 0.0  ;;  %v1303_v27 = vadd.f32 %v1302_v63, %v1301_v11 }
 0x111   :  { %v1988_v56 = vadd.f32 %v819_v17, %v719_v41  ;;  %v1294_v17 = vmul.f32 %v1992_v0, %v1992_v0  ;;  %v1269_v31 = vadd.f32 %v1268_v8, %v1267_v12 }
 0x112   :  { %v1305_v41 = vadd.f32 %v1304_v62, %v1303_v27  ;;  %v1248_v27 = vrot.slane %v1247_v10, 2 }
 0x113   :  { %v609_v43 = vpop.f32.mrf.mxu1  ;;  %v1259_v15 = vsel %vm1046_vm14, %v1988_v56, 0.0 }
 0x114   :  { %v705_v33 = vpop.f32.mrf.mxu2  ;;  %v1295_v37 = vmul.f32 %v1259_v15, %v1259_v15  ;;  %v1274_v50 = vsel %vm1190_vm6, %v1259_v15, 0.0  ;;  %v1307_v36 = vadd.f32 %v1306_v30, %v1305_v41 }
 0x115   :  { %v720_v57 = vadd.f32 %v705_v33, %v607_v42  ;;  %v1271_v42 = vadd.f32 %v1270_v16, %v1269_v31 }
 0x116   :  { %v1310_v38 = vsel %vm1190_vm6, %v1295_v37, 0.0  ;;  %v1249_v37 = vadd.f32 %v1248_v27, %v1247_v10 }
 0x117   :  { %v565_v46 = vpop.f32.mrf.mxu0  ;;  %v1273_v48 = vadd.f32 %v1272_v29, %v1271_v42 }
 0x118   :  { %v821_v45 = vpop.f32.mrf.mxu3  ;;  %v610_v47 = vadd.f32 %v609_v43, %v565_v46 }
 0x119   :  { %v1994_v60 = vadd.f32 %v821_v45, %v720_v57  ;;  %v1308_v45 = vsel %vm1190_vm6, %v1294_v17, 0.0  ;;  %v1275_v57 = vadd.f32 %v1274_v50, %v1273_v48 }
 0x11a   :  { %v1309_v6 = vadd.f32 %v1308_v45, %v1307_v36 }
 0x11b   :  { %v1260_v2 = vsel %vm1923_vm1, %v1994_v60, 0.0  ;;  %v611_v39 = vpop.f32.mrf.mxu1 }
 0x11c   :  { %v708_v53 = vpop.f32.mrf.mxu2  ;;  %v1296_v46 = vmul.f32 %v1260_v2, %v1260_v2  ;;  %v1276_v49 = vsel %vm1190_vm6, %v1260_v2, 0.0 }
 0x11d   :  { %v721_v3 = vadd.f32 %v708_v53, %v610_v47  ;;  %v1210_v47 = vrot.slane %v1956_v32, 4  ;;  %v1277_v4 = vadd.f32 %v1276_v49, %v1275_v57 }
 0x11e   :  { %v1312_v58 = vsel %vm1190_vm6, %v1296_v46, 0.0 }
 0x11f   :  { %v567_v23 = vpop.f32.mrf.mxu0  ;;  %v1211_v1 = vadd.f32 %v1210_v47, %v1956_v32 }
 0x120   :  { %v824_v19 = vpop.f32.mrf.mxu3  ;;  %v612_v44 = vadd.f32 %v611_v39, %v567_v23 }
 0x121   :  { %v2009_v33 = vadd.f32 %v824_v19, %v721_v3  ;;  %v1311_v3 = vadd.f32 %v1310_v38, %v1309_v6  ;;  %v1212_v17 = vrot.slane %v1211_v1, 2 }
 0x123   :  { %v1261_v43 = vsel %vm1935_vm4, %v2009_v33, 0.0  ;;  %v1313_v11 = vadd.f32 %v1312_v58, %v1311_v3  ;;  %v1213_v30 = vadd.f32 %v1212_v17, %v1211_v1 }
 0x124   :  { %v710_v13 = vpop.f32.mrf.mxu2  ;;  %v1297_v51 = vmul.f32 %v1261_v43, %v1261_v43  ;;  %v1278_v59 = vsel %vm1190_vm6, %v1261_v43, 0.0 }
 0x125   :  { %v722_v53 = vadd.f32 %v710_v13, %v612_v44  ;;  %v1279_v12 = vadd.f32 %v1278_v59, %v1277_v4  ;;  %v1214_v42 = vrot.slane %v1213_v30, 1  ;;  %v1250_v44 = vrot.slane %v1249_v37, 1 }
 0x126   :  { %v1314_v8 = vsel %vm1190_vm6, %v1297_v51, 0.0 }
 0x127   :  { %v1315_v19 = vadd.f32 %v1314_v8, %v1313_v11  ;;  %v1215_v46 = vadd.f32 %v1214_v42, %v1213_v30  ;;  %v1251_v36 = vadd.f32 %v1250_v44, %v1249_v37 }
 0x128   :  { %v826_v61 = vpop.f32.mrf.mxu3 }
 0x129   :  { %v2026_v63 = vadd.f32 %v826_v61, %v722_v53 }
 0x12b   :  { %v1262_v15 = vsel %vm1139_vm7, %v2026_v63, 0.0 }
 0x12c   :  { %v1280_v62 = vsel %vm1190_vm6, %v1262_v15, 0.0  ;;  %v1298_v16 = vmul.f32 %v1262_v15, %v1262_v15 }
 0x12d   :  { %v1281_v32 = vadd.f32 %v1280_v62, %v1279_v12 }
 0x12e   :  { %v1316_v23 = vsel %vm1190_vm6, %v1298_v16, 0.0 }
 0x12f   :  { %v1282_v31 = vrot.slane %v1281_v32, 4  ;;  %v1317_v2 = vadd.f32 %v1316_v23, %v1315_v19 }
 0x131   :  { %v1283_v29 = vadd.f32 %v1282_v31, %v1281_v32  ;;  %v1318_v34 = vrot.slane %v1317_v2, 4 }
 0x133   :  { %v1284_v39 = vrot.slane %v1283_v29, 2  ;;  %v1319_v41 = vadd.f32 %v1318_v34, %v1317_v2 }
 0x135   :  { %v1285_v18 = vadd.f32 %v1284_v39, %v1283_v29  ;;  %v1320_v43 = vrot.slane %v1319_v41, 2 }
 0x137   :  { %v1286_v45 = vrot.slane %v1285_v18, 1  ;;  %v1321_v50 = vadd.f32 %v1320_v43, %v1319_v41 }
 0x139   :  { %v1287_v13 = vadd.f32 %v1286_v45, %v1285_v18  ;;  %v1322_v47 = vrot.slane %v1321_v50, 1 }
 0x13b   :  { %v1288_v48 = vadd.f32 %v1287_v13, %v1215_v46  ;;  %v1323_v38 = vadd.f32 %v1322_v47, %v1321_v50 }
 0x13d   :  { %v1324_v49 = vadd.f32 %v1323_v38, %v1251_v36  ;;  %v2035_v51 = vmul.f32 0.0078125, %v1288_v48 }
 0x13f   :  { %v1326_v54 = vmul.f32 0.0078125, %v1324_v49  ;;  %v1327_v6 = vmul.f32 %v2035_v51, %v2035_v51  ;;  %v1340_v57 = vsub.f32 %v1844_v5, %v2035_v51  ;;  %v1341_v53 = vsub.f32 %v1854_v21, %v2035_v51 }
 0x140   :  { %v1342_v58 = vsub.f32 %v1874_v40, %v2035_v51  ;;  %v1343_v59 = vsub.f32 %v1886_v55, %v2035_v51  ;;  %v1344_v61 = vsub.f32 %v1897_v7, %v2035_v51  ;;  %v1345_v1 = vsub.f32 %v1904_v22, %v2035_v51 }
 0x141   :  { %v1328_v3 = vsub.f32 %v1326_v54, %v1327_v6  ;;  %v1346_v4 = vsub.f32 %v1915_v35, %v2035_v51  ;;  %v1347_v5 = vsub.f32 %v1927_v52, %v2035_v51  ;;  %v1348_v21 = vsub.f32 %v1939_v9, %v2035_v51 }
 0x142   :  { %v1349_v40 = vsub.f32 %v1950_v26, %v2035_v51  ;;  %v1415_v7 = vsub.f32 %v1975_v28, %v2035_v51  ;;  %v1416_v22 = vsub.f32 %v1992_v0, %v2035_v51  ;;  %v1417_v8 = vsub.f32 %v1988_v56, %v2035_v51 }
 0x143   :  { %v1329_v55 = vadd.f32 1e-05, %v1328_v3  ;;  %v1418_v35 = vsub.f32 %v1994_v60, %v2035_v51  ;;  %v1419_v52 = vsub.f32 %v2009_v33, %v2035_v51  ;;  %v1420_v9 = vsub.f32 %v2026_v63, %v2035_v51 }
 0x144   :  { %v1411_v17 = vsub.f32 %v1970_v25, %v2035_v51  ;;  %v1412_v19 = vsub.f32 %v1961_v20, %v2035_v51 }
 0x145   :  { %1662 = vrsqrt.f32 %v1329_v55  ;;  %vm1336_vm6 = vweird.f32 %v1329_v55 }
 0x14b   :  { %v1663_v26 = vpop.eup %1662 }
 0x14c   :  { %v1331_v10 = vmul.f32 %v1663_v26, %v1329_v55  ;;  %vm1337_vm5 = vweird.f32 %v1663_v26 }
 0x14d   :  { %vm1338_vm8 = vmor %vm1336_vm6, %vm1337_vm5 }
 0x14e   :  { %v1332_v11 = vmul.f32 %v1663_v26, %v1331_v10 }
 0x150   :  { %v1333_v12 = vmul.f32 0.5, %v1332_v11 }
 0x152   :  { %v1334_v15 = vsub.f32 1.5, %v1333_v12 }
 0x154   :  { %v1335_v62 = vmul.f32 %v1663_v26, %v1334_v15 }
 0x156   :  { %v2071_v16 = vsel %vm1338_vm8, %v1663_v26, %v1335_v62 }
 0x157   :  { %v1350_v32 = vmul.f32 %v1340_v57, %v2071_v16  ;;  %v1351_v23 = vmul.f32 %v1341_v53, %v2071_v16  ;;  %v1352_v27 = vmul.f32 %v1342_v58, %v2071_v16  ;;  %v1353_v31 = vmul.f32 %v1343_v59, %v2071_v16 }
 0x158   :  { %v1354_v2 = vmul.f32 %v1344_v61, %v2071_v16  ;;  %v1355_v30 = vmul.f32 %v1345_v1, %v2071_v16  ;;  %v1356_v29 = vmul.f32 %v1346_v4, %v2071_v16  ;;  %v1357_v34 = vmul.f32 %v1347_v5, %v2071_v16 }
 0x159   :  { %v1358_v25 = vmul.f32 %v1348_v21, %v2071_v16  ;;  %v1359_v20 = vmul.f32 %v1349_v40, %v2071_v16  ;;  %vm1360_vm9 = vcmp.ge.f32.partialorder %v1350_v32, 0.0  ;;  %vm1361_vm11 = vcmp.ge.f32.partialorder %v1351_v23, 0.0 }
 0x15a   :  { %vm1362_vm12 = vcmp.ge.f32.partialorder %v1352_v27, 0.0  ;;  %vm1363_vm13 = vcmp.ge.f32.partialorder %v1353_v31, 0.0  ;;  %vm1364_vm14 = vcmp.ge.f32.partialorder %v1354_v2, 0.0  ;;  %vm1365_vm15 = vcmp.ge.f32.partialorder %v1355_v30, 0.0 }
 0x15b   :  { %vm1366_vm0 = vcmp.ge.f32.partialorder %v1356_v29, 0.0  ;;  %vm1367_vm1 = vcmp.ge.f32.partialorder %v1357_v34, 0.0  ;;  %vm1368_vm2 = vcmp.ge.f32.partialorder %v1358_v25, 0.0  ;;  %v1370_v37 = vmul.f32 0.2, %v1350_v32 }
 0x15c   :  { %v1371_v39 = vmul.f32 0.2, %v1351_v23  ;;  %v1372_v41 = vmul.f32 0.2, %v1352_v27  ;;  %v2088_v42 = vmul.f32 %v1411_v17, %v2071_v16  ;;  %v1373_v18 = vmul.f32 0.2, %v1353_v31 }
 0x15d   :  { %v1374_v43 = vmul.f32 0.2, %v1354_v2  ;;  %v1375_v44 = vmul.f32 0.2, %v1355_v30  ;;  %v2091_v45 = vmul.f32 %v1412_v19, %v2071_v16  ;;  %v1376_v50 = vmul.f32 0.2, %v1356_v29 }
 0x15e   :  { %v1377_v46 = vmul.f32 0.2, %v1357_v34  ;;  %v1378_v13 = vmul.f32 0.2, %v1358_v25  ;;  %v1380_v47 = vsel %vm1360_vm9, %v1350_v32, %v1370_v37  ;;  %v1379_v36 = vmul.f32 0.2, %v1359_v20 }
 0x15f   :  { %v1381_v48 = vsel %vm1361_vm11, %v1351_v23, %v1371_v39  ;;  %v1382_v38 = vsel %vm1362_vm12, %v1352_v27, %v1372_v41  ;;  %v1383_v49 = vsel %vm1363_vm13, %v1353_v31, %v1373_v18  ;;  %vm1369_vm3 = vcmp.ge.f32.partialorder %v1359_v20, 0.0 }
 0x160   :  { %v1384_v54 = vsel %vm1364_vm14, %v1354_v2, %v1374_v43  ;;  %v1385_v6 = vsel %vm1365_vm15, %v1355_v30, %v1375_v44  ;;  %v1386_v57 = vsel %vm1366_vm0, %v1356_v29, %v1376_v50  ;;  %v1390_v53 = vpack.c.bf16 %v1380_v47, %v1380_v47 }
 0x161   :  { %v1391_v58 = vpack.c.bf16 %v1381_v48, %v1381_v48  ;;  %v1413_v59 = vsub.f32 %v1963_v24, %v2035_v51  ;;  %v1414_v61 = vsub.f32 %v1968_v14, %v2035_v51  ;;  %v1387_v1 = vsel %vm1367_vm1, %v1357_v34, %v1377_v46 }
 0x162   :  { %v1388_v3 = vsel %vm1368_vm2, %v1358_v25, %v1378_v13  ;;  %v1392_v4 = vpack.c.bf16 %v1382_v38, %v1382_v38  ;;  %v1393_v5 = vpack.c.bf16 %v1383_v49, %v1383_v49  ;;  %v1389_v21 = vsel %vm1369_vm3, %v1359_v20, %v1379_v36  ;;  %1401 = vst.msk [vmem:[%s2230_s2] sm:$0xf] %vm1400_vm10, %v1390_v53 }
 0x163   :  { %v1394_v40 = vpack.c.bf16 %v1384_v54, %v1384_v54  ;;  %v1395_v55 = vpack.c.bf16 %v1385_v6, %v1385_v6  ;;  %v1396_v26 = vpack.c.bf16 %v1386_v57, %v1386_v57  ;;  %1402 = vst.msk [vmem:[%s2230_s2 + $0x4] sm:$0xf] %vm1400_vm10, %v1391_v58  ;;  %v1423_v24 = vmul.f32 %v1413_v59, %v2071_v16 }
 0x164   :  { %v1424_v14 = vmul.f32 %v1414_v61, %v2071_v16  ;;  %v1425_v10 = vmul.f32 %v1415_v7, %v2071_v16  ;;  %v1426_v11 = vmul.f32 %v1416_v22, %v2071_v16  ;;  %1403 = vst.msk [vmem:[%s2230_s2 + $0x8] sm:$0xf] %vm1400_vm10, %v1392_v4  ;;  %v1427_v12 = vmul.f32 %v1417_v8, %v2071_v16 }
 0x165   :  { %v1428_v28 = vmul.f32 %v1418_v35, %v2071_v16  ;;  %v1429_v0 = vmul.f32 %v1419_v52, %v2071_v16  ;;  %v1430_v7 = vmul.f32 %v1420_v9, %v2071_v16  ;;  %v1397_v22 = vpack.c.bf16 %v1387_v1, %v1387_v1  ;;  %1404 = vst.msk [vmem:[%s2230_s2 + $0xc] sm:$0xf] %vm1400_vm10, %v1393_v5 }
 0x166   :  { %v1398_v15 = vpack.c.bf16 %v1388_v3, %v1388_v3  ;;  %vm1431_vm4 = vcmp.ge.f32.partialorder %v2088_v42, 0.0  ;;  %vm1432_vm7 = vcmp.ge.f32.partialorder %v2091_v45, 0.0  ;;  %1405 = vst.msk [vmem:[%s2230_s2 + $0x10] sm:$0xf] %vm1400_vm10, %v1394_v40  ;;  %vm1433_vm5 = vcmp.ge.f32.partialorder %v1423_v24, 0.0 }
 0x167   :  { %vm1434_vm6 = vcmp.ge.f32.partialorder %v1424_v14, 0.0  ;;  %vm1435_vm8 = vcmp.ge.f32.partialorder %v1425_v10, 0.0  ;;  %vm1436_vm9 = vcmp.ge.f32.partialorder %v1426_v11, 0.0  ;;  %v1399_v56 = vpack.c.bf16 %v1389_v21, %v1389_v21  ;;  %1406 = vst.msk [vmem:[%s2230_s2 + $0x14] sm:$0xf] %vm1400_vm10, %v1395_v55 }
 0x168   :  { %vm1437_vm11 = vcmp.ge.f32.partialorder %v1427_v12, 0.0  ;;  %vm1438_vm12 = vcmp.ge.f32.partialorder %v1428_v28, 0.0  ;;  %v1441_v60 = vmul.f32 0.2, %v2088_v42  ;;  %1407 = vst.msk [vmem:[%s2230_s2 + $0x18] sm:$0xf] %vm1400_vm10, %v1396_v26 }
 0x169   :  { %v1442_v33 = vmul.f32 0.2, %v2091_v45  ;;  %v1443_v63 = vmul.f32 0.2, %v1423_v24  ;;  %1408 = vst.msk [vmem:[%s2230_s2 + $0x1c] sm:$0xf] %vm1400_vm10, %v1397_v22 }
 0x16a   :  { %v1444_v51 = vmul.f32 0.2, %v1424_v14  ;;  %v1445_v8 = vmul.f32 0.2, %v1425_v10  ;;  %v1451_v35 = vsel %vm1431_vm4, %v2088_v42, %v1441_v60  ;;  %1409 = vst.msk [vmem:[%s2230_s2 + $0x20] sm:$0xf] %vm1400_vm10, %v1398_v15 }
 0x16b   :  { %v1446_v52 = vmul.f32 0.2, %v1426_v11  ;;  %v1447_v9 = vmul.f32 0.2, %v1427_v12  ;;  %v1452_v62 = vsel %vm1432_vm7, %v2091_v45, %v1442_v33  ;;  %v1453_v16 = vsel %vm1433_vm5, %v1423_v24, %v1443_v63  ;;  %1410 = vst.msk [vmem:[%s2230_s2 + $0x24] sm:$0xf] %vm1400_vm10, %v1399_v56 }
 0x16c   :  { %v1448_v17 = vmul.f32 0.2, %v1428_v28  ;;  %v1449_v19 = vmul.f32 0.2, %v1429_v0  ;;  %v1454_v32 = vsel %vm1434_vm6, %v1424_v14, %v1444_v51  ;;  %v1455_v23 = vsel %vm1435_vm8, %v1425_v10, %v1445_v8 }
 0x16d   :  { %vm1439_vm13 = vcmp.ge.f32.partialorder %v1429_v0, 0.0  ;;  %v1450_v27 = vmul.f32 0.2, %v1430_v7  ;;  %v1456_v31 = vsel %vm1436_vm9, %v1426_v11, %v1446_v52  ;;  %v1461_v2 = vpack.c.bf16 %v1451_v35, %v1451_v35 }
 0x16e   :  { %vm1440_vm14 = vcmp.ge.f32.partialorder %v1430_v7, 0.0  ;;  %v1457_v30 = vsel %vm1437_vm11, %v1427_v12, %v1447_v9  ;;  %v1462_v29 = vpack.c.bf16 %v1452_v62, %v1452_v62  ;;  %v1463_v34 = vpack.c.bf16 %v1453_v16, %v1453_v16 }
 0x16f   :  { %v1458_v25 = vsel %vm1438_vm12, %v1428_v28, %v1448_v17  ;;  %v1464_v20 = vpack.c.bf16 %v1454_v32, %v1454_v32  ;;  %v1465_v37 = vpack.c.bf16 %v1455_v23, %v1455_v23  ;;  %1632 = vst.msk [vmem:[%s2230_s2 + $0x28] sm:$0xf] %vm1400_vm10, %v1461_v2  ;;  %v1459_v39 = vsel %vm1439_vm13, %v1429_v0, %v1449_v19 }
 0x170   :  { %v1466_v41 = vpack.c.bf16 %v1456_v31, %v1456_v31  ;;  %1633 = vst.msk [vmem:[%s2230_s2 + $0x2c] sm:$0xf] %vm1400_vm10, %v1462_v29  ;;  %v1460_v42 = vsel %vm1440_vm14, %v1430_v7, %v1450_v27  ;;  %v1467_v18 = vpack.c.bf16 %v1457_v30, %v1457_v30  ;;  %v1468_v43 = vpack.c.bf16 %v1458_v25, %v1458_v25 }
 0x171   :  { %1634 = vst.msk [vmem:[%s2230_s2 + $0x30] sm:$0xf] %vm1400_vm10, %v1463_v34  ;;  %v1469_v44 = vpack.c.bf16 %v1459_v39, %v1459_v39  ;;  %v1470_v45 = vpack.c.bf16 %v1460_v42, %v1460_v42 }
 0x172   :  { %1635 = vst.msk [vmem:[%s2230_s2 + $0x34] sm:$0xf] %vm1400_vm10, %v1464_v20 }
 0x173   :  { %1636 = vst.msk [vmem:[%s2230_s2 + $0x38] sm:$0xf] %vm1400_vm10, %v1465_v37 }
 0x174   :  { %1637 = vst.msk [vmem:[%s2230_s2 + $0x3c] sm:$0xf] %vm1400_vm10, %v1466_v41 }
 0x175   :  { %1638 = vst.msk [vmem:[%s2230_s2 + $0x40] sm:$0xf] %vm1400_vm10, %v1467_v18 }
 0x176   :  { %1639 = vst.msk [vmem:[%s2230_s2 + $0x44] sm:$0xf] %vm1400_vm10, %v1468_v43 }
 0x177   :  { %1640 = vst.msk [vmem:[%s2230_s2 + $0x48] sm:$0xf] %vm1400_vm10, %v1469_v44 }
 0x178   :  { %1641 = vst.msk [vmem:[%s2230_s2 + $0x4c] sm:$0xf] %vm1400_vm10, %v1470_v45 }

// kernel: generator_forward.9
= control target key start
LH: loop header
LB: loop body
LE: loop exit
PB: predicated region body
PF: predicated region fallthrough
CT: control target
= control target key end

     0   :  { %vm463_vm5 = vcmask 130048   ;;  %vm626_vm9 = vcmask 125952   ;;  %s1154_s1 = inlined_call_operand.vmem [shape: bf16[4,128,16], index: 1, kind: input, shape index: {}]   ;;  %s1155_s0 = inlined_call_operand.vmem [shape: bf16[2,14,128], index: 0, kind: input, shape index: {}]   ;;  %s1156_s2 = inlined_call_operand.vmem [shape: bf16[2,4,8,16], index: 2, kind: output, shape index: {}]  }
   0x1   :  { %v878_v0 = vld [vmem:[%s1154_s1 + $0x38] sm:$0xff]  ;;  %v877_v2 = vld [vmem:[%s1154_s1 + $0x30] sm:$0xff]  ;;  %v876_v4 = vld [vmem:[%s1154_s1 + $0x28] sm:$0xff] }
   0x2   :  { %v887_v1 = vld [vmem:[%s1154_s1 + $0x78] sm:$0xff]  ;;  %76 = vmatpush.bf16.msra.mxu0 %v878_v0  ;;  %91 = vmatpush.bf16.msra.mxu1 %v878_v0  ;;  %v886_v3 = vld [vmem:[%s1154_s1 + $0x70] sm:$0xff]  ;;  %v885_v5 = vld [vmem:[%s1154_s1 + $0x68] sm:$0xff] }
   0x3   :  { %184 = vmatpush.bf16.msra.mxu2 %v887_v1  ;;  %212 = vmatpush.bf16.msra.mxu3 %v887_v1  ;;  %v875_v6 = vld [vmem:[%s1154_s1 + $0x20] sm:$0xff]  ;;  %v874_v8 = vld [vmem:[%s1154_s1 + $0x18] sm:$0xff]  ;;  %v763_v12 = vld [vmem:[%s1155_s0 + $0x8] sm:$0xf] }
   0x4   :  { %v884_v7 = vld [vmem:[%s1154_s1 + $0x60] sm:$0xff]  ;;  %v883_v9 = vld [vmem:[%s1154_s1 + $0x58] sm:$0xff]  ;;  %v888_v13 = vld [vmem:[%s1155_s0 + $0x8] sm:$0x10] }
   0x5   :  { %v725_v10 = vld [vmem:[%s1155_s0] sm:$0xf]  ;;  %v879_v11 = vld [vmem:[%s1155_s0] sm:$0x10]  ;;  %v873_v14 = vld [vmem:[%s1154_s1 + $0x10] sm:$0xff]  ;;  %v764_v17 = vor.u32 %v888_v13, %v763_v12  ;;  %v451_v12 = vlaneseq }
   0x6   :  { %77 = vmatpush.bf16.msra.mxu0 %v877_v2  ;;  %92 = vmatpush.bf16.msra.mxu1 %v877_v2  ;;  %v726_v15 = vor.u32 %v879_v11, %v725_v10  ;;  %v882_v16 = vld [vmem:[%s1154_s1 + $0x50] sm:$0xff]  ;;  %v872_v18 = vld [vmem:[%s1154_s1 + $0x8] sm:$0xff]  ;;  %v871_v22 = vld [vmem:[%s1154_s1] sm:$0xff] }
   0x7   :  { %185 = vmatpush.bf16.msra.mxu2 %v886_v3  ;;  %213 = vmatpush.bf16.msra.mxu3 %v886_v3  ;;  %v881_v20 = vld [vmem:[%s1154_s1 + $0x48] sm:$0xff]  ;;  %v207_v21 = vshll.u32 %v764_v17, 16  ;;  %v880_v25 = vld [vmem:[%s1154_s1 + $0x40] sm:$0xff]  ;;  %v205_v26 = vshrl.u32 %v764_v17, 16  ;;  %v896_v28 = vld [vmem:[%s1154_s1 + $0xb8] sm:$0xff]  ;;  %v452_v13 = vshrl.u32 %v451_v12, 7 }
   0x8   :  { %v131_v19 = vshll.u32 %v726_v15, 16  ;;  %v129_v23 = vshrl.u32 %v726_v15, 16  ;;  %v904_v29 = vld [vmem:[%s1154_s1 + $0xf8] sm:$0xff]  ;;  %v11_v31 = vld [vmem:[%s1155_s0] sm:$0xf]  ;;  %v895_v33 = vld [vmem:[%s1154_s1 + $0xb0] sm:$0xff] }
   0x9   :  { %v209_v27 = vrot.slane %v207_v21, 1  ;;  %v706_v34 = vld [vmem:[%s1155_s0 + $0x8] sm:$0xf]  ;;  %v903_v35 = vld [vmem:[%s1154_s1 + $0xf0] sm:$0xff]  ;;  %v893_v38 = vld [vmem:[%s1154_s1 + $0xa0] sm:$0xff]  ;;  %vm456_vm0 = vcmp.ge.s32.totalorder %v452_v13, 4 }
   0xa   :  { %78 = vmatpush.bf16.msra.mxu0 %v876_v4  ;;  %93 = vmatpush.bf16.msra.mxu1 %v876_v4  ;;  %v133_v24 = vrot.slane %v131_v19, 1  ;;  %v894_v36 = vld [vmem:[%s1154_s1 + $0xa8] sm:$0xff]  ;;  %v901_v39 = vld [vmem:[%s1154_s1 + $0xe0] sm:$0xff]  ;;  %v892_v44 = vld [vmem:[%s1154_s1 + $0x98] sm:$0xff]  ;;  %vm457_vm1 = vcmp.lt.s32.totalorder %v452_v13, 6  ;;  %vm454_vm2 = vcmp.lt.s32.totalorder %v452_v13, 2 }
   0xb   :  { %186 = vmatpush.bf16.msra.mxu2 %v885_v5  ;;  %214 = vmatpush.bf16.msra.mxu3 %v885_v5  ;;  %v210_v32 = vor.u32 %v209_v27, %v205_v26  ;;  %v902_v37 = vld [vmem:[%s1154_s1 + $0xe8] sm:$0xff]  ;;  %v225_v40 = vld [vmem:[%s1155_s0] sm:$0xc]  ;;  %v334_v42 = vld [vmem:[%s1155_s0 + $0x4] sm:$0x7] }
   0xc   :  { %v134_v30 = vor.u32 %v133_v24, %v129_v23  ;;  %v813_v41 = vld [vmem:[%s1155_s0 + $0x8] sm:$0xc]  ;;  %v863_v43 = vld [vmem:[%s1155_s0 + $0xc] sm:$0x7]  ;;  %v246_v45 = vunpack.c.l.b16 %v225_v40  ;;  %v353_v47 = vunpack.c.l.b16 %v334_v42  ;;  %v900_v49 = vld [vmem:[%s1154_s1 + $0xd8] sm:$0xff] }
   0xd   :  { %v316_v46 = vunpack.c.l.b16 %v813_v41  ;;  %v427_v48 = vunpack.c.l.b16 %v863_v43  ;;  %v891_v50 = vld [vmem:[%s1154_s1 + $0x90] sm:$0xff]  ;;  %v226_v51 = vld [vmem:[%s1155_s0 + $0x4] sm:$0x3]  ;;  %v814_v52 = vld [vmem:[%s1155_s0 + $0xc] sm:$0x3] }
   0xe   :  { %79 = vmatpush.bf16.msra.mxu0 %v875_v6  ;;  %94 = vmatpush.bf16.msra.mxu1 %v875_v6  ;;  %v354_v53 = vpack.c.b16 %v353_v47, %v246_v45  ;;  %v899_v55 = vld [vmem:[%s1154_s1 + $0xd0] sm:$0xff]  ;;  %v247_v56 = vunpack.c.l.b16 %v226_v51  ;;  %v317_v57 = vunpack.c.l.b16 %v814_v52  ;;  %v890_v58 = vld [vmem:[%s1154_s1 + $0x88] sm:$0xff]  ;;  %v889_v2 = vld [vmem:[%s1154_s1 + $0x80] sm:$0xff] }
   0xf   :  { %187 = vmatpush.bf16.msra.mxu2 %v884_v7  ;;  %215 = vmatpush.bf16.msra.mxu3 %v884_v7  ;;  %v428_v54 = vpack.c.b16 %v427_v48, %v316_v46  ;;  %v898_v63 = vld [vmem:[%s1154_s1 + $0xc8] sm:$0xff]  ;;  %v897_v7 = vld [vmem:[%s1154_s1 + $0xc0] sm:$0xff]  ;;  %vm458_vm3 = vmand %vm456_vm0, %vm457_vm1 }
  0x10   :  { %v356_v59 = vshrl.u32 %v354_v53, 16  ;;  %v359_v60 = vshll.u32 %v354_v53, 16  ;;  %v248_v0 = vpack.c.b16 %v247_v56, %v246_v45  ;;  %v318_v1 = vpack.c.b16 %v317_v57, %v316_v46  ;;  %vm1054_vm4 = vmor %vm454_vm2, %vm458_vm3 }
  0x11   :  { %v430_v61 = vshrl.u32 %v428_v54, 16  ;;  %v433_v62 = vshll.u32 %v428_v54, 16 }
  0x12   :  { %80 = vmatpush.bf16.msra.mxu0 %v874_v8  ;;  %95 = vmatpush.bf16.msra.mxu1 %v874_v8  ;;  %v358_v3 = vrot.slane %v356_v59, 2  ;;  %v361_v4 = vrot.slane %v359_v60, 3  ;;  %v249_v8 = vrot.slane %v248_v0, 2 }
  0x13   :  { %188 = vmatpush.bf16.msra.mxu2 %v883_v9  ;;  %216 = vmatpush.bf16.msra.mxu3 %v883_v9  ;;  %v432_v5 = vrot.slane %v430_v61, 2  ;;  %v435_v6 = vrot.slane %v433_v62, 3  ;;  %v319_v9 = vrot.slane %v318_v1, 2 }
  0x14   :  { %v362_v10 = vor.u32 %v361_v4, %v358_v3 }
  0x15   :  { %v436_v11 = vor.u32 %v435_v6, %v432_v5 }
  0x16   :  { %81 = vmatpush.bf16.msra.mxu0 %v873_v14  ;;  %96 = vmatpush.bf16.msra.mxu1 %v873_v14 }
  0x17   :  { %189 = vmatpush.bf16.msra.mxu2 %v882_v16  ;;  %217 = vmatpush.bf16.msra.mxu3 %v882_v16 }
  0x1a   :  { %82 = vmatpush.bf16.msra.mxu0 %v872_v18  ;;  %97 = vmatpush.bf16.msra.mxu1 %v872_v18 }
  0x1b   :  { %190 = vmatpush.bf16.msra.mxu2 %v881_v20  ;;  %218 = vmatpush.bf16.msra.mxu3 %v881_v20 }
  0x1e   :  { %83 = vmatpush.bf16.msra.mxu0 %v871_v22  ;;  %98 = vmatpush.bf16.msra.mxu1 %v871_v22 }
  0x1f   :  { %191 = vmatpush.bf16.msra.mxu2 %v880_v25  ;;  %219 = vmatpush.bf16.msra.mxu3 %v880_v25 }
  0x21   :  { %84 = vmatmul.bf16.vlgmr.msra.gmra.mxu0 %v11_v31  ;;  %99 = vmatmul.bf16.vlgmr.msra.gmra.mxu1 %v706_v34 }
  0x22   :  { %299 = vmatpush.bf16.msrb.mxu0 %v896_v28  ;;  %321 = vmatpush.bf16.msrb.mxu1 %v896_v28 }
  0x23   :  { %412 = vmatpush.bf16.msrb.mxu2 %v904_v29  ;;  %438 = vmatpush.bf16.msrb.mxu3 %v904_v29 }
  0x24   :  { %192 = vmatmul.bf16.vlgmr.msra.gmra.mxu2 %v134_v30  ;;  %220 = vmatmul.bf16.vlgmr.msra.gmra.mxu3 %v210_v32 }
  0x26   :  { %300 = vmatpush.bf16.msrb.mxu0 %v895_v33  ;;  %322 = vmatpush.bf16.msrb.mxu1 %v895_v33 }
  0x27   :  { %413 = vmatpush.bf16.msrb.mxu2 %v903_v35  ;;  %439 = vmatpush.bf16.msrb.mxu3 %v903_v35 }
  0x2a   :  { %301 = vmatpush.bf16.msrb.mxu0 %v894_v36  ;;  %323 = vmatpush.bf16.msrb.mxu1 %v894_v36 }
  0x2b   :  { %414 = vmatpush.bf16.msrb.mxu2 %v902_v37  ;;  %440 = vmatpush.bf16.msrb.mxu3 %v902_v37 }
  0x2e   :  { %302 = vmatpush.bf16.msrb.mxu0 %v893_v38  ;;  %324 = vmatpush.bf16.msrb.mxu1 %v893_v38 }
  0x2f   :  { %415 = vmatpush.bf16.msrb.mxu2 %v901_v39  ;;  %441 = vmatpush.bf16.msrb.mxu3 %v901_v39 }
  0x32   :  { %303 = vmatpush.bf16.msrb.mxu0 %v892_v44  ;;  %325 = vmatpush.bf16.msrb.mxu1 %v892_v44 }
  0x33   :  { %416 = vmatpush.bf16.msrb.mxu2 %v900_v49  ;;  %442 = vmatpush.bf16.msrb.mxu3 %v900_v49 }
  0x36   :  { %304 = vmatpush.bf16.msrb.mxu0 %v891_v50  ;;  %326 = vmatpush.bf16.msrb.mxu1 %v891_v50 }
  0x37   :  { %417 = vmatpush.bf16.msrb.mxu2 %v899_v55  ;;  %443 = vmatpush.bf16.msrb.mxu3 %v899_v55 }
  0x3a   :  { %305 = vmatpush.bf16.msrb.mxu0 %v890_v58  ;;  %327 = vmatpush.bf16.msrb.mxu1 %v890_v58 }
  0x3b   :  { %418 = vmatpush.bf16.msrb.mxu2 %v898_v63  ;;  %444 = vmatpush.bf16.msrb.mxu3 %v898_v63 }
  0x3e   :  { %306 = vmatpush.bf16.msrb.mxu0 %v889_v2  ;;  %328 = vmatpush.bf16.msrb.mxu1 %v889_v2 }
  0x3f   :  { %419 = vmatpush.bf16.msrb.mxu2 %v897_v7  ;;  %445 = vmatpush.bf16.msrb.mxu3 %v897_v7 }
  0x41   :  { %307 = vmatmul.bf16.vlgmr.msrb.gmra.mxu0 %v249_v8  ;;  %329 = vmatmul.bf16.vlgmr.msrb.gmra.mxu1 %v319_v9 }
  0x42   :  { %420 = vmatmul.bf16.vlgmr.msrb.gmra.mxu2 %v362_v10  ;;  %446 = vmatmul.bf16.vlgmr.msrb.gmra.mxu3 %v436_v11 }
  0x9e   :  { %v1058_v15 = vpop.f32.mrf.mxu0  ;;  %v1063_v17 = vpop.f32.mrf.mxu1 }
  0x9f   :  { %v462_v16 = vsel %vm1054_vm4, %v1058_v15, 0.0  ;;  %v481_v19 = vsel %vm1054_vm4, %v1063_v17, 0.0 }
  0xa0   :  { %v472_v18 = vmul.f32 %v462_v16, %v462_v16  ;;  %v490_v20 = vmul.f32 %v481_v19, %v481_v19  ;;  %v464_v21 = vsel %vm463_vm5, %v462_v16, 0.0  ;;  %v482_v22 = vsel %vm463_vm5, %v481_v19, 0.0 }
  0xa1   :  { %v465_v28 = vrot.slane %v464_v21, 4  ;;  %v483_v29 = vrot.slane %v482_v22, 4 }
  0xa2   :  { %v473_v23 = vsel %vm463_vm5, %v472_v18, 0.0  ;;  %v491_v25 = vsel %vm463_vm5, %v490_v20, 0.0 }
  0xa3   :  { %v474_v32 = vrot.slane %v473_v23, 4  ;;  %v492_v35 = vrot.slane %v491_v25, 4  ;;  %v466_v38 = vadd.f32 %v465_v28, %v464_v21  ;;  %v484_v39 = vadd.f32 %v483_v29, %v482_v22 }
  0xa5   :  { %v475_v41 = vadd.f32 %v474_v32, %v473_v23  ;;  %v493_v42 = vadd.f32 %v492_v35, %v491_v25  ;;  %v467_v48 = vrot.slane %v466_v38, 2  ;;  %v485_v49 = vrot.slane %v484_v39, 2 }
  0xa6   :  { %v87_v31 = vpop.f32.mrf.mxu0  ;;  %v102_v34 = vpop.f32.mrf.mxu1 }
  0xa7   :  { %v1071_v24 = vpop.f32.mrf.mxu2  ;;  %v1077_v27 = vpop.f32.mrf.mxu3  ;;  %v476_v51 = vrot.slane %v475_v41, 2  ;;  %v494_v53 = vrot.slane %v493_v42, 2  ;;  %v468_v56 = vadd.f32 %v467_v48, %v466_v38  ;;  %v486_v57 = vadd.f32 %v485_v49, %v484_v39 }
  0xa8   :  { %v499_v26 = vsel %vm1054_vm4, %v1071_v24, 0.0  ;;  %v517_v37 = vsel %vm1054_vm4, %v1077_v27, 0.0 }
  0xa9   :  { %v508_v30 = vmul.f32 %v499_v26, %v499_v26  ;;  %v500_v33 = vsel %vm463_vm5, %v499_v26, 0.0  ;;  %v518_v44 = vsel %vm463_vm5, %v517_v37, 0.0  ;;  %v526_v45 = vmul.f32 %v517_v37, %v517_v37 }
  0xaa   :  { %v501_v40 = vrot.slane %v500_v33, 4  ;;  %v519_v52 = vrot.slane %v518_v44, 4  ;;  %v477_v59 = vadd.f32 %v476_v51, %v475_v41  ;;  %v495_v62 = vadd.f32 %v494_v53, %v493_v42 }
  0xab   :  { %v509_v36 = vsel %vm463_vm5, %v508_v30, 0.0  ;;  %v527_v55 = vsel %vm463_vm5, %v526_v45, 0.0  ;;  %v469_v0 = vrot.slane %v468_v56, 1  ;;  %v487_v1 = vrot.slane %v486_v57, 1 }
  0xac   :  { %v510_v43 = vrot.slane %v509_v36, 4  ;;  %v502_v50 = vadd.f32 %v501_v40, %v500_v33  ;;  %v520_v60 = vadd.f32 %v519_v52, %v518_v44  ;;  %v528_v61 = vrot.slane %v527_v55, 4 }
  0xad   :  { %v478_v3 = vrot.slane %v477_v59, 1  ;;  %v496_v6 = vrot.slane %v495_v62, 1  ;;  %v470_v8 = vadd.f32 %v469_v0, %v468_v56  ;;  %v488_v9 = vadd.f32 %v487_v1, %v486_v57 }
  0xae   :  { %v511_v54 = vadd.f32 %v510_v43, %v509_v36  ;;  %v503_v58 = vrot.slane %v502_v50, 2  ;;  %v521_v4 = vrot.slane %v520_v60, 2  ;;  %v529_v5 = vadd.f32 %v528_v61, %v527_v55 }
  0xaf   :  { %v195_v46 = vpop.f32.mrf.mxu2  ;;  %v223_v47 = vpop.f32.mrf.mxu3  ;;  %v479_v11 = vadd.f32 %v478_v3, %v477_v59  ;;  %v497_v19 = vadd.f32 %v496_v6, %v495_v62  ;;  %v489_v29 = vadd.f32 %v488_v9, %v470_v8 }
  0xb0   :  { %v512_v63 = vrot.slane %v511_v54, 2  ;;  %v504_v2 = vadd.f32 %v503_v58, %v502_v50  ;;  %v522_v12 = vadd.f32 %v521_v4, %v520_v60  ;;  %v530_v13 = vrot.slane %v529_v5, 2 }
  0xb1   :  { %v498_v41 = vadd.f32 %v497_v19, %v479_v11 }
  0xb2   :  { %v513_v7 = vadd.f32 %v512_v63, %v511_v54  ;;  %v505_v10 = vrot.slane %v504_v2, 1  ;;  %v523_v33 = vrot.slane %v522_v12, 1  ;;  %v531_v34 = vadd.f32 %v530_v13, %v529_v5 }
  0xb4   :  { %v514_v20 = vrot.slane %v513_v7, 1  ;;  %v506_v30 = vadd.f32 %v505_v10, %v504_v2  ;;  %v524_v50 = vadd.f32 %v523_v33, %v522_v12  ;;  %v532_v55 = vrot.slane %v531_v34, 1 }
  0xb6   :  { %v515_v42 = vadd.f32 %v514_v20, %v513_v7  ;;  %v507_v49 = vadd.f32 %v506_v30, %v489_v29  ;;  %v533_v6 = vadd.f32 %v532_v55, %v531_v34 }
  0xb8   :  { %v516_v63 = vadd.f32 %v515_v42, %v498_v41  ;;  %v525_v19 = vadd.f32 %v524_v50, %v507_v49 }
  0xba   :  { %v534_v30 = vadd.f32 %v533_v6, %v516_v63 }
  0xbe   :  { %v1086_v16 = vpop.f32.mrf.mxu0  ;;  %v1088_v18 = vpop.f32.mrf.mxu1 }
  0xbf   :  { %v535_v21 = vsel %vm1054_vm4, %v1086_v16, 0.0  ;;  %v553_v22 = vsel %vm1054_vm4, %v1088_v18, 0.0 }
  0xc0   :  { %v536_v23 = vsel %vm463_vm5, %v535_v21, 0.0  ;;  %v544_v25 = vmul.f32 %v535_v21, %v535_v21  ;;  %v554_v26 = vsel %vm463_vm5, %v553_v22, 0.0  ;;  %v562_v28 = vmul.f32 %v553_v22, %v553_v22 }
  0xc1   :  { %v537_v31 = vrot.slane %v536_v23, 4  ;;  %v555_v32 = vrot.slane %v554_v26, 4 }
  0xc2   :  { %v545_v35 = vsel %vm463_vm5, %v544_v25, 0.0  ;;  %v563_v36 = vsel %vm463_vm5, %v562_v28, 0.0 }
  0xc3   :  { %v538_v37 = vadd.f32 %v537_v31, %v536_v23  ;;  %v546_v38 = vrot.slane %v545_v35, 4  ;;  %v556_v39 = vadd.f32 %v555_v32, %v554_v26  ;;  %v564_v40 = vrot.slane %v563_v36, 4 }
  0xc5   :  { %v539_v43 = vrot.slane %v538_v37, 2  ;;  %v547_v44 = vadd.f32 %v546_v38, %v545_v35  ;;  %v557_v45 = vrot.slane %v556_v39, 2  ;;  %v565_v46 = vadd.f32 %v564_v40, %v563_v36  ;;  %v1100_v47 = vpop.f32.mrf.mxu2  ;;  %v1102_v48 = vpop.f32.mrf.mxu3 }
  0xc6   :  { %v571_v51 = vsel %vm1054_vm4, %v1100_v47, 0.0  ;;  %v589_v52 = vsel %vm1054_vm4, %v1102_v48, 0.0  ;;  %v310_v53 = vpop.f32.mrf.mxu0  ;;  %v332_v54 = vpop.f32.mrf.mxu1 }
  0xc7   :  { %v540_v56 = vadd.f32 %v539_v43, %v538_v37  ;;  %v548_v57 = vrot.slane %v547_v44, 2  ;;  %v566_v58 = vrot.slane %v565_v46, 2  ;;  %v572_v59 = vsel %vm463_vm5, %v571_v51, 0.0 }
  0xc8   :  { %v580_v60 = vmul.f32 %v571_v51, %v571_v51  ;;  %v590_v61 = vsel %vm463_vm5, %v589_v52, 0.0  ;;  %v598_v62 = vmul.f32 %v589_v52, %v589_v52  ;;  %v558_v2 = vadd.f32 %v557_v45, %v556_v39 }
  0xc9   :  { %v541_v0 = vrot.slane %v540_v56, 1  ;;  %v549_v1 = vadd.f32 %v548_v57, %v547_v44  ;;  %v573_v3 = vrot.slane %v572_v59, 4  ;;  %v591_v4 = vrot.slane %v590_v61, 4 }
  0xca   :  { %v581_v14 = vsel %vm463_vm5, %v580_v60, 0.0  ;;  %v599_v5 = vsel %vm463_vm5, %v598_v62, 0.0  ;;  %v567_v9 = vadd.f32 %v566_v58, %v565_v46  ;;  %v559_v21 = vrot.slane %v558_v2, 1 }
  0xcb   :  { %v542_v7 = vadd.f32 %v541_v0, %v540_v56  ;;  %v550_v8 = vrot.slane %v549_v1, 1  ;;  %v574_v10 = vadd.f32 %v573_v3, %v572_v59  ;;  %v582_v11 = vrot.slane %v581_v14, 4 }
  0xcc   :  { %v592_v12 = vadd.f32 %v591_v4, %v590_v61  ;;  %v600_v13 = vrot.slane %v599_v5, 4  ;;  %v568_v32 = vrot.slane %v567_v9, 1  ;;  %v560_v38 = vadd.f32 %v559_v21, %v558_v2 }
  0xcd   :  { %v551_v20 = vadd.f32 %v550_v8, %v549_v1  ;;  %v423_v22 = vpop.f32.mrf.mxu2  ;;  %v449_v23 = vpop.f32.mrf.mxu3  ;;  %v575_v25 = vrot.slane %v574_v10, 2  ;;  %v583_v26 = vadd.f32 %v582_v11, %v581_v14  ;;  %v543_v31 = vadd.f32 %v542_v7, %v525_v19 }
  0xce   :  { %v593_v28 = vrot.slane %v592_v12, 2  ;;  %v601_v29 = vadd.f32 %v600_v13, %v599_v5  ;;  %v569_v43 = vadd.f32 %v568_v32, %v567_v9 }
  0xcf   :  { %v576_v33 = vadd.f32 %v575_v25, %v574_v10  ;;  %v584_v34 = vrot.slane %v583_v26, 2  ;;  %v552_v37 = vadd.f32 %v551_v20, %v534_v30  ;;  %v561_v44 = vadd.f32 %v560_v38, %v543_v31 }
  0xd0   :  { %v594_v35 = vadd.f32 %v593_v28, %v592_v12  ;;  %v602_v36 = vrot.slane %v601_v29, 2 }
  0xd1   :  { %v577_v39 = vrot.slane %v576_v33, 1  ;;  %v585_v40 = vadd.f32 %v584_v34, %v583_v26  ;;  %v570_v50 = vadd.f32 %v569_v43, %v552_v37 }
  0xd2   :  { %v595_v41 = vrot.slane %v594_v35, 1  ;;  %v603_v42 = vadd.f32 %v602_v36, %v601_v29 }
  0xd3   :  { %v578_v45 = vadd.f32 %v577_v39, %v576_v33  ;;  %v586_v46 = vrot.slane %v585_v40, 1 }
  0xd4   :  { %v604_v49 = vrot.slane %v603_v42, 1  ;;  %v596_v53 = vadd.f32 %v595_v41, %v594_v35 }
  0xd5   :  { %v579_v51 = vadd.f32 %v578_v45, %v561_v44  ;;  %v587_v52 = vadd.f32 %v586_v46, %v585_v40 }
  0xd6   :  { %v605_v56 = vadd.f32 %v604_v49, %v603_v42 }
  0xd7   :  { %v588_v54 = vadd.f32 %v587_v52, %v570_v50  ;;  %v597_v55 = vadd.f32 %v596_v53, %v579_v51 }
  0xd9   :  { %v606_v57 = vadd.f32 %v605_v56, %v588_v54  ;;  %v607_v58 = vmul.f32 0.03125, %v597_v55 }
  0xdb   :  { %v608_v59 = vmul.f32 0.03125, %v606_v57  ;;  %v609_v60 = vmul.f32 %v607_v58, %v607_v58  ;;  %v622_v4 = vsub.f32 %v1058_v15, %v607_v58  ;;  %v628_v5 = vsub.f32 %v1063_v17, %v607_v58 }
  0xdc   :  { %v634_v6 = vsub.f32 %v1071_v24, %v607_v58  ;;  %v640_v7 = vsub.f32 %v1077_v27, %v607_v58  ;;  %v646_v8 = vsub.f32 %v1086_v16, %v607_v58  ;;  %v652_v10 = vsub.f32 %v1088_v18, %v607_v58 }
  0xdd   :  { %v610_v61 = vsub.f32 %v608_v59, %v609_v60  ;;  %v658_v11 = vsub.f32 %v1100_v47, %v607_v58  ;;  %v664_v12 = vsub.f32 %v1102_v48, %v607_v58 }
  0xdf   :  { %v611_v62 = vadd.f32 1e-05, %v610_v61 }
  0xe1   :  { %905 = vrsqrt.f32 %v611_v62  ;;  %vm618_vm7 = vweird.f32 %v611_v62 }
  0xe7   :  { %v906_v63 = vpop.eup %905 }
  0xe8   :  { %v613_v0 = vmul.f32 %v906_v63, %v611_v62  ;;  %vm619_vm6 = vweird.f32 %v906_v63 }
  0xe9   :  { %vm620_vm8 = vmor %vm618_vm7, %vm619_vm6 }
  0xea   :  { %v614_v1 = vmul.f32 %v906_v63, %v613_v0 }
  0xec   :  { %v615_v2 = vmul.f32 0.5, %v614_v1 }
  0xee   :  { %v616_v3 = vsub.f32 1.5, %v615_v2 }
  0xf0   :  { %v617_v14 = vmul.f32 %v906_v63, %v616_v3 }
  0xf2   :  { %v621_v9 = vsel %vm620_vm8, %v906_v63, %v617_v14 }
  0xf3   :  { %v623_v13 = vmul.f32 %v622_v4, %v621_v9  ;;  %v629_v19 = vmul.f32 %v628_v5, %v621_v9  ;;  %v635_v20 = vmul.f32 %v634_v6, %v621_v9  ;;  %v641_v15 = vmul.f32 %v640_v7, %v621_v9 }
  0xf4   :  { %v647_v21 = vmul.f32 %v646_v8, %v621_v9  ;;  %v653_v22 = vmul.f32 %v652_v10, %v621_v9  ;;  %v659_v17 = vmul.f32 %v658_v11, %v621_v9  ;;  %v665_v23 = vmul.f32 %v664_v12, %v621_v9 }
  0xf5   :  { %v624_v24 = vmax.f32 %v623_v13, 0.0  ;;  %v630_v25 = vmax.f32 %v629_v19, 0.0  ;;  %v636_v27 = vmax.f32 %v635_v20, 0.0  ;;  %v642_v26 = vmax.f32 %v641_v15, 0.0 }
  0xf6   :  { %v648_v16 = vmax.f32 %v647_v21, 0.0  ;;  %v654_v28 = vmax.f32 %v653_v22, 0.0  ;;  %v660_v30 = vmax.f32 %v659_v17, 0.0  ;;  %v666_v31 = vmax.f32 %v665_v23, 0.0 }
  0xf7   :  { %v625_v18 = vpack.c.bf16 %v624_v24, %v624_v24  ;;  %v631_v29 = vpack.c.bf16 %v630_v25, %v630_v25  ;;  %v637_v47 = vpack.c.bf16 %v636_v27, %v636_v27  ;;  %v643_v48 = vpack.c.bf16 %v642_v26, %v642_v26 }
  0xf8   :  { %v649_v32 = vpack.c.bf16 %v648_v16, %v648_v16  ;;  %v655_v33 = vpack.c.bf16 %v654_v28, %v654_v28  ;;  %v661_v34 = vpack.c.bf16 %v660_v30, %v660_v30  ;;  %v667_v35 = vpack.c.bf16 %v666_v31, %v666_v31 }
  0xf9   :  { %627 = vst.msk [vmem:[%s1156_s2] sm:$0xf] %vm626_vm9, %v625_v18 }
  0xfa   :  { %864 = vst.msk [vmem:[%s1156_s2 + $0x10] sm:$0xf] %vm626_vm9, %v631_v29 }
  0xfb   :  { %865 = vst.msk [vmem:[%s1156_s2 + $0x4] sm:$0xf] %vm626_vm9, %v637_v47 }
  0xfc   :  { %866 = vst.msk [vmem:[%s1156_s2 + $0x14] sm:$0xf] %vm626_vm9, %v643_v48 }
  0xfd   :  { %867 = vst.msk [vmem:[%s1156_s2 + $0x8] sm:$0xf] %vm626_vm9, %v649_v32 }
  0xfe   :  { %868 = vst.msk [vmem:[%s1156_s2 + $0x18] sm:$0xf] %vm626_vm9, %v655_v33 }
  0xff   :  { %869 = vst.msk [vmem:[%s1156_s2 + $0xc] sm:$0xf] %vm626_vm9, %v661_v34 }
 0x100   :  { %870 = vst.msk [vmem:[%s1156_s2 + $0x1c] sm:$0xf] %vm626_vm9, %v667_v35 }

// kernel: generator_forward.10
= control target key start
LH: loop header
LB: loop body
LE: loop exit
PB: predicated region body
PF: predicated region fallthrough
CT: control target
= control target key end

     0   :  { %vm139_vm0 = vsmask.f32 7424  ;;  %vm55_vm1 = vcmask 523264   ;;  %vm273_vm2 = vcmask 1044480   ;;  %vm373_vm3 = vsmask.f32 4352  ;;  %s1621_s1 = inlined_call_operand.vmem [shape: bf16[4,64,8], index: 1, kind: input, shape index: {}]   ;;  %s1622_s0 = inlined_call_operand.vmem [shape: bf16[2,32,64], index: 0, kind: input, shape index: {}]   ;;  %s1623_s2 = inlined_call_operand.vmem [shape: bf16[2,4,24,8], index: 2, kind: output, shape index: {}]  }
   0x1   :  { %v1074_v0 = vld [vmem:[%s1621_s1 + $0x18] sm:$0xff]  ;;  %v1073_v2 = vld [vmem:[%s1621_s1 + $0x10] sm:$0xff]  ;;  %v1089_v4 = vld [vmem:[%s1622_s0] sm:$0xff]   ;;  %vm542_vm10 = vcmask 64512   ;;  %vm807_vm15 = vcmask 60416  }
   0x2   :  { %v1079_v1 = vld [vmem:[%s1621_s1 + $0x38] sm:$0xff]  ;;  %66 = vmatpush.bf16.msra.mxu0 %v1074_v0  ;;  %102 = vmatpush.bf16.msra.mxu1 %v1074_v0  ;;  %v1078_v3 = vld [vmem:[%s1621_s1 + $0x30] sm:$0xff]  ;;  %v1138_v5 = vld [vmem:[%s1622_s0 + $0x8] sm:$0xff]   ;;  %v143_v8 = vshll.u32 %v1089_v4, 16  ;;  %v141_v16 = vshrl.u32 %v1089_v4, 16 }
   0x3   :  { %189 = vmatpush.bf16.msra.mxu2 %v1079_v1  ;;  %242 = vmatpush.bf16.msra.mxu3 %v1079_v1  ;;  %v119_v6 = vld [vmem:[%s1622_s0 + $0xc] sm:$0x1]  ;;  %v135_v7 = vunpack.c.l.b16 %v1138_v5  ;;  %v1096_v9 = vld [vmem:[%s1622_s0 + $0x10] sm:$0xff]   ;;  %v1150_v10 = vld [vmem:[%s1622_s0 + $0x18] sm:$0xff]  }
   0x4   :  { %v136_v11 = vunpack.c.l.b16 %v119_v6  ;;  %v987_v12 = vld [vmem:[%s1622_s0 + $0x1c] sm:$0x1]  ;;  %v213_v13 = vunpack.c.l.b16 %v1150_v10  ;;  %v220_v14 = vshll.u32 %v1096_v9, 16  ;;  %v1072_v15 = vld [vmem:[%s1621_s1 + $0x8] sm:$0xff]  ;;  %v145_v20 = vrot.slane %v143_v8, 1  ;;  %v1071_v25 = vld [vmem:[%s1621_s1] sm:$0xff] }
   0x5   :  { %v214_v17 = vunpack.c.l.b16 %v987_v12  ;;  %v1077_v18 = vld [vmem:[%s1621_s1 + $0x28] sm:$0xff]  ;;  %v218_v21 = vshrl.u32 %v1096_v9, 16  ;;  %v1076_v27 = vld [vmem:[%s1621_s1 + $0x20] sm:$0xff]  ;;  %v1087_v32 = vld [vmem:[%s1621_s1 + $0x78] sm:$0xff]  ;;  %v452_v8 = vshrl.u32 %v1150_v10, 16  ;;  %v455_v9 = vshll.u32 %v1150_v10, 16 }
   0x6   :  { %67 = vmatpush.bf16.msra.mxu0 %v1073_v2  ;;  %103 = vmatpush.bf16.msra.mxu1 %v1073_v2  ;;  %v1164_v19 = vpack.c.b16 %v136_v11, %v135_v7  ;;  %v222_v22 = vrot.slane %v220_v14, 1  ;;  %v146_v28 = vor.u32 %v145_v20, %v141_v16  ;;  %v1083_v33 = vld [vmem:[%s1621_s1 + $0x58] sm:$0xff]  ;;  %v1070_v34 = vld [vmem:[%s1622_s0] sm:$0xff]  ;;  %v1075_v35 = vld [vmem:[%s1622_s0 + $0x10] sm:$0xff]  ;;  %v383_v2 = vshrl.u32 %v1138_v5, 16 }
   0x7   :  { %190 = vmatpush.bf16.msra.mxu2 %v1078_v3  ;;  %243 = vmatpush.bf16.msra.mxu3 %v1078_v3  ;;  %v1168_v23 = vpack.c.b16 %v214_v17, %v213_v13  ;;  %v1086_v38 = vld [vmem:[%s1621_s1 + $0x70] sm:$0xff]  ;;  %v1085_v40 = vld [vmem:[%s1621_s1 + $0x68] sm:$0xff]  ;;  %v951_v43 = vld [vmem:[%s1622_s0 + $0x18] sm:$0xf]  ;;  %v386_v3 = vshll.u32 %v1138_v5, 16  ;;  %v454_v20 = vrot.slane %v452_v8, 3 }
   0x8   :  { %v148_v24 = vshll.u32 %v1164_v19, 16  ;;  %v223_v30 = vor.u32 %v222_v22, %v218_v21  ;;  %v1082_v39 = vld [vmem:[%s1621_s1 + $0x50] sm:$0xff]  ;;  %v1081_v41 = vld [vmem:[%s1621_s1 + $0x48] sm:$0xff]  ;;  %v1084_v44 = vld [vmem:[%s1621_s1 + $0x60] sm:$0xff]  ;;  %v89_v47 = vunpack.c.l.b16 %v951_v43  ;;  %v152_v48 = vshrl.u32 %v1164_v19, 16 }
   0x9   :  { %v225_v26 = vshll.u32 %v1168_v23, 16  ;;  %v14_v42 = vld [vmem:[%s1622_s0 + $0x8] sm:$0xf]  ;;  %v1080_v45 = vld [vmem:[%s1621_s1 + $0x40] sm:$0xff]  ;;  %v229_v49 = vshrl.u32 %v1168_v23, 16  ;;  %v385_v16 = vrot.slane %v383_v2, 3 }
   0xa   :  { %68 = vmatpush.bf16.msra.mxu0 %v1072_v15  ;;  %104 = vmatpush.bf16.msra.mxu1 %v1072_v15  ;;  %v150_v29 = vrot.slane %v148_v24, 1  ;;  %v28_v46 = vunpack.c.l.b16 %v14_v42  ;;  %v1097_v50 = vld [vmem:[%s1622_s0] sm:$0xf0]  ;;  %v1098_v51 = vld [vmem:[%s1622_s0] sm:$0x8]  ;;  %v91_v55 = vpack.c.b16 %v89_v47, %v89_v47  ;;  %v388_v17 = vrot.slane %v386_v3, 4 }
   0xb   :  { %191 = vmatpush.bf16.msra.mxu2 %v1077_v18  ;;  %244 = vmatpush.bf16.msra.mxu3 %v1077_v18  ;;  %v227_v31 = vrot.slane %v225_v26, 1  ;;  %v1100_v52 = vld [vmem:[%s1622_s0 + $0x10] sm:$0xf0]  ;;  %v1101_v53 = vld [vmem:[%s1622_s0 + $0x10] sm:$0x8]  ;;  %v1099_v59 = vor.u32 %v1098_v51, %v1097_v50  ;;  %v457_v21 = vrot.slane %v455_v9, 4 }
   0xc   :  { %v151_v36 = vsel %vm139_vm0, %v146_v28, %v150_v29  ;;  %v30_v54 = vpack.c.b16 %v28_v46, %v28_v46  ;;  %v154_v56 = vor.u32 %v152_v48, %v150_v29  ;;  %v257_v58 = vld [vmem:[%s1622_s0 + $0xc] sm:$0x7]  ;;  %v1017_v60 = vld [vmem:[%s1622_s0 + $0x1c] sm:$0x7]  ;;  %v1102_v61 = vor.u32 %v1101_v53, %v1100_v52 }
   0xd   :  { %v228_v37 = vsel %vm139_vm0, %v223_v30, %v227_v31  ;;  %v231_v57 = vor.u32 %v229_v49, %v227_v31  ;;  %v270_v62 = vunpack.c.l.b16 %v257_v58  ;;  %v330_v63 = vunpack.c.l.b16 %v1017_v60 }
   0xe   :  { %69 = vmatpush.bf16.msra.mxu0 %v1071_v25  ;;  %105 = vmatpush.bf16.msra.mxu1 %v1071_v25  ;;  %v375_v0 = vshrl.u32 %v1099_v59, 16  ;;  %v378_v1 = vshll.u32 %v1099_v59, 16  ;;  %v444_v4 = vshrl.u32 %v1102_v61, 16  ;;  %v447_v6 = vshll.u32 %v1102_v61, 16 }
   0xf   :  { %192 = vmatpush.bf16.msra.mxu2 %v1076_v27  ;;  %245 = vmatpush.bf16.msra.mxu3 %v1076_v27  ;;  %v272_v11 = vpack.c.b16 %v270_v62, %v135_v7  ;;  %v332_v12 = vpack.c.b16 %v330_v63, %v213_v13  ;;  %v274_v22 = vrot.slane %v1099_v59, 3  ;;  %v333_v24 = vrot.slane %v1102_v61, 3 }
  0x10   :  { %v377_v14 = vrot.slane %v375_v0, 3  ;;  %v380_v15 = vrot.slane %v378_v1, 4  ;;  %v446_v18 = vrot.slane %v444_v4, 3  ;;  %v449_v19 = vrot.slane %v447_v6, 4 }
  0x11   :  { %947 = vmatmul.msk.bf16.vlgmr.msra.gmra.mxu0 %vm55_vm1, %v1070_v34  ;;  %956 = vmatmul.msk.bf16.vlgmr.msra.gmra.mxu1 %vm55_vm1, %v1075_v35  ;;  %v275_v23 = vrot.slane %v272_v11, 3  ;;  %v334_v25 = vrot.slane %v332_v12, 3  ;;  %v389_v27 = vor.u32 %v388_v17, %v385_v16  ;;  %v458_v7 = vor.u32 %v457_v21, %v454_v20 }
  0x12   :  { %311 = vmatpush.bf16.msrb.mxu0 %v1083_v33  ;;  %982 = vmatmul.msk.bf16.vlgmr.msra.gmra.mxu2 %vm55_vm1, %v151_v36  ;;  %v381_v26 = vor.u32 %v380_v15, %v377_v14  ;;  %v450_v5 = vor.u32 %v449_v19, %v446_v18  ;;  %v484_v30 = vlaneseq }
  0x13   :  { %425 = vmatpush.bf16.msrb.mxu2 %v1087_v32  ;;  %988 = vmatmul.msk.bf16.vlgmr.msra.gmra.mxu3 %vm55_vm1, %v228_v37  ;;  %v276_v10 = vsel %vm273_vm2, %v274_v22, %v275_v23  ;;  %v335_v13 = vsel %vm273_vm2, %v333_v24, %v334_v25 }
  0x14   :  { %470 = vmatpush.bf16.msrb.mxu3 %v1087_v32  ;;  %346 = vmatpush.bf16.msrb.mxu1 %v1083_v33  ;;  %v390_v28 = vsel %vm373_vm3, %v381_v26, %v389_v27  ;;  %v459_v29 = vsel %vm373_vm3, %v450_v5, %v458_v7  ;;  %v485_v31 = vshrl.u32 %v484_v30, 7 }
  0x16   :  { %312 = vmatpush.bf16.msrb.mxu0 %v1082_v39  ;;  %v486_v34 = vadd.s32 8, %v485_v31  ;;  %vm491_vm4 = vcmp.lt.s32.totalorder %v485_v31, 4  ;;  %vm497_vm5 = vcmp.ge.s32.totalorder %v485_v31, 6  ;;  %v487_v43 = vadd.s32 16, %v485_v31 }
  0x17   :  { %426 = vmatpush.bf16.msrb.mxu2 %v1086_v38  ;;  %vm1262_vm6 = vmor %vm491_vm4, %vm497_vm5 }
  0x18   :  { %471 = vmatpush.bf16.msrb.mxu3 %v1086_v38  ;;  %347 = vmatpush.bf16.msrb.mxu1 %v1082_v39  ;;  %vm501_vm7 = vcmp.lt.s32.totalorder %v486_v34, 10  ;;  %vm510_vm8 = vcmp.ge.s32.totalorder %v486_v34, 12  ;;  %vm523_vm11 = vcmp.ge.s32.totalorder %v487_v43, 18  ;;  %vm526_vm12 = vcmp.lt.s32.totalorder %v487_v43, 22 }
  0x19   :  { %vm1273_vm9 = vmor %vm501_vm7, %vm510_vm8 }
  0x1a   :  { %313 = vmatpush.bf16.msrb.mxu0 %v1081_v41  ;;  %vm1309_vm13 = vmand %vm523_vm11, %vm526_vm12 }
  0x1b   :  { %427 = vmatpush.bf16.msrb.mxu2 %v1085_v40 }
  0x1c   :  { %472 = vmatpush.bf16.msrb.mxu3 %v1085_v40  ;;  %348 = vmatpush.bf16.msrb.mxu1 %v1081_v41 }
  0x1e   :  { %314 = vmatpush.bf16.msrb.mxu0 %v1080_v45 }
  0x1f   :  { %428 = vmatpush.bf16.msrb.mxu2 %v1084_v44 }
  0x20   :  { %473 = vmatpush.bf16.msrb.mxu3 %v1084_v44  ;;  %349 = vmatpush.bf16.msrb.mxu1 %v1080_v45 }
  0x21   :  { %948 = vmatmul.msk.bf16.gmra.mxu0 %vm55_vm1, %v30_v54  ;;  %957 = vmatmul.msk.bf16.gmra.mxu1 %vm55_vm1, %v91_v55 }
  0x22   :  { %983 = vmatmul.msk.bf16.gmra.mxu2 %vm55_vm1, %v154_v56 }
  0x23   :  { %989 = vmatmul.msk.bf16.gmra.mxu3 %vm55_vm1, %v231_v57 }
  0x31   :  { %1014 = vmatmul.msk.bf16.vlgmr.msrb.gmra.mxu0 %vm55_vm1, %v276_v10  ;;  %1018 = vmatmul.msk.bf16.vlgmr.msrb.gmra.mxu1 %vm55_vm1, %v335_v13 }
  0x32   :  { %1044 = vmatmul.msk.bf16.vlgmr.msrb.gmra.mxu2 %vm55_vm1, %v390_v28 }
  0x33   :  { %1047 = vmatmul.msk.bf16.vlgmr.msrb.gmra.mxu3 %vm55_vm1, %v459_v29 }
  0x41   :  { %1015 = vmatmul.msk.bf16.gmra.mxu0 %vm55_vm1, %v275_v23  ;;  %1019 = vmatmul.msk.bf16.gmra.mxu1 %vm55_vm1, %v334_v25 }
  0x42   :  { %1045 = vmatmul.msk.bf16.gmra.mxu2 %vm55_vm1, %v389_v27 }
  0x43   :  { %1048 = vmatmul.msk.bf16.gmra.mxu3 %vm55_vm1, %v458_v7 }
  0x8e   :  { %v1258_v32 = vpop.f32.mrf.mxu0  ;;  %v1260_v33 = vpop.f32.mrf.mxu1 }
  0x8f   :  { %v539_v36 = vsel %vm1262_vm6, %v1258_v32, 0.0  ;;  %v570_v40 = vsel %vm1262_vm6, %v1260_v33, 0.0 }
  0x90   :  { %v555_v46 = vmul.f32 %v539_v36, %v539_v36  ;;  %v585_v48 = vmul.f32 %v570_v40, %v570_v40  ;;  %v543_v53 = vsel %vm542_vm10, %v539_v36, 0.0  ;;  %v573_v54 = vsel %vm542_vm10, %v570_v40, 0.0 }
  0x92   :  { %v558_v55 = vsel %vm542_vm10, %v555_v46, 0.0  ;;  %v588_v59 = vsel %vm542_vm10, %v585_v48, 0.0 }
  0x95   :  { %v1269_v37 = vpop.f32.mrf.mxu2 }
  0x96   :  { %v1271_v38 = vpop.f32.mrf.mxu3  ;;  %v1280_v41 = vpop.f32.mrf.mxu0  ;;  %v600_v44 = vsel %vm1262_vm6, %v1269_v37, 0.0 }
  0x97   :  { %v1282_v42 = vpop.f32.mrf.mxu1  ;;  %v630_v45 = vsel %vm1262_vm6, %v1271_v38, 0.0  ;;  %v540_v47 = vsel %vm1273_vm9, %v1280_v41, 0.0  ;;  %v615_v51 = vmul.f32 %v600_v44, %v600_v44  ;;  %v603_v60 = vsel %vm542_vm10, %v600_v44, 0.0 }
  0x98   :  { %v556_v49 = vmul.f32 %v540_v47, %v540_v47  ;;  %v571_v50 = vsel %vm1273_vm9, %v1282_v42, 0.0  ;;  %v645_v52 = vmul.f32 %v630_v45, %v630_v45  ;;  %v544_v56 = vsel %vm542_vm10, %v540_v47, 0.0 }
  0x99   :  { %v574_v57 = vsel %vm542_vm10, %v571_v50, 0.0  ;;  %v586_v58 = vmul.f32 %v571_v50, %v571_v50  ;;  %v633_v61 = vsel %vm542_vm10, %v630_v45, 0.0  ;;  %v618_v2 = vsel %vm542_vm10, %v615_v51, 0.0 }
  0x9a   :  { %v559_v62 = vsel %vm542_vm10, %v556_v49, 0.0  ;;  %v648_v3 = vsel %vm542_vm10, %v645_v52, 0.0  ;;  %v545_v11 = vadd.f32 %v544_v56, %v543_v53  ;;  %v575_v12 = vadd.f32 %v574_v57, %v573_v54 }
  0x9b   :  { %v560_v16 = vadd.f32 %v559_v62, %v558_v55  ;;  %v589_v17 = vsel %vm542_vm10, %v586_v58, 0.0 }
  0x9c   :  { %v590_v5 = vadd.f32 %v589_v17, %v588_v59 }
  0x9d   :  { %v1305_v63 = vpop.f32.mrf.mxu2 }
  0x9e   :  { %v1307_v0 = vpop.f32.mrf.mxu3  ;;  %v601_v4 = vsel %vm1273_vm9, %v1305_v63, 0.0  ;;  %v1321_v8 = vpop.f32.mrf.mxu0 }
  0x9f   :  { %v631_v6 = vsel %vm1273_vm9, %v1307_v0, 0.0  ;;  %v1323_v9 = vpop.f32.mrf.mxu1  ;;  %v616_v14 = vmul.f32 %v601_v4, %v601_v4  ;;  %v541_v18 = vsel %vm1309_vm13, %v1321_v8, 0.0  ;;  %v604_v20 = vsel %vm542_vm10, %v601_v4, 0.0 }
  0xa0   :  { %v646_v15 = vmul.f32 %v631_v6, %v631_v6  ;;  %v572_v19 = vsel %vm1309_vm13, %v1323_v9, 0.0  ;;  %v634_v21 = vsel %vm542_vm10, %v631_v6, 0.0  ;;  %v546_v22 = vsel %vm542_vm10, %v541_v18, 0.0 }
  0xa1   :  { %v557_v23 = vmul.f32 %v541_v18, %v541_v18  ;;  %v619_v24 = vsel %vm542_vm10, %v616_v14, 0.0  ;;  %v547_v26 = vadd.f32 %v546_v22, %v545_v11  ;;  %v576_v27 = vsel %vm542_vm10, %v572_v19, 0.0 }
  0xa2   :  { %v649_v25 = vsel %vm542_vm10, %v646_v15, 0.0  ;;  %v577_v10 = vadd.f32 %v576_v27, %v575_v12  ;;  %v587_v13 = vmul.f32 %v572_v19, %v572_v19  ;;  %v605_v28 = vadd.f32 %v604_v20, %v603_v60 }
  0xa3   :  { %v561_v7 = vsel %vm542_vm10, %v557_v23, 0.0  ;;  %v635_v29 = vadd.f32 %v634_v21, %v633_v61  ;;  %v548_v30 = vrot.slane %v547_v26, 4  ;;  %v620_v34 = vadd.f32 %v619_v24, %v618_v2 }
  0xa4   :  { %v562_v31 = vadd.f32 %v561_v7, %v560_v16  ;;  %v650_v36 = vadd.f32 %v649_v25, %v648_v3  ;;  %v578_v40 = vrot.slane %v577_v10, 4  ;;  %v591_v43 = vsel %vm542_vm10, %v587_v13, 0.0 }
  0xa5   :  { %v1340_v44 = vpop.f32.mrf.mxu2  ;;  %v549_v46 = vadd.f32 %v548_v30, %v547_v26  ;;  %v592_v48 = vadd.f32 %v591_v43, %v590_v5 }
  0xa6   :  { %v1342_v45 = vpop.f32.mrf.mxu3  ;;  %v563_v47 = vrot.slane %v562_v31, 4  ;;  %v602_v49 = vsel %vm1309_vm13, %v1340_v44, 0.0  ;;  %v78_v50 = vpop.f32.mrf.mxu0  ;;  %v579_v52 = vadd.f32 %v578_v40, %v577_v10 }
  0xa7   :  { %v114_v51 = vpop.f32.mrf.mxu1  ;;  %v606_v53 = vsel %vm542_vm10, %v602_v49, 0.0  ;;  %v617_v54 = vmul.f32 %v602_v49, %v602_v49  ;;  %v632_v55 = vsel %vm1309_vm13, %v1342_v45, 0.0  ;;  %v550_v56 = vrot.slane %v549_v46, 2 }
  0xa8   :  { %v564_v57 = vadd.f32 %v563_v47, %v562_v31  ;;  %v593_v58 = vrot.slane %v592_v48, 4  ;;  %v607_v59 = vadd.f32 %v606_v53, %v605_v28  ;;  %v580_v60 = vrot.slane %v579_v52, 2 }
  0xa9   :  { %v621_v61 = vsel %vm542_vm10, %v617_v54, 0.0  ;;  %v636_v62 = vsel %vm542_vm10, %v632_v55, 0.0  ;;  %v647_v2 = vmul.f32 %v632_v55, %v632_v55  ;;  %v551_v3 = vadd.f32 %v550_v56, %v549_v46 }
  0xaa   :  { %v565_v4 = vrot.slane %v564_v57, 2  ;;  %v594_v6 = vadd.f32 %v593_v58, %v592_v48  ;;  %v608_v11 = vrot.slane %v607_v59, 4  ;;  %v581_v12 = vadd.f32 %v580_v60, %v579_v52 }
  0xab   :  { %v622_v14 = vadd.f32 %v621_v61, %v620_v34  ;;  %v637_v15 = vadd.f32 %v636_v62, %v635_v29  ;;  %v651_v16 = vsel %vm542_vm10, %v647_v2, 0.0  ;;  %v552_v25 = vrot.slane %v551_v3, 1 }
  0xac   :  { %v566_v17 = vadd.f32 %v565_v4, %v564_v57  ;;  %v595_v18 = vrot.slane %v594_v6, 2  ;;  %v609_v19 = vadd.f32 %v608_v11, %v607_v59  ;;  %v652_v22 = vadd.f32 %v651_v16, %v650_v36 }
  0xad   :  { %v623_v20 = vrot.slane %v622_v14, 4  ;;  %v638_v21 = vrot.slane %v637_v15, 4  ;;  %v201_v23 = vpop.f32.mrf.mxu2  ;;  %v582_v26 = vrot.slane %v581_v12, 1  ;;  %v553_v47 = vadd.f32 %v552_v25, %v551_v3 }
  0xae   :  { %v254_v24 = vpop.f32.mrf.mxu3  ;;  %v596_v27 = vadd.f32 %v595_v18, %v594_v6  ;;  %v610_v5 = vrot.slane %v609_v19, 2  ;;  %v1354_v7 = vpop.f32.mrf.mxu0  ;;  %v653_v29 = vrot.slane %v652_v22, 4  ;;  %v567_v30 = vrot.slane %v566_v17, 1 }
  0xaf   :  { %v1356_v10 = vpop.f32.mrf.mxu1  ;;  %v624_v13 = vadd.f32 %v623_v20, %v622_v14  ;;  %v639_v28 = vadd.f32 %v638_v21, %v637_v15  ;;  %v660_v36 = vsel %vm1262_vm6, %v1354_v7, 0.0  ;;  %v583_v48 = vadd.f32 %v582_v26, %v581_v12 }
  0xb0   :  { %v597_v31 = vrot.slane %v596_v27, 1  ;;  %v611_v34 = vadd.f32 %v610_v5, %v609_v19  ;;  %v654_v46 = vadd.f32 %v653_v29, %v652_v22  ;;  %v568_v53 = vadd.f32 %v567_v30, %v566_v17 }
  0xb1   :  { %v625_v40 = vrot.slane %v624_v13, 2  ;;  %v640_v43 = vrot.slane %v639_v28, 2  ;;  %v675_v55 = vmul.f32 %v660_v36, %v660_v36  ;;  %v690_v56 = vsel %vm1262_vm6, %v1356_v10, 0.0 }
  0xb2   :  { %v612_v49 = vrot.slane %v611_v34, 1  ;;  %v655_v52 = vrot.slane %v654_v46, 2  ;;  %v598_v54 = vadd.f32 %v597_v31, %v596_v27  ;;  %v584_v62 = vadd.f32 %v583_v48, %v553_v47 }
  0xb3   :  { %v626_v50 = vadd.f32 %v625_v40, %v624_v13  ;;  %v641_v51 = vadd.f32 %v640_v43, %v639_v28  ;;  %v705_v6 = vmul.f32 %v690_v56, %v690_v56  ;;  %v663_v15 = vsel %vm542_vm10, %v660_v36, 0.0 }
  0xb4   :  { %v613_v57 = vadd.f32 %v612_v49, %v611_v34  ;;  %v656_v59 = vadd.f32 %v655_v52, %v654_v46  ;;  %v599_v14 = vadd.f32 %v598_v54, %v568_v53  ;;  %v678_v16 = vsel %vm542_vm10, %v675_v55, 0.0 }
  0xb5   :  { %v627_v58 = vrot.slane %v626_v50, 1  ;;  %v1364_v60 = vpop.f32.mrf.mxu2  ;;  %v642_v4 = vrot.slane %v641_v51, 1  ;;  %v693_v21 = vsel %vm542_vm10, %v690_v56, 0.0  ;;  %v708_v35 = vsel %vm542_vm10, %v705_v6, 0.0 }
  0xb6   :  { %v1366_v61 = vpop.f32.mrf.mxu3  ;;  %v1368_v2 = vpop.f32.mrf.mxu0  ;;  %v720_v11 = vsel %vm1262_vm6, %v1364_v60, 0.0  ;;  %v614_v17 = vadd.f32 %v613_v57, %v584_v62  ;;  %v657_v19 = vrot.slane %v656_v59, 1 }
  0xb7   :  { %v1370_v3 = vpop.f32.mrf.mxu1  ;;  %v750_v12 = vsel %vm1262_vm6, %v1366_v61, 0.0  ;;  %v628_v18 = vadd.f32 %v627_v58, %v626_v50  ;;  %v661_v20 = vsel %vm1273_vm9, %v1368_v2, 0.0  ;;  %v735_v22 = vmul.f32 %v720_v11, %v720_v11 }
  0xb8   :  { %v765_v23 = vmul.f32 %v750_v12, %v750_v12  ;;  %v676_v24 = vmul.f32 %v661_v20, %v661_v20  ;;  %v643_v25 = vadd.f32 %v642_v4, %v641_v51  ;;  %v723_v26 = vsel %vm542_vm10, %v720_v11, 0.0 }
  0xb9   :  { %v691_v27 = vsel %vm1273_vm9, %v1370_v3, 0.0  ;;  %v664_v5 = vsel %vm542_vm10, %v661_v20, 0.0  ;;  %v1392_v30 = vadd.f32 %v628_v18, %v599_v14  ;;  %v1396_v34 = vadd.f32 %v657_v19, %v656_v59 }
  0xba   :  { %v679_v13 = vsel %vm542_vm10, %v676_v24, 0.0  ;;  %v694_v28 = vsel %vm542_vm10, %v691_v27, 0.0  ;;  %v706_v29 = vmul.f32 %v691_v27, %v691_v27  ;;  %v1394_v31 = vadd.f32 %v643_v25, %v614_v17 }
  0xbb   :  { %v753_v40 = vsel %vm542_vm10, %v750_v12, 0.0  ;;  %v738_v36 = vsel %vm542_vm10, %v735_v22, 0.0  ;;  %v768_v47 = vsel %vm542_vm10, %v765_v23, 0.0  ;;  %v665_v52 = vadd.f32 %v664_v5, %v663_v15 }
  0xbc   :  { %v680_v53 = vadd.f32 %v679_v13, %v678_v16  ;;  %v695_v54 = vadd.f32 %v694_v28, %v693_v21  ;;  %v709_v56 = vsel %vm542_vm10, %v706_v29, 0.0 }
  0xbd   :  { %v1399_v43 = vpop.f32.mrf.mxu2  ;;  %v710_v16 = vadd.f32 %v709_v56, %v708_v35 }
  0xbe   :  { %v1401_v46 = vpop.f32.mrf.mxu3  ;;  %v721_v48 = vsel %vm1273_vm9, %v1399_v43, 0.0  ;;  %v1411_v50 = vpop.f32.mrf.mxu0 }
  0xbf   :  { %v751_v49 = vsel %vm1273_vm9, %v1401_v46, 0.0  ;;  %v1413_v51 = vpop.f32.mrf.mxu1  ;;  %v736_v55 = vmul.f32 %v721_v48, %v721_v48  ;;  %v724_v57 = vsel %vm542_vm10, %v721_v48, 0.0  ;;  %v662_v59 = vsel %vm1309_vm13, %v1411_v50, 0.0 }
  0xc0   :  { %v766_v58 = vmul.f32 %v751_v49, %v751_v49  ;;  %v754_v39 = vsel %vm542_vm10, %v751_v49, 0.0  ;;  %v666_v62 = vsel %vm542_vm10, %v662_v59, 0.0  ;;  %v677_v4 = vmul.f32 %v662_v59, %v662_v59 }
  0xc1   :  { %v692_v6 = vsel %vm1309_vm13, %v1413_v51, 0.0  ;;  %v739_v11 = vsel %vm542_vm10, %v736_v55, 0.0  ;;  %v667_v14 = vadd.f32 %v666_v62, %v665_v52  ;;  %v725_v20 = vadd.f32 %v724_v57, %v723_v26 }
  0xc2   :  { %v769_v12 = vsel %vm542_vm10, %v766_v58, 0.0  ;;  %v696_v15 = vsel %vm542_vm10, %v692_v6, 0.0  ;;  %v681_v17 = vsel %vm542_vm10, %v677_v4, 0.0  ;;  %v707_v19 = vmul.f32 %v692_v6, %v692_v6 }
  0xc3   :  { %v697_v18 = vadd.f32 %v696_v15, %v695_v54  ;;  %v755_v21 = vadd.f32 %v754_v39, %v753_v40  ;;  %v668_v22 = vrot.slane %v667_v14, 4  ;;  %v682_v23 = vadd.f32 %v681_v17, %v680_v53 }
  0xc4   :  { %v740_v24 = vadd.f32 %v739_v11, %v738_v36  ;;  %v770_v25 = vadd.f32 %v769_v12, %v768_v47  ;;  %v711_v5 = vsel %vm542_vm10, %v707_v19, 0.0 }
  0xc5   :  { %v698_v27 = vrot.slane %v697_v18, 4  ;;  %v1430_v13 = vpop.f32.mrf.mxu2  ;;  %v669_v29 = vadd.f32 %v668_v22, %v667_v14  ;;  %v683_v48 = vrot.slane %v682_v23, 4  ;;  %v712_v35 = vadd.f32 %v711_v5, %v710_v16 }
  0xc6   :  { %v1432_v28 = vpop.f32.mrf.mxu3  ;;  %v722_v49 = vsel %vm1309_vm13, %v1430_v13, 0.0  ;;  %v323_v26 = vpop.f32.mrf.mxu0 }
  0xc7   :  { %v358_v40 = vpop.f32.mrf.mxu1  ;;  %v699_v52 = vadd.f32 %v698_v27, %v697_v18  ;;  %v726_v36 = vsel %vm542_vm10, %v722_v49, 0.0  ;;  %v737_v47 = vmul.f32 %v722_v49, %v722_v49  ;;  %v752_v53 = vsel %vm1309_vm13, %v1432_v28, 0.0 }
  0xc8   :  { %v670_v54 = vrot.slane %v669_v29, 2  ;;  %v684_v55 = vadd.f32 %v683_v48, %v682_v23  ;;  %v713_v56 = vrot.slane %v712_v35, 4  ;;  %v727_v57 = vadd.f32 %v726_v36, %v725_v20 }
  0xc9   :  { %v700_v58 = vrot.slane %v699_v52, 2  ;;  %v741_v59 = vsel %vm542_vm10, %v737_v47, 0.0  ;;  %v756_v39 = vsel %vm542_vm10, %v752_v53, 0.0  ;;  %v767_v62 = vmul.f32 %v752_v53, %v752_v53 }
  0xca   :  { %v671_v4 = vadd.f32 %v670_v54, %v669_v29  ;;  %v685_v6 = vrot.slane %v684_v55, 2  ;;  %v714_v11 = vadd.f32 %v713_v56, %v712_v35  ;;  %v728_v12 = vrot.slane %v727_v57, 4 }
  0xcb   :  { %v701_v14 = vadd.f32 %v700_v58, %v699_v52  ;;  %v742_v15 = vadd.f32 %v741_v59, %v740_v24  ;;  %v757_v16 = vadd.f32 %v756_v39, %v755_v21  ;;  %v771_v1 = vsel %vm542_vm10, %v767_v62, 0.0 }
  0xcc   :  { %v672_v17 = vrot.slane %v671_v4, 1  ;;  %v686_v18 = vadd.f32 %v685_v6, %v684_v55  ;;  %v715_v19 = vrot.slane %v714_v11, 2  ;;  %v729_v22 = vadd.f32 %v728_v12, %v727_v57 }
  0xcd   :  { %v702_v20 = vrot.slane %v701_v14, 1  ;;  %v743_v23 = vrot.slane %v742_v15, 4  ;;  %v758_v27 = vrot.slane %v757_v16, 4  ;;  %v772_v5 = vadd.f32 %v771_v1, %v770_v25  ;;  %v437_v48 = vpop.f32.mrf.mxu2 }
  0xce   :  { %v482_v49 = vpop.f32.mrf.mxu3  ;;  %v673_v26 = vadd.f32 %v672_v17, %v671_v4  ;;  %v687_v29 = vrot.slane %v686_v18, 1  ;;  %v716_v40 = vadd.f32 %v715_v19, %v714_v11  ;;  %v730_v35 = vrot.slane %v729_v22, 2 }
  0xcf   :  { %v744_v36 = vadd.f32 %v743_v23, %v742_v15  ;;  %v759_v52 = vadd.f32 %v758_v27, %v757_v16  ;;  %v773_v24 = vrot.slane %v772_v5, 4  ;;  %v659_v21 = vadd.f32 %v1396_v34, %v1392_v30 }
  0xd0   :  { %v674_v47 = vadd.f32 %v673_v26, %v1394_v31  ;;  %v688_v53 = vadd.f32 %v687_v29, %v686_v18  ;;  %v731_v54 = vadd.f32 %v730_v35, %v729_v22  ;;  %v717_v55 = vrot.slane %v716_v40, 1 }
  0xd1   :  { %v745_v56 = vrot.slane %v744_v36, 2  ;;  %v760_v57 = vrot.slane %v759_v52, 2  ;;  %v774_v25 = vadd.f32 %v773_v24, %v772_v5  ;;  %v703_v58 = vadd.f32 %v702_v20, %v701_v14 }
  0xd2   :  { %v732_v59 = vrot.slane %v731_v54, 1  ;;  %v689_v39 = vadd.f32 %v688_v53, %v659_v21  ;;  %v718_v15 = vadd.f32 %v717_v55, %v716_v40 }
  0xd3   :  { %v746_v62 = vadd.f32 %v745_v56, %v744_v36  ;;  %v761_v4 = vadd.f32 %v760_v57, %v759_v52  ;;  %v775_v6 = vrot.slane %v774_v25, 2  ;;  %v704_v11 = vadd.f32 %v703_v58, %v674_v47 }
  0xd4   :  { %v733_v12 = vadd.f32 %v732_v59, %v731_v54  ;;  %v719_v31 = vadd.f32 %v718_v15, %v689_v39 }
  0xd5   :  { %v747_v16 = vrot.slane %v746_v62, 1  ;;  %v762_v1 = vrot.slane %v761_v4, 1  ;;  %v776_v30 = vadd.f32 %v775_v6, %v774_v25 }
  0xd6   :  { %v734_v34 = vadd.f32 %v733_v12, %v704_v11 }
  0xd7   :  { %v748_v17 = vadd.f32 %v747_v16, %v746_v62  ;;  %v763_v18 = vadd.f32 %v762_v1, %v761_v4  ;;  %v777_v19 = vrot.slane %v776_v30, 1 }
  0xd9   :  { %v749_v22 = vadd.f32 %v748_v17, %v719_v31  ;;  %v764_v23 = vadd.f32 %v763_v18, %v734_v34  ;;  %v778_v27 = vadd.f32 %v777_v19, %v776_v30 }
  0xdb   :  { %v779_v14 = vadd.f32 %v778_v27, %v749_v22  ;;  %v1447_v20 = vmul.f32 0.0078125, %v764_v23 }
  0xdd   :  { %v781_v5 = vmul.f32 0.0078125, %v779_v14  ;;  %v782_v48 = vmul.f32 %v1447_v20, %v1447_v20  ;;  %v795_v24 = vsub.f32 %v1258_v32, %v1447_v20  ;;  %v796_v21 = vsub.f32 %v1280_v41, %v1447_v20 }
  0xde   :  { %v797_v47 = vsub.f32 %v1321_v8, %v1447_v20  ;;  %v811_v53 = vsub.f32 %v1260_v33, %v1447_v20  ;;  %v812_v54 = vsub.f32 %v1282_v42, %v1447_v20  ;;  %v813_v56 = vsub.f32 %v1323_v9, %v1447_v20 }
  0xdf   :  { %v783_v49 = vsub.f32 %v781_v5, %v782_v48  ;;  %v827_v32 = vsub.f32 %v1269_v37, %v1447_v20  ;;  %v828_v41 = vsub.f32 %v1305_v63, %v1447_v20  ;;  %v829_v8 = vsub.f32 %v1340_v44, %v1447_v20 }
  0xe0   :  { %v843_v33 = vsub.f32 %v1271_v38, %v1447_v20  ;;  %v844_v42 = vsub.f32 %v1307_v0, %v1447_v20  ;;  %v845_v9 = vsub.f32 %v1342_v45, %v1447_v20  ;;  %v859_v37 = vsub.f32 %v1354_v7, %v1447_v20 }
  0xe1   :  { %v784_v26 = vadd.f32 1e-05, %v783_v49  ;;  %v860_v63 = vsub.f32 %v1368_v2, %v1447_v20  ;;  %v861_v15 = vsub.f32 %v1411_v50, %v1447_v20  ;;  %v875_v19 = vsub.f32 %v1356_v10, %v1447_v20 }
  0xe2   :  { %v876_v48 = vsub.f32 %v1370_v3, %v1447_v20  ;;  %v877_v3 = vsub.f32 %v1413_v51, %v1447_v20 }
  0xe3   :  { %1103 = vrsqrt.f32 %v784_v26  ;;  %vm791_vm0 = vweird.f32 %v784_v26 }
  0xe9   :  { %v1104_v29 = vpop.eup %1103 }
  0xea   :  { %v786_v40 = vmul.f32 %v1104_v29, %v784_v26  ;;  %vm792_vm14 = vweird.f32 %v1104_v29 }
  0xeb   :  { %vm793_vm1 = vmor %vm791_vm0, %vm792_vm14 }
  0xec   :  { %v787_v35 = vmul.f32 %v1104_v29, %v786_v40 }
  0xee   :  { %v788_v36 = vmul.f32 0.5, %v787_v35 }
  0xf0   :  { %v789_v52 = vsub.f32 1.5, %v788_v36 }
  0xf2   :  { %v790_v55 = vmul.f32 %v1104_v29, %v789_v52 }
  0xf4   :  { %v1473_v57 = vsel %vm793_vm1, %v1104_v29, %v790_v55 }
  0xf5   :  { %v798_v25 = vmul.f32 %v795_v24, %v1473_v57  ;;  %v799_v44 = vmul.f32 %v796_v21, %v1473_v57  ;;  %v800_v38 = vmul.f32 %v797_v47, %v1473_v57  ;;  %v814_v58 = vmul.f32 %v811_v53, %v1473_v57 }
  0xf6   :  { %v815_v0 = vmul.f32 %v812_v54, %v1473_v57  ;;  %v816_v59 = vmul.f32 %v813_v56, %v1473_v57  ;;  %v830_v45 = vmul.f32 %v827_v32, %v1473_v57  ;;  %v831_v39 = vmul.f32 %v828_v41, %v1473_v57 }
  0xf7   :  { %v801_v7 = vmax.f32 %v798_v25, 0.0  ;;  %v802_v62 = vmax.f32 %v799_v44, 0.0  ;;  %v803_v4 = vmax.f32 %v800_v38, 0.0  ;;  %v817_v2 = vmax.f32 %v814_v58, 0.0 }
  0xf8   :  { %v818_v6 = vmax.f32 %v815_v0, 0.0  ;;  %v819_v11 = vmax.f32 %v816_v59, 0.0  ;;  %v832_v12 = vmul.f32 %v829_v8, %v1473_v57  ;;  %v833_v34 = vmax.f32 %v830_v45, 0.0 }
  0xf9   :  { %v804_v16 = vpack.c.bf16 %v801_v7, %v801_v7  ;;  %v805_v1 = vpack.c.bf16 %v802_v62, %v802_v62  ;;  %v806_v30 = vpack.c.bf16 %v803_v4, %v803_v4  ;;  %v820_v31 = vpack.c.bf16 %v817_v2, %v817_v2 }
  0xfa   :  { %v821_v17 = vpack.c.bf16 %v818_v6, %v818_v6  ;;  %v834_v18 = vmax.f32 %v831_v39, 0.0  ;;  %v835_v22 = vmax.f32 %v832_v12, 0.0  ;;  %v846_v23 = vmul.f32 %v843_v33, %v1473_v57 }
  0xfb   :  { %808 = vst.msk [vmem:[%s1623_s2] sm:$0xf] %vm807_vm15, %v804_v16  ;;  %v847_v50 = vmul.f32 %v844_v42, %v1473_v57  ;;  %v848_v27 = vmul.f32 %v845_v9, %v1473_v57  ;;  %v822_v14 = vpack.c.bf16 %v819_v11, %v819_v11  ;;  %v862_v10 = vmul.f32 %v859_v37, %v1473_v57 }
  0xfc   :  { %809 = vst.msk [vmem:[%s1623_s2 + $0x4] sm:$0xf] %vm807_vm15, %v805_v1  ;;  %v863_v5 = vmul.f32 %v860_v63, %v1473_v57  ;;  %v836_v49 = vpack.c.bf16 %v833_v34, %v833_v34  ;;  %v849_v26 = vmax.f32 %v846_v23, 0.0  ;;  %v864_v40 = vmul.f32 %v861_v15, %v1473_v57 }
  0xfd   :  { %810 = vst.msk [vmem:[%s1623_s2 + $0x8] sm:$0xf] %vm807_vm15, %v806_v30  ;;  %v850_v29 = vmax.f32 %v847_v50, 0.0  ;;  %v837_v35 = vpack.c.bf16 %v834_v18, %v834_v18  ;;  %v851_v36 = vmax.f32 %v848_v27, 0.0  ;;  %v878_v52 = vmul.f32 %v875_v19, %v1473_v57 }
  0xfe   :  { %1049 = vst.msk [vmem:[%s1623_s2 + $0x30] sm:$0xf] %vm807_vm15, %v820_v31  ;;  %v838_v24 = vpack.c.bf16 %v835_v22, %v835_v22  ;;  %v865_v21 = vmax.f32 %v862_v10, 0.0  ;;  %v879_v47 = vmul.f32 %v876_v48, %v1473_v57  ;;  %v891_v53 = vsub.f32 %v1364_v60, %v1447_v20 }
  0xff   :  { %1050 = vst.msk [vmem:[%s1623_s2 + $0x34] sm:$0xf] %vm807_vm15, %v821_v17  ;;  %v852_v51 = vpack.c.bf16 %v849_v26, %v849_v26  ;;  %v866_v54 = vmax.f32 %v863_v5, 0.0  ;;  %v880_v55 = vmul.f32 %v877_v3, %v1473_v57  ;;  %v892_v56 = vsub.f32 %v1399_v43, %v1447_v20 }
 0x100   :  { %1051 = vst.msk [vmem:[%s1623_s2 + $0x38] sm:$0xf] %vm807_vm15, %v822_v14  ;;  %v853_v32 = vpack.c.bf16 %v850_v29, %v850_v29  ;;  %v867_v41 = vmax.f32 %v864_v40, 0.0  ;;  %v893_v60 = vsub.f32 %v1430_v13, %v1447_v20  ;;  %v894_v8 = vmul.f32 %v891_v53, %v1473_v57 }
 0x101   :  { %1052 = vst.msk [vmem:[%s1623_s2 + $0xc] sm:$0xf] %vm807_vm15, %v836_v49  ;;  %v854_v33 = vpack.c.bf16 %v851_v36, %v851_v36  ;;  %v881_v42 = vmax.f32 %v878_v52, 0.0  ;;  %v895_v43 = vmul.f32 %v892_v56, %v1473_v57  ;;  %v907_v9 = vsub.f32 %v1366_v61, %v1447_v20 }
 0x102   :  { %1053 = vst.msk [vmem:[%s1623_s2 + $0x10] sm:$0xf] %vm807_vm15, %v837_v35  ;;  %v868_v13 = vpack.c.bf16 %v865_v21, %v865_v21  ;;  %v882_v37 = vmax.f32 %v879_v47, 0.0  ;;  %v896_v63 = vmul.f32 %v893_v60, %v1473_v57  ;;  %v908_v25 = vsub.f32 %v1401_v46, %v1447_v20 }
 0x103   :  { %1054 = vst.msk [vmem:[%s1623_s2 + $0x14] sm:$0xf] %vm807_vm15, %v838_v24  ;;  %v869_v44 = vpack.c.bf16 %v866_v54, %v866_v54  ;;  %v883_v38 = vmax.f32 %v880_v55, 0.0  ;;  %v909_v61 = vsub.f32 %v1432_v28, %v1447_v20  ;;  %v910_v58 = vmul.f32 %v907_v9, %v1473_v57 }
 0x104   :  { %1055 = vst.msk [vmem:[%s1623_s2 + $0x3c] sm:$0xf] %vm807_vm15, %v852_v51  ;;  %v870_v0 = vpack.c.bf16 %v867_v41, %v867_v41  ;;  %v897_v59 = vmax.f32 %v894_v8, 0.0  ;;  %v911_v46 = vmul.f32 %v908_v25, %v1473_v57  ;;  %v884_v45 = vpack.c.bf16 %v881_v42, %v881_v42 }
 0x105   :  { %1056 = vst.msk [vmem:[%s1623_s2 + $0x40] sm:$0xf] %vm807_vm15, %v853_v32  ;;  %v898_v39 = vmax.f32 %v895_v43, 0.0  ;;  %v912_v28 = vmul.f32 %v909_v61, %v1473_v57  ;;  %v885_v20 = vpack.c.bf16 %v882_v37, %v882_v37  ;;  %v899_v7 = vmax.f32 %v896_v63, 0.0 }
 0x106   :  { %1057 = vst.msk [vmem:[%s1623_s2 + $0x44] sm:$0xf] %vm807_vm15, %v854_v33  ;;  %v886_v62 = vpack.c.bf16 %v883_v38, %v883_v38  ;;  %v913_v4 = vmax.f32 %v910_v58, 0.0  ;;  %v900_v57 = vpack.c.bf16 %v897_v59, %v897_v59  ;;  %v914_v2 = vmax.f32 %v911_v46, 0.0 }
 0x107   :  { %1058 = vst.msk [vmem:[%s1623_s2 + $0x18] sm:$0xf] %vm807_vm15, %v868_v13  ;;  %v901_v6 = vpack.c.bf16 %v898_v39, %v898_v39  ;;  %v915_v11 = vmax.f32 %v912_v28, 0.0  ;;  %v902_v12 = vpack.c.bf16 %v899_v7, %v899_v7 }
 0x108   :  { %1059 = vst.msk [vmem:[%s1623_s2 + $0x1c] sm:$0xf] %vm807_vm15, %v869_v44  ;;  %v916_v15 = vpack.c.bf16 %v913_v4, %v913_v4  ;;  %v917_v16 = vpack.c.bf16 %v914_v2, %v914_v2 }
 0x109   :  { %1060 = vst.msk [vmem:[%s1623_s2 + $0x20] sm:$0xf] %vm807_vm15, %v870_v0  ;;  %v918_v1 = vpack.c.bf16 %v915_v11, %v915_v11 }
 0x10a   :  { %1061 = vst.msk [vmem:[%s1623_s2 + $0x48] sm:$0xf] %vm807_vm15, %v884_v45 }
 0x10b   :  { %1062 = vst.msk [vmem:[%s1623_s2 + $0x4c] sm:$0xf] %vm807_vm15, %v885_v20 }
 0x10c   :  { %1063 = vst.msk [vmem:[%s1623_s2 + $0x50] sm:$0xf] %vm807_vm15, %v886_v62 }
 0x10d   :  { %1064 = vst.msk [vmem:[%s1623_s2 + $0x24] sm:$0xf] %vm807_vm15, %v900_v57 }
 0x10e   :  { %1065 = vst.msk [vmem:[%s1623_s2 + $0x28] sm:$0xf] %vm807_vm15, %v901_v6 }
 0x10f   :  { %1066 = vst.msk [vmem:[%s1623_s2 + $0x2c] sm:$0xf] %vm807_vm15, %v902_v12 }
 0x110   :  { %1067 = vst.msk [vmem:[%s1623_s2 + $0x54] sm:$0xf] %vm807_vm15, %v916_v15 }
 0x111   :  { %1068 = vst.msk [vmem:[%s1623_s2 + $0x58] sm:$0xf] %vm807_vm15, %v917_v16 }
 0x112   :  { %1069 = vst.msk [vmem:[%s1623_s2 + $0x5c] sm:$0xf] %vm807_vm15, %v918_v1 }

// kernel: generator_forward.11
= control target key start
LH: loop header
LB: loop body
LE: loop exit
PB: predicated region body
PF: predicated region fallthrough
CT: control target
= control target key end

     0   :  { %vm72_vm0 = vcmask 261120   ;;  %vm329_vm1 = vsmask.f32 7424  ;;  %vm689_vm2 = vcmask 1046528   ;;  %vm983_vm3 = vsmask.f32 6400  ;;  %s2654_s1 = inlined_call_operand.vmem [shape: bf16[4,32,1], index: 1, kind: input, shape index: {}]   ;;  %s2655_s0 = inlined_call_operand.vmem [shape: bf16[2,92,32], index: 0, kind: input, shape index: {}]   ;;  %s2656_s2 = inlined_call_operand.<no memory space> [shape: f32[1,1], index: 2, kind: input, shape index: {}]   ;;  %s2657_s3 = inlined_call_operand.vmem [shape: bf16[2,4,80,1], index: 3, kind: output, shape index: {}]  }
   0x1   :  { %v1728_v0 = vld [vmem:[%s2654_s1 + $0x8] sm:$0xff]  ;;  %v1742_v2 = vld [vmem:[%s2654_s1 + $0x18] sm:$0xff]  ;;  %v1727_v4 = vld [vmem:[%s2654_s1] sm:$0xff]  ;;  %vm142_vm4 = vcmask 3072  }
   0x2   :  { %v1735_v1 = vld [vmem:[%s2654_s1 + $0x8] sm:$0xff]  ;;  %v1749_v3 = vld [vmem:[%s2654_s1 + $0x18] sm:$0xff]  ;;  %94 = vmatpush.bf16.msra.mxu0 %v1728_v0  ;;  %v1734_v5 = vld [vmem:[%s2654_s1] sm:$0xff]  ;;  %407 = vmatpush.bf16.msra.mxu2 %v1742_v2 }
   0x3   :  { %226 = vmatpush.bf16.msra.mxu1 %v1735_v1  ;;  %v1741_v6 = vld [vmem:[%s2654_s1 + $0x10] sm:$0xff]  ;;  %586 = vmatpush.bf16.msra.mxu3 %v1749_v3  ;;  %v1736_v8 = vld [vmem:[%s2655_s0] sm:$0xff]  ;;  %v1737_v9 = vld [vmem:[%s2655_s0 + $0x8] sm:$0xff] }
   0x4   :  { %v1748_v7 = vld [vmem:[%s2654_s1 + $0x10] sm:$0xff]  ;;  %v1744_v11 = vld [vmem:[%s2655_s0 + $0x38] sm:$0xff]  ;;  %v1722_v13 = vld [vmem:[%s2655_s0] sm:$0xff]  ;;  %v331_v15 = vshrl.u32 %v1736_v8, 16  ;;  %v333_v16 = vshll.u32 %v1736_v8, 16  ;;  %v338_v17 = vshll.u32 %v1737_v9, 16 }
   0x5   :  { %v1743_v10 = vld [vmem:[%s2655_s0 + $0x30] sm:$0xff]  ;;  %v1770_v12 = vld [vmem:[%s2654_s1 + $0x38] sm:$0xff]  ;;  %v517_v21 = vshll.u32 %v1744_v11, 16  ;;  %v1756_v22 = vld [vmem:[%s2654_s1 + $0x28] sm:$0xff]  ;;  %v342_v38 = vshrl.u32 %v1737_v9, 16  ;;  %v521_v40 = vshrl.u32 %v1744_v11, 16 }
   0x6   :  { %v1729_v14 = vld [vmem:[%s2655_s0 + $0x30] sm:$0xff]  ;;  %v1777_v18 = vld [vmem:[%s2654_s1 + $0x38] sm:$0xff]  ;;  %95 = vmatpush.bf16.msra.mxu0 %v1727_v4  ;;  %v510_v19 = vshrl.u32 %v1743_v10, 16  ;;  %v512_v20 = vshll.u32 %v1743_v10, 16  ;;  %v1763_v23 = vld [vmem:[%s2654_s1 + $0x28] sm:$0xff]  ;;  %408 = vmatpush.bf16.msra.mxu2 %v1741_v6  ;;  %v335_v24 = vrot.slane %v333_v16, 1 }
   0x7   :  { %227 = vmatpush.bf16.msra.mxu1 %v1734_v5  ;;  %587 = vmatpush.bf16.msra.mxu3 %v1748_v7  ;;  %v340_v25 = vrot.slane %v338_v17, 1  ;;  %v519_v27 = vrot.slane %v517_v21, 1  ;;  %v1738_v32 = vld [vmem:[%s2655_s0 + $0x10] sm:$0xff]  ;;  %v1755_v35 = vld [vmem:[%s2654_s1 + $0x20] sm:$0xff]  ;;  %v1723_v42 = vld [vmem:[%s2655_s0 + $0x8] sm:$0xff] }
   0x8   :  { %v514_v26 = vrot.slane %v512_v20, 1  ;;  %v336_v28 = vor.u32 %v335_v24, %v331_v15  ;;  %v1769_v33 = vld [vmem:[%s2654_s1 + $0x30] sm:$0xff]  ;;  %v1745_v36 = vld [vmem:[%s2655_s0 + $0x40] sm:$0xff]  ;;  %v346_v39 = vshll.u32 %v1738_v32, 16  ;;  %v1730_v43 = vld [vmem:[%s2655_s0 + $0x38] sm:$0xff]  ;;  %v350_v52 = vshrl.u32 %v1738_v32, 16 }
   0x9   :  { %1349 = vmatmul.msk.bf16.vlgmr.msra.gmra.mxu0 %vm72_vm0, %v1722_v13  ;;  %v1776_v34 = vld [vmem:[%s2654_s1 + $0x30] sm:$0xff]  ;;  %v1762_v37 = vld [vmem:[%s2654_s1 + $0x20] sm:$0xff]  ;;  %v525_v41 = vshll.u32 %v1745_v36, 16  ;;  %v344_v44 = vor.u32 %v342_v38, %v340_v25  ;;  %v523_v46 = vor.u32 %v521_v40, %v519_v27  ;;  %v1739_v50 = vld [vmem:[%s2655_s0 + $0x18] sm:$0xff]  ;;  %v529_v54 = vshrl.u32 %v1745_v36, 16 }
   0xa   :  { %1070 = vmatpush.bf16.msrb.mxu2 %v1770_v12  ;;  %1392 = vmatmul.msk.bf16.vlgmr.msra.gmra.mxu1 %vm72_vm0, %v1729_v14  ;;  %v515_v29 = vor.u32 %v514_v26, %v510_v19  ;;  %v341_v30 = vsel %vm329_vm1, %v336_v28, %v340_v25  ;;  %v348_v45 = vrot.slane %v346_v39, 1  ;;  %v1746_v51 = vld [vmem:[%s2655_s0 + $0x48] sm:$0xff]  ;;  %v354_v53 = vshll.u32 %v1739_v50, 16  ;;  %v1724_v56 = vld [vmem:[%s2655_s0 + $0x10] sm:$0xff]  ;;  %v1731_v57 = vld [vmem:[%s2655_s0 + $0x40] sm:$0xff] }
   0xb   :  { %1258 = vmatpush.bf16.msrb.mxu3 %v1777_v18  ;;  %734 = vmatpush.bf16.msrb.mxu0 %v1756_v22  ;;  %v527_v47 = vrot.slane %v525_v41, 1  ;;  %v533_v55 = vshll.u32 %v1746_v51, 16  ;;  %v1740_v0 = vld [vmem:[%s2655_s0 + $0x20] sm:$0xff]  ;;  %v1747_v1 = vld [vmem:[%s2655_s0 + $0x50] sm:$0xff]  ;;  %v358_v2 = vshrl.u32 %v1739_v50, 16  ;;  %v537_v4 = vshrl.u32 %v1746_v51, 16 }
   0xc   :  { %880 = vmatpush.bf16.msrb.mxu1 %v1763_v23  ;;  %1439 = vmatmul.msk.bf16.vlgmr.msra.gmra.mxu2 %vm72_vm0, %v341_v30  ;;  %v520_v31 = vsel %vm329_vm1, %v515_v29, %v519_v27  ;;  %v349_v48 = vsel %vm329_vm1, %v344_v44, %v348_v45  ;;  %v352_v58 = vor.u32 %v350_v52, %v348_v45  ;;  %v356_v59 = vrot.slane %v354_v53, 1  ;;  %v1725_v6 = vld [vmem:[%s2655_s0 + $0x18] sm:$0xff]  ;;  %v1732_v7 = vld [vmem:[%s2655_s0 + $0x48] sm:$0xff]  ;;  %v1726_v24 = vld [vmem:[%s2655_s0 + $0x20] sm:$0xff] }
   0xd   :  { %1497 = vmatmul.msk.bf16.vlgmr.msra.gmra.mxu3 %vm72_vm0, %v520_v31  ;;  %v528_v49 = vsel %vm329_vm1, %v523_v46, %v527_v47  ;;  %v531_v60 = vor.u32 %v529_v54, %v527_v47  ;;  %v535_v61 = vrot.slane %v533_v55, 1  ;;  %v362_v3 = vshll.u32 %v1740_v0, 16  ;;  %v295_v12 = vld [vmem:[%s2655_s0 + $0x28] sm:$0x1]  ;;  %v1464_v13 = vld [vmem:[%s2655_s0 + $0x58] sm:$0x1] }
   0xe   :  { %1071 = vmatpush.bf16.msrb.mxu2 %v1769_v33  ;;  %v357_v62 = vsel %vm329_vm1, %v352_v58, %v356_v59  ;;  %v541_v5 = vshll.u32 %v1747_v1, 16  ;;  %v360_v8 = vor.u32 %v358_v2, %v356_v59  ;;  %v322_v15 = vunpack.c.l.b16 %v295_v12  ;;  %v1733_v25 = vld [vmem:[%s2655_s0 + $0x50] sm:$0xff]  ;;  %v1623_v28 = vld [vmem:[%s2655_s0 + $0x4] sm:$0xe]  ;;  %v1764_v29 = vld [vmem:[%s2655_s0 + $0x4] sm:$0xf0] }
   0xf   :  { %1259 = vmatpush.bf16.msrb.mxu3 %v1776_v34  ;;  %735 = vmatpush.bf16.msrb.mxu0 %v1755_v35  ;;  %v536_v63 = vsel %vm329_vm1, %v531_v60, %v535_v61  ;;  %v364_v9 = vrot.slane %v362_v3, 1  ;;  %v539_v10 = vor.u32 %v537_v4, %v535_v61  ;;  %v502_v17 = vunpack.c.l.b16 %v1464_v13  ;;  %v1681_v32 = vld [vmem:[%s2655_s0 + $0x34] sm:$0xe]  ;;  %v1771_v33 = vld [vmem:[%s2655_s0 + $0x34] sm:$0xf0]  ;;  %v1765_v38 = vld [vmem:[%s2655_s0 + $0xc] sm:$0xff] }
  0x10   :  { %881 = vmatpush.bf16.msrb.mxu1 %v1762_v37  ;;  %v543_v11 = vrot.slane %v541_v5, 1  ;;  %v328_v18 = vpack.c.b16 %v322_v15, %v322_v15  ;;  %v366_v20 = vshrl.u32 %v1740_v0, 16  ;;  %v545_v22 = vshrl.u32 %v1747_v1, 16  ;;  %v1518_v36 = vld [vmem:[%s2655_s0 + $0x4] sm:$0xe]  ;;  %v1772_v41 = vld [vmem:[%s2655_s0 + $0x3c] sm:$0xff] }
  0x11   :  { %v365_v14 = vsel %vm329_vm1, %v360_v8, %v364_v9  ;;  %v508_v19 = vpack.c.b16 %v502_v17, %v502_v17  ;;  %v1624_v34 = vor.u32 %v1764_v29, %v1623_v28  ;;  %v1750_v37 = vld [vmem:[%s2655_s0 + $0x4] sm:$0xf0]  ;;  %v1682_v39 = vor.u32 %v1771_v33, %v1681_v32  ;;  %v1751_v44 = vld [vmem:[%s2655_s0 + $0xc] sm:$0xff]  ;;  %v1758_v52 = vld [vmem:[%s2655_s0 + $0x3c] sm:$0xff] }
  0x12   :  { %v544_v16 = vsel %vm329_vm1, %v539_v10, %v543_v11  ;;  %v370_v21 = vshll.u32 %v328_v18, 16  ;;  %v368_v26 = vor.u32 %v366_v20, %v364_v9  ;;  %v547_v30 = vor.u32 %v545_v22, %v543_v11  ;;  %v1766_v11 = vld [vmem:[%s2655_s0 + $0x14] sm:$0xff]  ;;  %v1773_v13 = vld [vmem:[%s2655_s0 + $0x44] sm:$0xff]  ;;  %v1767_v32 = vld [vmem:[%s2655_s0 + $0x1c] sm:$0xff] }
  0x13   :  { %v549_v23 = vshll.u32 %v508_v19, 16  ;;  %v1519_v45 = vor.u32 %v1750_v37, %v1518_v36  ;;  %v985_v46 = vshrl.u32 %v1624_v34, 16  ;;  %v988_v47 = vshll.u32 %v1624_v34, 16  ;;  %v1752_v17 = vld [vmem:[%s2655_s0 + $0x14] sm:$0xff]  ;;  %v1759_v18 = vld [vmem:[%s2655_s0 + $0x44] sm:$0xff]  ;;  %v1774_v34 = vld [vmem:[%s2655_s0 + $0x4c] sm:$0xff] }
  0x14   :  { %v372_v27 = vrot.slane %v370_v21, 1  ;;  %v1173_v50 = vshrl.u32 %v1682_v39, 16  ;;  %v1176_v51 = vshll.u32 %v1682_v39, 16  ;;  %v1181_v54 = vshrl.u32 %v1772_v41, 16  ;;  %v1753_v37 = vld [vmem:[%s2655_s0 + $0x1c] sm:$0xff] }
  0x15   :  { %v551_v31 = vrot.slane %v549_v23, 1  ;;  %v1184_v55 = vshll.u32 %v1772_v41, 16  ;;  %v987_v58 = vrot.slane %v985_v46, 1  ;;  %v990_v59 = vrot.slane %v988_v47, 2 }
  0x16   :  { %v373_v35 = vsel %vm329_vm1, %v368_v26, %v372_v27  ;;  %v837_v1 = vrot.slane %v1758_v52, 1  ;;  %v1183_v2 = vrot.slane %v1181_v54, 1  ;;  %v1005_v15 = vshll.u32 %v1766_v11, 16  ;;  %v1768_v52 = vld [vmem:[%s2655_s0 + $0x24] sm:$0xff]  ;;  %v1775_v54 = vld [vmem:[%s2655_s0 + $0x54] sm:$0xff] }
  0x17   :  { %v552_v40 = vsel %vm329_vm1, %v547_v30, %v551_v31  ;;  %v1186_v3 = vrot.slane %v1184_v55, 2  ;;  %v991_v5 = vor.u32 %v990_v59, %v987_v58  ;;  %v1190_v19 = vshrl.u32 %v1773_v13, 16  ;;  %v2204_v58 = vld [vmem:[%s2655_s0 + $0x54] sm:$0xff] }
  0x18   :  { %v1193_v20 = vshll.u32 %v1773_v13, 16  ;;  %v1007_v22 = vrot.slane %v1005_v15, 2  ;;  %v693_v23 = vrot.slane %v1752_v17, 1  ;;  %v1014_v36 = vshll.u32 %v1767_v32, 16  ;;  %v1569_v17 = vld [vmem:[%s2655_s0 + $0x5c] sm:$0x1] }
  0x19   :  { %1350 = vmatmul.msk.bf16.gmra.mxu0 %vm72_vm0, %v1723_v42  ;;  %v1576_v42 = vld [vmem:[%s2655_s0 + $0x34] sm:$0xe]  ;;  %v1187_v9 = vor.u32 %v1186_v3, %v1183_v2  ;;  %v1199_v39 = vshrl.u32 %v1774_v34, 16  ;;  %v1020_v55 = vshrl.u32 %v1768_v52, 16  ;;  %v1208_v59 = vshrl.u32 %v1775_v54, 16 }
  0x1a   :  { %1393 = vmatmul.msk.bf16.gmra.mxu1 %vm72_vm0, %v1730_v43  ;;  %v1757_v43 = vld [vmem:[%s2655_s0 + $0x34] sm:$0xf0]  ;;  %v1195_v26 = vrot.slane %v1193_v20, 2 }
  0x1b   :  { %v1577_v53 = vor.u32 %v1757_v43, %v1576_v42  ;;  %v1016_v42 = vrot.slane %v1014_v36, 2  ;;  %v695_v43 = vrot.slane %v1753_v37, 1  ;;  %v1210_v2 = vrot.slane %v1208_v59, 1 }
  0x1c   :  { %1440 = vmatmul.msk.bf16.gmra.mxu2 %vm72_vm0, %v349_v48  ;;  %v993_v48 = vshrl.u32 %v1765_v38, 16 }
  0x1d   :  { %1498 = vmatmul.msk.bf16.gmra.mxu3 %vm72_vm0, %v528_v49  ;;  %v996_v49 = vshll.u32 %v1765_v38, 16  ;;  %v836_v0 = vrot.slane %v1577_v53, 1  ;;  %v1760_v38 = vld [vmem:[%s2655_s0 + $0x4c] sm:$0xff] }
  0x1e   :  { %v995_v60 = vrot.slane %v993_v48, 1  ;;  %v696_v48 = vsel %vm689_vm2, %v693_v23, %v695_v43 }
  0x1f   :  { %v998_v61 = vrot.slane %v996_v49, 2 }
  0x29   :  { %1351 = vmatmul.msk.bf16.gmra.mxu0 %vm72_vm0, %v1724_v56  ;;  %v690_v56 = vrot.slane %v1519_v45, 1  ;;  %v1201_v45 = vrot.slane %v1199_v39, 1 }
  0x2a   :  { %1394 = vmatmul.msk.bf16.gmra.mxu1 %vm72_vm0, %v1731_v57  ;;  %v691_v57 = vrot.slane %v1751_v44, 1  ;;  %v841_v44 = vrot.slane %v1760_v38, 1 }
  0x2c   :  { %1441 = vmatmul.msk.bf16.gmra.mxu2 %vm72_vm0, %v357_v62  ;;  %v1175_v62 = vrot.slane %v1173_v50, 1  ;;  %v692_v4 = vsel %vm689_vm2, %v690_v56, %v691_v57  ;;  %v694_v28 = vsel %vm689_vm2, %v691_v57, %v693_v23  ;;  %v1023_v56 = vshll.u32 %v1768_v52, 16  ;;  %v2199_v57 = vld [vmem:[%s2655_s0 + $0x24] sm:$0xff] }
  0x2d   :  { %1499 = vmatmul.msk.bf16.gmra.mxu3 %vm72_vm0, %v536_v63  ;;  %v1178_v63 = vrot.slane %v1176_v51, 2  ;;  %v829_v23 = vunpack.c.l.b16 %v1569_v17 }
  0x2f   :  { %v1179_v8 = vor.u32 %v1178_v63, %v1175_v62  ;;  %v1022_v62 = vrot.slane %v1020_v55, 1  ;;  %v1025_v63 = vrot.slane %v1023_v56, 2 }
  0x31   :  { %v1188_v12 = vsel %vm983_vm3, %v1179_v8, %v1187_v9 }
  0x39   :  { %1352 = vmatmul.msk.bf16.gmra.mxu0 %vm72_vm0, %v1725_v6  ;;  %v999_v6 = vor.u32 %v998_v61, %v995_v60  ;;  %v1211_v60 = vshll.u32 %v1775_v54, 16  ;;  %v949_v61 = vld [vmem:[%s2655_s0 + $0x2c] sm:$0x3] }
  0x3a   :  { %1395 = vmatmul.msk.bf16.gmra.mxu1 %vm72_vm0, %v1732_v7  ;;  %v838_v7 = vsel %vm689_vm2, %v836_v0, %v837_v1  ;;  %v697_v0 = vrot.slane %v2199_v57, 1 }
  0x3b   :  { %v1000_v10 = vsel %vm983_vm3, %v991_v5, %v999_v6  ;;  %v1213_v3 = vrot.slane %v1211_v60, 2 }
  0x3c   :  { %1442 = vmatmul.msk.bf16.gmra.mxu2 %vm72_vm0, %v365_v14  ;;  %v1002_v14 = vshrl.u32 %v1766_v11, 16  ;;  %v698_v11 = vsel %vm689_vm2, %v695_v43, %v697_v0 }
  0x3d   :  { %1500 = vmatmul.msk.bf16.gmra.mxu3 %vm72_vm0, %v544_v16  ;;  %v8_v16 = vstv %s2656_s2  ;;  %v2224_v13 = vor.u32 %v1213_v3, %v1210_v2 }
  0x3e   :  { %9 = vst [vmem:[#allocation2] sm:$0x1] %v8_v16  ;;  %v1004_v21 = vrot.slane %v1002_v14, 1  ;;  %v655_v16 = vld [vmem:[%s2655_s0 + $0x2c] sm:$0x1] }
  0x40   :  { %v1008_v27 = vor.u32 %v1007_v22, %v1004_v21  ;;  %v682_v22 = vunpack.c.l.b16 %v655_v16 }
  0x42   :  { %v1009_v31 = vsel %vm983_vm3, %v999_v6, %v1008_v27  ;;  %v976_v6 = vunpack.c.l.b16 %v949_v61 }
  0x45   :  { %v2214_v5 = vld [vmem:[#allocation2] ss:$0 sm:$0xff] }
  0x49   :  { %1353 = vmatmul.msk.bf16.gmra.mxu0 %vm72_vm0, %v1726_v24  ;;  %v839_v24 = vrot.slane %v1759_v18, 1  ;;  %v982_v18 = vpack.c.b16 %v976_v6, %v976_v6 }
  0x4a   :  { %1396 = vmatmul.msk.bf16.gmra.mxu1 %vm72_vm0, %v1733_v25  ;;  %v1192_v25 = vrot.slane %v1190_v19, 1 }
  0x4b   :  { %v840_v29 = vsel %vm689_vm2, %v837_v1, %v839_v24  ;;  %v842_v49 = vsel %vm689_vm2, %v839_v24, %v841_v44  ;;  %v843_v1 = vrot.slane %v2204_v58, 1  ;;  %v1029_v24 = vshrl.u32 %v982_v18, 16 }
  0x4c   :  { %1443 = vmatmul.msk.bf16.gmra.mxu2 %vm72_vm0, %v373_v35  ;;  %v1196_v30 = vor.u32 %v1195_v26, %v1192_v25  ;;  %v1011_v35 = vshrl.u32 %v1767_v32, 16  ;;  %v1032_v25 = vshll.u32 %v982_v18, 16 }
  0x4d   :  { %1501 = vmatmul.msk.bf16.gmra.mxu3 %vm72_vm0, %v552_v40  ;;  %v1202_v40 = vshll.u32 %v1774_v34, 16 }
  0x4e   :  { %v1197_v33 = vsel %vm983_vm3, %v1187_v9, %v1196_v30  ;;  %v1013_v41 = vrot.slane %v1011_v35, 1  ;;  %v1031_v35 = vrot.slane %v1029_v24, 1 }
  0x4f   :  { %v1204_v46 = vrot.slane %v1202_v40, 2 }
  0x50   :  { %v1017_v47 = vor.u32 %v1016_v42, %v1013_v41  ;;  %v1034_v41 = vrot.slane %v1032_v25, 2 }
  0x51   :  { %v1205_v50 = vor.u32 %v1204_v46, %v1201_v45 }
  0x52   :  { %v1018_v51 = vsel %vm983_vm3, %v1008_v27, %v1017_v47 }
  0x53   :  { %v1206_v53 = vsel %vm983_vm3, %v1196_v30, %v1205_v50  ;;  %v1215_v21 = vsel %vm983_vm3, %v1205_v50, %v2224_v13  ;;  %v835_v30 = vpack.c.b16 %v829_v23, %v829_v23 }
  0x55   :  { %v845_v46 = vrot.slane %v835_v30, 1 }
  0x57   :  { %v846_v52 = vsel %vm689_vm2, %v843_v1, %v845_v46 }
  0x59   :  { %1544 = vmatmul.msk.bf16.vlgmr.msrb.gmra.mxu0 %vm72_vm0, %v692_v4  ;;  %v1674_v4 = vld [vmem:[%s2655_s0 + $0x5c] sm:$0x3] }
  0x5a   :  { %1602 = vmatmul.msk.bf16.vlgmr.msrb.gmra.mxu1 %vm72_vm0, %v838_v7  ;;  %v2216_v7 = vor.u32 %v1025_v63, %v1022_v62  ;;  %v1165_v8 = vunpack.c.l.b16 %v1674_v4 }
  0x5c   :  { %1649 = vmatmul.msk.bf16.vlgmr.msrb.gmra.mxu2 %vm72_vm0, %v1000_v10  ;;  %v1027_v19 = vsel %vm983_vm3, %v1017_v47, %v2216_v7  ;;  %v1171_v20 = vpack.c.b16 %v1165_v8, %v1165_v8 }
  0x5d   :  { %1707 = vmatmul.msk.bf16.vlgmr.msrb.gmra.mxu3 %vm72_vm0, %v1188_v12  ;;  %v844_v12 = vsel %vm689_vm2, %v841_v44, %v843_v1 }
  0x5e   :  { %v1217_v26 = vshrl.u32 %v1171_v20, 16 }
  0x60   :  { %v1219_v44 = vrot.slane %v1217_v26, 1 }
  0x69   :  { %1545 = vmatmul.msk.bf16.gmra.mxu0 %vm72_vm0, %v694_v28 }
  0x6a   :  { %1603 = vmatmul.msk.bf16.gmra.mxu1 %vm72_vm0, %v840_v29  ;;  %v688_v29 = vpack.c.b16 %v682_v22, %v682_v22 }
  0x6c   :  { %1650 = vmatmul.msk.bf16.gmra.mxu2 %vm72_vm0, %v1009_v31  ;;  %v1220_v31 = vshll.u32 %v1171_v20, 16  ;;  %v699_v45 = vrot.slane %v688_v29, 1 }
  0x6d   :  { %1708 = vmatmul.msk.bf16.gmra.mxu3 %vm72_vm0, %v1197_v33 }
  0x6e   :  { %v1222_v47 = vrot.slane %v1220_v31, 2 }
  0x79   :  { %1546 = vmatmul.msk.bf16.gmra.mxu0 %vm72_vm0, %v696_v48  ;;  %v1035_v48 = vor.u32 %v1034_v41, %v1031_v35 }
  0x7a   :  { %1604 = vmatmul.msk.bf16.gmra.mxu1 %vm72_vm0, %v842_v49 }
  0x7b   :  { %v1036_v58 = vsel %vm983_vm3, %v2216_v7, %v1035_v48 }
  0x7c   :  { %1651 = vmatmul.msk.bf16.gmra.mxu2 %vm72_vm0, %v1018_v51  ;;  %v700_v51 = vsel %vm689_vm2, %v697_v0, %v699_v45 }
  0x7d   :  { %1709 = vmatmul.msk.bf16.gmra.mxu3 %vm72_vm0, %v1206_v53  ;;  %v1223_v53 = vor.u32 %v1222_v47, %v1219_v44 }
  0x7f   :  { %v1224_v4 = vsel %vm983_vm3, %v2224_v13, %v1223_v53 }
  0x86   :  { %v97_v9 = vpop.f32.mrf.mxu0 }
  0x87   :  { %v229_v10 = vpop.f32.mrf.mxu1  ;;  %v98_v14 = vadd.f32 %v2214_v5, %v97_v9 }
  0x88   :  { %v230_v15 = vadd.f32 %v2214_v5, %v229_v10 }
  0x89   :  { %1779 = vtanh.f32 %v98_v14  ;;  %1547 = vmatmul.msk.bf16.gmra.mxu0 %vm72_vm0, %v698_v11 }
  0x8a   :  { %1605 = vmatmul.msk.bf16.gmra.mxu1 %vm72_vm0, %v844_v12  ;;  %1781 = vtanh.f32 %v230_v15 }
  0x8c   :  { %1652 = vmatmul.msk.bf16.gmra.mxu2 %vm72_vm0, %v1027_v19 }
  0x8d   :  { %1710 = vmatmul.msk.bf16.gmra.mxu3 %vm72_vm0, %v1215_v21 }
  0x8e   :  { %v99_v27 = vpop.f32.mrf.mxu0 }
  0x8f   :  { %v231_v28 = vpop.f32.mrf.mxu1  ;;  %v1780_v32 = vpop.eup %1779  ;;  %v100_v34 = vadd.f32 %v2214_v5, %v99_v27 }
  0x90   :  { %v410_v33 = vpop.f32.mrf.mxu2  ;;  %v1782_v36 = vpop.eup %1781  ;;  %v132_v37 = vpack.c.bf16 %v1780_v32, %v1780_v32  ;;  %v232_v40 = vadd.f32 %v2214_v5, %v231_v28 }
  0x91   :  { %v411_v38 = vadd.f32 %v2214_v5, %v410_v33  ;;  %v589_v39 = vpop.f32.mrf.mxu3  ;;  %v264_v42 = vpack.c.bf16 %v1782_v36, %v1782_v36  ;;  %1783 = vtanh.f32 %v100_v34 }
  0x92   :  { %v590_v43 = vadd.f32 %v2214_v5, %v589_v39  ;;  %143 = vst.msk [vmem:[%s2657_s3] sm:$0xf] %vm142_vm4, %v132_v37 }
  0x93   :  { %1785 = vtanh.f32 %v411_v38  ;;  %1397 = vst.msk [vmem:[%s2657_s3 + $0xa0] sm:$0xf] %vm142_vm4, %v264_v42 }
  0x94   :  { %1787 = vtanh.f32 %v590_v43 }
  0x95   :  { %1789 = vtanh.f32 %v232_v40 }
  0x96   :  { %v102_v49 = vpop.f32.mrf.mxu0 }
  0x97   :  { %v234_v50 = vpop.f32.mrf.mxu1  ;;  %v1784_v54 = vpop.eup %1783  ;;  %v103_v56 = vadd.f32 %v2214_v5, %v102_v49 }
  0x98   :  { %v412_v55 = vpop.f32.mrf.mxu2  ;;  %v133_v60 = vpack.c.bf16 %v1784_v54, %v1784_v54  ;;  %v235_v63 = vadd.f32 %v2214_v5, %v234_v50 }
  0x99   :  { %v1786_v59 = vpop.eup %1785  ;;  %v413_v61 = vadd.f32 %v2214_v5, %v412_v55  ;;  %v591_v62 = vpop.f32.mrf.mxu3  ;;  %1791 = vtanh.f32 %v103_v56  ;;  %1548 = vmatmul.msk.bf16.gmra.mxu0 %vm72_vm0, %v700_v51 }
  0x9a   :  { %v1788_v2 = vpop.eup %1787  ;;  %v445_v57 = vpack.c.bf16 %v1786_v59, %v1786_v59  ;;  %v592_v0 = vadd.f32 %v2214_v5, %v591_v62  ;;  %1606 = vmatmul.msk.bf16.gmra.mxu1 %vm72_vm0, %v846_v52  ;;  %144 = vst.msk [vmem:[%s2657_s3 + $0x4] sm:$0xf] %vm142_vm4, %v133_v60 }
  0x9b   :  { %v1790_v1 = vpop.eup %1789  ;;  %v624_v3 = vpack.c.bf16 %v1788_v2, %v1788_v2  ;;  %1793 = vtanh.f32 %v413_v61 }
  0x9c   :  { %1444 = vst.msk [vmem:[%s2657_s3 + $0x28] sm:$0xf] %vm142_vm4, %v445_v57  ;;  %v265_v6 = vpack.c.bf16 %v1790_v1, %v1790_v1  ;;  %1795 = vtanh.f32 %v592_v0  ;;  %1653 = vmatmul.msk.bf16.gmra.mxu2 %vm72_vm0, %v1036_v58 }
  0x9d   :  { %1502 = vst.msk [vmem:[%s2657_s3 + $0xc8] sm:$0xf] %vm142_vm4, %v624_v3  ;;  %1797 = vtanh.f32 %v235_v63  ;;  %1711 = vmatmul.msk.bf16.gmra.mxu3 %vm72_vm0, %v1224_v4 }
  0x9e   :  { %1398 = vst.msk [vmem:[%s2657_s3 + $0xa4] sm:$0xf] %vm142_vm4, %v265_v6  ;;  %v104_v7 = vpop.f32.mrf.mxu0 }
  0x9f   :  { %v236_v8 = vpop.f32.mrf.mxu1  ;;  %v1792_v9 = vpop.eup %1791  ;;  %v105_v11 = vadd.f32 %v2214_v5, %v104_v7 }
  0xa0   :  { %v415_v10 = vpop.f32.mrf.mxu2  ;;  %v134_v13 = vpack.c.bf16 %v1792_v9, %v1792_v9  ;;  %v237_v16 = vadd.f32 %v2214_v5, %v236_v8 }
  0xa1   :  { %v1794_v12 = vpop.eup %1793  ;;  %v416_v14 = vadd.f32 %v2214_v5, %v415_v10  ;;  %v594_v15 = vpop.f32.mrf.mxu3  ;;  %1799 = vtanh.f32 %v105_v11 }
  0xa2   :  { %v1796_v17 = vpop.eup %1795  ;;  %v446_v18 = vpack.c.bf16 %v1794_v12, %v1794_v12  ;;  %v595_v19 = vadd.f32 %v2214_v5, %v594_v15  ;;  %145 = vst.msk [vmem:[%s2657_s3 + $0x8] sm:$0xf] %vm142_vm4, %v134_v13 }
  0xa3   :  { %v1798_v20 = vpop.eup %1797  ;;  %v625_v21 = vpack.c.bf16 %v1796_v17, %v1796_v17  ;;  %1801 = vtanh.f32 %v416_v14 }
  0xa4   :  { %1445 = vst.msk [vmem:[%s2657_s3 + $0x2c] sm:$0xf] %vm142_vm4, %v446_v18  ;;  %v266_v22 = vpack.c.bf16 %v1798_v20, %v1798_v20  ;;  %1803 = vtanh.f32 %v595_v19 }
  0xa5   :  { %1503 = vst.msk [vmem:[%s2657_s3 + $0xcc] sm:$0xf] %vm142_vm4, %v625_v21  ;;  %1805 = vtanh.f32 %v237_v16 }
  0xa6   :  { %1399 = vst.msk [vmem:[%s2657_s3 + $0xa8] sm:$0xf] %vm142_vm4, %v266_v22  ;;  %v107_v23 = vpop.f32.mrf.mxu0 }
  0xa7   :  { %v239_v24 = vpop.f32.mrf.mxu1  ;;  %v1800_v25 = vpop.eup %1799  ;;  %v108_v27 = vadd.f32 %v2214_v5, %v107_v23 }
  0xa8   :  { %v417_v26 = vpop.f32.mrf.mxu2  ;;  %v135_v29 = vpack.c.bf16 %v1800_v25, %v1800_v25  ;;  %v240_v32 = vadd.f32 %v2214_v5, %v239_v24 }
  0xa9   :  { %v1802_v28 = vpop.eup %1801  ;;  %v418_v30 = vadd.f32 %v2214_v5, %v417_v26  ;;  %v596_v31 = vpop.f32.mrf.mxu3  ;;  %1807 = vtanh.f32 %v108_v27 }
  0xaa   :  { %v1804_v33 = vpop.eup %1803  ;;  %v447_v34 = vpack.c.bf16 %v1802_v28, %v1802_v28  ;;  %v597_v35 = vadd.f32 %v2214_v5, %v596_v31  ;;  %146 = vst.msk [vmem:[%s2657_s3 + $0xc] sm:$0xf] %vm142_vm4, %v135_v29 }
  0xab   :  { %v1806_v36 = vpop.eup %1805  ;;  %v626_v37 = vpack.c.bf16 %v1804_v33, %v1804_v33  ;;  %1809 = vtanh.f32 %v418_v30 }
  0xac   :  { %1446 = vst.msk [vmem:[%s2657_s3 + $0x30] sm:$0xf] %vm142_vm4, %v447_v34  ;;  %v267_v38 = vpack.c.bf16 %v1806_v36, %v1806_v36  ;;  %1811 = vtanh.f32 %v597_v35 }
  0xad   :  { %1504 = vst.msk [vmem:[%s2657_s3 + $0xd0] sm:$0xf] %vm142_vm4, %v626_v37  ;;  %1813 = vtanh.f32 %v240_v32 }
  0xae   :  { %1400 = vst.msk [vmem:[%s2657_s3 + $0xac] sm:$0xf] %vm142_vm4, %v267_v38  ;;  %v109_v39 = vpop.f32.mrf.mxu0 }
  0xaf   :  { %v241_v40 = vpop.f32.mrf.mxu1  ;;  %v1808_v41 = vpop.eup %1807  ;;  %v110_v43 = vadd.f32 %v2214_v5, %v109_v39 }
  0xb0   :  { %v420_v42 = vpop.f32.mrf.mxu2  ;;  %v136_v45 = vpack.c.bf16 %v1808_v41, %v1808_v41  ;;  %v242_v48 = vadd.f32 %v2214_v5, %v241_v40 }
  0xb1   :  { %v1810_v44 = vpop.eup %1809  ;;  %v421_v46 = vadd.f32 %v2214_v5, %v420_v42  ;;  %v599_v47 = vpop.f32.mrf.mxu3  ;;  %1815 = vtanh.f32 %v110_v43 }
  0xb2   :  { %v1812_v49 = vpop.eup %1811  ;;  %v448_v50 = vpack.c.bf16 %v1810_v44, %v1810_v44  ;;  %v600_v51 = vadd.f32 %v2214_v5, %v599_v47  ;;  %147 = vst.msk [vmem:[%s2657_s3 + $0x10] sm:$0xf] %vm142_vm4, %v136_v45 }
  0xb3   :  { %v1814_v52 = vpop.eup %1813  ;;  %v627_v53 = vpack.c.bf16 %v1812_v49, %v1812_v49  ;;  %1817 = vtanh.f32 %v421_v46 }
  0xb4   :  { %1447 = vst.msk [vmem:[%s2657_s3 + $0x34] sm:$0xf] %vm142_vm4, %v448_v50  ;;  %v268_v54 = vpack.c.bf16 %v1814_v52, %v1814_v52  ;;  %1819 = vtanh.f32 %v600_v51 }
  0xb5   :  { %1505 = vst.msk [vmem:[%s2657_s3 + $0xd4] sm:$0xf] %vm142_vm4, %v627_v53  ;;  %1821 = vtanh.f32 %v242_v48 }
  0xb6   :  { %1401 = vst.msk [vmem:[%s2657_s3 + $0xb0] sm:$0xf] %vm142_vm4, %v268_v54  ;;  %v112_v55 = vpop.f32.mrf.mxu0 }
  0xb7   :  { %v244_v56 = vpop.f32.mrf.mxu1  ;;  %v1816_v59 = vpop.eup %1815  ;;  %v113_v61 = vadd.f32 %v2214_v5, %v112_v55 }
  0xb8   :  { %v422_v60 = vpop.f32.mrf.mxu2  ;;  %v137_v63 = vpack.c.bf16 %v1816_v59, %v1816_v59  ;;  %v245_v0 = vadd.f32 %v2214_v5, %v244_v56 }
  0xb9   :  { %v1818_v62 = vpop.eup %1817  ;;  %v423_v2 = vadd.f32 %v2214_v5, %v422_v60  ;;  %v601_v57 = vpop.f32.mrf.mxu3  ;;  %1823 = vtanh.f32 %v113_v61 }
  0xba   :  { %v1820_v58 = vpop.eup %1819  ;;  %v449_v1 = vpack.c.bf16 %v1818_v62, %v1818_v62  ;;  %v602_v3 = vadd.f32 %v2214_v5, %v601_v57  ;;  %148 = vst.msk [vmem:[%s2657_s3 + $0x14] sm:$0xf] %vm142_vm4, %v137_v63 }
  0xbb   :  { %v1822_v4 = vpop.eup %1821  ;;  %v628_v6 = vpack.c.bf16 %v1820_v58, %v1820_v58  ;;  %1825 = vtanh.f32 %v423_v2 }
  0xbc   :  { %1448 = vst.msk [vmem:[%s2657_s3 + $0x38] sm:$0xf] %vm142_vm4, %v449_v1  ;;  %v269_v7 = vpack.c.bf16 %v1822_v4, %v1822_v4  ;;  %1827 = vtanh.f32 %v602_v3 }
  0xbd   :  { %1506 = vst.msk [vmem:[%s2657_s3 + $0xd8] sm:$0xf] %vm142_vm4, %v628_v6  ;;  %1829 = vtanh.f32 %v245_v0 }
  0xbe   :  { %1402 = vst.msk [vmem:[%s2657_s3 + $0xb4] sm:$0xf] %vm142_vm4, %v269_v7  ;;  %v114_v8 = vpop.f32.mrf.mxu0 }
  0xbf   :  { %v246_v9 = vpop.f32.mrf.mxu1  ;;  %v1824_v10 = vpop.eup %1823  ;;  %v115_v12 = vadd.f32 %v2214_v5, %v114_v8 }
  0xc0   :  { %v425_v11 = vpop.f32.mrf.mxu2  ;;  %v138_v14 = vpack.c.bf16 %v1824_v10, %v1824_v10  ;;  %v247_v17 = vadd.f32 %v2214_v5, %v246_v9 }
  0xc1   :  { %v1826_v13 = vpop.eup %1825  ;;  %v426_v15 = vadd.f32 %v2214_v5, %v425_v11  ;;  %v604_v16 = vpop.f32.mrf.mxu3  ;;  %1831 = vtanh.f32 %v115_v12 }
  0xc2   :  { %v1828_v18 = vpop.eup %1827  ;;  %v450_v19 = vpack.c.bf16 %v1826_v13, %v1826_v13  ;;  %v605_v20 = vadd.f32 %v2214_v5, %v604_v16  ;;  %149 = vst.msk [vmem:[%s2657_s3 + $0x18] sm:$0xf] %vm142_vm4, %v138_v14 }
  0xc3   :  { %v1830_v21 = vpop.eup %1829  ;;  %v629_v22 = vpack.c.bf16 %v1828_v18, %v1828_v18  ;;  %1833 = vtanh.f32 %v426_v15 }
  0xc4   :  { %1449 = vst.msk [vmem:[%s2657_s3 + $0x3c] sm:$0xf] %vm142_vm4, %v450_v19  ;;  %v270_v23 = vpack.c.bf16 %v1830_v21, %v1830_v21  ;;  %1835 = vtanh.f32 %v605_v20 }
  0xc5   :  { %1507 = vst.msk [vmem:[%s2657_s3 + $0xdc] sm:$0xf] %vm142_vm4, %v629_v22  ;;  %1837 = vtanh.f32 %v247_v17 }
  0xc6   :  { %1403 = vst.msk [vmem:[%s2657_s3 + $0xb8] sm:$0xf] %vm142_vm4, %v270_v23  ;;  %v117_v24 = vpop.f32.mrf.mxu0 }
  0xc7   :  { %v249_v25 = vpop.f32.mrf.mxu1  ;;  %v1832_v26 = vpop.eup %1831  ;;  %v118_v28 = vadd.f32 %v2214_v5, %v117_v24 }
  0xc8   :  { %v427_v27 = vpop.f32.mrf.mxu2  ;;  %v139_v30 = vpack.c.bf16 %v1832_v26, %v1832_v26  ;;  %v250_v33 = vadd.f32 %v2214_v5, %v249_v25 }
  0xc9   :  { %v1834_v29 = vpop.eup %1833  ;;  %v428_v31 = vadd.f32 %v2214_v5, %v427_v27  ;;  %v606_v32 = vpop.f32.mrf.mxu3  ;;  %1839 = vtanh.f32 %v118_v28 }
  0xca   :  { %v1836_v34 = vpop.eup %1835  ;;  %v451_v35 = vpack.c.bf16 %v1834_v29, %v1834_v29  ;;  %v607_v36 = vadd.f32 %v2214_v5, %v606_v32  ;;  %150 = vst.msk [vmem:[%s2657_s3 + $0x1c] sm:$0xf] %vm142_vm4, %v139_v30 }
  0xcb   :  { %v1838_v37 = vpop.eup %1837  ;;  %v630_v38 = vpack.c.bf16 %v1836_v34, %v1836_v34  ;;  %1841 = vtanh.f32 %v428_v31 }
  0xcc   :  { %1450 = vst.msk [vmem:[%s2657_s3 + $0x40] sm:$0xf] %vm142_vm4, %v451_v35  ;;  %v271_v39 = vpack.c.bf16 %v1838_v37, %v1838_v37  ;;  %1843 = vtanh.f32 %v607_v36 }
  0xcd   :  { %1508 = vst.msk [vmem:[%s2657_s3 + $0xe0] sm:$0xf] %vm142_vm4, %v630_v38  ;;  %1845 = vtanh.f32 %v250_v33 }
  0xce   :  { %1404 = vst.msk [vmem:[%s2657_s3 + $0xbc] sm:$0xf] %vm142_vm4, %v271_v39  ;;  %v119_v40 = vpop.f32.mrf.mxu0 }
  0xcf   :  { %v251_v41 = vpop.f32.mrf.mxu1  ;;  %v1840_v42 = vpop.eup %1839  ;;  %v120_v44 = vadd.f32 %v2214_v5, %v119_v40 }
  0xd0   :  { %v430_v43 = vpop.f32.mrf.mxu2  ;;  %v140_v46 = vpack.c.bf16 %v1840_v42, %v1840_v42  ;;  %v252_v49 = vadd.f32 %v2214_v5, %v251_v41 }
  0xd1   :  { %v1842_v45 = vpop.eup %1841  ;;  %v431_v47 = vadd.f32 %v2214_v5, %v430_v43  ;;  %v609_v48 = vpop.f32.mrf.mxu3  ;;  %1847 = vtanh.f32 %v120_v44 }
  0xd2   :  { %v1844_v50 = vpop.eup %1843  ;;  %v452_v51 = vpack.c.bf16 %v1842_v45, %v1842_v45  ;;  %v610_v52 = vadd.f32 %v2214_v5, %v609_v48  ;;  %151 = vst.msk [vmem:[%s2657_s3 + $0x20] sm:$0xf] %vm142_vm4, %v140_v46 }
  0xd3   :  { %v1846_v53 = vpop.eup %1845  ;;  %v631_v54 = vpack.c.bf16 %v1844_v50, %v1844_v50  ;;  %1849 = vtanh.f32 %v431_v47 }
  0xd4   :  { %1451 = vst.msk [vmem:[%s2657_s3 + $0x44] sm:$0xf] %vm142_vm4, %v452_v51  ;;  %v272_v55 = vpack.c.bf16 %v1846_v53, %v1846_v53  ;;  %1851 = vtanh.f32 %v610_v52 }
  0xd5   :  { %1509 = vst.msk [vmem:[%s2657_s3 + $0xe4] sm:$0xf] %vm142_vm4, %v631_v54  ;;  %1853 = vtanh.f32 %v252_v49 }
  0xd6   :  { %1405 = vst.msk [vmem:[%s2657_s3 + $0xc0] sm:$0xf] %vm142_vm4, %v272_v55  ;;  %v737_v56 = vpop.f32.mrf.mxu0 }
  0xd7   :  { %v883_v59 = vpop.f32.mrf.mxu1  ;;  %v1848_v60 = vpop.eup %1847  ;;  %v738_v62 = vadd.f32 %v2214_v5, %v737_v56 }
  0xd8   :  { %v432_v61 = vpop.f32.mrf.mxu2  ;;  %v141_v2 = vpack.c.bf16 %v1848_v60, %v1848_v60  ;;  %v884_v58 = vadd.f32 %v2214_v5, %v883_v59 }
  0xd9   :  { %v1850_v63 = vpop.eup %1849  ;;  %v433_v57 = vadd.f32 %v2214_v5, %v432_v61  ;;  %v611_v0 = vpop.f32.mrf.mxu3  ;;  %1855 = vtanh.f32 %v738_v62 }
  0xda   :  { %v1852_v1 = vpop.eup %1851  ;;  %v453_v3 = vpack.c.bf16 %v1850_v63, %v1850_v63  ;;  %v612_v4 = vadd.f32 %v2214_v5, %v611_v0  ;;  %152 = vst.msk [vmem:[%s2657_s3 + $0x24] sm:$0xf] %vm142_vm4, %v141_v2 }
  0xdb   :  { %v1854_v6 = vpop.eup %1853  ;;  %v632_v7 = vpack.c.bf16 %v1852_v1, %v1852_v1  ;;  %1857 = vtanh.f32 %v433_v57 }
  0xdc   :  { %1452 = vst.msk [vmem:[%s2657_s3 + $0x48] sm:$0xf] %vm142_vm4, %v453_v3  ;;  %v273_v8 = vpack.c.bf16 %v1854_v6, %v1854_v6  ;;  %1859 = vtanh.f32 %v612_v4 }
  0xdd   :  { %1510 = vst.msk [vmem:[%s2657_s3 + $0xe8] sm:$0xf] %vm142_vm4, %v632_v7  ;;  %1861 = vtanh.f32 %v884_v58 }
  0xde   :  { %1406 = vst.msk [vmem:[%s2657_s3 + $0xc4] sm:$0xf] %vm142_vm4, %v273_v8  ;;  %v739_v9 = vpop.f32.mrf.mxu0 }
  0xdf   :  { %v885_v10 = vpop.f32.mrf.mxu1  ;;  %v1856_v11 = vpop.eup %1855  ;;  %v740_v13 = vadd.f32 %v2214_v5, %v739_v9 }
  0xe0   :  { %v1073_v12 = vpop.f32.mrf.mxu2  ;;  %v772_v15 = vpack.c.bf16 %v1856_v11, %v1856_v11  ;;  %v886_v18 = vadd.f32 %v2214_v5, %v885_v10 }
  0xe1   :  { %v1858_v14 = vpop.eup %1857  ;;  %v1074_v16 = vadd.f32 %v2214_v5, %v1073_v12  ;;  %v1261_v17 = vpop.f32.mrf.mxu3  ;;  %1863 = vtanh.f32 %v740_v13 }
  0xe2   :  { %v1860_v19 = vpop.eup %1859  ;;  %v454_v20 = vpack.c.bf16 %v1858_v14, %v1858_v14  ;;  %v1262_v21 = vadd.f32 %v2214_v5, %v1261_v17  ;;  %1549 = vst.msk [vmem:[%s2657_s3 + $0x50] sm:$0xf] %vm142_vm4, %v772_v15 }
  0xe3   :  { %v1862_v22 = vpop.eup %1861  ;;  %v633_v23 = vpack.c.bf16 %v1860_v19, %v1860_v19  ;;  %1865 = vtanh.f32 %v1074_v16 }
  0xe4   :  { %1453 = vst.msk [vmem:[%s2657_s3 + $0x4c] sm:$0xf] %vm142_vm4, %v454_v20  ;;  %v918_v24 = vpack.c.bf16 %v1862_v22, %v1862_v22  ;;  %1867 = vtanh.f32 %v1262_v21 }
  0xe5   :  { %1511 = vst.msk [vmem:[%s2657_s3 + $0xec] sm:$0xf] %vm142_vm4, %v633_v23  ;;  %1869 = vtanh.f32 %v886_v18 }
  0xe6   :  { %1607 = vst.msk [vmem:[%s2657_s3 + $0xf0] sm:$0xf] %vm142_vm4, %v918_v24  ;;  %v742_v25 = vpop.f32.mrf.mxu0 }
  0xe7   :  { %v888_v26 = vpop.f32.mrf.mxu1  ;;  %v1864_v27 = vpop.eup %1863  ;;  %v743_v29 = vadd.f32 %v2214_v5, %v742_v25 }
  0xe8   :  { %v1075_v28 = vpop.f32.mrf.mxu2  ;;  %v773_v31 = vpack.c.bf16 %v1864_v27, %v1864_v27  ;;  %v889_v34 = vadd.f32 %v2214_v5, %v888_v26 }
  0xe9   :  { %v1866_v30 = vpop.eup %1865  ;;  %v1076_v32 = vadd.f32 %v2214_v5, %v1075_v28  ;;  %v1263_v33 = vpop.f32.mrf.mxu3  ;;  %1871 = vtanh.f32 %v743_v29 }
  0xea   :  { %v1868_v35 = vpop.eup %1867  ;;  %v1108_v36 = vpack.c.bf16 %v1866_v30, %v1866_v30  ;;  %v1264_v37 = vadd.f32 %v2214_v5, %v1263_v33  ;;  %1550 = vst.msk [vmem:[%s2657_s3 + $0x54] sm:$0xf] %vm142_vm4, %v773_v31 }
  0xeb   :  { %v1870_v38 = vpop.eup %1869  ;;  %v1296_v39 = vpack.c.bf16 %v1868_v35, %v1868_v35  ;;  %1873 = vtanh.f32 %v1076_v32 }
  0xec   :  { %1654 = vst.msk [vmem:[%s2657_s3 + $0x78] sm:$0xf] %vm142_vm4, %v1108_v36  ;;  %v919_v40 = vpack.c.bf16 %v1870_v38, %v1870_v38  ;;  %1875 = vtanh.f32 %v1264_v37 }
  0xed   :  { %1712 = vst.msk [vmem:[%s2657_s3 + $0x118] sm:$0xf] %vm142_vm4, %v1296_v39  ;;  %1877 = vtanh.f32 %v889_v34 }
  0xee   :  { %1608 = vst.msk [vmem:[%s2657_s3 + $0xf4] sm:$0xf] %vm142_vm4, %v919_v40  ;;  %v744_v41 = vpop.f32.mrf.mxu0 }
  0xef   :  { %v890_v42 = vpop.f32.mrf.mxu1  ;;  %v1872_v43 = vpop.eup %1871  ;;  %v745_v45 = vadd.f32 %v2214_v5, %v744_v41 }
  0xf0   :  { %v1078_v44 = vpop.f32.mrf.mxu2  ;;  %v774_v47 = vpack.c.bf16 %v1872_v43, %v1872_v43  ;;  %v891_v50 = vadd.f32 %v2214_v5, %v890_v42 }
  0xf1   :  { %v1874_v46 = vpop.eup %1873  ;;  %v1079_v48 = vadd.f32 %v2214_v5, %v1078_v44  ;;  %v1266_v49 = vpop.f32.mrf.mxu3  ;;  %1879 = vtanh.f32 %v745_v45 }
  0xf2   :  { %v1876_v51 = vpop.eup %1875  ;;  %v1109_v52 = vpack.c.bf16 %v1874_v46, %v1874_v46  ;;  %v1267_v53 = vadd.f32 %v2214_v5, %v1266_v49  ;;  %1551 = vst.msk [vmem:[%s2657_s3 + $0x58] sm:$0xf] %vm142_vm4, %v774_v47 }
  0xf3   :  { %v1878_v54 = vpop.eup %1877  ;;  %v1297_v55 = vpack.c.bf16 %v1876_v51, %v1876_v51  ;;  %1881 = vtanh.f32 %v1079_v48 }
  0xf4   :  { %1655 = vst.msk [vmem:[%s2657_s3 + $0x7c] sm:$0xf] %vm142_vm4, %v1109_v52  ;;  %v920_v56 = vpack.c.bf16 %v1878_v54, %v1878_v54  ;;  %1883 = vtanh.f32 %v1267_v53 }
  0xf5   :  { %1713 = vst.msk [vmem:[%s2657_s3 + $0x11c] sm:$0xf] %vm142_vm4, %v1297_v55  ;;  %1885 = vtanh.f32 %v891_v50 }
  0xf6   :  { %1609 = vst.msk [vmem:[%s2657_s3 + $0xf8] sm:$0xf] %vm142_vm4, %v920_v56  ;;  %v747_v59 = vpop.f32.mrf.mxu0 }
  0xf7   :  { %v893_v60 = vpop.f32.mrf.mxu1  ;;  %v1880_v61 = vpop.eup %1879  ;;  %v748_v63 = vadd.f32 %v2214_v5, %v747_v59 }
  0xf8   :  { %v1080_v62 = vpop.f32.mrf.mxu2  ;;  %v775_v57 = vpack.c.bf16 %v1880_v61, %v1880_v61  ;;  %v894_v1 = vadd.f32 %v2214_v5, %v893_v60 }
  0xf9   :  { %v1882_v2 = vpop.eup %1881  ;;  %v1081_v0 = vadd.f32 %v2214_v5, %v1080_v62  ;;  %v1268_v58 = vpop.f32.mrf.mxu3  ;;  %1887 = vtanh.f32 %v748_v63 }
  0xfa   :  { %v1884_v3 = vpop.eup %1883  ;;  %v1110_v4 = vpack.c.bf16 %v1882_v2, %v1882_v2  ;;  %v1269_v6 = vadd.f32 %v2214_v5, %v1268_v58  ;;  %1552 = vst.msk [vmem:[%s2657_s3 + $0x5c] sm:$0xf] %vm142_vm4, %v775_v57 }
  0xfb   :  { %v1886_v7 = vpop.eup %1885  ;;  %v1298_v8 = vpack.c.bf16 %v1884_v3, %v1884_v3  ;;  %1889 = vtanh.f32 %v1081_v0 }
  0xfc   :  { %1656 = vst.msk [vmem:[%s2657_s3 + $0x80] sm:$0xf] %vm142_vm4, %v1110_v4  ;;  %v921_v9 = vpack.c.bf16 %v1886_v7, %v1886_v7  ;;  %1891 = vtanh.f32 %v1269_v6 }
  0xfd   :  { %1714 = vst.msk [vmem:[%s2657_s3 + $0x120] sm:$0xf] %vm142_vm4, %v1298_v8  ;;  %1893 = vtanh.f32 %v894_v1 }
  0xfe   :  { %1610 = vst.msk [vmem:[%s2657_s3 + $0xfc] sm:$0xf] %vm142_vm4, %v921_v9  ;;  %v749_v10 = vpop.f32.mrf.mxu0 }
  0xff   :  { %v895_v11 = vpop.f32.mrf.mxu1  ;;  %v1888_v12 = vpop.eup %1887  ;;  %v750_v14 = vadd.f32 %v2214_v5, %v749_v10 }
 0x100   :  { %v1083_v13 = vpop.f32.mrf.mxu2  ;;  %v776_v16 = vpack.c.bf16 %v1888_v12, %v1888_v12  ;;  %v896_v19 = vadd.f32 %v2214_v5, %v895_v11 }
 0x101   :  { %v1890_v15 = vpop.eup %1889  ;;  %v1084_v17 = vadd.f32 %v2214_v5, %v1083_v13  ;;  %v1271_v18 = vpop.f32.mrf.mxu3  ;;  %1895 = vtanh.f32 %v750_v14 }
 0x102   :  { %v1892_v20 = vpop.eup %1891  ;;  %v1111_v21 = vpack.c.bf16 %v1890_v15, %v1890_v15  ;;  %v1272_v22 = vadd.f32 %v2214_v5, %v1271_v18  ;;  %1553 = vst.msk [vmem:[%s2657_s3 + $0x60] sm:$0xf] %vm142_vm4, %v776_v16 }
 0x103   :  { %v1894_v23 = vpop.eup %1893  ;;  %v1299_v24 = vpack.c.bf16 %v1892_v20, %v1892_v20  ;;  %1897 = vtanh.f32 %v1084_v17 }
 0x104   :  { %1657 = vst.msk [vmem:[%s2657_s3 + $0x84] sm:$0xf] %vm142_vm4, %v1111_v21  ;;  %v922_v25 = vpack.c.bf16 %v1894_v23, %v1894_v23  ;;  %1899 = vtanh.f32 %v1272_v22 }
 0x105   :  { %1715 = vst.msk [vmem:[%s2657_s3 + $0x124] sm:$0xf] %vm142_vm4, %v1299_v24  ;;  %1901 = vtanh.f32 %v896_v19 }
 0x106   :  { %1611 = vst.msk [vmem:[%s2657_s3 + $0x100] sm:$0xf] %vm142_vm4, %v922_v25  ;;  %v752_v26 = vpop.f32.mrf.mxu0 }
 0x107   :  { %v898_v27 = vpop.f32.mrf.mxu1  ;;  %v1896_v28 = vpop.eup %1895  ;;  %v753_v30 = vadd.f32 %v2214_v5, %v752_v26 }
 0x108   :  { %v1085_v29 = vpop.f32.mrf.mxu2  ;;  %v777_v32 = vpack.c.bf16 %v1896_v28, %v1896_v28  ;;  %v899_v35 = vadd.f32 %v2214_v5, %v898_v27 }
 0x109   :  { %v1898_v31 = vpop.eup %1897  ;;  %v1086_v33 = vadd.f32 %v2214_v5, %v1085_v29  ;;  %v1273_v34 = vpop.f32.mrf.mxu3  ;;  %1903 = vtanh.f32 %v753_v30 }
 0x10a   :  { %v1900_v36 = vpop.eup %1899  ;;  %v1112_v37 = vpack.c.bf16 %v1898_v31, %v1898_v31  ;;  %v1274_v38 = vadd.f32 %v2214_v5, %v1273_v34  ;;  %1554 = vst.msk [vmem:[%s2657_s3 + $0x64] sm:$0xf] %vm142_vm4, %v777_v32 }
 0x10b   :  { %v1902_v39 = vpop.eup %1901  ;;  %v1300_v40 = vpack.c.bf16 %v1900_v36, %v1900_v36  ;;  %1905 = vtanh.f32 %v1086_v33 }
 0x10c   :  { %1658 = vst.msk [vmem:[%s2657_s3 + $0x88] sm:$0xf] %vm142_vm4, %v1112_v37  ;;  %v923_v41 = vpack.c.bf16 %v1902_v39, %v1902_v39  ;;  %1907 = vtanh.f32 %v1274_v38 }
 0x10d   :  { %1716 = vst.msk [vmem:[%s2657_s3 + $0x128] sm:$0xf] %vm142_vm4, %v1300_v40  ;;  %1909 = vtanh.f32 %v899_v35 }
 0x10e   :  { %1612 = vst.msk [vmem:[%s2657_s3 + $0x104] sm:$0xf] %vm142_vm4, %v923_v41  ;;  %v754_v42 = vpop.f32.mrf.mxu0 }
 0x10f   :  { %v900_v43 = vpop.f32.mrf.mxu1  ;;  %v1904_v44 = vpop.eup %1903  ;;  %v755_v46 = vadd.f32 %v2214_v5, %v754_v42 }
 0x110   :  { %v1088_v45 = vpop.f32.mrf.mxu2  ;;  %v778_v48 = vpack.c.bf16 %v1904_v44, %v1904_v44  ;;  %v901_v51 = vadd.f32 %v2214_v5, %v900_v43 }
 0x111   :  { %v1906_v47 = vpop.eup %1905  ;;  %v1089_v49 = vadd.f32 %v2214_v5, %v1088_v45  ;;  %v1276_v50 = vpop.f32.mrf.mxu3  ;;  %1911 = vtanh.f32 %v755_v46 }
 0x112   :  { %v1908_v52 = vpop.eup %1907  ;;  %v1113_v53 = vpack.c.bf16 %v1906_v47, %v1906_v47  ;;  %v1277_v54 = vadd.f32 %v2214_v5, %v1276_v50  ;;  %1555 = vst.msk [vmem:[%s2657_s3 + $0x68] sm:$0xf] %vm142_vm4, %v778_v48 }
 0x113   :  { %v1910_v55 = vpop.eup %1909  ;;  %v1301_v56 = vpack.c.bf16 %v1908_v52, %v1908_v52  ;;  %1913 = vtanh.f32 %v1089_v49 }
 0x114   :  { %1659 = vst.msk [vmem:[%s2657_s3 + $0x8c] sm:$0xf] %vm142_vm4, %v1113_v53  ;;  %v924_v59 = vpack.c.bf16 %v1910_v55, %v1910_v55  ;;  %1915 = vtanh.f32 %v1277_v54 }
 0x115   :  { %1717 = vst.msk [vmem:[%s2657_s3 + $0x12c] sm:$0xf] %vm142_vm4, %v1301_v56  ;;  %1917 = vtanh.f32 %v901_v51 }
 0x116   :  { %1613 = vst.msk [vmem:[%s2657_s3 + $0x108] sm:$0xf] %vm142_vm4, %v924_v59  ;;  %v757_v60 = vpop.f32.mrf.mxu0 }
 0x117   :  { %v903_v61 = vpop.f32.mrf.mxu1  ;;  %v1912_v62 = vpop.eup %1911  ;;  %v758_v2 = vadd.f32 %v2214_v5, %v757_v60 }
 0x118   :  { %v1090_v63 = vpop.f32.mrf.mxu2  ;;  %v779_v0 = vpack.c.bf16 %v1912_v62, %v1912_v62  ;;  %v904_v3 = vadd.f32 %v2214_v5, %v903_v61 }
 0x119   :  { %v1914_v57 = vpop.eup %1913  ;;  %v1091_v58 = vadd.f32 %v2214_v5, %v1090_v63  ;;  %v1278_v1 = vpop.f32.mrf.mxu3  ;;  %1919 = vtanh.f32 %v758_v2 }
 0x11a   :  { %v1916_v4 = vpop.eup %1915  ;;  %v1114_v6 = vpack.c.bf16 %v1914_v57, %v1914_v57  ;;  %v1279_v7 = vadd.f32 %v2214_v5, %v1278_v1  ;;  %1556 = vst.msk [vmem:[%s2657_s3 + $0x6c] sm:$0xf] %vm142_vm4, %v779_v0 }
 0x11b   :  { %v1918_v8 = vpop.eup %1917  ;;  %v1302_v9 = vpack.c.bf16 %v1916_v4, %v1916_v4  ;;  %1921 = vtanh.f32 %v1091_v58 }
 0x11c   :  { %1660 = vst.msk [vmem:[%s2657_s3 + $0x90] sm:$0xf] %vm142_vm4, %v1114_v6  ;;  %v925_v10 = vpack.c.bf16 %v1918_v8, %v1918_v8  ;;  %1923 = vtanh.f32 %v1279_v7 }
 0x11d   :  { %1718 = vst.msk [vmem:[%s2657_s3 + $0x130] sm:$0xf] %vm142_vm4, %v1302_v9  ;;  %1925 = vtanh.f32 %v904_v3 }
 0x11e   :  { %1614 = vst.msk [vmem:[%s2657_s3 + $0x10c] sm:$0xf] %vm142_vm4, %v925_v10  ;;  %v759_v11 = vpop.f32.mrf.mxu0 }
 0x11f   :  { %v905_v12 = vpop.f32.mrf.mxu1  ;;  %v1920_v13 = vpop.eup %1919  ;;  %v760_v15 = vadd.f32 %v2214_v5, %v759_v11 }
 0x120   :  { %v1093_v14 = vpop.f32.mrf.mxu2  ;;  %v780_v17 = vpack.c.bf16 %v1920_v13, %v1920_v13  ;;  %v906_v20 = vadd.f32 %v2214_v5, %v905_v12 }
 0x121   :  { %v1922_v16 = vpop.eup %1921  ;;  %v1094_v18 = vadd.f32 %v2214_v5, %v1093_v14  ;;  %v1281_v19 = vpop.f32.mrf.mxu3  ;;  %1927 = vtanh.f32 %v760_v15 }
 0x122   :  { %v1924_v21 = vpop.eup %1923  ;;  %v1115_v22 = vpack.c.bf16 %v1922_v16, %v1922_v16  ;;  %v1282_v23 = vadd.f32 %v2214_v5, %v1281_v19  ;;  %1557 = vst.msk [vmem:[%s2657_s3 + $0x70] sm:$0xf] %vm142_vm4, %v780_v17 }
 0x123   :  { %v1926_v24 = vpop.eup %1925  ;;  %v1303_v25 = vpack.c.bf16 %v1924_v21, %v1924_v21  ;;  %1929 = vtanh.f32 %v1094_v18 }
 0x124   :  { %1661 = vst.msk [vmem:[%s2657_s3 + $0x94] sm:$0xf] %vm142_vm4, %v1115_v22  ;;  %v926_v26 = vpack.c.bf16 %v1926_v24, %v1926_v24  ;;  %1931 = vtanh.f32 %v1282_v23 }
 0x125   :  { %1719 = vst.msk [vmem:[%s2657_s3 + $0x134] sm:$0xf] %vm142_vm4, %v1303_v25  ;;  %1933 = vtanh.f32 %v906_v20 }
 0x126   :  { %1615 = vst.msk [vmem:[%s2657_s3 + $0x110] sm:$0xf] %vm142_vm4, %v926_v26 }
 0x127   :  { %v1928_v27 = vpop.eup %1927 }
 0x128   :  { %v1095_v28 = vpop.f32.mrf.mxu2  ;;  %v781_v30 = vpack.c.bf16 %v1928_v27, %v1928_v27 }
 0x129   :  { %v1930_v29 = vpop.eup %1929  ;;  %v1096_v31 = vadd.f32 %v2214_v5, %v1095_v28  ;;  %v1283_v32 = vpop.f32.mrf.mxu3 }
 0x12a   :  { %v1932_v33 = vpop.eup %1931  ;;  %v1116_v34 = vpack.c.bf16 %v1930_v29, %v1930_v29  ;;  %v1284_v35 = vadd.f32 %v2214_v5, %v1283_v32  ;;  %1558 = vst.msk [vmem:[%s2657_s3 + $0x74] sm:$0xf] %vm142_vm4, %v781_v30 }
 0x12b   :  { %v1934_v36 = vpop.eup %1933  ;;  %v1304_v37 = vpack.c.bf16 %v1932_v33, %v1932_v33  ;;  %1935 = vtanh.f32 %v1096_v31 }
 0x12c   :  { %1662 = vst.msk [vmem:[%s2657_s3 + $0x98] sm:$0xf] %vm142_vm4, %v1116_v34  ;;  %v927_v38 = vpack.c.bf16 %v1934_v36, %v1934_v36  ;;  %1937 = vtanh.f32 %v1284_v35 }
 0x12d   :  { %1720 = vst.msk [vmem:[%s2657_s3 + $0x138] sm:$0xf] %vm142_vm4, %v1304_v37 }
 0x12e   :  { %1616 = vst.msk [vmem:[%s2657_s3 + $0x114] sm:$0xf] %vm142_vm4, %v927_v38 }
 0x131   :  { %v1936_v5 = vpop.eup %1935 }
 0x132   :  { %v1938_v39 = vpop.eup %1937  ;;  %v1117_v40 = vpack.c.bf16 %v1936_v5, %v1936_v5 }
 0x133   :  { %v1305_v41 = vpack.c.bf16 %v1938_v39, %v1938_v39 }
 0x134   :  { %1663 = vst.msk [vmem:[%s2657_s3 + $0x9c] sm:$0xf] %vm142_vm4, %v1117_v40 }
 0x135   :  { %1721 = vst.msk [vmem:[%s2657_s3 + $0x13c] sm:$0xf] %vm142_vm4, %v1305_v41 }

</bundles_post_ra>
